<compile_context>
chip_gen: v5e
topology: v5e:2x2
jax: 0.10.0
libtpu: 0.0.40
codegen_flags: <defaults>
</compile_context>

<pallas_src>
import numpy as np
import jax
import jax.numpy as jnp
from jax.experimental import pallas as pl
from jax.experimental.pallas import tpu as pltpu


# ---------------------------------------------------------------------------
# Pallas kernel
# ---------------------------------------------------------------------------
def conve_kernel(sr_ref, o_ref, e_ref, wfc_ref, bfc_ref, bn1_ref, out_ref):
    # Conv2d(1, OC, 3x3, valid) + bias as ONE lane-dense MXU matmul:
    #   conv[b, p*OC + oc] = [s | r | 1][b, :] @ E[:, p*OC + oc]
    conv = jnp.dot(sr_ref[...], e_ref[...], preferred_element_type=jnp.float32)
    act = jnp.maximum(conv, 0.0).astype(jnp.bfloat16)        # ReLU, bf16 for MXU

    # Linear(F, D) with eval-mode BatchNorm2d (post-ReLU) folded into weight/bias.
    h = jnp.dot(act, wfc_ref[...], preferred_element_type=jnp.float32)
    h = jnp.maximum(h + bfc_ref[...], 0.0)                    # bias + ReLU (f32)

    # BatchNorm1d (eval) affine in f32.
    h = h * bn1_ref[0:1, :] + bn1_ref[1:2, :]

    # scores[b] = sum_d h[b, d] * embed_o[b, d]  -> lane-dense (1, 1, TB) store.
    score = jnp.sum(h * o_ref[...].astype(jnp.float32), axis=1)
    out_ref[...] = score[None, None, :]


def _const_spec(shape, single_buffer):
    """BlockSpec for a grid-invariant (weight-like) operand."""
    idx = lambda *_: (0,) * len(shape)
    if single_buffer:
        # Invariant block index -> double-buffering only burns VMEM.
        return pl.BlockSpec(shape, idx, pipeline_mode=pl.Buffered(1))
    return pl.BlockSpec(shape, idx)


# ---------------------------------------------------------------------------
# Wrapper
# ---------------------------------------------------------------------------
def conve_forward(s_idx, r_idx, o_idx, params, *, block_b=256):
    e_sr = params["e_sr"]            # (2D+1, F) bf16, conv bias in last row
    fc_w = params["fc_w_folded"]     # (F, D)    bf16, BN2d folded, reordered
    fc_b = params["fc_b_folded"]     # (1, D)    f32
    bn1 = params["bn1_affine"]       # (2, D)    f32 [scale; shift]
    K1, F = e_sr.shape
    D = fc_w.shape[1]

    # Embedding gather is glue (plain JAX take); bf16 tiles halve the HBM trip.
    s = params["embed_e"][s_idx].astype(jnp.bfloat16)
    r = params["embed_r"][r_idx].astype(jnp.bfloat16)
    o = params["embed_e"][o_idx].astype(jnp.bfloat16)
    B = s.shape[0]
    ones = jnp.ones((B, 1), jnp.bfloat16)          # picks up conv bias row of E
    sr = jnp.concatenate([s, r, ones], axis=1)     # (B, 2D+1)

    # Batch tiling: pad B up to a multiple of the (MXU-aligned) tile so the
    # grid always has ceil(B/TB) steps (DMA/compute overlap, megacore sharding).
    # v5e: multiples of 128 suffice; v6e/v7x prefer multiples of 256.
    TB = int(block_b)
    G = -(-B // TB)
    B_pad = G * TB
    if B_pad != B:
        sr = jnp.pad(sr, ((0, B_pad - B), (0, 0)))
        o = jnp.pad(o, ((0, B_pad - B), (0, 0)))

    # Explicit VMEM budget (bytes): single-buffered weights + double-buffered
    # input tiles + f32/bf16 activation temporaries, with 50% headroom.
    weight_bytes = K1 * F * 2 + F * D * 2 + D * 4 + 2 * D * 4
    tile_bytes = TB * K1 * 2 + TB * D * 2 + TB * 4
    act_bytes = TB * F * 4 + TB * F * 2 + 4 * TB * D * 4
    vmem_limit = int(min(max(1.5 * (weight_bytes + 2 * tile_bytes + act_bytes),
                             32 * 1024 * 1024), 60 * 1024 * 1024))

    cost = pl.CostEstimate(
        flops=2 * B_pad * (K1 * F + F * D),
        transcendentals=0,
        bytes_accessed=int(weight_bytes + B_pad * K1 * 2 + B_pad * D * 2
                           + B_pad * 4),
    )

    def run(single_buffer_weights):
        return jax.block_until_ready(pl.pallas_call(
            conve_kernel,
            grid=(G,),
            in_specs=[
                pl.BlockSpec((TB, K1), lambda i: (i, 0)),   # [s | r | 1] tile
                pl.BlockSpec((TB, D), lambda i: (i, 0)),    # o embedding tile
                _const_spec((K1, F), single_buffer_weights),  # merged conv matrix
                _const_spec((F, D), single_buffer_weights),   # fc weight (folded)
                _const_spec((1, D), single_buffer_weights),   # fc bias   (folded)
                _const_spec((2, D), single_buffer_weights),   # BN1d affine
            ],
            out_specs=pl.BlockSpec((1, 1, TB), lambda i: (i, 0, 0)),
            out_shape=jax.ShapeDtypeStruct((G, 1, TB), jnp.float32),
            compiler_params=pltpu.CompilerParams(
                dimension_semantics=("parallel",),
                vmem_limit_bytes=vmem_limit),
            cost_estimate=cost,
        )(sr, o, e_sr, fc_w, fc_b, bn1))

    try:
        out = run(True)
    except Exception:
        # pipeline_mode=Buffered(1) not supported by this build of pallas_call:
        # fall back to default (double-buffered) invariant weights.
        out = run(False)

    return out.reshape(B_pad)[:B]


# ---------------------------------------------------------------------------
# Host-side parameter preparation (folding + layout + dtype)
# ---------------------------------------------------------------------------
def prepare_params(raw, eps=1e-5):
    D = int(raw["hidden_dim"])
    W = int(raw["embedding_size_w"])
    H = D // W
    conv_w = np.asarray(raw["conv_w"], np.float32)          # (OC, 1, K, K) OIHW
    OC, _, K, _ = conv_w.shape
    Ph, Pw = 2 * W - K + 1, H - K + 1
    P, F = Ph * Pw, Ph * Pw * OC

    # Merged expanded conv matrix: conv_flat = [s | r | 1] @ E, columns f=p*OC+oc,
    # with the conv bias folded into the last ("ones") row.
    E = np.zeros((2 * D + 1, P, OC), np.float32)
    for i in range(Ph):
        for j in range(Pw):
            p = i * Pw + j
            for di in range(K):
                for dj in range(K):
                    E[(i + di) * H + (j + dj), p, :] += conv_w[:, 0, di, dj]
    E[2 * D, :, :] = np.asarray(raw["conv_b"], np.float32)[None, :]
    E = E.reshape(2 * D + 1, F)

    # Fold eval-mode BatchNorm2d (applied after ReLU) into the Linear layer and
    # reorder its columns from torch flatten order (oc*P + p) to (p*OC + oc).
    s2 = np.asarray(raw["bn2_gamma"], np.float32) / np.sqrt(
        np.asarray(raw["bn2_var"], np.float32) + eps)
    t2 = (np.asarray(raw["bn2_beta"], np.float32)
          - np.asarray(raw["bn2_mean"], np.float32) * s2)
    W1 = np.asarray(raw["fc_w"], np.float32).reshape(D, OC, P)   # (Dh, OC, P)
    b1 = np.asarray(raw["fc_b"], np.float32)
    fc_w_folded = np.transpose(W1 * s2[None, :, None], (2, 1, 0)).reshape(F, D)
    fc_b_folded = (b1 + W1.sum(axis=2) @ t2).reshape(1, D)

    # Eval-mode BatchNorm1d affine (applied in-kernel after the second ReLU).
    s1 = np.asarray(raw["bn1_gamma"], np.float32) / np.sqrt(
        np.asarray(raw["bn1_var"], np.float32) + eps)
    t1 = (np.asarray(raw["bn1_beta"], np.float32)
          - np.asarray(raw["bn1_mean"], np.float32) * s1)
    bn1_affine = np.stack([s1, t1]).astype(np.float32)           # (2, Dh)

    return dict(
        embed_e=jnp.asarray(raw["embed_e"], jnp.float32),
        embed_r=jnp.asarray(raw["embed_r"], jnp.float32),
        e_sr=jnp.asarray(E, jnp.bfloat16),                 # bf16 MXU operand
        fc_w_folded=jnp.asarray(fc_w_folded, jnp.bfloat16),
        fc_b_folded=jnp.asarray(fc_b_folded, jnp.float32),
        bn1_affine=jnp.asarray(bn1_affine, jnp.float32),
    )


# ---------------------------------------------------------------------------
# Pure-JAX reference (mirrors the PyTorch eval-mode graph, unfolded f32 params)
# ---------------------------------------------------------------------------
def ref_forward(s_idx, r_idx, o_idx, raw, eps=1e-5):
    hp = jax.lax.Precision.HIGHEST
    es = raw["embed_e"][s_idx]
    er = raw["embed_r"][r_idx]
    eo = raw["embed_e"][o_idx]
    B, D = es.shape
    W = int(raw["embedding_size_w"])
    H = D // W
    x = jnp.concatenate([es.reshape(B, W, H), er.reshape(B, W, H)], axis=1)[:, None]
    y = jax.lax.conv_general_dilated(
        x, raw["conv_w"], (1, 1), "VALID",
        dimension_numbers=("NCHW", "OIHW", "NCHW"), precision=hp)
    y = y + raw["conv_b"][None, :, None, None]
    y = jnp.maximum(y, 0.0)                                        # ReLU
    s2 = raw["bn2_gamma"] / jnp.sqrt(raw["bn2_var"] + eps)
    t2 = raw["bn2_beta"] - raw["bn2_mean"] * s2
    y = y * s2[None, :, None, None] + t2[None, :, None, None]      # BatchNorm2d
    flat = y.reshape(B, -1)                                        # Flatten
    h = jnp.dot(flat, raw["fc_w"].T, precision=hp) + raw["fc_b"]   # Linear
    h = jnp.maximum(h, 0.0)                                        # ReLU
    s1 = raw["bn1_gamma"] / jnp.sqrt(raw["bn1_var"] + eps)
    t1 = raw["bn1_beta"] - raw["bn1_mean"] * s1
    h = h * s1 + t1                                                # BatchNorm1d
    return jnp.sum(h * eo, axis=-1)


# ---------------------------------------------------------------------------
if __name__ == "__main__":
    num_nodes, num_relations = 50, 12
    hidden_dim, emb_w, conv_channels, ksize = 40, 10, 32, 3
    B = 300          # not a multiple of block_b on purpose: exercises padding

    emb_h = hidden_dim // emb_w                                   # 4
    P = (2 * emb_w - ksize + 1) * (emb_h - ksize + 1)             # 36
    F = P * conv_channels                                         # 1152

    key = jax.random.PRNGKey(0)
    k = jax.random.split(key, 17)

    def nrm(kk, shape, s=0.1):
        return s * jax.random.normal(kk, shape, jnp.float32)

    raw = dict(
        hidden_dim=hidden_dim, embedding_size_w=emb_w,
        embed_e=nrm(k[0], (num_nodes, hidden_dim), 1.0),
        embed_r=nrm(k[1], (num_relations, hidden_dim), 1.0),
        conv_w=nrm(k[2], (conv_channels, 1, ksize, ksize), 0.3),
        conv_b=nrm(k[3], (conv_channels,), 0.1),
        bn2_gamma=1.0 + nrm(k[4], (conv_channels,), 0.1),
        bn2_beta=nrm(k[5], (conv_channels,), 0.1),
        bn2_mean=nrm(k[6], (conv_channels,), 0.1),
        bn2_var=0.5 + jax.random.uniform(k[7], (conv_channels,), jnp.float32),
        fc_w=nrm(k[8], (hidden_dim, F), 0.02),
        fc_b=nrm(k[9], (hidden_dim,), 0.1),
        bn1_gamma=1.0 + nrm(k[10], (hidden_dim,), 0.1),
        bn1_beta=nrm(k[11], (hidden_dim,), 0.1),
        bn1_mean=nrm(k[12], (hidden_dim,), 0.1),
        bn1_var=0.5 + jax.random.uniform(k[13], (hidden_dim,), jnp.float32),
    )
    s_idx = jax.random.randint(k[14], (B,), 0, num_nodes)
    r_idx = jax.random.randint(k[15], (B,), 0, num_relations)
    o_idx = jax.random.randint(k[16], (B,), 0, num_nodes)

    params = prepare_params(raw)
    scores = conve_forward(s_idx, r_idx, o_idx, params, block_b=256)  # grid=(2,)
    scores = jax.block_until_ready(scores)

    ref = jax.block_until_ready(ref_forward(s_idx, r_idx, o_idx, raw))
    assert scores.shape == (B,)
    err = float(np.max(np.abs(np.asarray(scores) - np.asarray(ref))))
    # bf16 MXU operands vs. a pure-f32 reference: ~1% relative error expected.
    assert np.allclose(np.asarray(scores), np.asarray(ref),
                       rtol=5e-2, atol=5e-2), err
    print("KERNEL_OK")
</pallas_src>

<mosaic_0001>
module attributes {stable_mosaic.version = 11 : i64} {
  func.func @conve_kernel(%arg0: i32, %arg1: memref<256x81xbf16, #tpu.memory_space<vmem>>, %arg2: memref<256x40xbf16, #tpu.memory_space<vmem>>, %arg3: memref<81x1152xbf16, #tpu.memory_space<vmem>>, %arg4: memref<1152x40xbf16, #tpu.memory_space<vmem>>, %arg5: memref<1x40xf32, #tpu.memory_space<vmem>>, %arg6: memref<2x40xf32, #tpu.memory_space<vmem>>, %arg7: memref<1x1x256xf32, #tpu.memory_space<vmem>>) attributes {dimension_semantics = [#tpu.dimension_semantics<parallel>], iteration_bounds = array<i64: 2>, scalar_prefetch = 0 : i64, scratch_operands = 0 : i64, tpu.core_type = #tpu.core_type<tc>, window_params = [{transform_indices = @transform_0, window_bounds = array<i64: 256, 81>}, {transform_indices = @transform_1, window_bounds = array<i64: 256, 40>}, {pipeline_mode = #tpu.pipeline_mode<synchronous>, transform_indices = @transform_2, window_bounds = array<i64: 81, 1152>}, {pipeline_mode = #tpu.pipeline_mode<synchronous>, transform_indices = @transform_3, window_bounds = array<i64: 1152, 40>}, {pipeline_mode = #tpu.pipeline_mode<synchronous>, transform_indices = @transform_4, window_bounds = array<i64: 1, 40>}, {pipeline_mode = #tpu.pipeline_mode<synchronous>, transform_indices = @transform_5, window_bounds = array<i64: 2, 40>}, {transform_indices = @transform_6, window_bounds = array<i64: 1, 1, 256>}]} {
    %c0 = arith.constant 0 : index
    %c0_0 = arith.constant 0 : index
    %0 = vector.load %arg1[%c0, %c0_0] : memref<256x81xbf16, #tpu.memory_space<vmem>>, vector<256x81xbf16>
    %c0_1 = arith.constant 0 : index
    %c0_2 = arith.constant 0 : index
    %1 = vector.load %arg3[%c0_1, %c0_2] : memref<81x1152xbf16, #tpu.memory_space<vmem>>, vector<81x1152xbf16>
    %cst = arith.constant dense<0.000000e+00> : vector<256x1152xf32>
    %2 = tpu.matmul %0, %1, %cst {dimension_numbers = #tpu.dot_dimension_numbers<[1], [0], [0], [1], [0, 0, 1, 1], [], []>} : vector<256x81xbf16>, vector<81x1152xbf16>, vector<256x1152xf32> -> vector<256x1152xf32>
    %cst_3 = arith.constant 0.000000e+00 : f32
    %3 = vector.broadcast %cst_3 : f32 to vector<256x1152xf32>
    %4 = arith.maximumf %2, %3 : vector<256x1152xf32>
    %5 = arith.truncf %4 : vector<256x1152xf32> to vector<256x1152xbf16>
    %c0_4 = arith.constant 0 : index
    %c0_5 = arith.constant 0 : index
    %6 = vector.load %arg4[%c0_4, %c0_5] : memref<1152x40xbf16, #tpu.memory_space<vmem>>, vector<1152x40xbf16>
    %cst_6 = arith.constant dense<0.000000e+00> : vector<256x40xf32>
    %7 = tpu.matmul %5, %6, %cst_6 {dimension_numbers = #tpu.dot_dimension_numbers<[1], [0], [0], [1], [0, 0, 1, 1], [], []>} : vector<256x1152xbf16>, vector<1152x40xbf16>, vector<256x40xf32> -> vector<256x40xf32>
    %c0_7 = arith.constant 0 : index
    %c0_8 = arith.constant 0 : index
    %8 = vector.load %arg5[%c0_7, %c0_8] : memref<1x40xf32, #tpu.memory_space<vmem>>, vector<1x40xf32>
    %9 = vector.broadcast %8 : vector<1x40xf32> to vector<256x40xf32>
    %10 = arith.addf %7, %9 : vector<256x40xf32>
    %cst_9 = arith.constant 0.000000e+00 : f32
    %11 = vector.broadcast %cst_9 : f32 to vector<256x40xf32>
    %12 = arith.maximumf %10, %11 : vector<256x40xf32>
    %c0_10 = arith.constant 0 : index
    %c0_11 = arith.constant 0 : index
    %13 = vector.load %arg6[%c0_10, %c0_11] : memref<2x40xf32, #tpu.memory_space<vmem>>, vector<1x40xf32>
    %14 = vector.broadcast %13 : vector<1x40xf32> to vector<256x40xf32>
    %15 = arith.mulf %12, %14 : vector<256x40xf32>
    %c1 = arith.constant 1 : index
    %c0_12 = arith.constant 0 : index
    %16 = vector.load %arg6[%c1, %c0_12] : memref<2x40xf32, #tpu.memory_space<vmem>>, vector<1x40xf32>
    %17 = vector.broadcast %16 : vector<1x40xf32> to vector<256x40xf32>
    %18 = arith.addf %15, %17 : vector<256x40xf32>
    %c0_13 = arith.constant 0 : index
    %c0_14 = arith.constant 0 : index
    %19 = vector.load %arg2[%c0_13, %c0_14] : memref<256x40xbf16, #tpu.memory_space<vmem>>, vector<256x40xbf16>
    %20 = arith.extf %19 : vector<256x40xbf16> to vector<256x40xf32>
    %21 = arith.mulf %18, %20 : vector<256x40xf32>
    %cst_15 = arith.constant dense<0.000000e+00> : vector<256xf32>
    %22 = vector.multi_reduction <add>, %21, %cst_15 [1] : vector<256x40xf32> to vector<256xf32>
    %23 = vector.shape_cast %22 : vector<256xf32> to vector<1x1x256xf32>
    %c0_16 = arith.constant 0 : index
    %c0_17 = arith.constant 0 : index
    %c0_18 = arith.constant 0 : index
    %24 = vector.load %arg7[%c0_16, %c0_17, %c0_18] : memref<1x1x256xf32, #tpu.memory_space<vmem>>, vector<1x1x256xf32>
    tpu.vector_store %arg7[%c0_16, %c0_17, %c0_18], %23 {strides = array<i32>} : memref<1x1x256xf32, #tpu.memory_space<vmem>>, vector<1x1x256xf32>,
    return
  }
  func.func @transform_0(%arg0: i32) -> (i32, i32) {
    %c0_i32 = arith.constant 0 : i32
    %c0_i32_0 = arith.constant 0 : i32
    return %arg0, %c0_i32 : i32, i32
  }
  func.func @transform_1(%arg0: i32) -> (i32, i32) {
    %c0_i32 = arith.constant 0 : i32
    %c0_i32_0 = arith.constant 0 : i32
    return %arg0, %c0_i32 : i32, i32
  }
  func.func @transform_2(%arg0: i32) -> (i32, i32) {
    %c0_i32 = arith.constant 0 : i32
    %c0_i32_0 = arith.constant 0 : i32
    %c0_i32_1 = arith.constant 0 : i32
    return %c0_i32, %c0_i32_0 : i32, i32
  }
  func.func @transform_3(%arg0: i32) -> (i32, i32) {
    %c0_i32 = arith.constant 0 : i32
    %c0_i32_0 = arith.constant 0 : i32
    %c0_i32_1 = arith.constant 0 : i32
    return %c0_i32, %c0_i32_0 : i32, i32
  }
  func.func @transform_4(%arg0: i32) -> (i32, i32) {
    %c0_i32 = arith.constant 0 : i32
    %c0_i32_0 = arith.constant 0 : i32
    %c0_i32_1 = arith.constant 0 : i32
    return %c0_i32, %c0_i32_0 : i32, i32
  }
  func.func @transform_5(%arg0: i32) -> (i32, i32) {
    %c0_i32 = arith.constant 0 : i32
    %c0_i32_0 = arith.constant 0 : i32
    %c0_i32_1 = arith.constant 0 : i32
    return %c0_i32, %c0_i32_0 : i32, i32
  }
  func.func @transform_6(%arg0: i32) -> (i32, i32, i32) {
    %c0_i32 = arith.constant 0 : i32
    %c0_i32_0 = arith.constant 0 : i32
    %c0_i32_1 = arith.constant 0 : i32
    return %arg0, %c0_i32, %c0_i32_0 : i32, i32, i32
  }
}

module attributes {stable_mosaic.version = 11 : i64} {
  func.func @conve_kernel(%arg0: i32, %arg1: memref<256x81xbf16, #tpu.memory_space<vmem>>, %arg2: memref<256x40xbf16, #tpu.memory_space<vmem>>, %arg3: memref<81x1152xbf16, #tpu.memory_space<vmem>>, %arg4: memref<1152x40xbf16, #tpu.memory_space<vmem>>, %arg5: memref<1x40xf32, #tpu.memory_space<vmem>>, %arg6: memref<2x40xf32, #tpu.memory_space<vmem>>, %arg7: memref<1x1x256xf32, #tpu.memory_space<vmem>>) attributes {dimension_semantics = [#tpu.dimension_semantics<parallel>], iteration_bounds = array<i64: 2>, scalar_prefetch = 0 : i64, scratch_operands = 0 : i64, tpu.core_type = #tpu.core_type<tc>, window_params = [{transform_indices = @transform_0, window_bounds = array<i64: 256, 81>}, {transform_indices = @transform_1, window_bounds = array<i64: 256, 40>}, {pipeline_mode = #tpu.pipeline_mode<synchronous>, transform_indices = @transform_2, window_bounds = array<i64: 81, 1152>}, {pipeline_mode = #tpu.pipeline_mode<synchronous>, transform_indices = @transform_3, window_bounds = array<i64: 1152, 40>}, {pipeline_mode = #tpu.pipeline_mode<synchronous>, transform_indices = @transform_4, window_bounds = array<i64: 1, 40>}, {pipeline_mode = #tpu.pipeline_mode<synchronous>, transform_indices = @transform_5, window_bounds = array<i64: 2, 40>}, {transform_indices = @transform_6, window_bounds = array<i64: 1, 1, 256>}]} {
    %c0 = arith.constant 0 : index
    %c0_0 = arith.constant 0 : index
    %0 = vector.load %arg1[%c0, %c0_0] : memref<256x81xbf16, #tpu.memory_space<vmem>>, vector<256x81xbf16>
    %c0_1 = arith.constant 0 : index
    %c0_2 = arith.constant 0 : index
    %1 = vector.load %arg3[%c0_1, %c0_2] : memref<81x1152xbf16, #tpu.memory_space<vmem>>, vector<81x1152xbf16>
    %cst = arith.constant dense<0.000000e+00> : vector<256x1152xf32>
    %2 = tpu.matmul %0, %1, %cst {dimension_numbers = #tpu.dot_dimension_numbers<[1], [0], [0], [1], [0, 0, 1, 1], [], []>} : vector<256x81xbf16>, vector<81x1152xbf16>, vector<256x1152xf32> -> vector<256x1152xf32>
    %cst_3 = arith.constant 0.000000e+00 : f32
    %3 = vector.broadcast %cst_3 : f32 to vector<256x1152xf32>
    %4 = arith.maximumf %2, %3 : vector<256x1152xf32>
    %5 = arith.truncf %4 : vector<256x1152xf32> to vector<256x1152xbf16>
    %c0_4 = arith.constant 0 : index
    %c0_5 = arith.constant 0 : index
    %6 = vector.load %arg4[%c0_4, %c0_5] : memref<1152x40xbf16, #tpu.memory_space<vmem>>, vector<1152x40xbf16>
    %cst_6 = arith.constant dense<0.000000e+00> : vector<256x40xf32>
    %7 = tpu.matmul %5, %6, %cst_6 {dimension_numbers = #tpu.dot_dimension_numbers<[1], [0], [0], [1], [0, 0, 1, 1], [], []>} : vector<256x1152xbf16>, vector<1152x40xbf16>, vector<256x40xf32> -> vector<256x40xf32>
    %c0_7 = arith.constant 0 : index
    %c0_8 = arith.constant 0 : index
    %8 = vector.load %arg5[%c0_7, %c0_8] : memref<1x40xf32, #tpu.memory_space<vmem>>, vector<1x40xf32>
    %9 = vector.broadcast %8 : vector<1x40xf32> to vector<256x40xf32>
    %10 = arith.addf %7, %9 : vector<256x40xf32>
    %cst_9 = arith.constant 0.000000e+00 : f32
    %11 = vector.broadcast %cst_9 : f32 to vector<256x40xf32>
    %12 = arith.maximumf %10, %11 : vector<256x40xf32>
    %c0_10 = arith.constant 0 : index
    %c0_11 = arith.constant 0 : index
    %13 = vector.load %arg6[%c0_10, %c0_11] : memref<2x40xf32, #tpu.memory_space<vmem>>, vector<1x40xf32>
    %14 = vector.broadcast %13 : vector<1x40xf32> to vector<256x40xf32>
    %15 = arith.mulf %12, %14 : vector<256x40xf32>
    %c1 = arith.constant 1 : index
    %c0_12 = arith.constant 0 : index
    %16 = vector.load %arg6[%c1, %c0_12] : memref<2x40xf32, #tpu.memory_space<vmem>>, vector<1x40xf32>
    %17 = vector.broadcast %16 : vector<1x40xf32> to vector<256x40xf32>
    %18 = arith.addf %15, %17 : vector<256x40xf32>
    %c0_13 = arith.constant 0 : index
    %c0_14 = arith.constant 0 : index
    %19 = vector.load %arg2[%c0_13, %c0_14] : memref<256x40xbf16, #tpu.memory_space<vmem>>, vector<256x40xbf16>
    %20 = arith.extf %19 : vector<256x40xbf16> to vector<256x40xf32>
    %21 = arith.mulf %18, %20 : vector<256x40xf32>
    %cst_15 = arith.constant dense<0.000000e+00> : vector<256xf32>
    %22 = vector.multi_reduction <add>, %21, %cst_15 [1] : vector<256x40xf32> to vector<256xf32>
    %23 = vector.shape_cast %22 : vector<256xf32> to vector<1x1x256xf32>
    %c0_16 = arith.constant 0 : index
    %c0_17 = arith.constant 0 : index
    %c0_18 = arith.constant 0 : index
    %24 = vector.load %arg7[%c0_16, %c0_17, %c0_18] : memref<1x1x256xf32, #tpu.memory_space<vmem>>, vector<1x1x256xf32>
    tpu.vector_store %arg7[%c0_16, %c0_17, %c0_18], %23 {strides = array<i32>} : memref<1x1x256xf32, #tpu.memory_space<vmem>>, vector<1x1x256xf32>,
    return
  }
  func.func @transform_0(%arg0: i32) -> (i32, i32) {
    %c0_i32 = arith.constant 0 : i32
    %c0_i32_0 = arith.constant 0 : i32
    return %arg0, %c0_i32 : i32, i32
  }
  func.func @transform_1(%arg0: i32) -> (i32, i32) {
    %c0_i32 = arith.constant 0 : i32
    %c0_i32_0 = arith.constant 0 : i32
    return %arg0, %c0_i32 : i32, i32
  }
  func.func @transform_2(%arg0: i32) -> (i32, i32) {
    %c0_i32 = arith.constant 0 : i32
    %c0_i32_0 = arith.constant 0 : i32
    %c0_i32_1 = arith.constant 0 : i32
    return %c0_i32, %c0_i32_0 : i32, i32
  }
  func.func @transform_3(%arg0: i32) -> (i32, i32) {
    %c0_i32 = arith.constant 0 : i32
    %c0_i32_0 = arith.constant 0 : i32
    %c0_i32_1 = arith.constant 0 : i32
    return %c0_i32, %c0_i32_0 : i32, i32
  }
  func.func @transform_4(%arg0: i32) -> (i32, i32) {
    %c0_i32 = arith.constant 0 : i32
    %c0_i32_0 = arith.constant 0 : i32
    %c0_i32_1 = arith.constant 0 : i32
    return %c0_i32, %c0_i32_0 : i32, i32
  }
  func.func @transform_5(%arg0: i32) -> (i32, i32) {
    %c0_i32 = arith.constant 0 : i32
    %c0_i32_0 = arith.constant 0 : i32
    %c0_i32_1 = arith.constant 0 : i32
    return %c0_i32, %c0_i32_0 : i32, i32
  }
  func.func @transform_6(%arg0: i32) -> (i32, i32, i32) {
    %c0_i32 = arith.constant 0 : i32
    %c0_i32_0 = arith.constant 0 : i32
    %c0_i32_1 = arith.constant 0 : i32
    return %arg0, %c0_i32, %c0_i32_0 : i32, i32, i32
  }
}

</mosaic_0001>

<bundles_post_ra>
// kernel: tpu_custom_call.1
= control target key start
LH: loop header
LB: loop body
LE: loop exit
PB: predicated region body
PF: predicated region fallthrough
CT: control target
= control target key end

     0   :  { %11 = vsyncpa [#allocation3], 0  ;;  %s7612_s0 = inlined_call_operand.vmem [shape: bf16[512,81], index: 0, kind: input, shape index: {}]   ;;  %s7613_s1 = inlined_call_operand.vmem [shape: bf16[512,40], index: 1, kind: input, shape index: {}]   ;;  %s7614_s2 = inlined_call_operand.vmem [shape: bf16[81,1152], index: 2, kind: input, shape index: {}]   ;;  %s7615_s3 = inlined_call_operand.vmem [shape: bf16[1152,40], index: 3, kind: input, shape index: {}]   ;;  %s7616_s4 = inlined_call_operand.vmem [shape: f32[1,40], index: 4, kind: input, shape index: {}]   ;;  %s7617_s5 = inlined_call_operand.vmem [shape: f32[2,40], index: 5, kind: input, shape index: {}]   ;;  %s7618_s6 = inlined_call_operand.hbm [shape: f32[2,1,256], index: 6, kind: output, shape index: {}]  }
   0x1   :  { %13 = vsyncpa [#allocation3 + $0x1], 0  ;;  %s5626_s21 = smov 0   ;;  %s5628_s22 = smov 0  }
   0x2   :  { %s5630_s23 = smov 0   ;;  %s5632_s24 = smov 0  }
   0x3 LB: > { %s5647_s25 = sadd.s32 4294967295, %s5588_s24   ;;  %s4549_s26 = sadd.s32 4294967294, %s5588_s24   ;;  %s5588_s24 = sphi %s5632_s24, %s7798_s24   ;;  %s5584_s23 = sphi %s5630_s23, %s7797_s23   ;;  %s5580_s22 = sphi %s5628_s22, %s7796_s22   ;;  %s5576_s21 = sphi %s5626_s21, %s7795_s21  }
   0x4   : > { %s5651_s27 = sadd.s32 1, %s5588_s24   ;;  %s162_s28 = sadd.s32 1, %s5584_s23 }
   0x5   : > { %s159_s29 = ssub.s32 %s5588_s24, %s5651_s27  ;;  %p172_p0 = scmp.ne.s32.totalorder %s5584_s23, %s5580_s22 }
   0x6   : > { %p160_p1 = scmp.eq.s32.totalorder %s159_s29, 0  ;;  %p173_p2 = scmp.eq.s32.totalorder %s5647_s25, 1 }
   0x7   : > { %p178_p3 = scmp.ne.s32.totalorder %s5580_s22, %s5576_s21  ;;  %p179_p4 = scmp.eq.s32.totalorder %s4549_s26, 1 }
   0x8   : > { %s5662_s30 = scalar_select %p160_p1, %s5584_s23, %s162_s28  }
   0x9   : > { %p5664_p5 = por %p173_p2, %p172_p0  ;;  %p5668_p6 = por %p179_p4, %p178_p3 }
   0xa   : > { %p4552_p7 = scmp.ge.s32.totalorder %s5588_s24, 1  ;;  %p227_p8 = scmp.lt.s32.totalorder %s5588_s24, 3 }
   0xc   : > { %p228_p9 = pnand %p4552_p7, %p227_p8 }
   0xe   : > { %231 = sbr.rel (%p228_p9) target bundleno = 1827 (0x723), region = 44 }
  0x13   : > { %v357_v0 = vld [vmem:[%s7614_s2 + $0x168] sm:$0x11]  ;;  %vm744_vm0 = vcmask 1040384   ;;  %v5590_v3 = vmov 0   ;;  %v4768_v7 = vld [vmem:[%s7614_s2 + $0x120] sm:$0xf] }
  0x14   : > { %v587_v1 = vunpack.c.l.b16 %v357_v0  ;;  %v588_v2 = vunpack.c.h.b16 %v357_v0  ;;  %5502 = vset.pattern.permute.xlu2 %v5590_v3  ;;  %5503 = vset.pattern.permute.xlu0 %v5590_v3  ;;  %v5678_v4 = vsel %vm744_vm0, 65535, %v5590_v3  ;;  %v5294_v8 = vld [vmem:[%s7614_s2 + $0x140] sm:$0xf0]  ;;  %v4770_v12 = vld [vmem:[%s7614_s2 + $0x144] sm:$0xf0]  ;;  %s4554_s26 = sshll.u32 %s5647_s25, 5 }
  0x15   : > { %5504 = vset.pattern.permute.xlu1 %v5590_v3  ;;  %v5290_v11 = vld [vmem:[%s7614_s2 + $0x124] sm:$0xf]  ;;  %v4769_v13 = vor.u32 %v5294_v8, %v4768_v7  ;;  %v4732_v14 = vld [vmem:[%s7614_s2 + $0xd8] sm:$0xf]  ;;  %v5285_v16 = vld [vmem:[%s7614_s2 + $0xf8] sm:$0xf0] }
  0x16   : > { %v641_v5 = vpack.c.b16 %v587_v1, %v587_v1  ;;  %v642_v6 = vpack.c.b16 %v588_v2, %v588_v2  ;;  %v4773_v15 = vor.u32 %v5290_v11, %v4770_v12  ;;  %v5281_v17 = vld [vmem:[%s7614_s2 + $0xdc] sm:$0xf]  ;;  %v4734_v18 = vld [vmem:[%s7614_s2 + $0xfc] sm:$0xf0]  ;;  %v4733_v19 = vor.u32 %v5285_v16, %v4732_v14  ;;  %p263_p10 = scmp.lt.s32.totalorder %s4554_s26, 63  ;;  %s259_s9 = sand.u32 1, %s5580_s22  }
  0x17   : > { %v4737_v20 = vor.u32 %v5281_v17, %v4734_v18  ;;  %v4696_v21 = vld [vmem:[%s7614_s2 + $0x90] sm:$0xf]  ;;  %v5276_v22 = vld [vmem:[%s7614_s2 + $0xb0] sm:$0xf0]  ;;  %v4698_v24 = vld [vmem:[%s7614_s2 + $0xb4] sm:$0xf0] }
  0x18   : > { %v748_v9 = vand.u32 %v5678_v4, %v641_v5  ;;  %v751_v10 = vand.u32 %v5678_v4, %v642_v6  ;;  %v5272_v23 = vld [vmem:[%s7614_s2 + $0x94] sm:$0xf]  ;;  %v4697_v26 = vor.u32 %v5276_v22, %v4696_v21  ;;  %s7800_s26 = smov (!%p263_p10, %s4554_s26), 63  ;;  %v4660_v28 = vld [vmem:[%s7614_s2 + $0x48] sm:$0xf]  ;;  %vm695_vm1 = vcmask 662528  }
  0x19   : > { %v358_v25 = vld [vmem:[%s7614_s2 + $0x170] sm:$0x11]  ;;  %v4701_v27 = vor.u32 %v5272_v23, %v4698_v24  ;;  %v5267_v29 = vld [vmem:[%s7614_s2 + $0x68] sm:$0xf0]  ;;  %v359_v34 = vld [vmem:[%s7614_s2 + $0x178] sm:$0x11] }
  0x1a   : > { %776 = vmatpush.bf16.msra.mxu0 %v748_v9  ;;  %5450 = vmatpush.bf16.msra.mxu2 %v748_v9  ;;  %v5263_v30 = vld [vmem:[%s7614_s2 + $0x4c] sm:$0xf]  ;;  %v4662_v31 = vld [vmem:[%s7614_s2 + $0x6c] sm:$0xf0]  ;;  %v589_v32 = vunpack.c.l.b16 %v358_v25  ;;  %v590_v33 = vunpack.c.h.b16 %v358_v25  ;;  %v4661_v35 = vor.u32 %v5267_v29, %v4660_v28  ;;  %s4555_s19 = sshll.u32 %s7800_s26, 2  ;;  %v591_v39 = vunpack.c.l.b16 %v359_v34  ;;  %s4553_s10 = sshll.u32 %s259_s9, 1 }
  0x1b   : > { %865 = vmatpush.bf16.msra.mxu1 %v751_v10  ;;  %5456 = vmatpush.bf16.msra.mxu3 %v751_v10  ;;  %v4665_v36 = vor.u32 %v5263_v30, %v4662_v31  ;;  %v4624_v37 = vld [vmem:[%s7614_s2] sm:$0xf]  ;;  %v5258_v38 = vld [vmem:[%s7614_s2 + $0x20] sm:$0xf0]  ;;  %v592_v40 = vunpack.c.h.b16 %v359_v34  ;;  %v4626_v42 = vld [vmem:[%s7614_s2 + $0x24] sm:$0xf0]  ;;  %s5757_s16 = scalar_lea.vmem %s7612_s0, %s4555_s19  ;;  %s7122_s15 = scalar_lea.vmem %s7613_s1, %s4555_s19 }
  0x1c   : > { %v5254_v41 = vld [vmem:[%s7614_s2 + $0x4] sm:$0xf]  ;;  %v643_v43 = vpack.c.b16 %v589_v32, %v589_v32  ;;  %v644_v44 = vpack.c.b16 %v590_v33, %v590_v33  ;;  %v4625_v45 = vor.u32 %v5258_v38, %v4624_v37  ;;  %v645_v47 = vpack.c.b16 %v591_v39, %v591_v39  ;;  %v4776_v53 = vld [vmem:[%s7614_s2 + $0x128] sm:$0xf]  ;;  %v5295_v54 = vld [vmem:[%s7614_s2 + $0x148] sm:$0xf0] }
  0x1d   : > { %v4629_v46 = vor.u32 %v5254_v41, %v4626_v42  ;;  %v646_v48 = vpack.c.b16 %v592_v40, %v592_v40  ;;  %v5760_v49 = vld [vmem:[%s5757_s16] sm:$0xff]  ;;  %v5291_v55 = vld [vmem:[%s7614_s2 + $0x12c] sm:$0xf]  ;;  %v4778_v56 = vld [vmem:[%s7614_s2 + $0x14c] sm:$0xf0]  ;;  %v4777_v59 = vor.u32 %v5295_v54, %v4776_v53  ;;  %vm3584_vm2 = vcmask 326656  }
  0x1e   : > { %777 = vmatpush.bf16.msra.mxu0 %v4769_v13  ;;  %5451 = vmatpush.bf16.msra.mxu2 %v4769_v13  ;;  %v5763_v50 = vld [vmem:[%s5757_s16 + $0x40] sm:$0xff]  ;;  %v754_v51 = vand.u32 %v5678_v4, %v643_v43  ;;  %v757_v52 = vand.u32 %v5678_v4, %v644_v44  ;;  %v760_v57 = vand.u32 %v5678_v4, %v645_v47  ;;  %v4784_v61 = vld [vmem:[%s7614_s2 + $0x130] sm:$0xf]  ;;  %v5296_v62 = vld [vmem:[%s7614_s2 + $0x150] sm:$0xf0]  ;;  %vm4365_vm3 = vcmask 130112  }
  0x1f   : > { %866 = vmatpush.bf16.msra.mxu1 %v4773_v15  ;;  %5457 = vmatpush.bf16.msra.mxu3 %v4773_v15  ;;  %v763_v58 = vand.u32 %v5678_v4, %v646_v48  ;;  %v4781_v60 = vor.u32 %v5291_v55, %v4778_v56  ;;  %v5292_v63 = vld [vmem:[%s7614_s2 + $0x134] sm:$0xf]  ;;  %v4785_v0 = vor.u32 %v5296_v62, %v4784_v61  ;;  %v4786_v1 = vld [vmem:[%s7614_s2 + $0x154] sm:$0xf0]  ;;  %v4740_v2 = vld [vmem:[%s7614_s2 + $0xe0] sm:$0xf] }
  0x20   : > { %v5286_v3 = vld [vmem:[%s7614_s2 + $0x100] sm:$0xf0]  ;;  %v4789_v5 = vor.u32 %v5292_v63, %v4786_v1  ;;  %v4742_v8 = vld [vmem:[%s7614_s2 + $0x104] sm:$0xf0]  ;;  %v5287_v13 = vld [vmem:[%s7614_s2 + $0x108] sm:$0xf0] }
  0x21   : > { %v4741_v6 = vor.u32 %v5286_v3, %v4740_v2  ;;  %v5282_v7 = vld [vmem:[%s7614_s2 + $0xe4] sm:$0xf]  ;;  %v5814_v10 = vld [vmem:[%s5757_s16 + $0x8] sm:$0xff]  ;;  %v4750_v16 = vld [vmem:[%s7614_s2 + $0x10c] sm:$0xf0]  ;;  %vm4369_vm4 = vcmask 195712  }
  0x22   : > { %778 = vmatpush.bf16.msra.mxu0 %v4733_v19  ;;  %5452 = vmatpush.bf16.msra.mxu2 %v4733_v19  ;;  %v4745_v9 = vor.u32 %v5282_v7, %v4742_v8  ;;  %v5817_v11 = vld [vmem:[%s5757_s16 + $0x48] sm:$0xff]  ;;  %v5840_v18 = vld [vmem:[%s5757_s16 + $0x10] sm:$0xff]  ;;  %v5277_v21 = vld [vmem:[%s7614_s2 + $0xb8] sm:$0xf0]  ;;  %vm4373_vm5 = vcmask 261312   ;;  %vm4377_vm6 = vcmask 326912  }
  0x23   : > { %867 = vmatpush.bf16.msra.mxu1 %v4737_v20  ;;  %5458 = vmatpush.bf16.msra.mxu3 %v4737_v20  ;;  %v4748_v12 = vld [vmem:[%s7614_s2 + $0xe8] sm:$0xf]  ;;  %v5283_v14 = vld [vmem:[%s7614_s2 + $0xec] sm:$0xf]  ;;  %v5843_v19 = vld [vmem:[%s5757_s16 + $0x50] sm:$0xff]  ;;  %vm4381_vm7 = vcmask 392512  }
  0x24   : > { %v4749_v15 = vor.u32 %v5287_v13, %v4748_v12  ;;  %v4753_v17 = vor.u32 %v5283_v14, %v4750_v16  ;;  %v4704_v20 = vld [vmem:[%s7614_s2 + $0x98] sm:$0xf]  ;;  %v5273_v22 = vld [vmem:[%s7614_s2 + $0x9c] sm:$0xf]  ;;  %v4706_v24 = vld [vmem:[%s7614_s2 + $0xbc] sm:$0xf0] }
  0x25   : > { %v4705_v23 = vor.u32 %v5277_v21, %v4704_v20  ;;  %v4712_v25 = vld [vmem:[%s7614_s2 + $0xa0] sm:$0xf]  ;;  %v5274_v29 = vld [vmem:[%s7614_s2 + $0xa4] sm:$0xf]  ;;  %v4714_v30 = vld [vmem:[%s7614_s2 + $0xc4] sm:$0xf0] }
  0x26   : > { %779 = vmatpush.bf16.msra.mxu0 %v4697_v26  ;;  %5453 = vmatpush.bf16.msra.mxu2 %v4697_v26  ;;  %v5278_v26 = vld [vmem:[%s7614_s2 + $0xc0] sm:$0xf0]  ;;  %v4717_v31 = vor.u32 %v5274_v29, %v4714_v30  ;;  %v5878_v32 = vld [vmem:[%s5757_s16 + $0x18] sm:$0xff]  ;;  %v4668_v34 = vld [vmem:[%s7614_s2 + $0x50] sm:$0xf]  ;;  %vm4385_vm8 = vcmask 458112  }
  0x27   : > { %868 = vmatpush.bf16.msra.mxu1 %v4701_v27  ;;  %5459 = vmatpush.bf16.msra.mxu3 %v4701_v27  ;;  %v4709_v27 = vor.u32 %v5273_v22, %v4706_v24  ;;  %v4713_v28 = vor.u32 %v5278_v26, %v4712_v25  ;;  %v5881_v33 = vld [vmem:[%s5757_s16 + $0x58] sm:$0xff]  ;;  %v5904_v40 = vld [vmem:[%s5757_s16 + $0x20] sm:$0xff]  ;;  %v4632_v47 = vld [vmem:[%s7614_s2 + $0x8] sm:$0xf]  ;;  %vm4389_vm9 = vcmask 523712   ;;  %vm4393_vm10 = vcmask 589312  }
  0x28   : > { %v4670_v38 = vld [vmem:[%s7614_s2 + $0x74] sm:$0xf0]  ;;  %v5907_v41 = vld [vmem:[%s5757_s16 + $0x60] sm:$0xff]  ;;  %v5269_v43 = vld [vmem:[%s7614_s2 + $0x78] sm:$0xf0]  ;;  %vm4397_vm11 = vcmask 654912  }
  0x29   : > { %v4676_v42 = vld [vmem:[%s7614_s2 + $0x58] sm:$0xf]  ;;  %v5265_v44 = vld [vmem:[%s7614_s2 + $0x5c] sm:$0xf]  ;;  %v5259_v48 = vld [vmem:[%s7614_s2 + $0x28] sm:$0xf0] }
  0x2a   : > { %780 = vmatpush.bf16.msra.mxu0 %v4661_v35  ;;  %5454 = vmatpush.bf16.msra.mxu2 %v4661_v35  ;;  %v5268_v35 = vld [vmem:[%s7614_s2 + $0x70] sm:$0xf0]  ;;  %v5255_v53 = vld [vmem:[%s7614_s2 + $0xc] sm:$0xf]  ;;  %v4634_v54 = vld [vmem:[%s7614_s2 + $0x2c] sm:$0xf0] }
  0x2b   : > { %869 = vmatpush.bf16.msra.mxu1 %v4665_v36  ;;  %5460 = vmatpush.bf16.msra.mxu3 %v4665_v36  ;;  %v5264_v36 = vld [vmem:[%s7614_s2 + $0x54] sm:$0xf]  ;;  %v4669_v37 = vor.u32 %v5268_v35, %v4668_v34  ;;  %v4637_v55 = vor.u32 %v5255_v53, %v4634_v54  ;;  %v5942_v56 = vld [vmem:[%s5757_s16 + $0x28] sm:$0xff]  ;;  %v4642_v62 = vld [vmem:[%s7614_s2 + $0x34] sm:$0xf0]  ;;  %vm4401_vm12 = vcmask 720512  }
  0x2c   : > { %v4673_v39 = vor.u32 %v5264_v36, %v4670_v38  ;;  %v5971_v1 = vld [vmem:[%s5757_s16 + $0x70] sm:$0xff]  ;;  %v360_v2 = vld [vmem:[%s7614_s2 + $0x180] sm:$0x11]  ;;  %v361_v12 = vld [vmem:[%s7614_s2 + $0x188] sm:$0x1]  ;;  %vm4405_vm13 = vcmask 786112  }
  0x2d   : > { %v593_v3 = vunpack.c.l.b16 %v360_v2  ;;  %v595_v13 = vunpack.c.l.b16 %v361_v12  ;;  %v5990_v14 = vld [vmem:[%s5757_s16 + $0x38] sm:$0xff]  ;;  %vm4409_vm14 = vcmask 851712   ;;  %vm4413_vm15 = vcmask 917312   ;;  %s5235_s11 = sshll.u32 %s5647_s25, 1  ;;  %s261_s25 = scalar_lea.vmem [#allocation2], %s4553_s10 }
  0x2e   : > { %781 = vmatpush.bf16.msra.mxu0 %v4625_v45  ;;  %5455 = vmatpush.bf16.msra.mxu2 %v4625_v45  ;;  %v4677_v45 = vor.u32 %v5269_v43, %v4676_v42  ;;  %v5306_v20 = vld [vmem:[%s7615_s3 + $0x38] sm:$0xff]  ;;  %s4473_s14 = scalar_lea.hbm %s7618_s6, %s5235_s11  ;;  %s4463_s18 = scalar_lea.sflag [#allocation3], %s259_s9 }
  0x2f   : > { %870 = vmatpush.bf16.msra.mxu1 %v4629_v46  ;;  %5461 = vmatpush.bf16.msra.mxu3 %v4629_v46  ;;  %v4678_v46 = vld [vmem:[%s7614_s2 + $0x7c] sm:$0xf0]  ;;  %v649_v16 = vpack.c.b16 %v595_v13, %v595_v13  ;;  %s4477_s17 = sshll.u32 %s4473_s14, 4  ;;  %s4478_s17 = int_to_ptr.hbm [resolvable:$true] %s4477_s17 }
  0x30   : > { %s5540_s20 = sshra.s32 %s4478_s17, 4  ;;  %s5541_s20 = int_to_ptr.hbm [resolvable:$true] %s5540_s20 }
  0x31   : > { %4802 = vmatmul.msk.bf16.vlgmr.msra.gmra.mxu0 %vm695_vm1, %v5760_v49  ;;  %4810 = vmatmul.msk.bf16.vlgmr.msra.gmra.mxu2 %vm695_vm1, %v5763_v50  ;;  %s5542_s26 = scalar_lea.hbm %s5541_s20, 2  ;;  %p5547_p0 = scmp.lt.s32.totalorder %s5541_s20, %s7618_s6 }
  0x32   : > { %954 = vmatpush.bf16.msrb.mxu2 %v754_v51  ;;  %4818 = vmatmul.msk.bf16.vlgmr.msra.gmra.mxu1 %vm695_vm1, %v5760_v49  ;;  %v4681_v51 = vor.u32 %v5265_v44, %v4678_v46  ;;  %v5297_v46 = vld [vmem:[%s7614_s2 + $0x158] sm:$0xf0]  ;;  %p5543_p11 = scmp.ne.s32.totalorder %s5541_s20, %s5542_s26 }
  0x33   : > { %1043 = vmatpush.bf16.msrb.mxu3 %v757_v52  ;;  %1132 = vmatpush.bf16.msrb.mxu0 %v760_v57  ;;  %v4633_v52 = vor.u32 %v5259_v48, %v4632_v47  ;;  %v5945_v57 = vld [vmem:[%s5757_s16 + $0x68] sm:$0xff]  ;;  %v5305_v47 = vld [vmem:[%s7615_s3 + $0x30] sm:$0xff] }
  0x34   : > { %4826 = vmatmul.msk.bf16.vlgmr.msra.gmra.mxu3 %vm695_vm1, %v5763_v50  ;;  %1221 = vmatpush.bf16.msrb.mxu1 %v763_v58  ;;  %v4640_v58 = vld [vmem:[%s7614_s2 + $0x10] sm:$0xf]  ;;  %p5544_p12 = pnand %p5543_p11, %p5664_p5 }
  0x36   : > { %955 = vmatpush.bf16.msrb.mxu2 %v4777_v59  ;;  %v5260_v59 = vld [vmem:[%s7614_s2 + $0x30] sm:$0xf0]  ;;  %p5545_p13 = pneg %p5544_p12 }
  0x37   : > { %1044 = vmatpush.bf16.msrb.mxu3 %v4781_v60  ;;  %1133 = vmatpush.bf16.msrb.mxu0 %v4785_v0  ;;  %v5256_v60 = vld [vmem:[%s7614_s2 + $0x14] sm:$0xf]  ;;  %v4641_v61 = vor.u32 %v5260_v59, %v4640_v58 }
  0x38   : > { %1222 = vmatpush.bf16.msrb.mxu1 %v4789_v5  ;;  %v4645_v63 = vor.u32 %v5256_v60, %v4642_v62  ;;  %v5968_v0 = vld [vmem:[%s5757_s16 + $0x30] sm:$0xff]  ;;  %v594_v5 = vunpack.c.h.b16 %v360_v2 }
  0x3a   : > { %956 = vmatpush.bf16.msrb.mxu2 %v4741_v6  ;;  %v647_v6 = vpack.c.b16 %v593_v3, %v593_v3  ;;  %v648_v7 = vpack.c.b16 %v594_v5, %v594_v5  ;;  %v5298_v5 = vld [vmem:[%s7614_s2 + $0x160] sm:$0xf0] }
  0x3b   : > { %1045 = vmatpush.bf16.msrb.mxu3 %v4745_v9  ;;  %1134 = vmatpush.bf16.msrb.mxu0 %v4749_v15  ;;  %v5993_v15 = vld [vmem:[%s5757_s16 + $0x78] sm:$0xff] }
  0x3c   : > { %1223 = vmatpush.bf16.msrb.mxu1 %v4753_v17  ;;  %v766_v8 = vand.u32 %v5678_v4, %v647_v6  ;;  %v769_v9 = vand.u32 %v5678_v4, %v648_v7  ;;  %v772_v17 = vand.u32 %v5678_v4, %v649_v16 }
  0x3e   : > { %957 = vmatpush.bf16.msrb.mxu2 %v4705_v23 }
  0x3f   : > { %1046 = vmatpush.bf16.msrb.mxu3 %v4709_v27  ;;  %1135 = vmatpush.bf16.msrb.mxu0 %v4713_v28 }
  0x40   : > { %1224 = vmatpush.bf16.msrb.mxu1 %v4717_v31 }
  0x41   : > { %4803 = vmatmul.msk.bf16.gmra.mxu0 %vm695_vm1, %v5814_v10  ;;  %4811 = vmatmul.msk.bf16.gmra.mxu2 %vm695_vm1, %v5817_v11 }
  0x42   : > { %4819 = vmatmul.msk.bf16.gmra.mxu1 %vm695_vm1, %v5814_v10  ;;  %958 = vmatpush.bf16.msrb.mxu2 %v4669_v37 }
  0x43   : > { %1047 = vmatpush.bf16.msrb.mxu3 %v4673_v39  ;;  %1136 = vmatpush.bf16.msrb.mxu0 %v4677_v45  ;;  %v4792_v45 = vld [vmem:[%s7614_s2 + $0x138] sm:$0xf] }
  0x44   : > { %4827 = vmatmul.msk.bf16.gmra.mxu3 %vm695_vm1, %v5817_v11  ;;  %1225 = vmatpush.bf16.msrb.mxu1 %v4681_v51  ;;  %v4793_v48 = vor.u32 %v5297_v46, %v4792_v45  ;;  %v5293_v51 = vld [vmem:[%s7614_s2 + $0x13c] sm:$0xf] }
  0x46   : > { %959 = vmatpush.bf16.msrb.mxu2 %v4633_v52  ;;  %v4794_v52 = vld [vmem:[%s7614_s2 + $0x15c] sm:$0xf0] }
  0x47   : > { %1048 = vmatpush.bf16.msrb.mxu3 %v4637_v55  ;;  %1137 = vmatpush.bf16.msrb.mxu0 %v4641_v61  ;;  %v4797_v53 = vor.u32 %v5293_v51, %v4794_v52 }
  0x48   : > { %1226 = vmatpush.bf16.msrb.mxu1 %v4645_v63 }
  0x4a   : > { %1310 = vmatpush.bf16.msra.mxu2 %v766_v8 }
  0x4b   : > { %1399 = vmatpush.bf16.msra.mxu3 %v769_v9  ;;  %1488 = vmatpush.bf16.msra.mxu0 %v772_v17 }
  0x4c   : > { %2587 = vmatpush.bf16.msra.mxu1 %v5306_v20 }
  0x4e   : > { %1311 = vmatpush.bf16.msra.mxu2 %v4793_v48  ;;  %v5304_v48 = vld [vmem:[%s7615_s3 + $0x28] sm:$0xff] }
  0x4f   : > { %1400 = vmatpush.bf16.msra.mxu3 %v4797_v53 }
  0x50   : > { %2588 = vmatpush.bf16.msra.mxu1 %v5305_v47 }
  0x51   : > { %4804 = vmatmul.msk.bf16.gmra.mxu0 %vm695_vm1, %v5840_v18  ;;  %4812 = vmatmul.msk.bf16.gmra.mxu2 %vm695_vm1, %v5843_v19 }
  0x52   : > { %4820 = vmatmul.msk.bf16.gmra.mxu1 %vm695_vm1, %v5840_v18 }
  0x54   : > { %4828 = vmatmul.msk.bf16.gmra.mxu3 %vm695_vm1, %v5843_v19  ;;  %2589 = vmatpush.bf16.msra.mxu1 %v5304_v48 }
  0x61   : > { %4805 = vmatmul.msk.bf16.gmra.mxu0 %vm695_vm1, %v5878_v32  ;;  %4813 = vmatmul.msk.bf16.gmra.mxu2 %vm695_vm1, %v5881_v33 }
  0x62   : > { %4821 = vmatmul.msk.bf16.gmra.mxu1 %vm695_vm1, %v5878_v32 }
  0x64   : > { %4829 = vmatmul.msk.bf16.gmra.mxu3 %vm695_vm1, %v5881_v33 }
  0x71   : > { %4806 = vmatmul.msk.bf16.gmra.mxu0 %vm695_vm1, %v5904_v40  ;;  %4814 = vmatmul.msk.bf16.gmra.mxu2 %vm695_vm1, %v5907_v41 }
  0x72   : > { %4822 = vmatmul.msk.bf16.gmra.mxu1 %vm695_vm1, %v5904_v40 }
  0x74   : > { %4830 = vmatmul.msk.bf16.gmra.mxu3 %vm695_vm1, %v5907_v41 }
  0x81   : > { %4807 = vmatmul.msk.bf16.gmra.mxu0 %vm695_vm1, %v5942_v56  ;;  %4815 = vmatmul.msk.bf16.gmra.mxu2 %vm695_vm1, %v5945_v57 }
  0x82   : > { %4823 = vmatmul.msk.bf16.gmra.mxu1 %vm695_vm1, %v5942_v56 }
  0x84   : > { %4831 = vmatmul.msk.bf16.gmra.mxu3 %vm695_vm1, %v5945_v57 }
  0x91   : > { %4808 = vmatmul.msk.bf16.gmra.mxu0 %vm695_vm1, %v5968_v0  ;;  %4816 = vmatmul.msk.bf16.gmra.mxu2 %vm695_vm1, %v5971_v1 }
  0x92   : > { %4824 = vmatmul.msk.bf16.gmra.mxu1 %vm695_vm1, %v5968_v0 }
  0x94   : > { %4832 = vmatmul.msk.bf16.gmra.mxu3 %vm695_vm1, %v5971_v1 }
  0xa1   : > { %4809 = vmatmul.msk.bf16.gmra.mxu0 %vm695_vm1, %v5990_v14  ;;  %4817 = vmatmul.msk.bf16.gmra.mxu2 %vm695_vm1, %v5993_v15 }
  0xa2   : > { %4825 = vmatmul.msk.bf16.gmra.mxu1 %vm695_vm1, %v5990_v14 }
  0xa4   : > { %4833 = vmatmul.msk.bf16.gmra.mxu3 %vm695_vm1, %v5993_v15 }
  0xae   : > { %v783_v21 = vpop.f32.mrf.mxu0 }
  0xaf   : > { %v872_v4 = vpop.f32.mrf.mxu1  ;;  %v1575_v23 = vmax.f32 %v783_v21, 0.0 }
  0xb0   : > { %v1576_v25 = vmax.f32 %v872_v4, 0.0 }
  0xb1   : > { %4834 = vmatmul.msk.bf16.vlgmr.msrb.gmra.mxu2 %vm695_vm1, %v5760_v49  ;;  %4866 = vmatmul.msk.bf16.vlgmr.msrb.gmra.mxu0 %vm695_vm1, %v5760_v49 }
  0xb2   : > { %4882 = vmatmul.msk.bf16.vlgmr.msrb.gmra.mxu1 %vm695_vm1, %v5760_v49 }
  0xb4   : > { %4850 = vmatmul.msk.bf16.vlgmr.msrb.gmra.mxu3 %vm695_vm1, %v5760_v49  ;;  %v823_v22 = vpop.f32.mrf.mxu2 }
  0xb5   : > { %v1719_v35 = vmax.f32 %v823_v22, 0.0 }
  0xb6   : > { %v785_v26 = vpop.f32.mrf.mxu0 }
  0xb7   : > { %v912_v24 = vpop.f32.mrf.mxu3  ;;  %v1584_v27 = vmax.f32 %v785_v26, 0.0  ;;  %v874_v28 = vpop.f32.mrf.mxu1 }
  0xb8   : > { %v1585_v29 = vmax.f32 %v874_v28, 0.0  ;;  %v1720_v38 = vmax.f32 %v912_v24, 0.0 }
  0xb9   : > { %v6015_v30 = vpack.c.bf16 %v1584_v27, %v1575_v23 }
  0xba   : > { %v6017_v31 = vpack.c.bf16 %v1585_v29, %v1576_v25 }
  0xbc   : > { %v825_v34 = vpop.f32.mrf.mxu2 }
  0xbd   : > { %v1728_v36 = vmax.f32 %v825_v34, 0.0 }
  0xbe   : > { %v788_v42 = vpop.f32.mrf.mxu0 }
  0xbf   : > { %v914_v37 = vpop.f32.mrf.mxu3  ;;  %v6019_v49 = vpack.c.bf16 %v1728_v36, %v1719_v35  ;;  %v877_v43 = vpop.f32.mrf.mxu1  ;;  %v1593_v55 = vmax.f32 %v788_v42, 0.0 }
  0xc0   : > { %v1729_v39 = vmax.f32 %v914_v37, 0.0  ;;  %v1594_v59 = vmax.f32 %v877_v43, 0.0 }
  0xc1   : > { %4835 = vmatmul.msk.bf16.gmra.mxu2 %vm695_vm1, %v5814_v10  ;;  %4867 = vmatmul.msk.bf16.gmra.mxu0 %vm695_vm1, %v5814_v10 }
  0xc2   : > { %v6021_v44 = vpack.c.bf16 %v1729_v39, %v1720_v38  ;;  %4883 = vmatmul.msk.bf16.gmra.mxu1 %vm695_vm1, %v5814_v10 }
  0xc4   : > { %7621 = vst [vmem:[#allocation5_spill] sm:$0xff] %v6021_v44  ;;  %4851 = vmatmul.msk.bf16.gmra.mxu3 %vm695_vm1, %v5814_v10  ;;  %v828_v54 = vpop.f32.mrf.mxu2  ;;  %v4800_v10 = vld [vmem:[%s7614_s2 + $0x140] sm:$0xf] }
  0xc5   : > { %v4801_v6 = vor.u32 %v5298_v5, %v4800_v10  ;;  %v1737_v8 = vmax.f32 %v828_v54, 0.0  ;;  %v5284_v10 = vld [vmem:[%s7614_s2 + $0xf4] sm:$0xf] }
  0xc6   : > { %v790_v60 = vpop.f32.mrf.mxu0 }
  0xc7   : > { %v917_v58 = vpop.f32.mrf.mxu3  ;;  %v1602_v61 = vmax.f32 %v790_v60, 0.0  ;;  %v879_v62 = vpop.f32.mrf.mxu1  ;;  %1489 = vmatpush.bf16.msra.mxu0 %v4801_v6  ;;  %v4758_v6 = vld [vmem:[%s7614_s2 + $0x114] sm:$0xf0] }
  0xc8   : > { %v1603_v63 = vmax.f32 %v879_v62, 0.0  ;;  %v1738_v13 = vmax.f32 %v917_v58, 0.0 }
  0xc9   : > { %v6046_v2 = vpack.c.bf16 %v1602_v61, %v1593_v55 }
  0xca   : > { %v6048_v3 = vpack.c.bf16 %v1603_v63, %v1594_v59  ;;  %v4756_v63 = vld [vmem:[%s7614_s2 + $0xf0] sm:$0xf] }
  0xcc   : > { %v830_v7 = vpop.f32.mrf.mxu2 }
  0xcd   : > { %v1746_v9 = vmax.f32 %v830_v7, 0.0 }
  0xce   : > { %v793_v17 = vpop.f32.mrf.mxu0 }
  0xcf   : > { %v919_v12 = vpop.f32.mrf.mxu3  ;;  %v6056_v20 = vpack.c.bf16 %v1746_v9, %v1737_v8  ;;  %v882_v21 = vpop.f32.mrf.mxu1  ;;  %v1611_v23 = vmax.f32 %v793_v17, 0.0  ;;  %v4761_v8 = vor.u32 %v5284_v10, %v4758_v6 }
  0xd0   : > { %v1747_v16 = vmax.f32 %v919_v12, 0.0  ;;  %v1612_v25 = vmax.f32 %v882_v21, 0.0 }
  0xd1   : > { %4836 = vmatmul.msk.bf16.gmra.mxu2 %vm695_vm1, %v5840_v18  ;;  %4868 = vmatmul.msk.bf16.gmra.mxu0 %vm695_vm1, %v5840_v18 }
  0xd2   : > { %v6058_v4 = vpack.c.bf16 %v1747_v16, %v1738_v13  ;;  %4884 = vmatmul.msk.bf16.gmra.mxu1 %vm695_vm1, %v5840_v18  ;;  %1401 = vmatpush.bf16.msra.mxu3 %v4761_v8 }
  0xd4   : > { %7622 = vst [vmem:[#allocation6_spill] sm:$0xff] %v6058_v4  ;;  %4852 = vmatmul.msk.bf16.gmra.mxu3 %vm695_vm1, %v5840_v18  ;;  %v833_v22 = vpop.f32.mrf.mxu2 }
  0xd5   : > { %v1755_v37 = vmax.f32 %v833_v22, 0.0 }
  0xd6   : > { %v795_v26 = vpop.f32.mrf.mxu0 }
  0xd7   : > { %v922_v24 = vpop.f32.mrf.mxu3  ;;  %v1620_v27 = vmax.f32 %v795_v26, 0.0  ;;  %v884_v28 = vpop.f32.mrf.mxu1  ;;  %v5289_v26 = vld [vmem:[%s7614_s2 + $0x118] sm:$0xf0] }
  0xd8   : > { %v1621_v29 = vmax.f32 %v884_v28, 0.0  ;;  %v1756_v42 = vmax.f32 %v922_v24, 0.0 }
  0xd9   : > { %v6068_v34 = vpack.c.bf16 %v1620_v27, %v1611_v23 }
  0xda   : > { %v6070_v35 = vpack.c.bf16 %v1621_v29, %v1612_v25  ;;  %v4764_v25 = vld [vmem:[%s7614_s2 + $0xf8] sm:$0xf] }
  0xdb   : > { %v4765_v27 = vor.u32 %v5289_v26, %v4764_v25 }
  0xdc   : > { %v835_v36 = vpop.f32.mrf.mxu2 }
  0xdd   : > { %v1764_v38 = vmax.f32 %v835_v36, 0.0  ;;  %1490 = vmatpush.bf16.msra.mxu0 %v4765_v27 }
  0xde   : > { %v798_v45 = vpop.f32.mrf.mxu0 }
  0xdf   : > { %v924_v39 = vpop.f32.mrf.mxu3  ;;  %v6072_v18 = vpack.c.bf16 %v1764_v38, %v1755_v37  ;;  %v887_v46 = vpop.f32.mrf.mxu1  ;;  %v1629_v52 = vmax.f32 %v798_v45, 0.0 }
  0xe0   : > { %v1765_v43 = vmax.f32 %v924_v39, 0.0  ;;  %v1630_v54 = vmax.f32 %v887_v46, 0.0 }
  0xe1   : > { %4837 = vmatmul.msk.bf16.gmra.mxu2 %vm695_vm1, %v5878_v32  ;;  %4869 = vmatmul.msk.bf16.gmra.mxu0 %vm695_vm1, %v5878_v32 }
  0xe2   : > { %v6074_v47 = vpack.c.bf16 %v1765_v43, %v1756_v42  ;;  %4885 = vmatmul.msk.bf16.gmra.mxu1 %vm695_vm1, %v5878_v32 }
  0xe4   : > { %7623 = vst [vmem:[#allocation7_spill] sm:$0xff] %v6074_v47  ;;  %4853 = vmatmul.msk.bf16.gmra.mxu3 %vm695_vm1, %v5878_v32  ;;  %v838_v51 = vpop.f32.mrf.mxu2  ;;  %v5288_v32 = vld [vmem:[%s7614_s2 + $0x110] sm:$0xf0] }
  0xe5   : > { %v4757_v5 = vor.u32 %v5288_v32, %v4756_v63  ;;  %v1773_v9 = vmax.f32 %v838_v51, 0.0  ;;  %v5303_v63 = vld [vmem:[%s7615_s3 + $0x20] sm:$0xff] }
  0xe6   : > { %v800_v55 = vpop.f32.mrf.mxu0  ;;  %2590 = vmatpush.bf16.msra.mxu1 %v5303_v63 }
  0xe7   : > { %v927_v53 = vpop.f32.mrf.mxu3  ;;  %v1638_v58 = vmax.f32 %v800_v55, 0.0  ;;  %v889_v59 = vpop.f32.mrf.mxu1  ;;  %1312 = vmatpush.bf16.msra.mxu2 %v4757_v5 }
  0xe8   : > { %v1639_v60 = vmax.f32 %v889_v59, 0.0  ;;  %v1774_v16 = vmax.f32 %v927_v53, 0.0 }
  0xe9   : > { %v6087_v61 = vpack.c.bf16 %v1638_v58, %v1629_v52 }
  0xea   : > { %v6089_v62 = vpack.c.bf16 %v1639_v60, %v1630_v54 }
  0xec   : > { %v840_v7 = vpop.f32.mrf.mxu2 }
  0xed   : > { %v1782_v12 = vmax.f32 %v840_v7, 0.0 }
  0xee   : > { %v803_v21 = vpop.f32.mrf.mxu0 }
  0xef   : > { %v929_v13 = vpop.f32.mrf.mxu3  ;;  %v6103_v22 = vpack.c.bf16 %v1782_v12, %v1773_v9  ;;  %v892_v23 = vpop.f32.mrf.mxu1  ;;  %v1647_v29 = vmax.f32 %v803_v21, 0.0 }
  0xf0   : > { %v1783_v17 = vmax.f32 %v929_v13, 0.0  ;;  %v1648_v37 = vmax.f32 %v892_v23, 0.0 }
  0xf1   : > { %4838 = vmatmul.msk.bf16.gmra.mxu2 %vm695_vm1, %v5904_v40  ;;  %4870 = vmatmul.msk.bf16.gmra.mxu0 %vm695_vm1, %v5904_v40 }
  0xf2   : > { %v6105_v24 = vpack.c.bf16 %v1783_v17, %v1774_v16  ;;  %4886 = vmatmul.msk.bf16.gmra.mxu1 %vm695_vm1, %v5904_v40 }
  0xf4   : > { %7624 = vst [vmem:[#allocation8_spill] sm:$0xff] %v6105_v24  ;;  %4854 = vmatmul.msk.bf16.gmra.mxu3 %vm695_vm1, %v5904_v40  ;;  %v843_v28 = vpop.f32.mrf.mxu2 }
  0xf5   : > { %v1791_v48 = vmax.f32 %v843_v28, 0.0 }
  0xf6   : > { %v805_v38 = vpop.f32.mrf.mxu0 }
  0xf7   : > { %v932_v36 = vpop.f32.mrf.mxu3  ;;  %v1656_v39 = vmax.f32 %v805_v38, 0.0  ;;  %v894_v42 = vpop.f32.mrf.mxu1  ;;  %v5279_v38 = vld [vmem:[%s7614_s2 + $0xc8] sm:$0xf0] }
  0xf8   : > { %v1657_v43 = vmax.f32 %v894_v42, 0.0  ;;  %v1792_v53 = vmax.f32 %v932_v36, 0.0 }
  0xf9   : > { %v6121_v45 = vpack.c.bf16 %v1656_v39, %v1647_v29  ;;  %v5275_v39 = vld [vmem:[%s7614_s2 + $0xac] sm:$0xf] }
  0xfa   : > { %v6123_v40 = vpack.c.bf16 %v1657_v43, %v1648_v37  ;;  %v4720_v37 = vld [vmem:[%s7614_s2 + $0xa8] sm:$0xf]  ;;  %v4722_v43 = vld [vmem:[%s7614_s2 + $0xcc] sm:$0xf0] }
  0xfb   : > { %v4721_v42 = vor.u32 %v5279_v38, %v4720_v37 }
  0xfc   : > { %v845_v46 = vpop.f32.mrf.mxu2 }
  0xfd   : > { %v1800_v51 = vmax.f32 %v845_v46, 0.0  ;;  %1313 = vmatpush.bf16.msra.mxu2 %v4721_v42 }
  0xfe   : > { %v808_v55 = vpop.f32.mrf.mxu0 }
  0xff   : > { %v934_v52 = vpop.f32.mrf.mxu3  ;;  %v6125_v58 = vpack.c.bf16 %v1800_v51, %v1791_v48  ;;  %v897_v59 = vpop.f32.mrf.mxu1  ;;  %v1665_v10 = vmax.f32 %v808_v55, 0.0  ;;  %v4725_v48 = vor.u32 %v5275_v39, %v4722_v43 }
 0x100   : > { %v1801_v54 = vmax.f32 %v934_v52, 0.0  ;;  %v1666_v6 = vmax.f32 %v897_v59, 0.0 }
 0x101   : > { %4839 = vmatmul.msk.bf16.gmra.mxu2 %vm695_vm1, %v5942_v56  ;;  %4871 = vmatmul.msk.bf16.gmra.mxu0 %vm695_vm1, %v5942_v56 }
 0x102   : > { %v6127_v60 = vpack.c.bf16 %v1801_v54, %v1792_v53  ;;  %4887 = vmatmul.msk.bf16.gmra.mxu1 %vm695_vm1, %v5942_v56  ;;  %1402 = vmatpush.bf16.msra.mxu3 %v4725_v48 }
 0x104   : > { %7625 = vst [vmem:[#allocation9_spill] sm:$0xff] %v6127_v60  ;;  %4855 = vmatmul.msk.bf16.gmra.mxu3 %vm695_vm1, %v5942_v56  ;;  %v848_v32 = vpop.f32.mrf.mxu2 }
 0x105   : > { %v1809_v21 = vmax.f32 %v848_v32, 0.0 }
 0x106   : > { %v810_v7 = vpop.f32.mrf.mxu0 }
 0x107   : > { %v937_v5 = vpop.f32.mrf.mxu3  ;;  %v1674_v8 = vmax.f32 %v810_v7, 0.0  ;;  %v899_v9 = vpop.f32.mrf.mxu1 }
 0x108   : > { %v1675_v12 = vmax.f32 %v899_v9, 0.0  ;;  %v1810_v26 = vmax.f32 %v937_v5, 0.0  ;;  %v5280_v5 = vld [vmem:[%s7614_s2 + $0xd0] sm:$0xf0] }
 0x109   : > { %v6140_v13 = vpack.c.bf16 %v1674_v8, %v1665_v10  ;;  %v4728_v10 = vld [vmem:[%s7614_s2 + $0xb0] sm:$0xf] }
 0x10a   : > { %v6142_v16 = vpack.c.bf16 %v1675_v12, %v1666_v6  ;;  %v4729_v6 = vor.u32 %v5280_v5, %v4728_v10 }
 0x10c   : > { %v850_v17 = vpop.f32.mrf.mxu2  ;;  %1491 = vmatpush.bf16.msra.mxu0 %v4729_v6 }
 0x10d   : > { %v1818_v23 = vmax.f32 %v850_v17, 0.0 }
 0x10e   : > { %v813_v56 = vpop.f32.mrf.mxu0 }
 0x10f   : > { %v939_v25 = vpop.f32.mrf.mxu3  ;;  %v6144_v28 = vpack.c.bf16 %v1818_v23, %v1809_v21  ;;  %v902_v29 = vpop.f32.mrf.mxu1 }
 0x110   : > { %v1819_v27 = vmax.f32 %v939_v25, 0.0  ;;  %v1684_v52 = vmax.f32 %v902_v29, 0.0 }
 0x111   : > { %4840 = vmatmul.msk.bf16.gmra.mxu2 %vm695_vm1, %v5968_v0  ;;  %4872 = vmatmul.msk.bf16.gmra.mxu0 %vm695_vm1, %v5968_v0 }
 0x112   : > { %v6146_v36 = vpack.c.bf16 %v1819_v27, %v1810_v26  ;;  %4888 = vmatmul.msk.bf16.gmra.mxu1 %vm695_vm1, %v5968_v0 }
 0x114   : > { %7626 = vst [vmem:[#allocation10_spill] sm:$0xff] %v6146_v36  ;;  %4856 = vmatmul.msk.bf16.gmra.mxu3 %vm695_vm1, %v5968_v0  ;;  %v853_v46 = vpop.f32.mrf.mxu2  ;;  %v1683_v0 = vmax.f32 %v813_v56, 0.0  ;;  %v5302_v56 = vld [vmem:[%s7615_s3 + $0x18] sm:$0xff] }
 0x115   : > { %v1827_v8 = vmax.f32 %v853_v46, 0.0  ;;  %2591 = vmatpush.bf16.msra.mxu1 %v5302_v56 }
 0x116   : > { %v815_v53 = vpop.f32.mrf.mxu0 }
 0x117   : > { %v942_v51 = vpop.f32.mrf.mxu3  ;;  %v1692_v54 = vmax.f32 %v815_v53, 0.0  ;;  %v904_v55 = vpop.f32.mrf.mxu1 }
 0x118   : > { %v1693_v59 = vmax.f32 %v904_v55, 0.0  ;;  %v1828_v17 = vmax.f32 %v942_v51, 0.0 }
 0x119   : > { %v6168_v63 = vpack.c.bf16 %v1692_v54, %v1683_v0 }
 0x11a   : > { %v6170_v32 = vpack.c.bf16 %v1693_v59, %v1684_v52 }
 0x11c   : > { %v855_v7 = vpop.f32.mrf.mxu2 }
 0x11d   : > { %v1836_v9 = vmax.f32 %v855_v7, 0.0 }
 0x11e   : > { %v818_v23 = vpop.f32.mrf.mxu0 }
 0x11f   : > { %v944_v12 = vpop.f32.mrf.mxu3  ;;  %v6178_v25 = vpack.c.bf16 %v1836_v9, %v1827_v8  ;;  %v907_v26 = vpop.f32.mrf.mxu1  ;;  %v1701_v37 = vmax.f32 %v818_v23, 0.0 }
 0x120   : > { %v1837_v21 = vmax.f32 %v944_v12, 0.0  ;;  %v1702_v39 = vmax.f32 %v907_v26, 0.0 }
 0x121   : > { %4841 = vmatmul.msk.bf16.gmra.mxu2 %vm695_vm1, %v5990_v14  ;;  %4873 = vmatmul.msk.bf16.gmra.mxu0 %vm695_vm1, %v5990_v14 }
 0x122   : > { %v6180_v27 = vpack.c.bf16 %v1837_v21, %v1828_v17  ;;  %4889 = vmatmul.msk.bf16.gmra.mxu1 %vm695_vm1, %v5990_v14 }
 0x124   : > { %7627 = vst [vmem:[#allocation11_spill] sm:$0xff] %v6180_v27  ;;  %4857 = vmatmul.msk.bf16.gmra.mxu3 %vm695_vm1, %v5990_v14  ;;  %v858_v29 = vpop.f32.mrf.mxu2 }
 0x125   : > { %v1845_v53 = vmax.f32 %v858_v29, 0.0 }
 0x126   : > { %v820_v42 = vpop.f32.mrf.mxu0 }
 0x127   : > { %v947_v38 = vpop.f32.mrf.mxu3  ;;  %v1710_v43 = vmax.f32 %v820_v42, 0.0  ;;  %v909_v46 = vpop.f32.mrf.mxu1 }
 0x128   : > { %v1711_v48 = vmax.f32 %v909_v46, 0.0  ;;  %v1846_v59 = vmax.f32 %v947_v38, 0.0 }
 0x129   : > { %v6193_v0 = vpack.c.bf16 %v1710_v43, %v1701_v37 }
 0x12a   : > { %v6195_v51 = vpack.c.bf16 %v1711_v48, %v1702_v39 }
 0x12c   : > { %7628 = vst [vmem:[#allocation12_spill] sm:$0xff] %v6195_v51  ;;  %v860_v52 = vpop.f32.mrf.mxu2 }
 0x12d   : > { %v1854_v54 = vmax.f32 %v860_v52, 0.0 }
 0x12e   : > { %v1139_v14 = vpop.f32.mrf.mxu0 }
 0x12f   : > { %v949_v55 = vpop.f32.mrf.mxu3  ;;  %v6197_v5 = vpack.c.bf16 %v1854_v54, %v1845_v53  ;;  %v1228_v6 = vpop.f32.mrf.mxu1  ;;  %v1579_v9 = vmax.f32 %v1139_v14, 0.0 }
 0x130   : > { %v1855_v10 = vmax.f32 %v949_v55, 0.0  ;;  %v1580_v17 = vmax.f32 %v1228_v6, 0.0  ;;  %v4684_v55 = vld [vmem:[%s7614_s2 + $0x60] sm:$0xf]  ;;  %v5266_v6 = vld [vmem:[%s7614_s2 + $0x64] sm:$0xf] }
 0x131   : > { %4842 = vmatmul.msk.bf16.gmra.mxu2 %vm695_vm1, %v5763_v50  ;;  %4874 = vmatmul.msk.bf16.gmra.mxu0 %vm695_vm1, %v5763_v50 }
 0x132   : > { %v6199_v7 = vpack.c.bf16 %v1855_v10, %v1846_v59  ;;  %4890 = vmatmul.msk.bf16.gmra.mxu1 %vm695_vm1, %v5763_v50  ;;  %v5270_v59 = vld [vmem:[%s7614_s2 + $0x80] sm:$0xf0]  ;;  %v5301_v10 = vld [vmem:[%s7615_s3 + $0x10] sm:$0xff] }
 0x133   : > { %v4685_v14 = vor.u32 %v5270_v59, %v4684_v55  ;;  %2592 = vmatpush.bf16.msra.mxu1 %v5301_v10 }
 0x134   : > { %7629 = vst [vmem:[#allocation13_spill] sm:$0xff] %v6199_v7  ;;  %4858 = vmatmul.msk.bf16.gmra.mxu3 %vm695_vm1, %v5763_v50  ;;  %v961_v8 = vpop.f32.mrf.mxu2 }
 0x135   : > { %v1577_v39 = vmax.f32 %v961_v8, 0.0  ;;  %v4686_v8 = vld [vmem:[%s7614_s2 + $0x84] sm:$0xf0]  ;;  %1314 = vmatpush.bf16.msra.mxu2 %v4685_v14 }
 0x136   : > { %v1141_v21 = vpop.f32.mrf.mxu0 }
 0x137   : > { %v1050_v12 = vpop.f32.mrf.mxu3  ;;  %v1588_v23 = vmax.f32 %v1141_v21, 0.0  ;;  %v1230_v26 = vpop.f32.mrf.mxu1 }
 0x138   : > { %v1589_v56 = vmax.f32 %v1230_v26, 0.0  ;;  %v1578_v46 = vmax.f32 %v1050_v12, 0.0 }
 0x139   : > { %v6209_v29 = vpack.c.bf16 %v1588_v23, %v1579_v9  ;;  %v4689_v9 = vor.u32 %v5266_v6, %v4686_v8 }
 0x13a   : > { %v6211_v37 = vpack.c.bf16 %v1589_v56, %v1580_v17 }
 0x13b   : > { %1403 = vmatpush.bf16.msra.mxu3 %v4689_v9 }
 0x13c   : > { %7630 = vst [vmem:[#allocation14_spill] sm:$0xff] %v6211_v37  ;;  %v963_v38 = vpop.f32.mrf.mxu2 }
 0x13d   : > { %v1586_v42 = vmax.f32 %v963_v38, 0.0 }
 0x13e   : > { %v1144_v52 = vpop.f32.mrf.mxu0 }
 0x13f   : > { %v1052_v43 = vpop.f32.mrf.mxu3  ;;  %v6213_v50 = vpack.c.bf16 %v1586_v42, %v1577_v39  ;;  %v1233_v53 = vpop.f32.mrf.mxu1  ;;  %v1597_v17 = vmax.f32 %v1144_v52, 0.0 }
 0x140   : > { %v1587_v48 = vmax.f32 %v1052_v43, 0.0  ;;  %v1598_v23 = vmax.f32 %v1233_v53, 0.0 }
 0x141   : > { %4843 = vmatmul.msk.bf16.gmra.mxu2 %vm695_vm1, %v5817_v11  ;;  %4875 = vmatmul.msk.bf16.gmra.mxu0 %vm695_vm1, %v5817_v11 }
 0x142   : > { %v6215_v54 = vpack.c.bf16 %v1587_v48, %v1578_v46  ;;  %4891 = vmatmul.msk.bf16.gmra.mxu1 %vm695_vm1, %v5817_v11  ;;  %v5271_v46 = vld [vmem:[%s7614_s2 + $0x88] sm:$0xf0] }
 0x144   : > { %4859 = vmatmul.msk.bf16.gmra.mxu3 %vm695_vm1, %v5817_v11  ;;  %v966_v12 = vpop.f32.mrf.mxu2  ;;  %v4692_v11 = vld [vmem:[%s7614_s2 + $0x68] sm:$0xf] }
 0x145   : > { %v4693_v48 = vor.u32 %v5271_v46, %v4692_v11  ;;  %v1595_v55 = vmax.f32 %v966_v12, 0.0 }
 0x146   : > { %v1146_v26 = vpop.f32.mrf.mxu0 }
 0x147   : > { %v1055_v21 = vpop.f32.mrf.mxu3  ;;  %v1606_v56 = vmax.f32 %v1146_v26, 0.0  ;;  %v1235_v38 = vpop.f32.mrf.mxu1  ;;  %1492 = vmatpush.bf16.msra.mxu0 %v4693_v48 }
 0x148   : > { %v1607_v39 = vmax.f32 %v1235_v38, 0.0  ;;  %v1596_v10 = vmax.f32 %v1055_v21, 0.0 }
 0x149   : > { %v6240_v42 = vpack.c.bf16 %v1606_v56, %v1597_v17 }
 0x14a   : > { %v6242_v43 = vpack.c.bf16 %v1607_v39, %v1598_v23 }
 0x14c   : > { %7631 = vst [vmem:[#allocation15_spill] sm:$0xff] %v6242_v43  ;;  %v968_v52 = vpop.f32.mrf.mxu2 }
 0x14d   : > { %v1604_v53 = vmax.f32 %v968_v52, 0.0 }
 0x14e   : > { %v1149_v6 = vpop.f32.mrf.mxu0 }
 0x14f   : > { %v1057_v59 = vpop.f32.mrf.mxu3  ;;  %v6250_v8 = vpack.c.bf16 %v1604_v53, %v1595_v55  ;;  %v1238_v9 = vpop.f32.mrf.mxu1  ;;  %v1615_v21 = vmax.f32 %v1149_v6, 0.0 }
 0x150   : > { %v1605_v14 = vmax.f32 %v1057_v59, 0.0  ;;  %v1616_v26 = vmax.f32 %v1238_v9, 0.0  ;;  %v5300_v9 = vld [vmem:[%s7615_s3 + $0x8] sm:$0xff] }
 0x151   : > { %4844 = vmatmul.msk.bf16.gmra.mxu2 %vm695_vm1, %v5843_v19  ;;  %4876 = vmatmul.msk.bf16.gmra.mxu0 %vm695_vm1, %v5843_v19 }
 0x152   : > { %v6252_v17 = vpack.c.bf16 %v1605_v14, %v1596_v10  ;;  %4892 = vmatmul.msk.bf16.gmra.mxu1 %vm695_vm1, %v5843_v19 }
 0x153   : > { %2593 = vmatpush.bf16.msra.mxu1 %v5300_v9 }
 0x154   : > { %4860 = vmatmul.msk.bf16.gmra.mxu3 %vm695_vm1, %v5843_v19  ;;  %v971_v12 = vpop.f32.mrf.mxu2 }
 0x155   : > { %v1613_v55 = vmax.f32 %v971_v12, 0.0 }
 0x156   : > { %v1151_v56 = vpop.f32.mrf.mxu0 }
 0x157   : > { %v1060_v23 = vpop.f32.mrf.mxu3  ;;  %v1624_v38 = vmax.f32 %v1151_v56, 0.0  ;;  %v1240_v39 = vpop.f32.mrf.mxu1 }
 0x158   : > { %v1625_v11 = vmax.f32 %v1240_v39, 0.0  ;;  %v1614_v10 = vmax.f32 %v1060_v23, 0.0 }
 0x159   : > { %v6262_v46 = vpack.c.bf16 %v1624_v38, %v1615_v21 }
 0x15a   : > { %v6264_v48 = vpack.c.bf16 %v1625_v11, %v1616_v26 }
 0x15c   : > { %7632 = vst [vmem:[#allocation16_spill] sm:$0xff] %v6264_v48  ;;  %v973_v52 = vpop.f32.mrf.mxu2 }
 0x15d   : > { %v1622_v53 = vmax.f32 %v973_v52, 0.0 }
 0x15e   : > { %v1154_v43 = vpop.f32.mrf.mxu0 }
 0x15f   : > { %v1062_v59 = vpop.f32.mrf.mxu3  ;;  %v6266_v19 = vpack.c.bf16 %v1622_v53, %v1613_v55  ;;  %v1243_v6 = vpop.f32.mrf.mxu1  ;;  %v1633_v21 = vmax.f32 %v1154_v43, 0.0  ;;  %v4648_v53 = vld [vmem:[%s7614_s2 + $0x18] sm:$0xf]  ;;  %v5257_v43 = vld [vmem:[%s7614_s2 + $0x1c] sm:$0xf] }
 0x160   : > { %v1623_v14 = vmax.f32 %v1062_v59, 0.0  ;;  %v1634_v26 = vmax.f32 %v1243_v6, 0.0 }
 0x161   : > { %4845 = vmatmul.msk.bf16.gmra.mxu2 %vm695_vm1, %v5881_v33  ;;  %4877 = vmatmul.msk.bf16.gmra.mxu0 %vm695_vm1, %v5881_v33 }
 0x162   : > { %v6268_v37 = vpack.c.bf16 %v1623_v14, %v1614_v10  ;;  %4893 = vmatmul.msk.bf16.gmra.mxu1 %vm695_vm1, %v5881_v33  ;;  %v4650_v10 = vld [vmem:[%s7614_s2 + $0x3c] sm:$0xf0] }
 0x163   : > { %v4653_v6 = vor.u32 %v5257_v43, %v4650_v10 }
 0x164   : > { %4861 = vmatmul.msk.bf16.gmra.mxu3 %vm695_vm1, %v5881_v33  ;;  %v976_v12 = vpop.f32.mrf.mxu2  ;;  %v5261_v33 = vld [vmem:[%s7614_s2 + $0x38] sm:$0xf0] }
 0x165   : > { %v4649_v59 = vor.u32 %v5261_v33, %v4648_v53  ;;  %v1631_v9 = vmax.f32 %v976_v12, 0.0  ;;  %1404 = vmatpush.bf16.msra.mxu3 %v4653_v6  ;;  %v4656_v12 = vld [vmem:[%s7614_s2 + $0x20] sm:$0xf] }
 0x166   : > { %v1156_v56 = vpop.f32.mrf.mxu0 }
 0x167   : > { %v1065_v23 = vpop.f32.mrf.mxu3  ;;  %v1642_v38 = vmax.f32 %v1156_v56, 0.0  ;;  %v1245_v39 = vpop.f32.mrf.mxu1  ;;  %1315 = vmatpush.bf16.msra.mxu2 %v4649_v59 }
 0x168   : > { %v1643_v11 = vmax.f32 %v1245_v39, 0.0  ;;  %v1632_v56 = vmax.f32 %v1065_v23, 0.0  ;;  %v5262_v23 = vld [vmem:[%s7614_s2 + $0x40] sm:$0xf0] }
 0x169   : > { %v6281_v52 = vpack.c.bf16 %v1642_v38, %v1633_v21  ;;  %v4657_v53 = vor.u32 %v5262_v23, %v4656_v12 }
 0x16a   : > { %v6283_v55 = vpack.c.bf16 %v1643_v11, %v1634_v26 }
 0x16b   : > { %1493 = vmatpush.bf16.msra.mxu0 %v4657_v53 }
 0x16c   : > { %7633 = vst [vmem:[#allocation17_spill] sm:$0xff] %v6283_v55  ;;  %v978_v14 = vpop.f32.mrf.mxu2 }
 0x16d   : > { %v1640_v21 = vmax.f32 %v978_v14, 0.0 }
 0x16e   : > { %v1159_v39 = vpop.f32.mrf.mxu0 }
 0x16f   : > { %v1067_v26 = vpop.f32.mrf.mxu3  ;;  %v6297_v11 = vpack.c.bf16 %v1640_v21, %v1631_v9  ;;  %v1248_v55 = vpop.f32.mrf.mxu1  ;;  %v1651_v43 = vmax.f32 %v1159_v39, 0.0 }
 0x170   : > { %v1641_v38 = vmax.f32 %v1067_v26, 0.0  ;;  %v1652_v10 = vmax.f32 %v1248_v55, 0.0  ;;  %v5299_v55 = vld [vmem:[%s7615_s3] sm:$0xff] }
 0x171   : > { %4846 = vmatmul.msk.bf16.gmra.mxu2 %vm695_vm1, %v5907_v41  ;;  %4878 = vmatmul.msk.bf16.gmra.mxu0 %vm695_vm1, %v5907_v41 }
 0x172   : > { %v6299_v48 = vpack.c.bf16 %v1641_v38, %v1632_v56  ;;  %4894 = vmatmul.msk.bf16.gmra.mxu1 %vm695_vm1, %v5907_v41 }
 0x173   : > { %2594 = vmatpush.bf16.msra.mxu1 %v5299_v55 }
 0x174   : > { %4862 = vmatmul.msk.bf16.gmra.mxu3 %vm695_vm1, %v5907_v41  ;;  %v981_v33 = vpop.f32.mrf.mxu2 }
 0x175   : > { %v1649_v38 = vmax.f32 %v981_v33, 0.0 }
 0x176   : > { %v1161_v14 = vpop.f32.mrf.mxu0 }
 0x177   : > { %v1070_v59 = vpop.f32.mrf.mxu3  ;;  %v1660_v6 = vmax.f32 %v1161_v14, 0.0  ;;  %v1250_v9 = vpop.f32.mrf.mxu1 }
 0x178   : > { %v1661_v21 = vmax.f32 %v1250_v9, 0.0  ;;  %v1650_v36 = vmax.f32 %v1070_v59, 0.0 }
 0x179   : > { %v6315_v26 = vpack.c.bf16 %v1660_v6, %v1651_v43 }
 0x17a   : > { %v6317_v41 = vpack.c.bf16 %v1661_v21, %v1652_v10 }
 0x17c   : > { %7634 = vst [vmem:[#allocation18_spill] sm:$0xff] %v6317_v41  ;;  %v983_v56 = vpop.f32.mrf.mxu2 }
 0x17d   : > { %v1658_v7 = vmax.f32 %v983_v56, 0.0 }
 0x17e   : > { %v1164_v12 = vpop.f32.mrf.mxu0 }
 0x17f   : > { %v1072_v27 = vpop.f32.mrf.mxu3  ;;  %v6319_v23 = vpack.c.bf16 %v1658_v7, %v1649_v38  ;;  %v1253_v39 = vpop.f32.mrf.mxu1 }
 0x180   : > { %v1659_v60 = vmax.f32 %v1072_v27, 0.0  ;;  %v1670_v7 = vmax.f32 %v1253_v39, 0.0  ;;  %v5314_v39 = vld [vmem:[%s7615_s3 + $0x78] sm:$0xff] }
 0x181   : > { %4847 = vmatmul.msk.bf16.gmra.mxu2 %vm695_vm1, %v5945_v57  ;;  %4879 = vmatmul.msk.bf16.gmra.mxu0 %vm695_vm1, %v5945_v57 }
 0x182   : > { %v6321_v53 = vpack.c.bf16 %v1659_v60, %v1650_v36  ;;  %4895 = vmatmul.msk.bf16.gmra.mxu1 %vm695_vm1, %v5945_v57  ;;  %v1669_v60 = vmax.f32 %v1164_v12, 0.0  ;;  %2676 = vmatpush.bf16.msrb.mxu2 %v5314_v39 }
 0x184   : > { %4863 = vmatmul.msk.bf16.gmra.mxu3 %vm695_vm1, %v5945_v57  ;;  %v986_v27 = vpop.f32.mrf.mxu2 }
 0x185   : > { %v1667_v21 = vmax.f32 %v986_v27, 0.0 }
 0x186   : > { %v1166_v33 = vpop.f32.mrf.mxu0 }
 0x187   : > { %v1075_v36 = vpop.f32.mrf.mxu3  ;;  %v1678_v43 = vmax.f32 %v1166_v33, 0.0  ;;  %v1255_v59 = vpop.f32.mrf.mxu1 }
 0x188   : > { %v1679_v10 = vmax.f32 %v1255_v59, 0.0  ;;  %v1668_v41 = vmax.f32 %v1075_v36, 0.0 }
 0x189   : > { %v6334_v14 = vpack.c.bf16 %v1678_v43, %v1669_v60 }
 0x18a   : > { %v6336_v6 = vpack.c.bf16 %v1679_v10, %v1670_v7 }
 0x18c   : > { %7635 = vst [vmem:[#allocation19_spill] sm:$0xff] %v6336_v6  ;;  %v988_v9 = vpop.f32.mrf.mxu2 }
 0x18d   : > { %v1676_v56 = vmax.f32 %v988_v9, 0.0  ;;  %v5330_v9 = vld [vmem:[%s7615_s3 + $0xf8] sm:$0xff] }
 0x18e   : > { %v1169_v57 = vpop.f32.mrf.mxu0  ;;  %2854 = vmatpush.bf16.msrb.mxu0 %v5330_v9 }
 0x18f   : > { %v1077_v38 = vpop.f32.mrf.mxu3  ;;  %v6338_v55 = vpack.c.bf16 %v1676_v56, %v1667_v21  ;;  %v1258_v12 = vpop.f32.mrf.mxu1  ;;  %v1687_v27 = vmax.f32 %v1169_v57, 0.0 }
 0x190   : > { %v1677_v24 = vmax.f32 %v1077_v38, 0.0  ;;  %v1688_v36 = vmax.f32 %v1258_v12, 0.0 }
 0x191   : > { %4848 = vmatmul.msk.bf16.gmra.mxu2 %vm695_vm1, %v5971_v1  ;;  %4880 = vmatmul.msk.bf16.gmra.mxu0 %vm695_vm1, %v5971_v1 }
 0x192   : > { %v6340_v47 = vpack.c.bf16 %v1677_v24, %v1668_v41  ;;  %4896 = vmatmul.msk.bf16.gmra.mxu1 %vm695_vm1, %v5971_v1  ;;  %v5322_v24 = vld [vmem:[%s7615_s3 + $0xb8] sm:$0xff] }
 0x193   : > { %2765 = vmatpush.bf16.msrb.mxu3 %v5322_v24 }
 0x194   : > { %4864 = vmatmul.msk.bf16.gmra.mxu3 %vm695_vm1, %v5971_v1  ;;  %v991_v41 = vpop.f32.mrf.mxu2 }
 0x195   : > { %v1685_v56 = vmax.f32 %v991_v41, 0.0 }
 0x196   : > { %v1171_v7 = vpop.f32.mrf.mxu0 }
 0x197   : > { %v1080_v60 = vpop.f32.mrf.mxu3  ;;  %v1696_v33 = vmax.f32 %v1171_v7, 0.0  ;;  %v1260_v43 = vpop.f32.mrf.mxu1 }
 0x198   : > { %v1697_v59 = vmax.f32 %v1260_v43, 0.0  ;;  %v1686_v57 = vmax.f32 %v1080_v60, 0.0 }
 0x199   : > { %v6356_v10 = vpack.c.bf16 %v1696_v33, %v1687_v27  ;;  %v5338_v27 = vld [vmem:[%s7615_s3 + $0x138] sm:$0xff] }
 0x19a   : > { %v6358_v1 = vpack.c.bf16 %v1697_v59, %v1688_v36  ;;  %2943 = vmatpush.bf16.msrb.mxu1 %v5338_v27 }
 0x19b   : > { %7636 = vst [vmem:[#allocation20_spill] sm:$0xff] %v6356_v10  ;;  %v5508_v10 = vld [vmem:[%s5757_s16] sm:$0xff] }
 0x19c   : > { %7637 = vst [vmem:[#allocation21_spill] sm:$0xff] %v6358_v1  ;;  %v993_v21 = vpop.f32.mrf.mxu2 }
 0x19d   : > { %v1694_v38 = vmax.f32 %v993_v21, 0.0 }
 0x19e   : > { %v1174_v12 = vpop.f32.mrf.mxu0 }
 0x19f   : > { %v1082_v39 = vpop.f32.mrf.mxu3  ;;  %v6363_v6 = vpack.c.bf16 %v1694_v38, %v1685_v56  ;;  %v1263_v7 = vpop.f32.mrf.mxu1  ;;  %v1705_v60 = vmax.f32 %v1174_v12, 0.0 }
 0x1a0   : > { %v1695_v24 = vmax.f32 %v1082_v39, 0.0  ;;  %v1706_v33 = vmax.f32 %v1263_v7, 0.0 }
 0x1a1   : > { %4849 = vmatmul.msk.bf16.gmra.mxu2 %vm695_vm1, %v5993_v15  ;;  %4881 = vmatmul.msk.bf16.gmra.mxu0 %vm695_vm1, %v5993_v15 }
 0x1a2   : > { %v6365_v43 = vpack.c.bf16 %v1695_v24, %v1686_v57  ;;  %4897 = vmatmul.msk.bf16.gmra.mxu1 %vm695_vm1, %v5993_v15 }
 0x1a4   : > { %4865 = vmatmul.msk.bf16.gmra.mxu3 %vm695_vm1, %v5993_v15  ;;  %v996_v41 = vpop.f32.mrf.mxu2 }
 0x1a5   : > { %v1703_v24 = vmax.f32 %v996_v41, 0.0  ;;  %v5313_v41 = vld [vmem:[%s7615_s3 + $0x70] sm:$0xff] }
 0x1a6   : > { %v1176_v59 = vpop.f32.mrf.mxu0  ;;  %2677 = vmatpush.bf16.msrb.mxu2 %v5313_v41 }
 0x1a7   : > { %v1085_v36 = vpop.f32.mrf.mxu3  ;;  %v1714_v9 = vmax.f32 %v1176_v59, 0.0  ;;  %v1265_v21 = vpop.f32.mrf.mxu1 }
 0x1a8   : > { %v1715_v56 = vmax.f32 %v1265_v21, 0.0  ;;  %v1704_v44 = vmax.f32 %v1085_v36, 0.0 }
 0x1a9   : > { %v6378_v38 = vpack.c.bf16 %v1714_v9, %v1705_v60 }
 0x1aa   : > { %v6380_v39 = vpack.c.bf16 %v1715_v56, %v1706_v33  ;;  %v5329_v56 = vld [vmem:[%s7615_s3 + $0xf0] sm:$0xff] }
 0x1ab   : > { %7638 = vst [vmem:[#allocation22_spill] sm:$0xff] %v6378_v38  ;;  %2855 = vmatpush.bf16.msrb.mxu0 %v5329_v56  ;;  %v5510_v38 = vld [vmem:[%s5757_s16 + $0x10] sm:$0xff] }
 0x1ac   : > { %7639 = vst [vmem:[#allocation23_spill] sm:$0xff] %v6380_v39  ;;  %v998_v57 = vpop.f32.mrf.mxu2 }
 0x1ad   : > { %v1712_v1 = vmax.f32 %v998_v57, 0.0 }
 0x1ae   : > { %v1179_v27 = vpop.f32.mrf.mxu0 }
 0x1af   : > { %v1087_v4 = vpop.f32.mrf.mxu3  ;;  %v6382_v51 = vpack.c.bf16 %v1712_v1, %v1703_v24  ;;  %v1268_v12 = vpop.f32.mrf.mxu1 }
 0x1b0   : > { %v1713_v15 = vmax.f32 %v1087_v4, 0.0  ;;  %v5321_v4 = vld [vmem:[%s7615_s3 + $0xb0] sm:$0xff]  ;;  %v1724_v36 = vmax.f32 %v1268_v12, 0.0 }
 0x1b1   : > { %4898 = vmatmul.msk.bf16.vlgmr.msra.gmra.mxu2 %vm695_vm1, %v5508_v10  ;;  %4930 = vmatmul.msk.bf16.vlgmr.msra.gmra.mxu0 %vm695_vm1, %v5508_v10 }
 0x1b2   : > { %v6384_v7 = vpack.c.bf16 %v1713_v15, %v1704_v44  ;;  %2595 = vmatmul.bf16.vlgmr.msra.gmra.mxu1 %v6015_v30  ;;  %2766 = vmatpush.bf16.msrb.mxu3 %v5321_v4  ;;  %v1723_v44 = vmax.f32 %v1179_v27, 0.0 }
 0x1b4   : > { %4914 = vmatmul.msk.bf16.vlgmr.msra.gmra.mxu3 %vm695_vm1, %v5508_v10  ;;  %v1001_v1 = vpop.f32.mrf.mxu2 }
 0x1b5   : > { %v1721_v24 = vmax.f32 %v1001_v1, 0.0 }
 0x1b6   : > { %v1181_v33 = vpop.f32.mrf.mxu0 }
 0x1b7   : > { %v1090_v60 = vpop.f32.mrf.mxu3  ;;  %v1732_v59 = vmax.f32 %v1181_v33, 0.0  ;;  %v1270_v9 = vpop.f32.mrf.mxu1 }
 0x1b8   : > { %v1733_v10 = vmax.f32 %v1270_v9, 0.0  ;;  %v1722_v41 = vmax.f32 %v1090_v60, 0.0 }
 0x1b9   : > { %v6397_v30 = vpack.c.bf16 %v1732_v59, %v1723_v44  ;;  %v5337_v44 = vld [vmem:[%s7615_s3 + $0x130] sm:$0xff] }
 0x1ba   : > { %v6399_v21 = vpack.c.bf16 %v1733_v10, %v1724_v36  ;;  %v5509_v36 = vld [vmem:[%s5757_s16 + $0x8] sm:$0xff]  ;;  %2944 = vmatpush.bf16.msrb.mxu1 %v5337_v44 }
 0x1bb   : > { %7640 = vst [vmem:[#allocation24_spill] sm:$0xff] %v6397_v30 }
 0x1bc   : > { %7641 = vst [vmem:[#allocation25_spill] sm:$0xff] %v6399_v21  ;;  %v1003_v57 = vpop.f32.mrf.mxu2 }
 0x1bd   : > { %v1730_v15 = vmax.f32 %v1003_v57, 0.0 }
 0x1be   : > { %v1184_v4 = vpop.f32.mrf.mxu0 }
 0x1bf   : > { %v1092_v27 = vpop.f32.mrf.mxu3  ;;  %v6404_v33 = vpack.c.bf16 %v1730_v15, %v1721_v24  ;;  %v1273_v9 = vpop.f32.mrf.mxu1  ;;  %v1741_v60 = vmax.f32 %v1184_v4, 0.0 }
 0x1c0   : > { %v1731_v12 = vmax.f32 %v1092_v27, 0.0  ;;  %v1742_v10 = vmax.f32 %v1273_v9, 0.0 }
 0x1c1   : > { %7642 = vst [vmem:[#allocation26_spill] sm:$0xff] %v6404_v33  ;;  %4899 = vmatmul.msk.bf16.gmra.mxu2 %vm695_vm1, %v5509_v36  ;;  %4931 = vmatmul.msk.bf16.gmra.mxu0 %vm695_vm1, %v5509_v36 }
 0x1c2   : > { %v6406_v39 = vpack.c.bf16 %v1731_v12, %v1722_v41  ;;  %2600 = vmatmul.bf16.gmra.mxu1 %v6046_v2 }
 0x1c4   : > { %7643 = vst [vmem:[#allocation27_spill] sm:$0xff] %v6406_v39  ;;  %4915 = vmatmul.msk.bf16.gmra.mxu3 %vm695_vm1, %v5509_v36  ;;  %v1006_v1 = vpop.f32.mrf.mxu2 }
 0x1c5   : > { %v1739_v21 = vmax.f32 %v1006_v1, 0.0  ;;  %v5312_v1 = vld [vmem:[%s7615_s3 + $0x68] sm:$0xff] }
 0x1c6   : > { %v1186_v56 = vpop.f32.mrf.mxu0  ;;  %2678 = vmatpush.bf16.msrb.mxu2 %v5312_v1 }
 0x1c7   : > { %v1095_v59 = vpop.f32.mrf.mxu3  ;;  %v1750_v57 = vmax.f32 %v1186_v56, 0.0  ;;  %v1275_v24 = vpop.f32.mrf.mxu1 }
 0x1c8   : > { %v1751_v15 = vmax.f32 %v1275_v24, 0.0  ;;  %v1740_v33 = vmax.f32 %v1095_v59, 0.0 }
 0x1c9   : > { %v6416_v27 = vpack.c.bf16 %v1750_v57, %v1741_v60 }
 0x1ca   : > { %v6418_v41 = vpack.c.bf16 %v1751_v15, %v1742_v10  ;;  %v5328_v15 = vld [vmem:[%s7615_s3 + $0xe8] sm:$0xff] }
 0x1cb   : > { %7644 = vst [vmem:[#allocation28_spill] sm:$0xff] %v6416_v27  ;;  %2856 = vmatpush.bf16.msrb.mxu0 %v5328_v15  ;;  %v5512_v27 = vld [vmem:[%s5757_s16 + $0x20] sm:$0xff] }
 0x1cc   : > { %7645 = vst [vmem:[#allocation29_spill] sm:$0xff] %v6418_v41  ;;  %v1008_v12 = vpop.f32.mrf.mxu2 }
 0x1cd   : > { %v1748_v30 = vmax.f32 %v1008_v12, 0.0 }
 0x1ce   : > { %v1189_v44 = vpop.f32.mrf.mxu0 }
 0x1cf   : > { %v1097_v36 = vpop.f32.mrf.mxu3  ;;  %v6420_v39 = vpack.c.bf16 %v1748_v30, %v1739_v21  ;;  %v1278_v4 = vpop.f32.mrf.mxu1  ;;  %v5320_v30 = vld [vmem:[%s7615_s3 + $0xa8] sm:$0xff] }
 0x1d0   : > { %v1749_v2 = vmax.f32 %v1097_v36, 0.0  ;;  %2767 = vmatpush.bf16.msrb.mxu3 %v5320_v30  ;;  %v1760_v59 = vmax.f32 %v1278_v4, 0.0 }
 0x1d1   : > { %4900 = vmatmul.msk.bf16.gmra.mxu2 %vm695_vm1, %v5510_v38  ;;  %4932 = vmatmul.msk.bf16.gmra.mxu0 %vm695_vm1, %v5510_v38 }
 0x1d2   : > { %v6422_v9 = vpack.c.bf16 %v1749_v2, %v1740_v33  ;;  %2605 = vmatmul.bf16.gmra.mxu1 %v6068_v34  ;;  %v1759_v33 = vmax.f32 %v1189_v44, 0.0 }
 0x1d4   : > { %4916 = vmatmul.msk.bf16.gmra.mxu3 %vm695_vm1, %v5510_v38  ;;  %v1011_v21 = vpop.f32.mrf.mxu2 }
 0x1d5   : > { %v1757_v36 = vmax.f32 %v1011_v21, 0.0 }
 0x1d6   : > { %v1191_v10 = vpop.f32.mrf.mxu0 }
 0x1d7   : > { %v1100_v60 = vpop.f32.mrf.mxu3  ;;  %v1768_v56 = vmax.f32 %v1191_v10, 0.0  ;;  %v1280_v57 = vpop.f32.mrf.mxu1 }
 0x1d8   : > { %v1769_v38 = vmax.f32 %v1280_v57, 0.0  ;;  %v1758_v1 = vmax.f32 %v1100_v60, 0.0 }
 0x1d9   : > { %v6435_v34 = vpack.c.bf16 %v1768_v56, %v1759_v33  ;;  %v5336_v33 = vld [vmem:[%s7615_s3 + $0x128] sm:$0xff] }
 0x1da   : > { %v6437_v24 = vpack.c.bf16 %v1769_v38, %v1760_v59  ;;  %v5511_v59 = vld [vmem:[%s5757_s16 + $0x18] sm:$0xff]  ;;  %2945 = vmatpush.bf16.msrb.mxu1 %v5336_v33 }
 0x1db   : > { %7646 = vst [vmem:[#allocation30_spill] sm:$0xff] %v6435_v34 }
 0x1dc   : > { %7647 = vst [vmem:[#allocation31_spill] sm:$0xff] %v6437_v24  ;;  %v1013_v12 = vpop.f32.mrf.mxu2 }
 0x1dd   : > { %v1766_v2 = vmax.f32 %v1013_v12, 0.0 }
 0x1de   : > { %v1194_v30 = vpop.f32.mrf.mxu0 }
 0x1df   : > { %v1102_v44 = vpop.f32.mrf.mxu3  ;;  %v6442_v10 = vpack.c.bf16 %v1766_v2, %v1757_v36  ;;  %v1283_v57 = vpop.f32.mrf.mxu1  ;;  %v1777_v60 = vmax.f32 %v1194_v30, 0.0 }
 0x1e0   : > { %v1767_v4 = vmax.f32 %v1102_v44, 0.0  ;;  %v1778_v38 = vmax.f32 %v1283_v57, 0.0 }
 0x1e1   : > { %7648 = vst [vmem:[#allocation32_spill] sm:$0xff] %v6442_v10  ;;  %4901 = vmatmul.msk.bf16.gmra.mxu2 %vm695_vm1, %v5511_v59  ;;  %4933 = vmatmul.msk.bf16.gmra.mxu0 %vm695_vm1, %v5511_v59 }
 0x1e2   : > { %v6444_v41 = vpack.c.bf16 %v1767_v4, %v1758_v1  ;;  %2610 = vmatmul.bf16.gmra.mxu1 %v6087_v61 }
 0x1e4   : > { %7649 = vst [vmem:[#allocation33_spill] sm:$0xff] %v6444_v41  ;;  %4917 = vmatmul.msk.bf16.gmra.mxu3 %vm695_vm1, %v5511_v59  ;;  %v1016_v21 = vpop.f32.mrf.mxu2 }
 0x1e5   : > { %v1775_v24 = vmax.f32 %v1016_v21, 0.0  ;;  %v5311_v21 = vld [vmem:[%s7615_s3 + $0x60] sm:$0xff] }
 0x1e6   : > { %v1196_v15 = vpop.f32.mrf.mxu0  ;;  %2679 = vmatpush.bf16.msrb.mxu2 %v5311_v21 }
 0x1e7   : > { %v1105_v56 = vpop.f32.mrf.mxu3  ;;  %v1786_v12 = vmax.f32 %v1196_v15, 0.0  ;;  %v1285_v36 = vpop.f32.mrf.mxu1 }
 0x1e8   : > { %v1787_v2 = vmax.f32 %v1285_v36, 0.0  ;;  %v1776_v10 = vmax.f32 %v1105_v56, 0.0 }
 0x1e9   : > { %v6454_v44 = vpack.c.bf16 %v1786_v12, %v1777_v60 }
 0x1ea   : > { %v6456_v1 = vpack.c.bf16 %v1787_v2, %v1778_v38  ;;  %v5327_v2 = vld [vmem:[%s7615_s3 + $0xe0] sm:$0xff] }
 0x1eb   : > { %7650 = vst [vmem:[#allocation34_spill] sm:$0xff] %v6454_v44  ;;  %2857 = vmatpush.bf16.msrb.mxu0 %v5327_v2  ;;  %v5514_v44 = vld [vmem:[%s5757_s16 + $0x30] sm:$0xff] }
 0x1ec   : > { %7651 = vst [vmem:[#allocation35_spill] sm:$0xff] %v6456_v1  ;;  %v1018_v4 = vpop.f32.mrf.mxu2 }
 0x1ed   : > { %v1784_v34 = vmax.f32 %v1018_v4, 0.0 }
 0x1ee   : > { %v1199_v33 = vpop.f32.mrf.mxu0 }
 0x1ef   : > { %v1107_v59 = vpop.f32.mrf.mxu3  ;;  %v6458_v41 = vpack.c.bf16 %v1784_v34, %v1775_v24  ;;  %v1288_v30 = vpop.f32.mrf.mxu1  ;;  %v5319_v34 = vld [vmem:[%s7615_s3 + $0xa0] sm:$0xff] }
 0x1f0   : > { %v1785_v61 = vmax.f32 %v1107_v59, 0.0  ;;  %2768 = vmatpush.bf16.msrb.mxu3 %v5319_v34  ;;  %v1796_v56 = vmax.f32 %v1288_v30, 0.0 }
 0x1f1   : > { %4902 = vmatmul.msk.bf16.gmra.mxu2 %vm695_vm1, %v5512_v27  ;;  %4934 = vmatmul.msk.bf16.gmra.mxu0 %vm695_vm1, %v5512_v27 }
 0x1f2   : > { %v6460_v57 = vpack.c.bf16 %v1785_v61, %v1776_v10  ;;  %2615 = vmatmul.bf16.gmra.mxu1 %v6121_v45  ;;  %v1795_v10 = vmax.f32 %v1199_v33, 0.0 }
 0x1f4   : > { %4918 = vmatmul.msk.bf16.gmra.mxu3 %vm695_vm1, %v5512_v27  ;;  %v1021_v24 = vpop.f32.mrf.mxu2 }
 0x1f5   : > { %v1793_v59 = vmax.f32 %v1021_v24, 0.0 }
 0x1f6   : > { %v1201_v38 = vpop.f32.mrf.mxu0 }
 0x1f7   : > { %v1110_v60 = vpop.f32.mrf.mxu3  ;;  %v1804_v15 = vmax.f32 %v1201_v38, 0.0  ;;  %v1290_v12 = vpop.f32.mrf.mxu1 }
 0x1f8   : > { %v1805_v27 = vmax.f32 %v1290_v12, 0.0  ;;  %v1794_v21 = vmax.f32 %v1110_v60, 0.0 }
 0x1f9   : > { %v6473_v45 = vpack.c.bf16 %v1804_v15, %v1795_v10  ;;  %v5335_v10 = vld [vmem:[%s7615_s3 + $0x120] sm:$0xff] }
 0x1fa   : > { %v6475_v36 = vpack.c.bf16 %v1805_v27, %v1796_v56  ;;  %v5513_v56 = vld [vmem:[%s5757_s16 + $0x28] sm:$0xff]  ;;  %2946 = vmatpush.bf16.msrb.mxu1 %v5335_v10 }
 0x1fb   : > { %7652 = vst [vmem:[#allocation36_spill] sm:$0xff] %v6473_v45 }
 0x1fc   : > { %7653 = vst [vmem:[#allocation37_spill] sm:$0xff] %v6475_v36  ;;  %v1023_v4 = vpop.f32.mrf.mxu2 }
 0x1fd   : > { %v1802_v61 = vmax.f32 %v1023_v4, 0.0 }
 0x1fe   : > { %v1204_v34 = vpop.f32.mrf.mxu0 }
 0x1ff   : > { %v1112_v33 = vpop.f32.mrf.mxu3  ;;  %v6480_v38 = vpack.c.bf16 %v1802_v61, %v1793_v59  ;;  %v1293_v12 = vpop.f32.mrf.mxu1  ;;  %v1813_v60 = vmax.f32 %v1204_v34, 0.0 }
 0x200   : > { %v1803_v30 = vmax.f32 %v1112_v33, 0.0  ;;  %v1814_v27 = vmax.f32 %v1293_v12, 0.0 }
 0x201   : > { %7654 = vst [vmem:[#allocation38_spill] sm:$0xff] %v6480_v38  ;;  %4903 = vmatmul.msk.bf16.gmra.mxu2 %vm695_vm1, %v5513_v56  ;;  %4935 = vmatmul.msk.bf16.gmra.mxu0 %vm695_vm1, %v5513_v56 }
 0x202   : > { %v6482_v1 = vpack.c.bf16 %v1803_v30, %v1794_v21  ;;  %2620 = vmatmul.bf16.gmra.mxu1 %v6140_v13 }
 0x204   : > { %7655 = vst [vmem:[#allocation39_spill] sm:$0xff] %v6482_v1  ;;  %4919 = vmatmul.msk.bf16.gmra.mxu3 %vm695_vm1, %v5513_v56  ;;  %v1026_v24 = vpop.f32.mrf.mxu2 }
 0x205   : > { %v1811_v36 = vmax.f32 %v1026_v24, 0.0  ;;  %v5310_v24 = vld [vmem:[%s7615_s3 + $0x58] sm:$0xff] }
 0x206   : > { %v1206_v2 = vpop.f32.mrf.mxu0  ;;  %2680 = vmatpush.bf16.msrb.mxu2 %v5310_v24 }
 0x207   : > { %v1115_v15 = vpop.f32.mrf.mxu3  ;;  %v1822_v4 = vmax.f32 %v1206_v2, 0.0  ;;  %v1295_v59 = vpop.f32.mrf.mxu1 }
 0x208   : > { %v1823_v61 = vmax.f32 %v1295_v59, 0.0  ;;  %v1812_v38 = vmax.f32 %v1115_v15, 0.0  ;;  %v5326_v59 = vld [vmem:[%s7615_s3 + $0xd8] sm:$0xff] }
 0x209   : > { %v6492_v33 = vpack.c.bf16 %v1822_v4, %v1813_v60  ;;  %2858 = vmatpush.bf16.msrb.mxu0 %v5326_v59 }
 0x20a   : > { %v6494_v21 = vpack.c.bf16 %v1823_v61, %v1814_v27 }
 0x20b   : > { %7656 = vst [vmem:[#allocation40_spill] sm:$0xff] %v6492_v33 }
 0x20c   : > { %7657 = vst [vmem:[#allocation41_spill] sm:$0xff] %v6494_v21  ;;  %v1028_v30 = vpop.f32.mrf.mxu2 }
 0x20d   : > { %v1820_v45 = vmax.f32 %v1028_v30, 0.0 }
 0x20e   : > { %v1209_v10 = vpop.f32.mrf.mxu0 }
 0x20f   : > { %v1117_v56 = vpop.f32.mrf.mxu3  ;;  %v6496_v1 = vpack.c.bf16 %v1820_v45, %v1811_v36  ;;  %v1298_v34 = vpop.f32.mrf.mxu1  ;;  %v5318_v45 = vld [vmem:[%s7615_s3 + $0x98] sm:$0xff] }
 0x210   : > { %v1821_v13 = vmax.f32 %v1117_v56, 0.0  ;;  %2769 = vmatpush.bf16.msrb.mxu3 %v5318_v45  ;;  %v1832_v15 = vmax.f32 %v1298_v34, 0.0 }
 0x211   : > { %7658 = vst [vmem:[#allocation42_spill] sm:$0xff] %v6496_v1  ;;  %4904 = vmatmul.msk.bf16.gmra.mxu2 %vm695_vm1, %v5514_v44  ;;  %4936 = vmatmul.msk.bf16.gmra.mxu0 %vm695_vm1, %v5514_v44 }
 0x212   : > { %v6498_v12 = vpack.c.bf16 %v1821_v13, %v1812_v38  ;;  %2625 = vmatmul.bf16.gmra.mxu1 %v6168_v63  ;;  %v1831_v38 = vmax.f32 %v1209_v10, 0.0 }
 0x214   : > { %4920 = vmatmul.msk.bf16.gmra.mxu3 %vm695_vm1, %v5514_v44  ;;  %v1031_v36 = vpop.f32.mrf.mxu2 }
 0x215   : > { %v1829_v56 = vmax.f32 %v1031_v36, 0.0 }
 0x216   : > { %v1211_v27 = vpop.f32.mrf.mxu0 }
 0x217   : > { %v1120_v60 = vpop.f32.mrf.mxu3  ;;  %v1840_v2 = vmax.f32 %v1211_v27, 0.0  ;;  %v1300_v4 = vpop.f32.mrf.mxu1 }
 0x218   : > { %v1841_v44 = vmax.f32 %v1300_v4, 0.0  ;;  %v1830_v24 = vmax.f32 %v1120_v60, 0.0 }
 0x219   : > { %v6511_v63 = vpack.c.bf16 %v1840_v2, %v1831_v38  ;;  %v5334_v38 = vld [vmem:[%s7615_s3 + $0x118] sm:$0xff] }
 0x21a   : > { %v6516_v61 = vpack.c.bf16 %v1841_v44, %v1832_v15  ;;  %v5515_v2 = vld [vmem:[%s5757_s16 + $0x38] sm:$0xff]  ;;  %2947 = vmatpush.bf16.msrb.mxu1 %v5334_v38 }
 0x21b   : > { %7659 = vst [vmem:[#allocation43_spill] sm:$0xff] %v6511_v63 }
 0x21c   : > { %7660 = vst [vmem:[#allocation44_spill] sm:$0xff] %v6516_v61  ;;  %v1033_v30 = vpop.f32.mrf.mxu2 }
 0x21d   : > { %v1838_v13 = vmax.f32 %v1033_v30, 0.0 }
 0x21e   : > { %v1214_v45 = vpop.f32.mrf.mxu0 }
 0x21f   : > { %v1122_v10 = vpop.f32.mrf.mxu3  ;;  %v6518_v27 = vpack.c.bf16 %v1838_v13, %v1829_v56  ;;  %v1303_v4 = vpop.f32.mrf.mxu1  ;;  %v1849_v60 = vmax.f32 %v1214_v45, 0.0 }
 0x220   : > { %v1839_v34 = vmax.f32 %v1122_v10, 0.0  ;;  %v1850_v44 = vmax.f32 %v1303_v4, 0.0 }
 0x221   : > { %7661 = vst [vmem:[#allocation45_spill] sm:$0xff] %v6518_v27  ;;  %4905 = vmatmul.msk.bf16.gmra.mxu2 %vm695_vm1, %v5515_v2  ;;  %4937 = vmatmul.msk.bf16.gmra.mxu0 %vm695_vm1, %v5515_v2 }
 0x222   : > { %v6520_v21 = vpack.c.bf16 %v1839_v34, %v1830_v24  ;;  %2630 = vmatmul.bf16.gmra.mxu1 %v6193_v0 }
 0x224   : > { %7662 = vst [vmem:[#allocation46_spill] sm:$0xff] %v6520_v21  ;;  %4921 = vmatmul.msk.bf16.gmra.mxu3 %vm695_vm1, %v5515_v2  ;;  %v1036_v36 = vpop.f32.mrf.mxu2 }
 0x225   : > { %v1847_v61 = vmax.f32 %v1036_v36, 0.0  ;;  %v5309_v36 = vld [vmem:[%s7615_s3 + $0x50] sm:$0xff] }
 0x226   : > { %v1216_v59 = vpop.f32.mrf.mxu0  ;;  %2681 = vmatpush.bf16.msrb.mxu2 %v5309_v36 }
 0x227   : > { %v1125_v15 = vpop.f32.mrf.mxu3  ;;  %v1858_v30 = vmax.f32 %v1216_v59, 0.0  ;;  %v1305_v56 = vpop.f32.mrf.mxu1  ;;  %v5516_v59 = vld [vmem:[%s5757_s16 + $0x40] sm:$0xff] }
 0x228   : > { %v1859_v13 = vmax.f32 %v1305_v56, 0.0  ;;  %v1848_v27 = vmax.f32 %v1125_v15, 0.0 }
 0x229   : > { %v6530_v10 = vpack.c.bf16 %v1858_v30, %v1849_v60 }
 0x22a   : > { %v6532_v24 = vpack.c.bf16 %v1859_v13, %v1850_v44 }
 0x22b   : > { %7663 = vst [vmem:[#allocation47_spill] sm:$0xff] %v6530_v10 }
 0x22c   : > { %7664 = vst [vmem:[#allocation48_spill] sm:$0xff] %v6532_v24  ;;  %v1038_v34 = vpop.f32.mrf.mxu2 }
 0x22d   : > { %v1856_v63 = vmax.f32 %v1038_v34, 0.0 }
 0x22e   : > { %v1495_v38 = vpop.f32.mrf.mxu0 }
 0x22f   : > { %v1127_v2 = vpop.f32.mrf.mxu3  ;;  %v6534_v21 = vpack.c.bf16 %v1856_v63, %v1847_v61  ;;  %v6536_v45 = vpop.f32.mrf.mxu1  ;;  %v5317_v63 = vld [vmem:[%s7615_s3 + $0x90] sm:$0xff] }
 0x230   : > { %v1857_v0 = vmax.f32 %v1127_v2, 0.0  ;;  %2770 = vmatpush.bf16.msrb.mxu3 %v5317_v63 }
 0x231   : > { %7665 = vst [vmem:[#allocation49_spill] sm:$0xff] %v6534_v21  ;;  %4906 = vmatmul.msk.bf16.gmra.mxu2 %vm695_vm1, %v5516_v59  ;;  %4938 = vmatmul.msk.bf16.gmra.mxu0 %vm695_vm1, %v5516_v59 }
 0x232   : > { %v6538_v4 = vpack.c.bf16 %v1857_v0, %v1848_v27  ;;  %2635 = vmatmul.bf16.gmra.mxu1 %v6019_v49  ;;  %v1583_v27 = vmax.f32 %v1495_v38, 0.0  ;;  %v5325_v49 = vld [vmem:[%s7615_s3 + $0xd0] sm:$0xff] }
 0x233   : > { %2859 = vmatpush.bf16.msrb.mxu0 %v5325_v49 }
 0x234   : > { %7666 = vst [vmem:[#allocation50_spill] sm:$0xff] %v6538_v4  ;;  %4922 = vmatmul.msk.bf16.gmra.mxu3 %vm695_vm1, %v5516_v59  ;;  %v1317_v61 = vpop.f32.mrf.mxu2 }
 0x235   : > { %v1581_v34 = vmax.f32 %v1317_v61, 0.0 }
 0x236   : > { %v1497_v15 = vpop.f32.mrf.mxu0 }
 0x237   : > { %v1406_v60 = vpop.f32.mrf.mxu3  ;;  %v1592_v44 = vmax.f32 %v1497_v15, 0.0  ;;  %v6551_v30 = vpop.f32.mrf.mxu1 }
 0x238   : > { %v1582_v59 = vmax.f32 %v1406_v60, 0.0 }
 0x239   : > { %v6553_v56 = vpack.c.bf16 %v1592_v44, %v1583_v27  ;;  %v5333_v27 = vld [vmem:[%s7615_s3 + $0x110] sm:$0xff]  ;;  %v5517_v44 = vld [vmem:[%s5757_s16 + $0x48] sm:$0xff] }
 0x23a   : > { %2948 = vmatpush.bf16.msrb.mxu1 %v5333_v27  ;;  %v5518_v27 = vld [vmem:[%s5757_s16 + $0x50] sm:$0xff] }
 0x23b   : > { %7667 = vst [vmem:[#allocation51_spill] sm:$0xff] %v6553_v56 }
 0x23c   : > { %v1319_v13 = vpop.f32.mrf.mxu2 }
 0x23d   : > { %v1590_v2 = vmax.f32 %v1319_v13, 0.0 }
 0x23e   : > { %v1500_v38 = vpop.f32.mrf.mxu0 }
 0x23f   : > { %v1408_v0 = vpop.f32.mrf.mxu3  ;;  %v6558_v63 = vpack.c.bf16 %v1590_v2, %v1581_v34  ;;  %v6560_v15 = vpop.f32.mrf.mxu1  ;;  %v1601_v60 = vmax.f32 %v1500_v38, 0.0 }
 0x240   : > { %v1591_v36 = vmax.f32 %v1408_v0, 0.0 }
 0x241   : > { %7668 = vst [vmem:[#allocation52_spill] sm:$0xff] %v6558_v63  ;;  %4907 = vmatmul.msk.bf16.gmra.mxu2 %vm695_vm1, %v5517_v44  ;;  %4939 = vmatmul.msk.bf16.gmra.mxu0 %vm695_vm1, %v5517_v44 }
 0x242   : > { %v6562_v24 = vpack.c.bf16 %v1591_v36, %v1582_v59  ;;  %2640 = vmatmul.bf16.gmra.mxu1 %v6056_v20 }
 0x244   : > { %7669 = vst [vmem:[#allocation53_spill] sm:$0xff] %v6562_v24  ;;  %4923 = vmatmul.msk.bf16.gmra.mxu3 %vm695_vm1, %v5517_v44  ;;  %v1322_v61 = vpop.f32.mrf.mxu2 }
 0x245   : > { %v1599_v36 = vmax.f32 %v1322_v61, 0.0 }
 0x246   : > { %v1502_v13 = vpop.f32.mrf.mxu0 }
 0x247   : > { %v1411_v49 = vpop.f32.mrf.mxu3  ;;  %v1610_v34 = vmax.f32 %v1502_v13, 0.0  ;;  %v6572_v2 = vpop.f32.mrf.mxu1 }
 0x248   : > { %v1600_v24 = vmax.f32 %v1411_v49, 0.0 }
 0x249   : > { %v6574_v0 = vpack.c.bf16 %v1610_v34, %v1601_v60 }
 0x24b   : > { %7670 = vst [vmem:[#allocation54_spill] sm:$0xff] %v6574_v0 }
 0x24c   : > { %v1324_v59 = vpop.f32.mrf.mxu2 }
 0x24d   : > { %v1608_v56 = vmax.f32 %v1324_v59, 0.0 }
 0x24e   : > { %v1505_v44 = vpop.f32.mrf.mxu0 }
 0x24f   : > { %v1413_v63 = vpop.f32.mrf.mxu3  ;;  %v6576_v21 = vpack.c.bf16 %v1608_v56, %v1599_v36  ;;  %v6578_v20 = vpop.f32.mrf.mxu1  ;;  %v5316_v56 = vld [vmem:[%s7615_s3 + $0x88] sm:$0xff] }
 0x250   : > { %v1609_v10 = vmax.f32 %v1413_v63, 0.0  ;;  %v5308_v63 = vld [vmem:[%s7615_s3 + $0x48] sm:$0xff]  ;;  %2771 = vmatpush.bf16.msrb.mxu3 %v5316_v56 }
 0x251   : > { %7671 = vst [vmem:[#allocation55_spill] sm:$0xff] %v6576_v21  ;;  %4908 = vmatmul.msk.bf16.gmra.mxu2 %vm695_vm1, %v5518_v27  ;;  %4940 = vmatmul.msk.bf16.gmra.mxu0 %vm695_vm1, %v5518_v27 }
 0x252   : > { %v6580_v38 = vpack.c.bf16 %v1609_v10, %v1600_v24  ;;  %2645 = vmatmul.bf16.gmra.mxu1 %v6072_v18  ;;  %2682 = vmatpush.bf16.msrb.mxu2 %v5308_v63  ;;  %v1619_v10 = vmax.f32 %v1505_v44, 0.0  ;;  %v5324_v18 = vld [vmem:[%s7615_s3 + $0xc8] sm:$0xff] }
 0x253   : > { %2860 = vmatpush.bf16.msrb.mxu0 %v5324_v18 }
 0x254   : > { %7672 = vst [vmem:[#allocation56_spill] sm:$0xff] %v6580_v38  ;;  %4924 = vmatmul.msk.bf16.gmra.mxu3 %vm695_vm1, %v5518_v27  ;;  %v1327_v61 = vpop.f32.mrf.mxu2 }
 0x255   : > { %v1617_v36 = vmax.f32 %v1327_v61, 0.0 }
 0x256   : > { %v1507_v60 = vpop.f32.mrf.mxu0 }
 0x257   : > { %v1416_v24 = vpop.f32.mrf.mxu3  ;;  %v1628_v49 = vmax.f32 %v1507_v60, 0.0  ;;  %v6593_v13 = vpop.f32.mrf.mxu1 }
 0x258   : > { %v1618_v63 = vmax.f32 %v1416_v24, 0.0 }
 0x259   : > { %v6595_v34 = vpack.c.bf16 %v1628_v49, %v1619_v10  ;;  %v5332_v10 = vld [vmem:[%s7615_s3 + $0x108] sm:$0xff]  ;;  %v5519_v49 = vld [vmem:[%s5757_s16 + $0x58] sm:$0xff] }
 0x25a   : > { %2949 = vmatpush.bf16.msrb.mxu1 %v5332_v10  ;;  %v5520_v10 = vld [vmem:[%s5757_s16 + $0x60] sm:$0xff] }
 0x25b   : > { %7673 = vst [vmem:[#allocation57_spill] sm:$0xff] %v6595_v34 }
 0x25c   : > { %v1329_v59 = vpop.f32.mrf.mxu2 }
 0x25d   : > { %v1626_v27 = vmax.f32 %v1329_v59, 0.0 }
 0x25e   : > { %v1510_v44 = vpop.f32.mrf.mxu0 }
 0x25f   : > { %v1418_v0 = vpop.f32.mrf.mxu3  ;;  %v6600_v21 = vpack.c.bf16 %v1626_v27, %v1617_v36  ;;  %v6602_v60 = vpop.f32.mrf.mxu1  ;;  %v1637_v61 = vmax.f32 %v1510_v44, 0.0 }
 0x260   : > { %v1627_v56 = vmax.f32 %v1418_v0, 0.0 }
 0x261   : > { %7674 = vst [vmem:[#allocation58_spill] sm:$0xff] %v6600_v21  ;;  %4909 = vmatmul.msk.bf16.gmra.mxu2 %vm695_vm1, %v5519_v49  ;;  %4941 = vmatmul.msk.bf16.gmra.mxu0 %vm695_vm1, %v5519_v49 }
 0x262   : > { %v6604_v38 = vpack.c.bf16 %v1627_v56, %v1618_v63  ;;  %2650 = vmatmul.bf16.gmra.mxu1 %v6103_v22 }
 0x264   : > { %7675 = vst [vmem:[#allocation59_spill] sm:$0xff] %v6604_v38  ;;  %4925 = vmatmul.msk.bf16.gmra.mxu3 %vm695_vm1, %v5519_v49  ;;  %v1332_v0 = vpop.f32.mrf.mxu2 }
 0x265   : > { %v1635_v56 = vmax.f32 %v1332_v0, 0.0 }
 0x266   : > { %v1512_v18 = vpop.f32.mrf.mxu0 }
 0x267   : > { %v1421_v24 = vpop.f32.mrf.mxu3  ;;  %v1646_v59 = vmax.f32 %v1512_v18, 0.0  ;;  %v6614_v36 = vpop.f32.mrf.mxu1 }
 0x268   : > { %v1636_v38 = vmax.f32 %v1421_v24, 0.0 }
 0x269   : > { %v6616_v27 = vpack.c.bf16 %v1646_v59, %v1637_v61 }
 0x26b   : > { %7676 = vst [vmem:[#allocation60_spill] sm:$0xff] %v6616_v27 }
 0x26c   : > { %v1334_v63 = vpop.f32.mrf.mxu2 }
 0x26d   : > { %v1644_v34 = vmax.f32 %v1334_v63, 0.0 }
 0x26e   : > { %v1515_v49 = vpop.f32.mrf.mxu0 }
 0x26f   : > { %v1423_v21 = vpop.f32.mrf.mxu3  ;;  %v6618_v33 = vpack.c.bf16 %v1644_v34, %v1635_v56  ;;  %v6620_v22 = vpop.f32.mrf.mxu1  ;;  %v5315_v34 = vld [vmem:[%s7615_s3 + $0x80] sm:$0xff] }
 0x270   : > { %v1645_v4 = vmax.f32 %v1423_v21, 0.0  ;;  %v5307_v21 = vld [vmem:[%s7615_s3 + $0x40] sm:$0xff]  ;;  %2772 = vmatpush.bf16.msrb.mxu3 %v5315_v34 }
 0x271   : > { %7677 = vst [vmem:[#allocation61_spill] sm:$0xff] %v6618_v33  ;;  %4910 = vmatmul.msk.bf16.gmra.mxu2 %vm695_vm1, %v5520_v10  ;;  %4942 = vmatmul.msk.bf16.gmra.mxu0 %vm695_vm1, %v5520_v10 }
 0x272   : > { %v6622_v44 = vpack.c.bf16 %v1645_v4, %v1636_v38  ;;  %2655 = vmatmul.bf16.gmra.mxu1 %v6125_v58  ;;  %2683 = vmatpush.bf16.msrb.mxu2 %v5307_v21  ;;  %v1655_v4 = vmax.f32 %v1515_v49, 0.0  ;;  %v5323_v58 = vld [vmem:[%s7615_s3 + $0xc0] sm:$0xff] }
 0x273   : > { %2861 = vmatpush.bf16.msrb.mxu0 %v5323_v58 }
 0x274   : > { %7678 = vst [vmem:[#allocation62_spill] sm:$0xff] %v6622_v44  ;;  %4926 = vmatmul.msk.bf16.gmra.mxu3 %vm695_vm1, %v5520_v10  ;;  %v1337_v0 = vpop.f32.mrf.mxu2 }
 0x275   : > { %v1653_v56 = vmax.f32 %v1337_v0, 0.0 }
 0x276   : > { %v1517_v61 = vpop.f32.mrf.mxu0 }
 0x277   : > { %v1426_v38 = vpop.f32.mrf.mxu3  ;;  %v1664_v24 = vmax.f32 %v1517_v61, 0.0  ;;  %v6635_v18 = vpop.f32.mrf.mxu1 }
 0x278   : > { %v1654_v21 = vmax.f32 %v1426_v38, 0.0 }
 0x279   : > { %v6637_v59 = vpack.c.bf16 %v1664_v24, %v1655_v4  ;;  %v5331_v4 = vld [vmem:[%s7615_s3 + $0x100] sm:$0xff]  ;;  %v5521_v24 = vld [vmem:[%s5757_s16 + $0x68] sm:$0xff] }
 0x27a   : > { %2950 = vmatpush.bf16.msrb.mxu1 %v5331_v4  ;;  %v5522_v4 = vld [vmem:[%s5757_s16 + $0x70] sm:$0xff] }
 0x27b   : > { %7679 = vst [vmem:[#allocation63_spill] sm:$0xff] %v6637_v59 }
 0x27c   : > { %v1339_v63 = vpop.f32.mrf.mxu2 }
 0x27d   : > { %v1662_v10 = vmax.f32 %v1339_v63, 0.0 }
 0x27e   : > { %v1520_v49 = vpop.f32.mrf.mxu0 }
 0x27f   : > { %v1428_v27 = vpop.f32.mrf.mxu3  ;;  %v6642_v33 = vpack.c.bf16 %v1662_v10, %v1653_v56  ;;  %v6644_v61 = vpop.f32.mrf.mxu1  ;;  %v1673_v0 = vmax.f32 %v1520_v49, 0.0 }
 0x280   : > { %v1663_v34 = vmax.f32 %v1428_v27, 0.0  ;;  %7681 = vst [vmem:[#allocation65_spill] sm:$0xff] %v6644_v61 }
 0x281   : > { %7680 = vst [vmem:[#allocation64_spill] sm:$0xff] %v6642_v33  ;;  %4911 = vmatmul.msk.bf16.gmra.mxu2 %vm695_vm1, %v5521_v24  ;;  %4943 = vmatmul.msk.bf16.gmra.mxu0 %vm695_vm1, %v5521_v24 }
 0x282   : > { %v6646_v44 = vpack.c.bf16 %v1663_v34, %v1654_v21  ;;  %2660 = vmatmul.bf16.gmra.mxu1 %v6144_v28 }
 0x284   : > { %7682 = vst [vmem:[#allocation66_spill] sm:$0xff] %v6646_v44  ;;  %4927 = vmatmul.msk.bf16.gmra.mxu3 %vm695_vm1, %v5521_v24  ;;  %v1342_v27 = vpop.f32.mrf.mxu2 }
 0x285   : > { %v1671_v34 = vmax.f32 %v1342_v27, 0.0 }
 0x286   : > { %v1522_v58 = vpop.f32.mrf.mxu0 }
 0x287   : > { %v1431_v38 = vpop.f32.mrf.mxu3  ;;  %v1682_v63 = vmax.f32 %v1522_v58, 0.0  ;;  %v6656_v56 = vpop.f32.mrf.mxu1 }
 0x288   : > { %v1672_v44 = vmax.f32 %v1431_v38, 0.0 }
 0x289   : > { %v6658_v10 = vpack.c.bf16 %v1682_v63, %v1673_v0 }
 0x28b   : > { %7683 = vst [vmem:[#allocation67_spill] sm:$0xff] %v6658_v10 }
 0x28c   : > { %v1344_v21 = vpop.f32.mrf.mxu2 }
 0x28d   : > { %v1680_v59 = vmax.f32 %v1344_v21, 0.0 }
 0x28e   : > { %v1525_v24 = vpop.f32.mrf.mxu0 }
 0x28f   : > { %v1433_v33 = vpop.f32.mrf.mxu3  ;;  %v6660_v1 = vpack.c.bf16 %v1680_v59, %v1671_v34  ;;  %v6662_v28 = vpop.f32.mrf.mxu1  ;;  %v5354_v59 = vld [vmem:[%s7615_s3 + $0x1b8] sm:$0xff] }
 0x290   : > { %v1681_v61 = vmax.f32 %v1433_v33, 0.0  ;;  %v5346_v33 = vld [vmem:[%s7615_s3 + $0x178] sm:$0xff]  ;;  %3121 = vmatpush.bf16.msra.mxu3 %v5354_v59 }
 0x291   : > { %7684 = vst [vmem:[#allocation68_spill] sm:$0xff] %v6660_v1  ;;  %4912 = vmatmul.msk.bf16.gmra.mxu2 %vm695_vm1, %v5522_v4  ;;  %4944 = vmatmul.msk.bf16.gmra.mxu0 %vm695_vm1, %v5522_v4 }
 0x292   : > { %v6664_v49 = vpack.c.bf16 %v1681_v61, %v1672_v44  ;;  %2665 = vmatmul.bf16.gmra.mxu1 %v6178_v25  ;;  %3032 = vmatpush.bf16.msra.mxu2 %v5346_v33  ;;  %v1691_v44 = vmax.f32 %v1525_v24, 0.0  ;;  %v5362_v25 = vld [vmem:[%s7615_s3 + $0x1f8] sm:$0xff] }
 0x293   : > { %3210 = vmatpush.bf16.msra.mxu0 %v5362_v25 }
 0x294   : > { %7685 = vst [vmem:[#allocation69_spill] sm:$0xff] %v6664_v49  ;;  %4928 = vmatmul.msk.bf16.gmra.mxu3 %vm695_vm1, %v5522_v4  ;;  %v1347_v27 = vpop.f32.mrf.mxu2 }
 0x295   : > { %v1689_v34 = vmax.f32 %v1347_v27, 0.0 }
 0x296   : > { %v1527_v0 = vpop.f32.mrf.mxu0 }
 0x297   : > { %v1436_v61 = vpop.f32.mrf.mxu3  ;;  %v1700_v38 = vmax.f32 %v1527_v0, 0.0  ;;  %v6677_v58 = vpop.f32.mrf.mxu1 }
 0x298   : > { %7686 = vst [vmem:[#allocation70_spill] sm:$0xff] %v6677_v58  ;;  %v1690_v33 = vmax.f32 %v1436_v61, 0.0 }
 0x299   : > { %v6679_v63 = vpack.c.bf16 %v1700_v38, %v1691_v44  ;;  %v5370_v44 = vld [vmem:[%s7615_s3 + $0x238] sm:$0xff] }
 0x29a   : > { %v5523_v38 = vld [vmem:[%s5757_s16 + $0x78] sm:$0xff]  ;;  %3299 = vmatpush.bf16.msra.mxu1 %v5370_v44  ;;  %s5546_s16 = scalar_lea.hbm %s7618_s6, 4 }
 0x29b   : > { %7687 = vst [vmem:[#allocation71_spill] sm:$0xff] %v6679_v63  ;;  %p5548_p1 = scmp.lt.s32.totalorder %s5546_s16, %s5542_s26 }
 0x29c   : > { %v1349_v21 = vpop.f32.mrf.mxu2 }
 0x29d   : > { %v1698_v4 = vmax.f32 %v1349_v21, 0.0  ;;  %p5549_p2 = por %p5548_p1, %p5547_p0 }
 0x29e   : > { %v1530_v24 = vpop.f32.mrf.mxu0 }
 0x29f   : > { %v1438_v10 = vpop.f32.mrf.mxu3  ;;  %v6684_v1 = vpack.c.bf16 %v1698_v4, %v1689_v34  ;;  %v6686_v0 = vpop.f32.mrf.mxu1  ;;  %v1709_v27 = vmax.f32 %v1530_v24, 0.0  ;;  %v5345_v24 = vld [vmem:[%s7615_s3 + $0x170] sm:$0xff]  ;;  %p5550_p3 = pnand %p5549_p2, %p5545_p13 }
 0x2a0   : > { %v1699_v59 = vmax.f32 %v1438_v10, 0.0  ;;  %7689 = vst [vmem:[#allocation73_spill] sm:$0xff] %v6686_v0  ;;  %3033 = vmatpush.bf16.msra.mxu2 %v5345_v24 }
 0x2a1   : > { %7688 = vst [vmem:[#allocation72_spill] sm:$0xff] %v6684_v1  ;;  %4913 = vmatmul.msk.bf16.gmra.mxu2 %vm695_vm1, %v5523_v38  ;;  %4945 = vmatmul.msk.bf16.gmra.mxu0 %vm695_vm1, %v5523_v38 }
 0x2a2   : > { %v6688_v49 = vpack.c.bf16 %v1699_v59, %v1690_v33  ;;  %2670 = vmatmul.bf16.gmra.mxu1 %v6197_v5 }
 0x2a4   : > { %7690 = vst [vmem:[#allocation74_spill] sm:$0xff] %v6688_v49  ;;  %4929 = vmatmul.msk.bf16.gmra.mxu3 %vm695_vm1, %v5523_v38  ;;  %v1352_v10 = vpop.f32.mrf.mxu2  ;;  %vm4417_vm1 = vcmask 982912  }
 0x2a5   : > { %v1707_v59 = vmax.f32 %v1352_v10, 0.0 }
 0x2a6   : > { %v1532_v25 = vpop.f32.mrf.mxu0 }
 0x2a7   : > { %v1441_v61 = vpop.f32.mrf.mxu3  ;;  %v1718_v21 = vmax.f32 %v1532_v25, 0.0  ;;  %v6698_v34 = vpop.f32.mrf.mxu1 }
 0x2a8   : > { %v1708_v49 = vmax.f32 %v1441_v61, 0.0 }
 0x2a9   : > { %v6700_v4 = vpack.c.bf16 %v1718_v21, %v1709_v27 }
 0x2ac   : > { %v1354_v33 = vpop.f32.mrf.mxu2 }
 0x2ad   : > { %v1716_v63 = vmax.f32 %v1354_v33, 0.0 }
 0x2ae   : > { %v1535_v58 = vpop.f32.mrf.mxu0 }
 0x2af   : > { %v1443_v1 = vpop.f32.mrf.mxu3  ;;  %v6702_v38 = vpack.c.bf16 %v1716_v63, %v1707_v59  ;;  %v6704_v5 = vpop.f32.mrf.mxu1 }
 0x2b0   : > { %v1717_v0 = vmax.f32 %v1443_v1, 0.0  ;;  %v5353_v1 = vld [vmem:[%s7615_s3 + $0x1b0] sm:$0xff] }
 0x2b1   : > { %2684 = vmatmul.bf16.vlgmr.msrb.gmra.mxu2 %v6017_v31  ;;  %2862 = vmatmul.bf16.vlgmr.msrb.gmra.mxu0 %v6215_v54 }
 0x2b2   : > { %v6706_v44 = vpack.c.bf16 %v1717_v0, %v1708_v49  ;;  %2951 = vmatmul.bf16.vlgmr.msrb.gmra.mxu1 %v6209_v29  ;;  %3122 = vmatpush.bf16.msra.mxu3 %v5353_v1  ;;  %v1727_v49 = vmax.f32 %v1535_v58, 0.0  ;;  %v5361_v29 = vld [vmem:[%s7615_s3 + $0x1f0] sm:$0xff] }
 0x2b3   : > { %3211 = vmatpush.bf16.msra.mxu0 %v5361_v29 }
 0x2b4   : > { %2773 = vmatmul.bf16.vlgmr.msrb.gmra.mxu3 %v6213_v50  ;;  %v1357_v63 = vpop.f32.mrf.mxu2 }
 0x2b5   : > { %v1725_v61 = vmax.f32 %v1357_v63, 0.0 }
 0x2b6   : > { %v1537_v31 = vpop.f32.mrf.mxu0 }
 0x2b7   : > { %v1446_v0 = vpop.f32.mrf.mxu3  ;;  %v1736_v10 = vmax.f32 %v1537_v31, 0.0  ;;  %v6718_v54 = vpop.f32.mrf.mxu1 }
 0x2b8   : > { %v1726_v33 = vmax.f32 %v1446_v0, 0.0 }
 0x2b9   : > { %v6720_v50 = vpack.c.bf16 %v1736_v10, %v1727_v49  ;;  %v5369_v49 = vld [vmem:[%s7615_s3 + $0x230] sm:$0xff] }
 0x2ba   : > { %3300 = vmatpush.bf16.msra.mxu1 %v5369_v49 }
 0x2bb   : > { %7691 = vst [vmem:[#allocation75_spill] sm:$0xff] %v6720_v50 }
 0x2bc   : > { %v1359_v27 = vpop.f32.mrf.mxu2 }
 0x2bd   : > { %v1734_v25 = vmax.f32 %v1359_v27, 0.0 }
 0x2be   : > { %v1540_v24 = vpop.f32.mrf.mxu0 }
 0x2bf   : > { %v1448_v21 = vpop.f32.mrf.mxu3  ;;  %v6725_v58 = vpack.c.bf16 %v1734_v25, %v1725_v61  ;;  %v6727_v1 = vpop.f32.mrf.mxu1  ;;  %v1745_v0 = vmax.f32 %v1540_v24, 0.0  ;;  %v5344_v24 = vld [vmem:[%s7615_s3 + $0x168] sm:$0xff] }
 0x2c0   : > { %v1735_v59 = vmax.f32 %v1448_v21, 0.0  ;;  %3034 = vmatpush.bf16.msra.mxu2 %v5344_v24 }
 0x2c1   : > { %7692 = vst [vmem:[#allocation76_spill] sm:$0xff] %v6725_v58  ;;  %2689 = vmatmul.bf16.gmra.mxu2 %v6048_v3  ;;  %2867 = vmatmul.bf16.gmra.mxu0 %v6252_v17 }
 0x2c2   : > { %v6729_v31 = vpack.c.bf16 %v1735_v59, %v1726_v33  ;;  %2956 = vmatmul.bf16.gmra.mxu1 %v6240_v42 }
 0x2c4   : > { %2778 = vmatmul.bf16.gmra.mxu3 %v6250_v8  ;;  %v1362_v63 = vpop.f32.mrf.mxu2 }
 0x2c5   : > { %v1743_v33 = vmax.f32 %v1362_v63, 0.0  ;;  %v5352_v63 = vld [vmem:[%s7615_s3 + $0x1a8] sm:$0xff] }
 0x2c6   : > { %v1542_v29 = vpop.f32.mrf.mxu0  ;;  %3123 = vmatpush.bf16.msra.mxu3 %v5352_v63 }
 0x2c7   : > { %v1451_v10 = vpop.f32.mrf.mxu3  ;;  %v1754_v27 = vmax.f32 %v1542_v29, 0.0  ;;  %v6738_v61 = vpop.f32.mrf.mxu1 }
 0x2c8   : > { %v1744_v50 = vmax.f32 %v1451_v10, 0.0 }
 0x2c9   : > { %v6740_v25 = vpack.c.bf16 %v1754_v27, %v1745_v0 }
 0x2cc   : > { %v1364_v21 = vpop.f32.mrf.mxu2 }
 0x2cd   : > { %v1752_v59 = vmax.f32 %v1364_v21, 0.0 }
 0x2ce   : > { %v1545_v58 = vpop.f32.mrf.mxu0 }
 0x2cf   : > { %v1453_v3 = vpop.f32.mrf.mxu3  ;;  %v6742_v8 = vpack.c.bf16 %v1752_v59, %v1743_v33  ;;  %v6744_v42 = vpop.f32.mrf.mxu1 }
 0x2d0   : > { %v1753_v17 = vmax.f32 %v1453_v3, 0.0 }
 0x2d1   : > { %2694 = vmatmul.bf16.gmra.mxu2 %v6070_v35  ;;  %2872 = vmatmul.bf16.gmra.mxu0 %v6268_v37 }
 0x2d2   : > { %v6746_v49 = vpack.c.bf16 %v1753_v17, %v1744_v50  ;;  %2961 = vmatmul.bf16.gmra.mxu1 %v6262_v46  ;;  %v1763_v50 = vmax.f32 %v1545_v58, 0.0  ;;  %v5360_v46 = vld [vmem:[%s7615_s3 + $0x1e8] sm:$0xff] }
 0x2d3   : > { %3212 = vmatpush.bf16.msra.mxu0 %v5360_v46 }
 0x2d4   : > { %2783 = vmatmul.bf16.gmra.mxu3 %v6266_v19  ;;  %v1367_v0 = vpop.f32.mrf.mxu2 }
 0x2d5   : > { %v1761_v21 = vmax.f32 %v1367_v0, 0.0 }
 0x2d6   : > { %v1547_v35 = vpop.f32.mrf.mxu0 }
 0x2d7   : > { %v1456_v10 = vpop.f32.mrf.mxu3  ;;  %v1772_v29 = vmax.f32 %v1547_v35, 0.0  ;;  %v6758_v37 = vpop.f32.mrf.mxu1 }
 0x2d8   : > { %v1762_v3 = vmax.f32 %v1456_v10, 0.0 }
 0x2d9   : > { %v6760_v19 = vpack.c.bf16 %v1772_v29, %v1763_v50  ;;  %v5368_v50 = vld [vmem:[%s7615_s3 + $0x228] sm:$0xff] }
 0x2da   : > { %3301 = vmatpush.bf16.msra.mxu1 %v5368_v50 }
 0x2db   : > { %7693 = vst [vmem:[#allocation77_spill] sm:$0xff] %v6760_v19 }
 0x2dc   : > { %v1369_v27 = vpop.f32.mrf.mxu2 }
 0x2dd   : > { %v1770_v33 = vmax.f32 %v1369_v27, 0.0 }
 0x2de   : > { %v1550_v24 = vpop.f32.mrf.mxu0 }
 0x2df   : > { %v1458_v59 = vpop.f32.mrf.mxu3  ;;  %v6765_v58 = vpack.c.bf16 %v1770_v33, %v1761_v21  ;;  %v6767_v63 = vpop.f32.mrf.mxu1  ;;  %v1781_v10 = vmax.f32 %v1550_v24, 0.0  ;;  %v5343_v24 = vld [vmem:[%s7615_s3 + $0x160] sm:$0xff] }
 0x2e0   : > { %v1771_v17 = vmax.f32 %v1458_v59, 0.0  ;;  %3035 = vmatpush.bf16.msra.mxu2 %v5343_v24 }
 0x2e1   : > { %7694 = vst [vmem:[#allocation78_spill] sm:$0xff] %v6765_v58  ;;  %2699 = vmatmul.bf16.gmra.mxu2 %v6089_v62  ;;  %2877 = vmatmul.bf16.gmra.mxu0 %v6299_v48 }
 0x2e2   : > { %v6769_v35 = vpack.c.bf16 %v1771_v17, %v1762_v3  ;;  %2966 = vmatmul.bf16.gmra.mxu1 %v6281_v52 }
 0x2e4   : > { %2788 = vmatmul.bf16.gmra.mxu3 %v6297_v11  ;;  %v1372_v0 = vpop.f32.mrf.mxu2 }
 0x2e5   : > { %v1779_v3 = vmax.f32 %v1372_v0, 0.0  ;;  %v5351_v0 = vld [vmem:[%s7615_s3 + $0x1a0] sm:$0xff] }
 0x2e6   : > { %v1552_v46 = vpop.f32.mrf.mxu0  ;;  %3124 = vmatpush.bf16.msra.mxu3 %v5351_v0 }
 0x2e7   : > { %v1461_v29 = vpop.f32.mrf.mxu3  ;;  %v1790_v27 = vmax.f32 %v1552_v46, 0.0  ;;  %v6778_v21 = vpop.f32.mrf.mxu1 }
 0x2e8   : > { %v1780_v19 = vmax.f32 %v1461_v29, 0.0 }
 0x2e9   : > { %v6780_v33 = vpack.c.bf16 %v1790_v27, %v1781_v10 }
 0x2ec   : > { %v1374_v59 = vpop.f32.mrf.mxu2 }
 0x2ed   : > { %v1788_v17 = vmax.f32 %v1374_v59, 0.0 }
 0x2ee   : > { %v1555_v58 = vpop.f32.mrf.mxu0 }
 0x2ef   : > { %v1463_v62 = vpop.f32.mrf.mxu3  ;;  %v6782_v11 = vpack.c.bf16 %v1788_v17, %v1779_v3  ;;  %v6784_v52 = vpop.f32.mrf.mxu1 }
 0x2f0   : > { %v1789_v48 = vmax.f32 %v1463_v62, 0.0 }
 0x2f1   : > { %2704 = vmatmul.bf16.gmra.mxu2 %v6123_v40  ;;  %2882 = vmatmul.bf16.gmra.mxu0 %v6321_v53 }
 0x2f2   : > { %v6786_v50 = vpack.c.bf16 %v1789_v48, %v1780_v19  ;;  %2971 = vmatmul.bf16.gmra.mxu1 %v6315_v26  ;;  %v1799_v19 = vmax.f32 %v1555_v58, 0.0  ;;  %v5359_v26 = vld [vmem:[%s7615_s3 + $0x1e0] sm:$0xff] }
 0x2f3   : > { %3213 = vmatpush.bf16.msra.mxu0 %v5359_v26 }
 0x2f4   : > { %2793 = vmatmul.bf16.gmra.mxu3 %v6319_v23  ;;  %v1377_v10 = vpop.f32.mrf.mxu2 }
 0x2f5   : > { %v1797_v59 = vmax.f32 %v1377_v10, 0.0 }
 0x2f6   : > { %v1557_v40 = vpop.f32.mrf.mxu0 }
 0x2f7   : > { %v1466_v29 = vpop.f32.mrf.mxu3  ;;  %v1808_v46 = vmax.f32 %v1557_v40, 0.0  ;;  %v6798_v53 = vpop.f32.mrf.mxu1 }
 0x2f8   : > { %v1798_v62 = vmax.f32 %v1466_v29, 0.0 }
 0x2f9   : > { %v6800_v23 = vpack.c.bf16 %v1808_v46, %v1799_v19  ;;  %v5367_v19 = vld [vmem:[%s7615_s3 + $0x220] sm:$0xff] }
 0x2fa   : > { %3302 = vmatpush.bf16.msra.mxu1 %v5367_v19 }
 0x2fb   : > { %7695 = vst [vmem:[#allocation79_spill] sm:$0xff] %v6800_v23 }
 0x2fc   : > { %v1379_v27 = vpop.f32.mrf.mxu2 }
 0x2fd   : > { %v1806_v3 = vmax.f32 %v1379_v27, 0.0 }
 0x2fe   : > { %v1560_v24 = vpop.f32.mrf.mxu0 }
 0x2ff   : > { %v1468_v17 = vpop.f32.mrf.mxu3  ;;  %v6805_v58 = vpack.c.bf16 %v1806_v3, %v1797_v59  ;;  %v6807_v0 = vpop.f32.mrf.mxu1  ;;  %v1817_v29 = vmax.f32 %v1560_v24, 0.0  ;;  %v7700_v24 = vld [vmem:[#allocation20_spill] sm:$0xff] }
 0x300   : > { %v1807_v48 = vmax.f32 %v1468_v17, 0.0 }
 0x301   : > { %7696 = vst [vmem:[#allocation80_spill] sm:$0xff] %v6805_v58  ;;  %2709 = vmatmul.bf16.gmra.mxu2 %v6142_v16  ;;  %2887 = vmatmul.bf16.gmra.mxu0 %v6340_v47 }
 0x302   : > { %v6809_v40 = vpack.c.bf16 %v1807_v48, %v1798_v62  ;;  %2976 = vmatmul.bf16.gmra.mxu1 %v6334_v14 }
 0x304   : > { %2798 = vmatmul.bf16.gmra.mxu3 %v6338_v55  ;;  %v1382_v10 = vpop.f32.mrf.mxu2 }
 0x305   : > { %v1815_v62 = vmax.f32 %v1382_v10, 0.0  ;;  %v5342_v10 = vld [vmem:[%s7615_s3 + $0x158] sm:$0xff] }
 0x306   : > { %v1562_v26 = vpop.f32.mrf.mxu0  ;;  %3036 = vmatpush.bf16.msra.mxu2 %v5342_v10 }
 0x307   : > { %v1471_v46 = vpop.f32.mrf.mxu3  ;;  %v1826_v27 = vmax.f32 %v1562_v26, 0.0  ;;  %v6818_v59 = vpop.f32.mrf.mxu1 }
 0x308   : > { %v1816_v23 = vmax.f32 %v1471_v46, 0.0 }
 0x309   : > { %v6820_v3 = vpack.c.bf16 %v1826_v27, %v1817_v29  ;;  %v5350_v29 = vld [vmem:[%s7615_s3 + $0x198] sm:$0xff] }
 0x30a   : > { %3125 = vmatpush.bf16.msra.mxu3 %v5350_v29 }
 0x30b   : > { %7697 = vst [vmem:[#allocation81_spill] sm:$0xff] %v6820_v3 }
 0x30c   : > { %v1384_v17 = vpop.f32.mrf.mxu2 }
 0x30d   : > { %v1824_v48 = vmax.f32 %v1384_v17, 0.0  ;;  %v5358_v17 = vld [vmem:[%s7615_s3 + $0x1d8] sm:$0xff] }
 0x30e   : > { %v1565_v58 = vpop.f32.mrf.mxu0  ;;  %3214 = vmatpush.bf16.msra.mxu0 %v5358_v17 }
 0x30f   : > { %v1473_v16 = vpop.f32.mrf.mxu3  ;;  %v6822_v55 = vpack.c.bf16 %v1824_v48, %v1815_v62  ;;  %v6824_v14 = vpop.f32.mrf.mxu1 }
 0x310   : > { %v1825_v47 = vmax.f32 %v1473_v16, 0.0 }
 0x311   : > { %7698 = vst [vmem:[#allocation82_spill] sm:$0xff] %v6822_v55  ;;  %2714 = vmatmul.bf16.gmra.mxu2 %v6170_v32  ;;  %2892 = vmatmul.bf16.gmra.mxu0 %v6365_v43 }
 0x312   : > { %v6826_v19 = vpack.c.bf16 %v1825_v47, %v1816_v23  ;;  %2981 = vmatmul.bf16.gmra.mxu1 %v7700_v24  ;;  %v1835_v23 = vmax.f32 %v1565_v58, 0.0 }
 0x314   : > { %7699 = vst [vmem:[#allocation83_spill] sm:$0xff] %v6826_v19  ;;  %2803 = vmatmul.bf16.gmra.mxu3 %v6363_v6  ;;  %v1387_v46 = vpop.f32.mrf.mxu2 }
 0x315   : > { %v1833_v48 = vmax.f32 %v1387_v46, 0.0  ;;  %v7705_v46 = vld [vmem:[#allocation22_spill] sm:$0xff] }
 0x316   : > { %v1567_v32 = vpop.f32.mrf.mxu0 }
 0x317   : > { %v1476_v26 = vpop.f32.mrf.mxu3  ;;  %v1844_v27 = vmax.f32 %v1567_v32, 0.0  ;;  %v6838_v43 = vpop.f32.mrf.mxu1 }
 0x318   : > { %v1834_v24 = vmax.f32 %v1476_v26, 0.0 }
 0x319   : > { %v6840_v6 = vpack.c.bf16 %v1844_v27, %v1835_v23  ;;  %v7704_v23 = vld [vmem:[#allocation12_spill] sm:$0xff]  ;;  %v5366_v27 = vld [vmem:[%s7615_s3 + $0x218] sm:$0xff] }
 0x31a   : > { %3303 = vmatpush.bf16.msra.mxu1 %v5366_v27 }
 0x31b   : > { %7701 = vst [vmem:[#allocation20_spill] sm:$0xff] %v6840_v6 }
 0x31c   : > { %v1389_v62 = vpop.f32.mrf.mxu2 }
 0x31d   : > { %v1842_v16 = vmax.f32 %v1389_v62, 0.0 }
 0x31e   : > { %v1570_v29 = vpop.f32.mrf.mxu0 }
 0x31f   : > { %v1478_v47 = vpop.f32.mrf.mxu3  ;;  %v6845_v58 = vpack.c.bf16 %v1842_v16, %v1833_v48  ;;  %v6847_v3 = vpop.f32.mrf.mxu1  ;;  %v1853_v17 = vmax.f32 %v1570_v29, 0.0 }
 0x320   : > { %v1843_v10 = vmax.f32 %v1478_v47, 0.0 }
 0x321   : > { %7702 = vst [vmem:[#allocation84_spill] sm:$0xff] %v6845_v58  ;;  %2719 = vmatmul.bf16.gmra.mxu2 %v7704_v23  ;;  %2897 = vmatmul.bf16.gmra.mxu0 %v6384_v7 }
 0x322   : > { %v6849_v32 = vpack.c.bf16 %v1843_v10, %v1834_v24  ;;  %2986 = vmatmul.bf16.gmra.mxu1 %v7705_v46 }
 0x324   : > { %7703 = vst [vmem:[#allocation85_spill] sm:$0xff] %v6849_v32  ;;  %2808 = vmatmul.bf16.gmra.mxu3 %v6382_v51  ;;  %v1392_v26 = vpop.f32.mrf.mxu2  ;;  %v6865_v51 = vld [vmem:[%s7616_s4] ss:$0 sm:$0xff] }
 0x325   : > { %v1851_v7 = vmax.f32 %v1392_v26, 0.0  ;;  %v7711_v26 = vld [vmem:[#allocation26_spill] sm:$0xff] }
 0x326   : > { %v1572_v48 = vpop.f32.mrf.mxu0 }
 0x327   : > { %v1481_v62 = vpop.f32.mrf.mxu3  ;;  %v1862_v16 = vmax.f32 %v1572_v48, 0.0  ;;  %v6858_v47 = vpop.f32.mrf.mxu1  ;;  %v7709_v48 = vld [vmem:[#allocation5_spill] sm:$0xff] }
 0x328   : > { %v1852_v58 = vmax.f32 %v1481_v62, 0.0  ;;  %v5349_v62 = vld [vmem:[%s7615_s3 + $0x190] sm:$0xff] }
 0x329   : > { %v6860_v24 = vpack.c.bf16 %v1862_v16, %v1853_v17  ;;  %v7710_v17 = vld [vmem:[#allocation27_spill] sm:$0xff]  ;;  %v7712_v16 = vld [vmem:[#allocation24_spill] sm:$0xff]  ;;  %3126 = vmatpush.bf16.msra.mxu3 %v5349_v62 }
 0x32b   : > { %7706 = vst [vmem:[#allocation12_spill] sm:$0xff] %v6860_v24  ;;  %v2599_v24 = vadd.f32 %v6865_v51, %v6551_v30  ;;  %v7714_v30 = vld [vmem:[#allocation28_spill] sm:$0xff] }
 0x32c   : > { %v1394_v10 = vpop.f32.mrf.mxu2 }
 0x32d   : > { %v1860_v23 = vmax.f32 %v1394_v10, 0.0 }
 0x32e   : > { %v2863_v55 = vpop.f32.mrf.mxu0 }
 0x32f   : > { %v1483_v6 = vpop.f32.mrf.mxu3  ;;  %v6867_v29 = vpack.c.bf16 %v1860_v23, %v1851_v7  ;;  %v2952_v27 = vpop.f32.mrf.mxu1 }
 0x330   : > { %v1861_v32 = vmax.f32 %v1483_v6, 0.0  ;;  %v5341_v6 = vld [vmem:[%s7615_s3 + $0x150] sm:$0xff] }
 0x331   : > { %7707 = vst [vmem:[#allocation22_spill] sm:$0xff] %v6867_v29  ;;  %2724 = vmatmul.bf16.gmra.mxu2 %v7709_v48  ;;  %2902 = vmatmul.bf16.gmra.mxu0 %v7710_v17 }
 0x332   : > { %v6869_v46 = vpack.c.bf16 %v1861_v32, %v1852_v58  ;;  %2991 = vmatmul.bf16.gmra.mxu1 %v7712_v16  ;;  %v2597_v58 = vadd.f32 %v6865_v51, %v6536_v45  ;;  %3037 = vmatpush.bf16.msra.mxu2 %v5341_v6  ;;  %v5357_v16 = vld [vmem:[%s7615_s3 + $0x1d0] sm:$0xff] }
 0x333   : > { %3215 = vmatpush.bf16.msra.mxu0 %v5357_v16 }
 0x334   : > { %7708 = vst [vmem:[#allocation86_spill] sm:$0xff] %v6869_v46  ;;  %2813 = vmatmul.bf16.gmra.mxu3 %v7711_v26  ;;  %v2685_v32 = vpop.f32.mrf.mxu2 }
 0x335   : > { %v2686_v10 = vadd.f32 %v2685_v32, %v2597_v58 }
 0x336   : > { %v2865_v23 = vpop.f32.mrf.mxu0 }
 0x337   : > { %v2774_v7 = vpop.f32.mrf.mxu3  ;;  %v2954_v17 = vpop.f32.mrf.mxu1 }
 0x338   : > { %v2775_v48 = vadd.f32 %v2774_v7, %v2686_v10  ;;  %v7713_v10 = vld [vmem:[#allocation6_spill] sm:$0xff] }
 0x33a   : > { %v2864_v26 = vadd.f32 %v2863_v55, %v2775_v48  ;;  %v5365_v55 = vld [vmem:[%s7615_s3 + $0x210] sm:$0xff] }
 0x33b   : > { %3304 = vmatpush.bf16.msra.mxu1 %v5365_v55 }
 0x33c   : > { %v6888_v29 = vadd.f32 %v2952_v27, %v2864_v26  ;;  %v2687_v45 = vpop.f32.mrf.mxu2 }
 0x33d   : > { %v2688_v46 = vadd.f32 %v2687_v45, %v2599_v24  ;;  %v2602_v24 = vadd.f32 %v6865_v51, %v6560_v15  ;;  %v2604_v45 = vadd.f32 %v6865_v51, %v6572_v2  ;;  %v5340_v2 = vld [vmem:[%s7615_s3 + $0x148] sm:$0xff] }
 0x33e   : > { %v2868_v62 = vpop.f32.mrf.mxu0  ;;  %3038 = vmatpush.bf16.msra.mxu2 %v5340_v2 }
 0x33f   : > { %v2776_v6 = vpop.f32.mrf.mxu3  ;;  %v2957_v32 = vpop.f32.mrf.mxu1 }
 0x340   : > { %v2777_v58 = vadd.f32 %v2776_v6, %v2688_v46 }
 0x341   : > { %2729 = vmatmul.bf16.gmra.mxu2 %v7713_v10  ;;  %2907 = vmatmul.bf16.gmra.mxu0 %v6422_v9 }
 0x342   : > { %v2866_v19 = vadd.f32 %v2865_v23, %v2777_v58  ;;  %2996 = vmatmul.bf16.gmra.mxu1 %v7714_v30 }
 0x344   : > { %2818 = vmatmul.bf16.gmra.mxu3 %v6420_v39  ;;  %v6899_v27 = vadd.f32 %v2954_v17, %v2866_v19  ;;  %v2690_v46 = vpop.f32.mrf.mxu2  ;;  %v7715_v17 = vld [vmem:[#allocation7_spill] sm:$0xff] }
 0x345   : > { %v2691_v7 = vadd.f32 %v2690_v46, %v2602_v24  ;;  %v7716_v24 = vld [vmem:[#allocation33_spill] sm:$0xff]  ;;  %v7717_v46 = vld [vmem:[#allocation32_spill] sm:$0xff] }
 0x346   : > { %v2870_v48 = vpop.f32.mrf.mxu0 }
 0x347   : > { %v2779_v23 = vpop.f32.mrf.mxu3  ;;  %v2959_v9 = vpop.f32.mrf.mxu1 }
 0x348   : > { %v2780_v26 = vadd.f32 %v2779_v23, %v2691_v7  ;;  %v7718_v7 = vld [vmem:[#allocation30_spill] sm:$0xff] }
 0x34a   : > { %v2869_v16 = vadd.f32 %v2868_v62, %v2780_v26  ;;  %v5348_v62 = vld [vmem:[%s7615_s3 + $0x188] sm:$0xff] }
 0x34b   : > { %3127 = vmatpush.bf16.msra.mxu3 %v5348_v62 }
 0x34c   : > { %v6903_v6 = vadd.f32 %v2957_v32, %v2869_v16  ;;  %v2692_v39 = vpop.f32.mrf.mxu2  ;;  %v2607_v32 = vadd.f32 %v6865_v51, %v6578_v20 }
 0x34d   : > { %v2693_v58 = vadd.f32 %v2692_v39, %v2604_v45 }
 0x34e   : > { %v2873_v30 = vpop.f32.mrf.mxu0 }
 0x34f   : > { %v2781_v10 = vpop.f32.mrf.mxu3  ;;  %v2962_v55 = vpop.f32.mrf.mxu1 }
 0x350   : > { %v2782_v15 = vadd.f32 %v2781_v10, %v2693_v58 }
 0x351   : > { %2734 = vmatmul.bf16.gmra.mxu2 %v7715_v17  ;;  %2912 = vmatmul.bf16.gmra.mxu0 %v7716_v24  ;;  %v2609_v17 = vadd.f32 %v6865_v51, %v6593_v13  ;;  %v7720_v13 = vld [vmem:[#allocation34_spill] sm:$0xff] }
 0x352   : > { %v2871_v19 = vadd.f32 %v2870_v48, %v2782_v15  ;;  %3001 = vmatmul.bf16.gmra.mxu1 %v7718_v7  ;;  %v5356_v15 = vld [vmem:[%s7615_s3 + $0x1c8] sm:$0xff] }
 0x353   : > { %3216 = vmatpush.bf16.msra.mxu0 %v5356_v15 }
 0x354   : > { %2823 = vmatmul.bf16.gmra.mxu3 %v7717_v46  ;;  %v6917_v23 = vadd.f32 %v2959_v9, %v2871_v19  ;;  %v2695_v48 = vpop.f32.mrf.mxu2 }
 0x355   : > { %v2696_v26 = vadd.f32 %v2695_v48, %v2607_v32  ;;  %v7719_v32 = vld [vmem:[#allocation8_spill] sm:$0xff] }
 0x356   : > { %v2875_v45 = vpop.f32.mrf.mxu0 }
 0x357   : > { %v2784_v16 = vpop.f32.mrf.mxu3  ;;  %v2964_v58 = vpop.f32.mrf.mxu1 }
 0x358   : > { %v2785_v39 = vadd.f32 %v2784_v16, %v2696_v26 }
 0x35a   : > { %v2874_v10 = vadd.f32 %v2873_v30, %v2785_v39  ;;  %v5364_v30 = vld [vmem:[%s7615_s3 + $0x208] sm:$0xff] }
 0x35b   : > { %3305 = vmatpush.bf16.msra.mxu1 %v5364_v30  ;;  %v7722_v30 = vld [vmem:[#allocation39_spill] sm:$0xff] }
 0x35c   : > { %v6924_v20 = vadd.f32 %v2962_v55, %v2874_v10  ;;  %v2697_v9 = vpop.f32.mrf.mxu2  ;;  %v2612_v55 = vadd.f32 %v6865_v51, %v6602_v60 }
 0x35d   : > { %v2698_v19 = vadd.f32 %v2697_v9, %v2609_v17  ;;  %v2614_v17 = vadd.f32 %v6865_v51, %v6614_v36  ;;  %v5339_v36 = vld [vmem:[%s7615_s3 + $0x140] sm:$0xff] }
 0x35e   : > { %v2878_v46 = vpop.f32.mrf.mxu0  ;;  %3039 = vmatpush.bf16.msra.mxu2 %v5339_v36  ;;  %v7725_v36 = vld [vmem:[#allocation10_spill] sm:$0xff] }
 0x35f   : > { %v2786_v24 = vpop.f32.mrf.mxu3  ;;  %v2967_v2 = vpop.f32.mrf.mxu1 }
 0x360   : > { %v2787_v7 = vadd.f32 %v2786_v24, %v2698_v19 }
 0x361   : > { %2739 = vmatmul.bf16.gmra.mxu2 %v7719_v32  ;;  %2917 = vmatmul.bf16.gmra.mxu0 %v6460_v57 }
 0x362   : > { %v2876_v62 = vadd.f32 %v2875_v45, %v2787_v7  ;;  %3006 = vmatmul.bf16.gmra.mxu1 %v7720_v13  ;;  %v7723_v13 = vld [vmem:[#allocation38_spill] sm:$0xff] }
 0x364   : > { %2828 = vmatmul.bf16.gmra.mxu3 %v6458_v41  ;;  %v6935_v48 = vadd.f32 %v2964_v58, %v2876_v62  ;;  %v2700_v26 = vpop.f32.mrf.mxu2  ;;  %v7721_v62 = vld [vmem:[#allocation9_spill] sm:$0xff] }
 0x365   : > { %v2701_v16 = vadd.f32 %v2700_v26, %v2612_v55  ;;  %v7724_v55 = vld [vmem:[#allocation36_spill] sm:$0xff] }
 0x366   : > { %v2880_v39 = vpop.f32.mrf.mxu0 }
 0x367   : > { %v2789_v45 = vpop.f32.mrf.mxu3  ;;  %v2969_v57 = vpop.f32.mrf.mxu1 }
 0x368   : > { %v2790_v10 = vadd.f32 %v2789_v45, %v2701_v16 }
 0x36a   : > { %v2879_v15 = vadd.f32 %v2878_v46, %v2790_v10  ;;  %v5347_v46 = vld [vmem:[%s7615_s3 + $0x180] sm:$0xff] }
 0x36b   : > { %3128 = vmatpush.bf16.msra.mxu3 %v5347_v46  ;;  %v7726_v46 = vld [vmem:[#allocation42_spill] sm:$0xff] }
 0x36c   : > { %v6939_v9 = vadd.f32 %v2967_v2, %v2879_v15  ;;  %v2702_v41 = vpop.f32.mrf.mxu2  ;;  %v2617_v2 = vadd.f32 %v6865_v51, %v6620_v22 }
 0x36d   : > { %v2703_v19 = vadd.f32 %v2702_v41, %v2614_v17 }
 0x36e   : > { %v2883_v7 = vpop.f32.mrf.mxu0 }
 0x36f   : > { %v2791_v24 = vpop.f32.mrf.mxu3  ;;  %v2972_v32 = vpop.f32.mrf.mxu1 }
 0x370   : > { %v2792_v60 = vadd.f32 %v2791_v24, %v2703_v19  ;;  %v5355_v19 = vld [vmem:[%s7615_s3 + $0x1c0] sm:$0xff]  ;;  %v2619_v24 = vadd.f32 %v6865_v51, %v6635_v18 }
 0x371   : > { %2744 = vmatmul.bf16.gmra.mxu2 %v7721_v62  ;;  %2922 = vmatmul.bf16.gmra.mxu0 %v7722_v30  ;;  %v7727_v18 = vld [vmem:[#allocation40_spill] sm:$0xff] }
 0x372   : > { %v2881_v58 = vadd.f32 %v2880_v39, %v2792_v60  ;;  %3011 = vmatmul.bf16.gmra.mxu1 %v7724_v55  ;;  %3217 = vmatpush.bf16.msra.mxu0 %v5355_v19 }
 0x374   : > { %2833 = vmatmul.bf16.gmra.mxu3 %v7723_v13  ;;  %v6953_v26 = vadd.f32 %v2969_v57, %v2881_v58  ;;  %v2705_v16 = vpop.f32.mrf.mxu2 }
 0x375   : > { %v2706_v45 = vadd.f32 %v2705_v16, %v2617_v2 }
 0x376   : > { %v2885_v10 = vpop.f32.mrf.mxu0 }
 0x377   : > { %v2794_v39 = vpop.f32.mrf.mxu3  ;;  %v2974_v17 = vpop.f32.mrf.mxu1 }
 0x378   : > { %v2795_v15 = vadd.f32 %v2794_v39, %v2706_v45 }
 0x37a   : > { %v2884_v41 = vadd.f32 %v2883_v7, %v2795_v15  ;;  %v5363_v7 = vld [vmem:[%s7615_s3 + $0x200] sm:$0xff] }
 0x37b   : > { %3306 = vmatpush.bf16.msra.mxu1 %v5363_v7 }
 0x37c   : > { %v6960_v22 = vadd.f32 %v2972_v32, %v2884_v41  ;;  %v2707_v57 = vpop.f32.mrf.mxu2  ;;  %v7728_v32 = vld [vmem:[#allocation65_spill] sm:$0xff] }
 0x37d   : > { %v2708_v60 = vadd.f32 %v2707_v57, %v2619_v24  ;;  %v2622_v2 = vadd.f32 %v6865_v51, %v7728_v32  ;;  %v2624_v24 = vadd.f32 %v6865_v51, %v6656_v56  ;;  %v7731_v32 = vld [vmem:[#allocation45_spill] sm:$0xff]  ;;  %v2627_v56 = vadd.f32 %v6865_v51, %v6662_v28 }
 0x37e   : > { %v2888_v62 = vpop.f32.mrf.mxu0 }
 0x37f   : > { %v2796_v58 = vpop.f32.mrf.mxu3  ;;  %v2977_v13 = vpop.f32.mrf.mxu1 }
 0x380   : > { %v2797_v30 = vadd.f32 %v2796_v58, %v2708_v60 }
 0x381   : > { %2749 = vmatmul.bf16.gmra.mxu2 %v7725_v36  ;;  %2927 = vmatmul.bf16.gmra.mxu0 %v6498_v12 }
 0x382   : > { %v2886_v55 = vadd.f32 %v2885_v10, %v2797_v30  ;;  %3016 = vmatmul.bf16.gmra.mxu1 %v7727_v18  ;;  %v7730_v18 = vld [vmem:[#allocation46_spill] sm:$0xff] }
 0x384   : > { %2838 = vmatmul.bf16.gmra.mxu3 %v7726_v46  ;;  %v6971_v16 = vadd.f32 %v2974_v17, %v2886_v55  ;;  %v2710_v45 = vpop.f32.mrf.mxu2  ;;  %v7729_v55 = vld [vmem:[#allocation11_spill] sm:$0xff] }
 0x385   : > { %v2711_v39 = vadd.f32 %v2710_v45, %v2622_v2  ;;  %v7732_v2 = vld [vmem:[#allocation43_spill] sm:$0xff] }
 0x386   : > { %v2890_v15 = vpop.f32.mrf.mxu0 }
 0x387   : > { %v2799_v10 = vpop.f32.mrf.mxu3  ;;  %v2979_v12 = vpop.f32.mrf.mxu1 }
 0x388   : > { %v2800_v41 = vadd.f32 %v2799_v10, %v2711_v39 }
 0x38a   : > { %v2889_v19 = vadd.f32 %v2888_v62, %v2800_v41 }
 0x38c   : > { %v6975_v57 = vadd.f32 %v2977_v13, %v2889_v19  ;;  %v2712_v60 = vpop.f32.mrf.mxu2 }
 0x38d   : > { %v2713_v58 = vadd.f32 %v2712_v60, %v2624_v24  ;;  %v7733_v24 = vld [vmem:[#allocation70_spill] sm:$0xff] }
 0x38e   : > { %v2893_v36 = vpop.f32.mrf.mxu0  ;;  %v2629_v60 = vadd.f32 %v6865_v51, %v7733_v24 }
 0x38f   : > { %v2801_v30 = vpop.f32.mrf.mxu3  ;;  %v2982_v7 = vpop.f32.mrf.mxu1 }
 0x390   : > { %v2802_v46 = vadd.f32 %v2801_v30, %v2713_v58 }
 0x391   : > { %2754 = vmatmul.bf16.gmra.mxu2 %v7729_v55  ;;  %2932 = vmatmul.bf16.gmra.mxu0 %v7730_v18 }
 0x392   : > { %v2891_v17 = vadd.f32 %v2890_v15, %v2802_v46  ;;  %3021 = vmatmul.bf16.gmra.mxu1 %v7732_v2  ;;  %v7735_v2 = vld [vmem:[#allocation50_spill] sm:$0xff] }
 0x394   : > { %2843 = vmatmul.bf16.gmra.mxu3 %v7731_v32  ;;  %v6983_v62 = vadd.f32 %v2979_v12, %v2891_v17  ;;  %v2715_v13 = vpop.f32.mrf.mxu2  ;;  %v7734_v17 = vld [vmem:[#allocation13_spill] sm:$0xff] }
 0x395   : > { %v2716_v45 = vadd.f32 %v2715_v13, %v2627_v56  ;;  %v7736_v56 = vld [vmem:[#allocation49_spill] sm:$0xff]  ;;  %v7737_v13 = vld [vmem:[#allocation47_spill] sm:$0xff] }
 0x396   : > { %v2895_v10 = vpop.f32.mrf.mxu0 }
 0x397   : > { %v2804_v39 = vpop.f32.mrf.mxu3  ;;  %v2984_v19 = vpop.f32.mrf.mxu1 }
 0x398   : > { %v2805_v41 = vadd.f32 %v2804_v39, %v2716_v45 }
 0x39a   : > { %v2894_v15 = vadd.f32 %v2893_v36, %v2805_v41  ;;  %v7738_v36 = vld [vmem:[#allocation73_spill] sm:$0xff] }
 0x39b   : > { %v2632_v45 = vadd.f32 %v6865_v51, %v7738_v36 }
 0x39c   : > { %v6987_v58 = vadd.f32 %v2982_v7, %v2894_v15  ;;  %v2717_v30 = vpop.f32.mrf.mxu2 }
 0x39d   : > { %v2718_v46 = vadd.f32 %v2717_v30, %v2629_v60 }
 0x39e   : > { %v2898_v18 = vpop.f32.mrf.mxu0 }
 0x39f   : > { %v2806_v55 = vpop.f32.mrf.mxu3  ;;  %v2987_v28 = vpop.f32.mrf.mxu1 }
 0x3a0   : > { %v2807_v32 = vadd.f32 %v2806_v55, %v2718_v46  ;;  %v2634_v46 = vadd.f32 %v6865_v51, %v6698_v34  ;;  %v2637_v34 = vadd.f32 %v6865_v51, %v6704_v5 }
 0x3a1   : > { %2759 = vmatmul.bf16.gmra.mxu2 %v7734_v17  ;;  %2937 = vmatmul.bf16.gmra.mxu0 %v7735_v2 }
 0x3a2   : > { %v2896_v12 = vadd.f32 %v2895_v10, %v2807_v32  ;;  %3026 = vmatmul.bf16.gmra.mxu1 %v7737_v13 }
 0x3a4   : > { %2848 = vmatmul.bf16.gmra.mxu3 %v7736_v56  ;;  %v6995_v7 = vadd.f32 %v2984_v19, %v2896_v12  ;;  %v2720_v39 = vpop.f32.mrf.mxu2  ;;  %v7739_v12 = vld [vmem:[#allocation14_spill] sm:$0xff] }
 0x3a5   : > { %v2721_v41 = vadd.f32 %v2720_v39, %v2632_v45  ;;  %v7740_v45 = vld [vmem:[#allocation53_spill] sm:$0xff]  ;;  %v7741_v39 = vld [vmem:[#allocation52_spill] sm:$0xff] }
 0x3a6   : > { %v2900_v24 = vpop.f32.mrf.mxu0 }
 0x3a7   : > { %v2809_v15 = vpop.f32.mrf.mxu3  ;;  %v2989_v30 = vpop.f32.mrf.mxu1 }
 0x3a8   : > { %v2810_v60 = vadd.f32 %v2809_v15, %v2721_v41  ;;  %v7742_v41 = vld [vmem:[#allocation51_spill] sm:$0xff] }
 0x3aa   : > { %v2899_v10 = vadd.f32 %v2898_v18, %v2810_v60 }
 0x3ac   : > { %v6999_v55 = vadd.f32 %v2987_v28, %v2899_v10  ;;  %v2722_v32 = vpop.f32.mrf.mxu2 }
 0x3ad   : > { %v2723_v17 = vadd.f32 %v2722_v32, %v2634_v46 }
 0x3ae   : > { %v2903_v56 = vpop.f32.mrf.mxu0 }
 0x3af   : > { %v2811_v2 = vpop.f32.mrf.mxu3  ;;  %v2992_v36 = vpop.f32.mrf.mxu1 }
 0x3b0   : > { %v2812_v13 = vadd.f32 %v2811_v2, %v2723_v17  ;;  %v2639_v17 = vadd.f32 %v6865_v51, %v6718_v54  ;;  %v2642_v54 = vadd.f32 %v6865_v51, %v6727_v1 }
 0x3b1   : > { %3040 = vmatmul.bf16.vlgmr.msra.gmra.mxu2 %v7739_v12  ;;  %3218 = vmatmul.bf16.vlgmr.msra.gmra.mxu0 %v7740_v45 }
 0x3b2   : > { %v2901_v19 = vadd.f32 %v2900_v24, %v2812_v13  ;;  %3307 = vmatmul.bf16.vlgmr.msra.gmra.mxu1 %v7742_v41 }
 0x3b4   : > { %3129 = vmatmul.bf16.vlgmr.msra.gmra.mxu3 %v7741_v39  ;;  %v7007_v18 = vadd.f32 %v2989_v30, %v2901_v19  ;;  %v2725_v28 = vpop.f32.mrf.mxu2  ;;  %v7743_v19 = vld [vmem:[#allocation15_spill] sm:$0xff] }
 0x3b5   : > { %v2726_v15 = vadd.f32 %v2725_v28, %v2637_v34  ;;  %v7744_v34 = vld [vmem:[#allocation56_spill] sm:$0xff]  ;;  %v7745_v28 = vld [vmem:[#allocation55_spill] sm:$0xff] }
 0x3b6   : > { %v2905_v10 = vpop.f32.mrf.mxu0 }
 0x3b7   : > { %v2814_v60 = vpop.f32.mrf.mxu3  ;;  %v2994_v32 = vpop.f32.mrf.mxu1 }
 0x3b8   : > { %v2815_v46 = vadd.f32 %v2814_v60, %v2726_v15  ;;  %v7746_v15 = vld [vmem:[#allocation54_spill] sm:$0xff] }
 0x3ba   : > { %v2904_v24 = vadd.f32 %v2903_v56, %v2815_v46 }
 0x3bc   : > { %v7011_v2 = vadd.f32 %v2992_v36, %v2904_v24  ;;  %v2727_v13 = vpop.f32.mrf.mxu2 }
 0x3bd   : > { %v2728_v12 = vadd.f32 %v2727_v13, %v2639_v17 }
 0x3be   : > { %v2908_v39 = vpop.f32.mrf.mxu0 }
 0x3bf   : > { %v2816_v45 = vpop.f32.mrf.mxu3  ;;  %v2997_v5 = vpop.f32.mrf.mxu1 }
 0x3c0   : > { %v2817_v41 = vadd.f32 %v2816_v45, %v2728_v12  ;;  %v2644_v12 = vadd.f32 %v6865_v51, %v6738_v61  ;;  %v2647_v61 = vadd.f32 %v6865_v51, %v6744_v42 }
 0x3c1   : > { %3045 = vmatmul.bf16.gmra.mxu2 %v7743_v19  ;;  %3223 = vmatmul.bf16.gmra.mxu0 %v7744_v34 }
 0x3c2   : > { %v2906_v30 = vadd.f32 %v2905_v10, %v2817_v41  ;;  %3312 = vmatmul.bf16.gmra.mxu1 %v7746_v15 }
 0x3c4   : > { %3134 = vmatmul.bf16.gmra.mxu3 %v7745_v28  ;;  %v7019_v56 = vadd.f32 %v2994_v32, %v2906_v30  ;;  %v2730_v36 = vpop.f32.mrf.mxu2  ;;  %v7747_v30 = vld [vmem:[#allocation16_spill] sm:$0xff] }
 0x3c5   : > { %v2731_v60 = vadd.f32 %v2730_v36, %v2642_v54  ;;  %v7748_v54 = vld [vmem:[#allocation59_spill] sm:$0xff]  ;;  %v7749_v36 = vld [vmem:[#allocation58_spill] sm:$0xff] }
 0x3c6   : > { %v2910_v24 = vpop.f32.mrf.mxu0 }
 0x3c7   : > { %v2819_v46 = vpop.f32.mrf.mxu3  ;;  %v2999_v13 = vpop.f32.mrf.mxu1 }
 0x3c8   : > { %v2820_v17 = vadd.f32 %v2819_v46, %v2731_v60  ;;  %v7750_v60 = vld [vmem:[#allocation57_spill] sm:$0xff] }
 0x3ca   : > { %v2909_v10 = vadd.f32 %v2908_v39, %v2820_v17 }
 0x3cc   : > { %v7023_v45 = vadd.f32 %v2997_v5, %v2909_v10  ;;  %v2732_v41 = vpop.f32.mrf.mxu2 }
 0x3cd   : > { %v2733_v19 = vadd.f32 %v2732_v41, %v2644_v12 }
 0x3ce   : > { %v2913_v28 = vpop.f32.mrf.mxu0 }
 0x3cf   : > { %v2821_v34 = vpop.f32.mrf.mxu3  ;;  %v3002_v1 = vpop.f32.mrf.mxu1 }
 0x3d0   : > { %v2822_v15 = vadd.f32 %v2821_v34, %v2733_v19  ;;  %v2649_v19 = vadd.f32 %v6865_v51, %v6758_v37  ;;  %v2652_v37 = vadd.f32 %v6865_v51, %v6767_v63  ;;  %v7757_v63 = vld [vmem:[#allocation18_spill] sm:$0xff] }
 0x3d1   : > { %3050 = vmatmul.bf16.gmra.mxu2 %v7747_v30  ;;  %3228 = vmatmul.bf16.gmra.mxu0 %v7748_v54 }
 0x3d2   : > { %v2911_v32 = vadd.f32 %v2910_v24, %v2822_v15  ;;  %3317 = vmatmul.bf16.gmra.mxu1 %v7750_v60 }
 0x3d4   : > { %3139 = vmatmul.bf16.gmra.mxu3 %v7749_v36  ;;  %v7031_v39 = vadd.f32 %v2999_v13, %v2911_v32  ;;  %v2735_v5 = vpop.f32.mrf.mxu2  ;;  %v7752_v32 = vld [vmem:[#allocation17_spill] sm:$0xff] }
 0x3d5   : > { %v2736_v46 = vadd.f32 %v2735_v5, %v2647_v61  ;;  %v7753_v61 = vld [vmem:[#allocation62_spill] sm:$0xff]  ;;  %v7754_v5 = vld [vmem:[#allocation61_spill] sm:$0xff] }
 0x3d6   : > { %v2915_v10 = vpop.f32.mrf.mxu0 }
 0x3d7   : > { %v2824_v17 = vpop.f32.mrf.mxu3  ;;  %v3004_v41 = vpop.f32.mrf.mxu1 }
 0x3d8   : > { %v2825_v12 = vadd.f32 %v2824_v17, %v2736_v46  ;;  %v7755_v46 = vld [vmem:[#allocation60_spill] sm:$0xff] }
 0x3da   : > { %v2914_v24 = vadd.f32 %v2913_v28, %v2825_v12 }
 0x3dc   : > { %v7035_v34 = vadd.f32 %v3002_v1, %v2914_v24  ;;  %v2737_v15 = vpop.f32.mrf.mxu2 }
 0x3dd   : > { %v2738_v30 = vadd.f32 %v2737_v15, %v2649_v19 }
 0x3de   : > { %7751 = vst [vmem:[#allocation5_spill] sm:$0xff] %v7035_v34  ;;  %v2918_v36 = vpop.f32.mrf.mxu0 }
 0x3df   : > { %v2826_v54 = vpop.f32.mrf.mxu3  ;;  %v3007_v42 = vpop.f32.mrf.mxu1 }
 0x3e0   : > { %v2827_v60 = vadd.f32 %v2826_v54, %v2738_v30  ;;  %v2654_v30 = vadd.f32 %v6865_v51, %v6778_v21 }
 0x3e1   : > { %3055 = vmatmul.bf16.gmra.mxu2 %v7752_v32  ;;  %3233 = vmatmul.bf16.gmra.mxu0 %v7753_v61 }
 0x3e2   : > { %v2916_v13 = vadd.f32 %v2915_v10, %v2827_v60  ;;  %3322 = vmatmul.bf16.gmra.mxu1 %v7755_v46 }
 0x3e4   : > { %3144 = vmatmul.bf16.gmra.mxu3 %v7754_v5  ;;  %v2740_v28 = vpop.f32.mrf.mxu2  ;;  %v7043_v24 = vadd.f32 %v3004_v41, %v2916_v13  ;;  %v7760_v41 = vld [vmem:[#allocation63_spill] sm:$0xff] }
 0x3e5   : > { %v2741_v1 = vadd.f32 %v2740_v28, %v2652_v37  ;;  %v7758_v37 = vld [vmem:[#allocation66_spill] sm:$0xff]  ;;  %v7759_v28 = vld [vmem:[#allocation64_spill] sm:$0xff] }
 0x3e6   : > { %v2920_v12 = vpop.f32.mrf.mxu0  ;;  %7756 = vst [vmem:[#allocation27_spill] sm:$0xff] %v7043_v24  ;;  %v7761_v24 = vld [vmem:[#allocation19_spill] sm:$0xff] }
 0x3e7   : > { %v2829_v17 = vpop.f32.mrf.mxu3  ;;  %v3009_v15 = vpop.f32.mrf.mxu1 }
 0x3e8   : > { %v2830_v19 = vadd.f32 %v2829_v17, %v2741_v1 }
 0x3ea   : > { %v2919_v10 = vadd.f32 %v2918_v36, %v2830_v19  ;;  %v2657_v36 = vadd.f32 %v6865_v51, %v6784_v52 }
 0x3ec   : > { %v2742_v54 = vpop.f32.mrf.mxu2  ;;  %v7053_v17 = vadd.f32 %v3007_v42, %v2919_v10  ;;  %v7763_v42 = vld [vmem:[#allocation68_spill] sm:$0xff]  ;;  %v7764_v10 = vld [vmem:[#allocation67_spill] sm:$0xff] }
 0x3ed   : > { %v2743_v60 = vadd.f32 %v2742_v54, %v2654_v30 }
 0x3ee   : > { %v2923_v61 = vpop.f32.mrf.mxu0 }
 0x3ef   : > { %v2831_v32 = vpop.f32.mrf.mxu3  ;;  %v3012_v46 = vpop.f32.mrf.mxu1 }
 0x3f0   : > { %v2832_v5 = vadd.f32 %v2831_v32, %v2743_v60  ;;  %v2659_v60 = vadd.f32 %v6865_v51, %v6798_v53 }
 0x3f1   : > { %3060 = vmatmul.bf16.gmra.mxu2 %v7757_v63  ;;  %3238 = vmatmul.bf16.gmra.mxu0 %v7758_v37 }
 0x3f2   : > { %v2921_v34 = vadd.f32 %v2920_v12, %v2832_v5  ;;  %3327 = vmatmul.bf16.gmra.mxu1 %v7760_v41 }
 0x3f4   : > { %3149 = vmatmul.bf16.gmra.mxu3 %v7759_v28  ;;  %v2745_v13 = vpop.f32.mrf.mxu2 }
 0x3f5   : > { %v2746_v21 = vadd.f32 %v2745_v13, %v2657_v36  ;;  %v7762_v36 = vld [vmem:[#allocation69_spill] sm:$0xff]  ;;  %v7065_v13 = vadd.f32 %v3009_v15, %v2921_v34  ;;  %v7766_v15 = vld [vmem:[#allocation74_spill] sm:$0xff] }
 0x3f6   : > { %v2925_v19 = vpop.f32.mrf.mxu0  ;;  %v7765_v34 = vld [vmem:[#allocation21_spill] sm:$0xff] }
 0x3f7   : > { %v2834_v1 = vpop.f32.mrf.mxu3  ;;  %v3014_v54 = vpop.f32.mrf.mxu1 }
 0x3f8   : > { %v2835_v30 = vadd.f32 %v2834_v1, %v2746_v21 }
 0x3fa   : > { %v2924_v12 = vadd.f32 %v2923_v61, %v2835_v30  ;;  %v2662_v61 = vadd.f32 %v6865_v51, %v6807_v0 }
 0x3fc   : > { %v2747_v32 = vpop.f32.mrf.mxu2 }
 0x3fd   : > { %v2748_v5 = vadd.f32 %v2747_v32, %v2659_v60 }
 0x3fe   : > { %v2928_v37 = vpop.f32.mrf.mxu0 }
 0x3ff   : > { %v2836_v63 = vpop.f32.mrf.mxu3  ;;  %v7057_v41 = vpop.f32.mrf.mxu1 }
 0x400   : > { %v2837_v28 = vadd.f32 %v2836_v63, %v2748_v5 }
 0x401   : > { %3065 = vmatmul.bf16.gmra.mxu2 %v7761_v24  ;;  %3243 = vmatmul.bf16.gmra.mxu0 %v7762_v36  ;;  %v2664_v24 = vadd.f32 %v6865_v51, %v6818_v59  ;;  %v2667_v59 = vadd.f32 %v6865_v51, %v6824_v14 }
 0x402   : > { %v2926_v52 = vadd.f32 %v2925_v19, %v2837_v28  ;;  %3332 = vmatmul.bf16.gmra.mxu1 %v7764_v10 }
 0x404   : > { %3154 = vmatmul.bf16.gmra.mxu3 %v7763_v42  ;;  %v2750_v53 = vpop.f32.mrf.mxu2 }
 0x405   : > { %v2751_v21 = vadd.f32 %v2750_v53, %v2662_v61  ;;  %v7767_v61 = vld [vmem:[#allocation72_spill] sm:$0xff]  ;;  %v7768_v53 = vld [vmem:[#allocation71_spill] sm:$0xff] }
 0x406   : > { %v2930_v30 = vpop.f32.mrf.mxu0 }
 0x407   : > { %v2839_v1 = vpop.f32.mrf.mxu3  ;;  %v7067_v32 = vpop.f32.mrf.mxu1 }
 0x408   : > { %v2840_v60 = vadd.f32 %v2839_v1, %v2751_v21 }
 0x40a   : > { %v2929_v19 = vadd.f32 %v2928_v37, %v2840_v60  ;;  %v7081_v37 = vadd.f32 %v3012_v46, %v2924_v12  ;;  %v7769_v12 = vld [vmem:[#allocation23_spill] sm:$0xff] }
 0x40c   : > { %v2752_v5 = vpop.f32.mrf.mxu2 }
 0x40d   : > { %v2753_v63 = vadd.f32 %v2752_v5, %v2664_v24 }
 0x40e   : > { %v2933_v36 = vpop.f32.mrf.mxu0 }
 0x40f   : > { %v2841_v28 = vpop.f32.mrf.mxu3  ;;  %v7071_v10 = vpop.f32.mrf.mxu1 }
 0x410   : > { %v2842_v42 = vadd.f32 %v2841_v28, %v2753_v63  ;;  %v2669_v28 = vadd.f32 %v6865_v51, %v6838_v43  ;;  %v2672_v43 = vadd.f32 %v6865_v51, %v6847_v3 }
 0x411   : > { %3070 = vmatmul.bf16.gmra.mxu2 %v7765_v34  ;;  %3248 = vmatmul.bf16.gmra.mxu0 %v7766_v15 }
 0x412   : > { %v7073_v0 = vadd.f32 %v2930_v30, %v2842_v42  ;;  %3337 = vmatmul.bf16.gmra.mxu1 %v7768_v53 }
 0x414   : > { %3159 = vmatmul.bf16.gmra.mxu3 %v7767_v61  ;;  %v2755_v21 = vpop.f32.mrf.mxu2 }
 0x415   : > { %v2756_v1 = vadd.f32 %v2755_v21, %v2667_v59 }
 0x416   : > { %v2935_v24 = vpop.f32.mrf.mxu0 }
 0x417   : > { %v2844_v60 = vpop.f32.mrf.mxu3  ;;  %v7083_v30 = vpop.f32.mrf.mxu1 }
 0x418   : > { %v2845_v5 = vadd.f32 %v2844_v60, %v2756_v1 }
 0x41a   : > { %v7085_v63 = vadd.f32 %v2933_v36, %v2845_v5  ;;  %v7097_v36 = vadd.f32 %v3014_v54, %v2926_v52 }
 0x41c   : > { %v2757_v42 = vpop.f32.mrf.mxu2 }
 0x41d   : > { %v2758_v34 = vadd.f32 %v2757_v42, %v2669_v28 }
 0x41e   : > { %v2938_v61 = vpop.f32.mrf.mxu0 }
 0x41f   : > { %v2846_v15 = vpop.f32.mrf.mxu3  ;;  %v7089_v14 = vpop.f32.mrf.mxu1 }
 0x420   : > { %v2847_v53 = vadd.f32 %v2846_v15, %v2758_v34  ;;  %v7770_v15 = vld [vmem:[#allocation25_spill] sm:$0xff] }
 0x421   : > { %3075 = vmatmul.bf16.gmra.mxu2 %v7769_v12  ;;  %3253 = vmatmul.bf16.gmra.mxu0 %v6706_v44  ;;  %v2674_v44 = vadd.f32 %v6865_v51, %v6858_v47  ;;  %v7772_v12 = vld [vmem:[#allocation75_spill] sm:$0xff] }
 0x422   : > { %v7091_v46 = vadd.f32 %v2935_v24, %v2847_v53  ;;  %3342 = vmatmul.bf16.gmra.mxu1 %v6700_v4  ;;  %v7112_v53 = vadd.f32 %v7057_v41, %v2929_v19  ;;  %v7127_v41 = vld [vmem:[%s7617_s5] ss:$0 sm:$0xff] }
 0x424   : > { %3164 = vmatmul.bf16.gmra.mxu3 %v6702_v38  ;;  %v2760_v59 = vpop.f32.mrf.mxu2 }
 0x425   : > { %v2761_v21 = vadd.f32 %v2760_v59, %v2672_v43 }
 0x426   : > { %v2940_v60 = vpop.f32.mrf.mxu0 }
 0x427   : > { %v2849_v1 = vpop.f32.mrf.mxu3  ;;  %v7101_v24 = vpop.f32.mrf.mxu1 }
 0x428   : > { %v2850_v5 = vadd.f32 %v2849_v1, %v2761_v21 }
 0x42a   : > { %v7103_v28 = vadd.f32 %v2938_v61, %v2850_v5  ;;  %v7771_v61 = vld [vmem:[#allocation76_spill] sm:$0xff] }
 0x42c   : > { %v2762_v38 = vpop.f32.mrf.mxu2 }
 0x42d   : > { %v2763_v42 = vadd.f32 %v2762_v38, %v2674_v44 }
 0x42e   : > { %v3219_v54 = vpop.f32.mrf.mxu0 }
 0x42f   : > { %v2851_v4 = vpop.f32.mrf.mxu3  ;;  %v3308_v34 = vpop.f32.mrf.mxu1 }
 0x430   : > { %v2852_v52 = vadd.f32 %v2851_v4, %v2763_v42  ;;  %v7134_v42 = vld [vmem:[%s7617_s5 + $0x1] ss:$0 sm:$0xff] }
 0x431   : > { %3080 = vmatmul.bf16.gmra.mxu2 %v7770_v15  ;;  %3258 = vmatmul.bf16.gmra.mxu0 %v6729_v31 }
 0x432   : > { %v7107_v3 = vadd.f32 %v2940_v60, %v2852_v52  ;;  %3347 = vmatmul.bf16.gmra.mxu1 %v7772_v12 }
 0x434   : > { %3169 = vmatmul.bf16.gmra.mxu3 %v7771_v61  ;;  %v3041_v47 = vpop.f32.mrf.mxu2  ;;  %v7139_v61 = vadd.f32 %v7067_v32, %v7073_v0 }
 0x435   : > { %v3042_v51 = vadd.f32 %v3041_v47, %v6888_v29  ;;  %v5372_v29 = vld [vmem:[%s7122_s15] sm:$0xff]   ;;  %v7773_v47 = vld [vmem:[#allocation29_spill] sm:$0xff] }
 0x436   : > { %v3221_v59 = vpop.f32.mrf.mxu0  ;;  %v5373_v15 = vunpack.c.l.bf16 %v5372_v29 }
 0x437   : > { %v3130_v43 = vpop.f32.mrf.mxu3  ;;  %v3310_v1 = vpop.f32.mrf.mxu1 }
 0x438   : > { %v3131_v21 = vadd.f32 %v3130_v43, %v3042_v51 }
 0x43a   : > { %v3220_v60 = vadd.f32 %v3219_v54, %v3131_v21 }
 0x43c   : > { %v3309_v31 = vadd.f32 %v3308_v34, %v3220_v60  ;;  %v3043_v19 = vpop.f32.mrf.mxu2 }
 0x43d   : > { %v3044_v44 = vadd.f32 %v3043_v19, %v6899_v27 }
 0x43e   : > { %v3388_v5 = vmax.f32 %v3309_v31, 0.0  ;;  %v3224_v4 = vpop.f32.mrf.mxu0 }
 0x43f   : > { %v3132_v38 = vpop.f32.mrf.mxu3  ;;  %v3313_v52 = vpop.f32.mrf.mxu1 }
 0x440   : > { %v3133_v54 = vadd.f32 %v3132_v38, %v3044_v44  ;;  %v3422_v34 = vmul.f32 %v7127_v41, %v3388_v5 }
 0x441   : > { %3085 = vmatmul.bf16.gmra.mxu2 %v7773_v47  ;;  %3263 = vmatmul.bf16.gmra.mxu0 %v6746_v49 }
 0x442   : > { %v3222_v12 = vadd.f32 %v3221_v59, %v3133_v54  ;;  %v3456_v27 = vadd.f32 %v7134_v42, %v3422_v34  ;;  %3352 = vmatmul.bf16.gmra.mxu1 %v6740_v25  ;;  %v5435_v34 = vld [vmem:[%s7122_s15 + $0x8] sm:$0xff]  }
 0x444   : > { %3174 = vmatmul.bf16.gmra.mxu3 %v6742_v8  ;;  %v3311_v51 = vadd.f32 %v3310_v1, %v3222_v12  ;;  %v3552_v43 = vmul.f32 %v5373_v15, %v3456_v27  ;;  %v3046_v21 = vpop.f32.mrf.mxu2  ;;  %v5374_v8 = vunpack.c.h.bf16 %v5372_v29  ;;  %v5377_v29 = vunpack.c.l.bf16 %v5435_v34 }
 0x445   : > { %v3047_v32 = vadd.f32 %v3046_v21, %v6903_v6 }
 0x446   : > { %v3389_v60 = vmax.f32 %v3311_v51, 0.0  ;;  %v3585_v59 = vsel %vm3584_vm2, %v3552_v43, 0.0  ;;  %v3226_v31 = vpop.f32.mrf.mxu0 }
 0x447   : > { %v3135_v0 = vpop.f32.mrf.mxu3  ;;  %3586 = vadd.xlane.f32.xlu0 %v3585_v59  ;;  %v3315_v19 = vpop.f32.mrf.mxu1 }
 0x448   : > { %v3136_v49 = vadd.f32 %v3135_v0, %v3047_v32  ;;  %v3423_v5 = vmul.f32 %v7127_v41, %v3389_v60  ;;  %v7774_v60 = vld [vmem:[#allocation31_spill] sm:$0xff]  ;;  %v7775_v32 = vld [vmem:[#allocation78_spill] sm:$0xff]  ;;  %v7776_v0 = vld [vmem:[#allocation77_spill] sm:$0xff] }
 0x44a   : > { %v3225_v44 = vadd.f32 %v3224_v4, %v3136_v49  ;;  %v3457_v25 = vadd.f32 %v7134_v42, %v3423_v5  ;;  %v7156_v4 = vadd.f32 %v7071_v10, %v7085_v63 }
 0x44c   : > { %v3314_v1 = vadd.f32 %v3313_v52, %v3225_v44  ;;  %v3553_v38 = vmul.f32 %v5374_v8, %v3457_v25  ;;  %v3048_v54 = vpop.f32.mrf.mxu2 }
 0x44d   : > { %v3049_v6 = vadd.f32 %v3048_v54, %v6917_v23 }
 0x44e   : > { %v3390_v15 = vmax.f32 %v3314_v1, 0.0  ;;  %v3588_v47 = vsel %vm3584_vm2, %v3553_v38, 0.0  ;;  %v3229_v27 = vpop.f32.mrf.mxu0  ;;  %v5378_v38 = vunpack.c.h.bf16 %v5435_v34 }
 0x44f   : > { %v3137_v12 = vpop.f32.mrf.mxu3  ;;  %3589 = vadd.xlane.f32.xlu0 %v3588_v47  ;;  %v3318_v43 = vpop.f32.mrf.mxu1  ;;  %v5436_v47 = vld [vmem:[%s7122_s15 + $0x10] sm:$0xff]  }
 0x450   : > { %v3138_v51 = vadd.f32 %v3137_v12, %v3049_v6  ;;  %v3424_v21 = vmul.f32 %v7127_v41, %v3390_v15 }
 0x451   : > { %3090 = vmatmul.bf16.gmra.mxu2 %v7774_v60  ;;  %3268 = vmatmul.bf16.gmra.mxu0 %v6769_v35  ;;  %v7172_v60 = vadd.f32 %v7083_v30, %v7091_v46 }
 0x452   : > { %v3227_v52 = vadd.f32 %v3226_v31, %v3138_v51  ;;  %v3458_v23 = vadd.f32 %v7134_v42, %v3424_v21  ;;  %3357 = vmatmul.bf16.gmra.mxu1 %v7776_v0  ;;  %v7777_v0 = vld [vmem:[#allocation35_spill] sm:$0xff] }
 0x454   : > { %3179 = vmatmul.bf16.gmra.mxu3 %v7775_v32  ;;  %v3316_v59 = vadd.f32 %v3315_v19, %v3227_v52  ;;  %v3554_v49 = vmul.f32 %v5377_v29, %v3458_v23  ;;  %v3051_v5 = vpop.f32.mrf.mxu2 }
 0x455   : > { %v3052_v44 = vadd.f32 %v3051_v5, %v6924_v20 }
 0x456   : > { %v3391_v8 = vmax.f32 %v3316_v59, 0.0  ;;  %v3591_v63 = vsel %vm3584_vm2, %v3554_v49, 0.0  ;;  %v3231_v31 = vpop.f32.mrf.mxu0 }
 0x457   : > { %v3140_v10 = vpop.f32.mrf.mxu3  ;;  %3592 = vadd.xlane.f32.xlu1 %v3591_v63  ;;  %v3320_v35 = vpop.f32.mrf.mxu1 }
 0x458   : > { %v3141_v25 = vadd.f32 %v3140_v10, %v3052_v44  ;;  %v3425_v1 = vmul.f32 %v7127_v41, %v3391_v8 }
 0x45a   : > { %v3230_v54 = vadd.f32 %v3229_v27, %v3141_v25  ;;  %v3459_v15 = vadd.f32 %v7134_v42, %v3425_v1  ;;  %v5382_v25 = vunpack.c.h.bf16 %v5436_v47 }
 0x45c   : > { %v3319_v19 = vadd.f32 %v3318_v43, %v3230_v54  ;;  %v3555_v6 = vmul.f32 %v5378_v38, %v3459_v15  ;;  %v3053_v12 = vpop.f32.mrf.mxu2  ;;  %v5381_v43 = vunpack.c.l.bf16 %v5436_v47  ;;  %v5437_v54 = vld [vmem:[%s7122_s15 + $0x18] sm:$0xff]  }
 0x45d   : > { %v3054_v20 = vadd.f32 %v3053_v12, %v6935_v48  ;;  %v5385_v47 = vunpack.c.l.bf16 %v5437_v54 }
 0x45e   : > { %v3392_v51 = vmax.f32 %v3319_v19, 0.0  ;;  %v3594_v29 = vsel %vm3584_vm2, %v3555_v6, 0.0  ;;  %v3234_v52 = vpop.f32.mrf.mxu0 }
 0x45f   : > { %v3142_v21 = vpop.f32.mrf.mxu3  ;;  %3595 = vadd.xlane.f32.xlu1 %v3594_v29  ;;  %v3323_v27 = vpop.f32.mrf.mxu1 }
 0x460   : > { %v3143_v34 = vadd.f32 %v3142_v21, %v3054_v20  ;;  %v3426_v23 = vmul.f32 %v7127_v41, %v3392_v51 }
 0x461   : > { %3095 = vmatmul.bf16.gmra.mxu2 %v7777_v0  ;;  %3273 = vmatmul.bf16.gmra.mxu0 %v6786_v50 }
 0x462   : > { %v3232_v32 = vadd.f32 %v3231_v31, %v3143_v34  ;;  %v3460_v48 = vadd.f32 %v7134_v42, %v3426_v23  ;;  %3362 = vmatmul.bf16.gmra.mxu1 %v6780_v33 }
 0x464   : > { %3184 = vmatmul.bf16.gmra.mxu3 %v6782_v11  ;;  %v3321_v59 = vadd.f32 %v3320_v35, %v3232_v32  ;;  %v3556_v49 = vmul.f32 %v5381_v43, %v3460_v48  ;;  %v3056_v30 = vpop.f32.mrf.mxu2 }
 0x465   : > { %v3057_v5 = vadd.f32 %v3056_v30, %v6939_v9 }
 0x466   : > { %v3393_v46 = vmax.f32 %v3321_v59, 0.0  ;;  %v3597_v44 = vsel %vm3584_vm2, %v3556_v49, 0.0  ;;  %v3236_v10 = vpop.f32.mrf.mxu0 }
 0x467   : > { %v3145_v8 = vpop.f32.mrf.mxu3  ;;  %3598 = vadd.xlane.f32.xlu2 %v3597_v44  ;;  %v3325_v50 = vpop.f32.mrf.mxu1 }
 0x468   : > { %v3146_v63 = vadd.f32 %v3145_v8, %v3057_v5  ;;  %v3427_v31 = vmul.f32 %v7127_v41, %v3393_v46  ;;  %v5386_v8 = vunpack.c.h.bf16 %v5437_v54 }
 0x46a   : > { %v3235_v11 = vadd.f32 %v3234_v52, %v3146_v63  ;;  %v3461_v33 = vadd.f32 %v7134_v42, %v3427_v31  ;;  %v7778_v52 = vld [vmem:[#allocation37_spill] sm:$0xff] }
 0x46c   : > { %v3324_v35 = vadd.f32 %v3323_v27, %v3235_v11  ;;  %v3557_v1 = vmul.f32 %v5382_v25, %v3461_v33  ;;  %v3058_v38 = vpop.f32.mrf.mxu2  ;;  %v7779_v27 = vld [vmem:[#allocation80_spill] sm:$0xff] }
 0x46d   : > { %v3059_v9 = vadd.f32 %v3058_v38, %v6953_v26  ;;  %v7780_v26 = vld [vmem:[#allocation79_spill] sm:$0xff] }
 0x46e   : > { %v3394_v15 = vmax.f32 %v3324_v35, 0.0  ;;  %v3600_v6 = vsel %vm3584_vm2, %v3557_v1, 0.0  ;;  %v3239_v12 = vpop.f32.mrf.mxu0  ;;  %v5438_v25 = vld [vmem:[%s7122_s15 + $0x20] sm:$0xff]  }
 0x46f   : > { %v3147_v19 = vpop.f32.mrf.mxu3  ;;  %3601 = vadd.xlane.f32.xlu2 %v3600_v6  ;;  %v3328_v20 = vpop.f32.mrf.mxu1  ;;  %v5389_v54 = vunpack.c.l.bf16 %v5438_v25  ;;  %v7781_v6 = vld [vmem:[#allocation41_spill] sm:$0xff] }
 0x470   : > { %v3148_v51 = vadd.f32 %v3147_v19, %v3059_v9  ;;  %v3428_v21 = vmul.f32 %v7127_v41, %v3394_v15 }
 0x471   : > { %3100 = vmatmul.bf16.gmra.mxu2 %v7778_v52  ;;  %3278 = vmatmul.bf16.gmra.mxu0 %v6809_v40 }
 0x472   : > { %v3237_v29 = vadd.f32 %v3236_v10, %v3148_v51  ;;  %v3462_v34 = vadd.f32 %v7134_v42, %v3428_v21  ;;  %3367 = vmatmul.bf16.gmra.mxu1 %v7780_v26 }
 0x474   : > { %3189 = vmatmul.bf16.gmra.mxu3 %v7779_v27  ;;  %v3326_v23 = vadd.f32 %v3325_v50, %v3237_v29  ;;  %v3558_v43 = vmul.f32 %v5385_v47, %v3462_v34  ;;  %v3061_v32 = vpop.f32.mrf.mxu2 }
 0x475   : > { %v3062_v48 = vadd.f32 %v3061_v32, %v6960_v22 }
 0x476   : > { %v3395_v0 = vmax.f32 %v3326_v23, 0.0  ;;  %v3603_v49 = vsel %vm3584_vm2, %v3558_v43, 0.0  ;;  %v3241_v30 = vpop.f32.mrf.mxu0 }
 0x477   : > { %v3150_v59 = vpop.f32.mrf.mxu3  ;;  %3604 = vadd.xlane.f32.xlu0 %v3603_v49  ;;  %v3330_v40 = vpop.f32.mrf.mxu1 }
 0x478   : > { %v3151_v46 = vadd.f32 %v3150_v59, %v3062_v48  ;;  %v3429_v5 = vmul.f32 %v7127_v41, %v3395_v0  ;;  %v5390_v0 = vunpack.c.h.bf16 %v5438_v25 }
 0x47a   : > { %v3240_v44 = vadd.f32 %v3239_v12, %v3151_v46  ;;  %v3463_v10 = vadd.f32 %v7134_v42, %v3429_v5  ;;  %v7782_v12 = vld [vmem:[#allocation83_spill] sm:$0xff]  ;;  %v5439_v5 = vld [vmem:[%s7122_s15 + $0x28] sm:$0xff]  }
 0x47c   : > { %v3329_v63 = vadd.f32 %v3328_v20, %v3240_v44  ;;  %v3559_v50 = vmul.f32 %v5386_v8, %v3463_v10  ;;  %v3063_v31 = vpop.f32.mrf.mxu2  ;;  %v7783_v20 = vld [vmem:[#allocation82_spill] sm:$0xff] }
 0x47d   : > { %v3064_v22 = vadd.f32 %v3063_v31, %v6971_v16  ;;  %v7784_v16 = vld [vmem:[#allocation81_spill] sm:$0xff]  ;;  %v5393_v31 = vunpack.c.l.bf16 %v5439_v5 }
 0x47e   : > { %v3396_v11 = vmax.f32 %v3329_v63, 0.0  ;;  %v3606_v35 = vsel %vm3584_vm2, %v3559_v50, 0.0  ;;  %v3244_v1 = vpop.f32.mrf.mxu0 }
 0x47f   : > { %v3152_v33 = vpop.f32.mrf.mxu3  ;;  %3607 = vadd.xlane.f32.xlu1 %v3606_v35  ;;  %v3333_v15 = vpop.f32.mrf.mxu1 }
 0x480   : > { %v3153_v38 = vadd.f32 %v3152_v33, %v3064_v22  ;;  %v3430_v9 = vmul.f32 %v7127_v41, %v3396_v11  ;;  %v7785_v22 = vld [vmem:[#allocation44_spill] sm:$0xff]  ;;  %v7786_v33 = vld [vmem:[#allocation85_spill] sm:$0xff] }
 0x481   : > { %3105 = vmatmul.bf16.gmra.mxu2 %v7781_v6  ;;  %3283 = vmatmul.bf16.gmra.mxu0 %v7782_v12 }
 0x482   : > { %v3242_v19 = vadd.f32 %v3241_v30, %v3153_v38  ;;  %v3464_v51 = vadd.f32 %v7134_v42, %v3430_v9  ;;  %3372 = vmatmul.bf16.gmra.mxu1 %v7784_v16  ;;  %v7787_v38 = vld [vmem:[#allocation84_spill] sm:$0xff] }
 0x484   : > { %3194 = vmatmul.bf16.gmra.mxu3 %v7783_v20  ;;  %v3331_v21 = vadd.f32 %v3330_v40, %v3242_v19  ;;  %v3560_v47 = vmul.f32 %v5389_v54, %v3464_v51  ;;  %v3066_v29 = vpop.f32.mrf.mxu2 }
 0x485   : > { %v3067_v34 = vadd.f32 %v3066_v29, %v6975_v57 }
 0x486   : > { %v3397_v52 = vmax.f32 %v3331_v21, 0.0  ;;  %v3609_v26 = vsel %vm3584_vm2, %v3560_v47, 0.0  ;;  %v3246_v23 = vpop.f32.mrf.mxu0  ;;  %v5394_v21 = vunpack.c.h.bf16 %v5439_v5  ;;  %v7790_v5 = vld [vmem:[#allocation86_spill] sm:$0xff] }
 0x487   : > { %v3155_v27 = vpop.f32.mrf.mxu3  ;;  %3610 = vadd.xlane.f32.xlu2 %v3609_v26  ;;  %v3335_v48 = vpop.f32.mrf.mxu1 }
 0x488   : > { %v3156_v43 = vadd.f32 %v3155_v27, %v3067_v34  ;;  %v3431_v32 = vmul.f32 %v7127_v41, %v3397_v52 }
 0x48a   : > { %v3245_v59 = vadd.f32 %v3244_v1, %v3156_v43  ;;  %v3465_v49 = vadd.f32 %v7134_v42, %v3431_v32  ;;  %v5440_v43 = vld [vmem:[%s7122_s15 + $0x30] sm:$0xff]  }
 0x48c   : > { %v3334_v30 = vadd.f32 %v3333_v15, %v3245_v59  ;;  %v3561_v46 = vmul.f32 %v5390_v0, %v3465_v49  ;;  %v3068_v40 = vpop.f32.mrf.mxu2 }
 0x48d   : > { %v3069_v57 = vadd.f32 %v3068_v40, %v6983_v62  ;;  %v7788_v62 = vld [vmem:[#allocation20_spill] sm:$0xff] }
 0x48e   : > { %v3398_v8 = vmax.f32 %v3334_v30, 0.0  ;;  %v3612_v10 = vsel %vm3584_vm2, %v3561_v46, 0.0  ;;  %v3249_v25 = vpop.f32.mrf.mxu0  ;;  %v5397_v30 = vunpack.c.l.bf16 %v5440_v43  ;;  %v7789_v40 = vld [vmem:[#allocation48_spill] sm:$0xff] }
 0x48f   : > { %v3157_v44 = vpop.f32.mrf.mxu3  ;;  %3613 = vadd.xlane.f32.xlu0 %v3612_v10  ;;  %v3338_v1 = vpop.f32.mrf.mxu1 }
 0x490   : > { %v3158_v63 = vadd.f32 %v3157_v44, %v3069_v57  ;;  %v3432_v50 = vmul.f32 %v7127_v41, %v3398_v8  ;;  %v7791_v57 = vld [vmem:[#allocation22_spill] sm:$0xff]  ;;  %v7792_v44 = vld [vmem:[#allocation12_spill] sm:$0xff] }
 0x491   : > { %3110 = vmatmul.bf16.gmra.mxu2 %v7785_v22  ;;  %3288 = vmatmul.bf16.gmra.mxu0 %v7786_v33 }
 0x492   : > { %v3247_v11 = vadd.f32 %v3246_v23, %v3158_v63  ;;  %v3466_v35 = vadd.f32 %v7134_v42, %v3432_v50  ;;  %3377 = vmatmul.bf16.gmra.mxu1 %v7788_v62 }
 0x494   : > { %3199 = vmatmul.bf16.gmra.mxu3 %v7787_v38  ;;  %v3336_v15 = vadd.f32 %v3335_v48, %v3247_v11  ;;  %v3562_v9 = vmul.f32 %v5393_v31, %v3466_v35  ;;  %v3071_v54 = vpop.f32.mrf.mxu2  ;;  %v5398_v38 = vunpack.c.h.bf16 %v5440_v43 }
 0x495   : > { %v3072_v6 = vadd.f32 %v3071_v54, %v6987_v58 }
 0x496   : > { %v3399_v19 = vmax.f32 %v3336_v15, 0.0  ;;  %v3615_v51 = vsel %vm3584_vm2, %v3562_v9, 0.0  ;;  %v3251_v52 = vpop.f32.mrf.mxu0 }
 0x497   : > { %v3160_v12 = vpop.f32.mrf.mxu3  ;;  %3616 = vadd.xlane.f32.xlu1 %v3615_v51  ;;  %v3340_v26 = vpop.f32.mrf.mxu1 }
 0x498   : > { %v3161_v20 = vadd.f32 %v3160_v12, %v3072_v6  ;;  %v3433_v16 = vmul.f32 %v7127_v41, %v3399_v19  ;;  %v5441_v6 = vld [vmem:[%s7122_s15 + $0x38] sm:$0xff]  }
 0x49a   : > { %v3250_v47 = vadd.f32 %v3249_v25, %v3161_v20  ;;  %v3467_v29 = vadd.f32 %v7134_v42, %v3433_v16 }
 0x49c   : > { %v3339_v34 = vadd.f32 %v3338_v1, %v3250_v47  ;;  %v3563_v27 = vmul.f32 %v5394_v21, %v3467_v29  ;;  %v3073_v23 = vpop.f32.mrf.mxu2  ;;  %v5401_v29 = vunpack.c.l.bf16 %v5441_v6 }
 0x49d   : > { %v3074_v58 = vadd.f32 %v3073_v23, %v6995_v7 }
 0x49e   : > { %v3400_v32 = vmax.f32 %v3339_v34, 0.0  ;;  %v3618_v48 = vsel %vm3584_vm2, %v3563_v27, 0.0  ;;  %v3254_v63 = vpop.f32.mrf.mxu0 }
 0x49f   : > { %v3162_v0 = vpop.f32.mrf.mxu3  ;;  %3619 = vadd.xlane.f32.xlu2 %v3618_v48  ;;  %v3343_v33 = vpop.f32.mrf.mxu1 }
 0x4a0   : > { %v3163_v59 = vadd.f32 %v3162_v0, %v3074_v58  ;;  %v3434_v49 = vmul.f32 %v7127_v41, %v3400_v32 }
 0x4a1   : > { %3115 = vmatmul.bf16.gmra.mxu2 %v7789_v40  ;;  %3293 = vmatmul.bf16.gmra.mxu0 %v7790_v5 }
 0x4a2   : > { %v3252_v46 = vadd.f32 %v3251_v52, %v3163_v59  ;;  %v3468_v8 = vadd.f32 %v7134_v42, %v3434_v49  ;;  %3382 = vmatmul.bf16.gmra.mxu1 %v7792_v44 }
 0x4a4   : > { %3204 = vmatmul.bf16.gmra.mxu3 %v7791_v57  ;;  %v3341_v7 = vadd.f32 %v3340_v26, %v3252_v46  ;;  %v3564_v10 = vmul.f32 %v5397_v30, %v3468_v8  ;;  %v3076_v50 = vpop.f32.mrf.mxu2  ;;  %v5402_v30 = vunpack.c.h.bf16 %v5441_v6 }
 0x4a5   : > { %v3077_v25 = vadd.f32 %v3076_v50, %v6999_v55 }
 0x4a6   : > { %v3401_v31 = vmax.f32 %v3341_v7, 0.0  ;;  %v3621_v22 = vsel %vm3584_vm2, %v3564_v10, 0.0  ;;  %v3256_v16 = vpop.f32.mrf.mxu0 }
 0x4a7   : > { %v3165_v11 = vpop.f32.mrf.mxu3  ;;  %3622 = vadd.xlane.f32.xlu0 %v3621_v22  ;;  %v3345_v52 = vpop.f32.mrf.mxu1 }
 0x4a8   : > { %v3166_v35 = vadd.f32 %v3165_v11, %v3077_v25  ;;  %v3435_v1 = vmul.f32 %v7127_v41, %v3401_v31  ;;  %v7246_v11 = vld [vmem:[%s7122_s15 + $0x40] sm:$0xff]  }
 0x4aa   : > { %v3255_v62 = vadd.f32 %v3254_v63, %v3166_v35  ;;  %v3469_v15 = vadd.f32 %v7134_v42, %v3435_v1 }
 0x4ac   : > { %v3344_v9 = vadd.f32 %v3343_v33, %v3255_v62  ;;  %v3565_v54 = vmul.f32 %v5398_v38, %v3469_v15  ;;  %v3078_v19 = vpop.f32.mrf.mxu2  ;;  %v5405_v38 = vunpack.c.l.bf16 %v7246_v11 }
 0x4ad   : > { %v3079_v51 = vadd.f32 %v3078_v19, %v7007_v18 }
 0x4ae   : > { %v3402_v12 = vmax.f32 %v3344_v9, 0.0  ;;  %v3624_v20 = vsel %vm3584_vm2, %v3565_v54, 0.0  ;;  %v3259_v49 = vpop.f32.mrf.mxu0 }
 0x4af   : > { %v3167_v55 = vpop.f32.mrf.mxu3  ;;  %3625 = vadd.xlane.f32.xlu1 %v3624_v20  ;;  %v3348_v8 = vpop.f32.mrf.mxu1 }
 0x4b0   : > { %v3168_v21 = vadd.f32 %v3167_v55, %v3079_v51  ;;  %v3436_v47 = vmul.f32 %v7127_v41, %v3402_v12 }
 0x4b2   : > { %v3257_v34 = vadd.f32 %v3256_v16, %v3168_v21  ;;  %v3470_v27 = vadd.f32 %v7134_v42, %v3436_v47 }
 0x4b4   : > { %v3346_v26 = vadd.f32 %v3345_v52, %v3257_v34  ;;  %v3566_v23 = vmul.f32 %v5401_v29, %v3470_v27  ;;  %v3081_v43 = vpop.f32.mrf.mxu2 }
 0x4b5   : > { %v3082_v58 = vadd.f32 %v3081_v43, %v7011_v2 }
 0x4b6   : > { %v3403_v32 = vmax.f32 %v3346_v26, 0.0  ;;  %v3627_v18 = vsel %vm3584_vm2, %v3566_v23, 0.0  ;;  %v3261_v23 = vpop.f32.mrf.mxu0 }
 0x4b7   : > { %v3170_v0 = vpop.f32.mrf.mxu3  ;;  %3628 = vadd.xlane.f32.xlu2 %v3627_v18 }
 0x4b8   : > { %v3171_v48 = vadd.f32 %v3170_v0, %v3082_v58  ;;  %v3437_v59 = vmul.f32 %v7127_v41, %v3403_v32 }
 0x4ba   : > { %v3260_v46 = vadd.f32 %v3259_v49, %v3171_v48  ;;  %v3587_v40 = vpop.xlane.xlu0 %3586  ;;  %v3471_v5 = vadd.f32 %v7134_v42, %v3437_v59 }
 0x4bb   : > { %v3713_v57 = vperm.slane %v3587_v40, 0  ;;  %v3714_v44 = vperm.slane %v3587_v40, 1  ;;  %v3715_v7 = vperm.slane %v3587_v40, 2  ;;  %v3716_v2 = vperm.slane %v3587_v40, 3 }
 0x4bc   : > { %v3349_v10 = vadd.f32 %v3348_v8, %v3260_v46  ;;  %v3717_v63 = vperm.slane %v3587_v40, 4  ;;  %v3567_v50 = vmul.f32 %v5402_v30, %v3471_v5  ;;  %v3718_v25 = vperm.slane %v3587_v40, 5  ;;  %v3083_v47 = vpop.f32.mrf.mxu2  ;;  %v3350_v30 = vpop.f32.mrf.mxu1 }
 0x4bd   : > { %3969 = vst [vmem:[#allocation1] ss:$9 sm:$0xff] %v3713_v57  ;;  %v3719_v22 = vperm.slane %v3587_v40, 6  ;;  %v3720_v35 = vperm.slane %v3587_v40, 7  ;;  %v3084_v27 = vadd.f32 %v3083_v47, %v7019_v56 }
 0x4be   : > { %v3404_v31 = vmax.f32 %v3349_v10, 0.0  ;;  %3971 = vst [vmem:[#allocation1 + $0x1] ss:$9 sm:$0xff] %v3714_v44  ;;  %v3630_v33 = vsel %vm3584_vm2, %v3567_v50, 0.0  ;;  %v3264_v8 = vpop.f32.mrf.mxu0 }
 0x4bf   : > { %3973 = vst [vmem:[#allocation1 + $0x2] ss:$9 sm:$0xff] %v3715_v7  ;;  %3631 = vadd.xlane.f32.xlu0 %v3630_v33  ;;  %v3172_v34 = vpop.f32.mrf.mxu3 }
 0x4c0   : > { %3975 = vst [vmem:[#allocation1 + $0x3] ss:$9 sm:$0xff] %v3716_v2  ;;  %v3438_v1 = vmul.f32 %v7127_v41, %v3404_v31  ;;  %v3173_v48 = vadd.f32 %v3172_v34, %v3084_v27 }
 0x4c1   : > { %3977 = vst [vmem:[#allocation1 + $0x4] ss:$9 sm:$0xff] %v3717_v63 }
 0x4c2   : > { %3979 = vst [vmem:[#allocation1 + $0x5] ss:$9 sm:$0xff] %v3718_v25  ;;  %v3472_v62 = vadd.f32 %v7134_v42, %v3438_v1  ;;  %v3590_v15 = vpop.xlane.xlu0 %3589  ;;  %v3262_v5 = vadd.f32 %v3261_v23, %v3173_v48  ;;  %v5443_v48 = vld [vmem:[%s7122_s15 + $0x48] sm:$0xff]  }
 0x4c3   : > { %3981 = vst [vmem:[#allocation1 + $0x6] ss:$9 sm:$0xff] %v3719_v22  ;;  %v3721_v19 = vperm.slane %v3590_v15, 0  ;;  %v3722_v6 = vperm.slane %v3590_v15, 1  ;;  %v3723_v12 = vperm.slane %v3590_v15, 2  ;;  %v3724_v55 = vperm.slane %v3590_v15, 3 }
 0x4c4   : > { %3983 = vst [vmem:[#allocation1 + $0x7] ss:$9 sm:$0xff] %v3720_v35  ;;  %v3568_v9 = vmul.f32 %v5405_v38, %v3472_v62  ;;  %v3725_v20 = vperm.slane %v3590_v15, 4  ;;  %v3726_v16 = vperm.slane %v3590_v15, 5  ;;  %v3727_v21 = vperm.slane %v3590_v15, 6  ;;  %v3086_v32 = vpop.f32.mrf.mxu2  ;;  %v3353_v50 = vpop.f32.mrf.mxu1 }
 0x4c5   : > { %v3728_v29 = vperm.slane %v3590_v15, 7  ;;  %v3351_v57 = vadd.f32 %v3350_v30, %v3262_v5  ;;  %v3087_v10 = vadd.f32 %v3086_v32, %v7023_v45 }
 0x4c6   : > { %v3633_v54 = vsel %vm3584_vm2, %v3568_v9, 0.0  ;;  %v3266_v45 = vpop.f32.mrf.mxu0 }
 0x4c7   : > { %3634 = vadd.xlane.f32.xlu1 %v3633_v54  ;;  %v3175_v56 = vpop.f32.mrf.mxu3  ;;  %v3405_v63 = vmax.f32 %v3351_v57, 0.0  ;;  %v5409_v57 = vunpack.c.l.bf16 %v5443_v48 }
 0x4c8   : > { %v3176_v25 = vadd.f32 %v3175_v56, %v3087_v10 }
 0x4c9   : > { %v3439_v15 = vmul.f32 %v7127_v41, %v3405_v63 }
 0x4ca   : > { %v3593_v52 = vpop.xlane.xlu1 %3592  ;;  %v3265_v9 = vadd.f32 %v3264_v8, %v3176_v25 }
 0x4cb   : > { %v3984_v51 = vld [vmem:[#allocation1] sm:$0xff]  ;;  %v3729_v26 = vperm.slane %v3593_v52, 0  ;;  %v3730_v43 = vperm.slane %v3593_v52, 1  ;;  %v3731_v58 = vperm.slane %v3593_v52, 2  ;;  %v3732_v0 = vperm.slane %v3593_v52, 3 }
 0x4cc   : > { %3985 = vst [vmem:[#allocation1] ss:$9 sm:$0xff] %v3721_v19  ;;  %v3733_v59 = vperm.slane %v3593_v52, 4  ;;  %v3734_v49 = vperm.slane %v3593_v52, 5  ;;  %v3735_v46 = vperm.slane %v3593_v52, 6  ;;  %v3736_v40 = vperm.slane %v3593_v52, 7  ;;  %v3088_v44 = vpop.f32.mrf.mxu2 }
 0x4cd   : > { %3986 = vst [vmem:[#allocation1 + $0x1] ss:$9 sm:$0xff] %v3722_v6 }
 0x4ce   : > { %3987 = vst [vmem:[#allocation1 + $0x2] ss:$9 sm:$0xff] %v3723_v12  ;;  %v3473_v12 = vadd.f32 %v7134_v42, %v3439_v15  ;;  %v7263_v23 = vpop.f32.mrf.mxu0 }
 0x4cf   : > { %3988 = vst [vmem:[#allocation1 + $0x3] ss:$9 sm:$0xff] %v3724_v55  ;;  %4265 = vperm.xlu2 %5502, %v3984_v51   ;;  %v3177_v35 = vpop.f32.mrf.mxu3  ;;  %v5406_v51 = vunpack.c.h.bf16 %v7246_v11  ;;  %v3354_v55 = vadd.f32 %v3353_v50, %v3265_v9 }
 0x4d0   : > { %3989 = vst [vmem:[#allocation1 + $0x4] ss:$9 sm:$0xff] %v3725_v20  ;;  %v3355_v20 = vpop.f32.mrf.mxu1 }
 0x4d1   : > { %3990 = vst [vmem:[#allocation1 + $0x5] ss:$9 sm:$0xff] %v3726_v16  ;;  %v3406_v52 = vmax.f32 %v3354_v55, 0.0 }
 0x4d2   : > { %3991 = vst [vmem:[#allocation1 + $0x6] ss:$9 sm:$0xff] %v3727_v21  ;;  %v3596_v7 = vpop.xlane.xlu1 %3595  ;;  %v3089_v21 = vadd.f32 %v3088_v44, %v7031_v39 }
 0x4d3   : > { %3992 = vst [vmem:[#allocation1 + $0x7] ss:$9 sm:$0xff] %v3728_v29  ;;  %v3737_v2 = vperm.slane %v3596_v7, 0  ;;  %v3738_v31 = vperm.slane %v3596_v7, 1  ;;  %v3739_v22 = vperm.slane %v3596_v7, 2  ;;  %v3740_v1 = vperm.slane %v3596_v7, 3 }
 0x4d4   : > { %v3741_v38 = vperm.slane %v3596_v7, 4  ;;  %v3742_v62 = vperm.slane %v3596_v7, 5  ;;  %v3743_v54 = vperm.slane %v3596_v7, 6  ;;  %v3744_v19 = vperm.slane %v3596_v7, 7  ;;  %v7256_v6 = vpop.f32.mrf.mxu2 }
 0x4d5   : > { %v3569_v29 = vmul.f32 %v5406_v51, %v3473_v12 }
 0x4d6   : > { %v3271_v63 = vpop.f32.mrf.mxu0 }
 0x4d7   : > { %v7261_v47 = vpop.f32.mrf.mxu3  ;;  %v3636_v11 = vsel %vm3584_vm2, %v3569_v29, 0.0  ;;  %v7277_v29 = vld [vmem:[%s7122_s15 + $0x50] sm:$0xff]  }
 0x4da   : > { %v3993_v18 = vld [vmem:[#allocation1] sm:$0xff]  ;;  %v3599_v16 = vpop.xlane.xlu2 %3598 }
 0x4db   : > { %3994 = vst [vmem:[#allocation1] ss:$9 sm:$0xff] %v3729_v26  ;;  %4268 = vperm.xlu0 %5503, %v3993_v18   ;;  %v3745_v34 = vperm.slane %v3599_v16, 0  ;;  %v3746_v27 = vperm.slane %v3599_v16, 1  ;;  %v3178_v26 = vadd.f32 %v3177_v35, %v3089_v21  ;;  %v3748_v18 = vperm.slane %v3599_v16, 3 }
 0x4dc   : > { %3995 = vst [vmem:[#allocation1 + $0x1] ss:$9 sm:$0xff] %v3730_v43  ;;  %v3747_v43 = vperm.slane %v3599_v16, 2  ;;  %v3093_v32 = vpop.f32.mrf.mxu2  ;;  %v3749_v39 = vperm.slane %v3599_v16, 4  ;;  %v3751_v5 = vperm.slane %v3599_v16, 6  ;;  %v3752_v56 = vperm.slane %v3599_v16, 7 }
 0x4dd   : > { %3996 = vst [vmem:[#allocation1 + $0x2] ss:$9 sm:$0xff] %v3731_v58 }
 0x4de   : > { %3997 = vst [vmem:[#allocation1 + $0x3] ss:$9 sm:$0xff] %v3732_v0  ;;  %v3440_v0 = vmul.f32 %v7127_v41, %v3406_v52 }
 0x4df   : > { %3998 = vst [vmem:[#allocation1 + $0x4] ss:$9 sm:$0xff] %v3733_v59  ;;  %v3750_v59 = vperm.slane %v3599_v16, 5  ;;  %v3182_v44 = vpop.f32.mrf.mxu3  ;;  %v5410_v16 = vunpack.c.h.bf16 %v5443_v48 }
 0x4e0   : > { %3999 = vst [vmem:[#allocation1 + $0x5] ss:$9 sm:$0xff] %v3734_v49  ;;  %v7793_v49 = vld [vmem:[#allocation27_spill] sm:$0xff]  ;;  %v3474_v8 = vadd.f32 %v7134_v42, %v3440_v0 }
 0x4e1   : > { %4000 = vst [vmem:[#allocation1 + $0x6] ss:$9 sm:$0xff] %v3735_v46  ;;  %v3094_v30 = vadd.f32 %v3093_v32, %v7793_v49  ;;  %v3267_v46 = vadd.f32 %v3266_v45, %v3178_v26  ;;  %v5414_v26 = vunpack.c.h.bf16 %v7277_v29 }
 0x4e2   : > { %4001 = vst [vmem:[#allocation1 + $0x7] ss:$9 sm:$0xff] %v3736_v40  ;;  %v7269_v40 = vpop.f32.mrf.mxu1  ;;  %v3602_v50 = vpop.xlane.xlu2 %3601 }
 0x4e3   : > { %v3183_v7 = vadd.f32 %v3182_v44, %v3094_v30  ;;  %v3356_v10 = vadd.f32 %v3355_v20, %v3267_v46  ;;  %v3756_v9 = vperm.slane %v3602_v50, 3  ;;  %v3757_v45 = vperm.slane %v3602_v50, 4 }
 0x4e4   : > { %v3759_v51 = vperm.slane %v3602_v50, 6  ;;  %v3760_v55 = vperm.slane %v3602_v50, 7 }
 0x4e5   : > { %v3407_v25 = vmax.f32 %v3356_v10, 0.0 }
 0x4e9   : > { %v4002_v33 = vld [vmem:[#allocation1] sm:$0xff] }
 0x4ea   : > { %4003 = vst [vmem:[#allocation1] ss:$9 sm:$0xff] %v3737_v2  ;;  %4271 = vperm.xlu1 %5504, %v4002_v33   ;;  %v3570_v2 = vmul.f32 %v5409_v57, %v3474_v8  ;;  %v3360_v35 = vpop.f32.mrf.mxu1 }
 0x4eb   : > { %4004 = vst [vmem:[#allocation1 + $0x1] ss:$9 sm:$0xff] %v3738_v31  ;;  %v3272_v31 = vadd.f32 %v3271_v63, %v3183_v7 }
 0x4ec   : > { %4005 = vst [vmem:[#allocation1 + $0x2] ss:$9 sm:$0xff] %v3739_v22  ;;  %v3753_v22 = vperm.slane %v3602_v50, 0  ;;  %v3639_v33 = vsel %vm3584_vm2, %v3570_v2, 0.0 }
 0x4ed   : > { %4006 = vst [vmem:[#allocation1 + $0x3] ss:$9 sm:$0xff] %v3740_v1  ;;  %v3754_v1 = vperm.slane %v3602_v50, 1 }
 0x4ee   : > { %4007 = vst [vmem:[#allocation1 + $0x4] ss:$9 sm:$0xff] %v3741_v38  ;;  %v3361_v38 = vadd.f32 %v3360_v35, %v3272_v31 }
 0x4ef   : > { %4008 = vst [vmem:[#allocation1 + $0x5] ss:$9 sm:$0xff] %v3742_v62  ;;  %v3755_v62 = vperm.slane %v3602_v50, 2 }
 0x4f0   : > { %4009 = vst [vmem:[#allocation1 + $0x6] ss:$9 sm:$0xff] %v3743_v54  ;;  %v3441_v54 = vmul.f32 %v7127_v41, %v3407_v25  ;;  %v3409_v12 = vmax.f32 %v3361_v38, 0.0 }
 0x4f1   : > { %4010 = vst [vmem:[#allocation1 + $0x7] ss:$9 sm:$0xff] %v3744_v19  ;;  %v3758_v19 = vperm.slane %v3602_v50, 5 }
 0x4f2   : > { %v3475_v20 = vadd.f32 %v7134_v42, %v3441_v54  ;;  %v3443_v21 = vmul.f32 %v7127_v41, %v3409_v12  ;;  %v3608_v30 = vpop.xlane.xlu1 %3607 }
 0x4f3   : > { %v3769_v46 = vperm.slane %v3608_v30, 0  ;;  %v3770_v8 = vperm.slane %v3608_v30, 1  ;;  %v3771_v57 = vperm.slane %v3608_v30, 2  ;;  %v3772_v7 = vperm.slane %v3608_v30, 3 }
 0x4f4   : > { %v3571_v52 = vmul.f32 %v5410_v16, %v3475_v20  ;;  %v3773_v10 = vperm.slane %v3608_v30, 4  ;;  %v3774_v63 = vperm.slane %v3608_v30, 5  ;;  %v3775_v50 = vperm.slane %v3608_v30, 6 }
 0x4f5   : > { %v3776_v31 = vperm.slane %v3608_v30, 7  ;;  %v5413_v20 = vunpack.c.l.bf16 %v7277_v29 }
 0x4f8   : > { %v4011_v58 = vld [vmem:[#allocation1] sm:$0xff]  ;;  %3637 = vadd.xlane.f32.xlu2 %v3636_v11  ;;  %v3642_v11 = vsel %vm3584_vm2, %v3571_v52, 0.0  ;;  %v3274_v52 = vpop.f32.mrf.mxu0 }
 0x4f9   : > { %4012 = vst [vmem:[#allocation1] ss:$9 sm:$0xff] %v3745_v34  ;;  %v3605_v34 = vpop.xlane.xlu0 %3604 }
 0x4fa   : > { %4013 = vst [vmem:[#allocation1 + $0x1] ss:$9 sm:$0xff] %v3746_v27  ;;  %v3477_v27 = vadd.f32 %v7134_v42, %v3443_v21  ;;  %v3761_v32 = vperm.slane %v3605_v34, 0  ;;  %v3763_v0 = vperm.slane %v3605_v34, 2  ;;  %v3764_v48 = vperm.slane %v3605_v34, 3 }
 0x4fb   : > { %4014 = vst [vmem:[#allocation1 + $0x2] ss:$9 sm:$0xff] %v3747_v43  ;;  %v3766_v49 = vperm.slane %v3605_v34, 5  ;;  %v3767_v42 = vperm.slane %v3605_v34, 6 }
 0x4fc   : > { %4015 = vst [vmem:[#allocation1 + $0x3] ss:$9 sm:$0xff] %v3748_v18  ;;  %v3573_v43 = vmul.f32 %v5414_v26, %v3477_v27  ;;  %v3762_v18 = vperm.slane %v3605_v34, 1 }
 0x4fd   : > { %4016 = vst [vmem:[#allocation1 + $0x4] ss:$9 sm:$0xff] %v3749_v39 }
 0x4fe   : > { %4017 = vst [vmem:[#allocation1 + $0x5] ss:$9 sm:$0xff] %v3750_v59  ;;  %v3648_v39 = vsel %vm3584_vm2, %v3573_v43, 0.0  ;;  %v3765_v59 = vperm.slane %v3605_v34, 4 }
 0x4ff   : > { %4018 = vst [vmem:[#allocation1 + $0x6] ss:$9 sm:$0xff] %v3751_v5  ;;  %v7794_v5 = vld [vmem:[#allocation5_spill] sm:$0xff] }
 0x500   : > { %4019 = vst [vmem:[#allocation1 + $0x7] ss:$9 sm:$0xff] %v3752_v56  ;;  %v3092_v56 = vadd.f32 %v7256_v6, %v7794_v5  ;;  %v3611_v6 = vpop.xlane.xlu2 %3610 }
 0x501   : > { %v3778_v35 = vperm.slane %v3611_v6, 1  ;;  %v3779_v38 = vperm.slane %v3611_v6, 2  ;;  %v3784_v12 = vperm.slane %v3611_v6, 7 }
 0x502   : > { %v3181_v2 = vadd.f32 %v7261_v47, %v3092_v56  ;;  %v3096_v47 = vpop.f32.mrf.mxu2 }
 0x503   : > { %v3097_v54 = vadd.f32 %v3096_v47, %v7053_v17 }
 0x504   : > { %v3270_v25 = vadd.f32 %v7263_v23, %v3181_v2  ;;  %v3782_v23 = vperm.slane %v3611_v6, 5 }
 0x505   : > { %3640 = vadd.xlane.f32.xlu0 %v3639_v33  ;;  %v3777_v33 = vperm.slane %v3611_v6, 0 }
 0x507   : > { %v4020_v15 = vld [vmem:[#allocation1] sm:$0xff] }
 0x508   : > { %4021 = vst [vmem:[#allocation1] ss:$9 sm:$0xff] %v3753_v22  ;;  %v3359_v22 = vadd.f32 %v7269_v40, %v3270_v25  ;;  %v7296_v40 = vld [vmem:[%s7617_s5] ss:$0 sm:$0xff] }
 0x509   : > { %4022 = vst [vmem:[#allocation1 + $0x1] ss:$9 sm:$0xff] %v3754_v1 }
 0x50a   : > { %4023 = vst [vmem:[#allocation1 + $0x2] ss:$9 sm:$0xff] %v3755_v62  ;;  %v3408_v1 = vmax.f32 %v3359_v22, 0.0  ;;  %v7306_v26 = vpop.f32.mrf.mxu2 }
 0x50b   : > { %4024 = vst [vmem:[#allocation1 + $0x3] ss:$9 sm:$0xff] %v3756_v9  ;;  %v3781_v9 = vperm.slane %v3611_v6, 4 }
 0x50c   : > { %4025 = vst [vmem:[#allocation1 + $0x4] ss:$9 sm:$0xff] %v3757_v45  ;;  %v3783_v45 = vperm.slane %v3611_v6, 6 }
 0x50d   : > { %4026 = vst [vmem:[#allocation1 + $0x5] ss:$9 sm:$0xff] %v3758_v19  ;;  %3649 = vadd.xlane.f32.xlu0 %v3648_v39  ;;  %v3442_v19 = vmul.f32 %v7296_v40, %v3408_v1 }
 0x50e   : > { %4027 = vst [vmem:[#allocation1 + $0x6] ss:$9 sm:$0xff] %v3759_v51  ;;  %v3185_v51 = vpop.f32.mrf.mxu3 }
 0x50f   : > { %4028 = vst [vmem:[#allocation1 + $0x7] ss:$9 sm:$0xff] %v3760_v55  ;;  %v7302_v55 = vld [vmem:[%s7617_s5 + $0x1] ss:$0 sm:$0xff]  ;;  %v3186_v16 = vadd.f32 %v3185_v51, %v3097_v54 }
 0x510   : > { %4274 = vperm.xlu2 %5502, %v4011_v58   ;;  %v3768_v58 = vperm.slane %v3605_v34, 7  ;;  %v3476_v17 = vadd.f32 %v7302_v55, %v3442_v19  ;;  %v3614_v34 = vpop.xlane.xlu0 %3613 }
 0x511   : > { %v3275_v27 = vadd.f32 %v3274_v52, %v3186_v16  ;;  %v3785_v43 = vperm.slane %v3614_v34, 0  ;;  %v3787_v39 = vperm.slane %v3614_v34, 2  ;;  %v3788_v29 = vperm.slane %v3614_v34, 3 }
 0x512   : > { %v3572_v21 = vmul.f32 %v5413_v20, %v3476_v17  ;;  %v3792_v30 = vperm.slane %v3614_v34, 7  ;;  %v3101_v5 = vpop.f32.mrf.mxu2 }
 0x514   : > { %3643 = vadd.xlane.f32.xlu1 %v3642_v11  ;;  %v3363_v11 = vpop.f32.mrf.mxu1 }
 0x516   : > { %v4029_v41 = vld [vmem:[#allocation1] sm:$0xff] }
 0x517   : > { %4030 = vst [vmem:[#allocation1] ss:$9 sm:$0xff] %v3761_v32  ;;  %v3645_v32 = vsel %vm3584_vm2, %v3572_v21, 0.0  ;;  %v3099_v21 = vadd.f32 %v7306_v26, %v7065_v13 }
 0x518   : > { %4031 = vst [vmem:[#allocation1 + $0x1] ss:$9 sm:$0xff] %v3762_v18  ;;  %4277 = vperm.xlu2 %5502, %v4020_v15   ;;  %v3780_v15 = vperm.slane %v3611_v6, 3  ;;  %v3786_v18 = vperm.slane %v3614_v34, 1 }
 0x519   : > { %4032 = vst [vmem:[#allocation1 + $0x2] ss:$9 sm:$0xff] %v3763_v0  ;;  %v3364_v0 = vadd.f32 %v3363_v11, %v3275_v27 }
 0x51a   : > { %4033 = vst [vmem:[#allocation1 + $0x3] ss:$9 sm:$0xff] %v3764_v48  ;;  %v3789_v48 = vperm.slane %v3614_v34, 4 }
 0x51b   : > { %4034 = vst [vmem:[#allocation1 + $0x4] ss:$9 sm:$0xff] %v3765_v59  ;;  %v3790_v59 = vperm.slane %v3614_v34, 5 }
 0x51c   : > { %4035 = vst [vmem:[#allocation1 + $0x5] ss:$9 sm:$0xff] %v3766_v49  ;;  %v3410_v49 = vmax.f32 %v3364_v0, 0.0 }
 0x51d   : > { %4036 = vst [vmem:[#allocation1 + $0x6] ss:$9 sm:$0xff] %v3767_v42  ;;  %v3187_v42 = vpop.f32.mrf.mxu3 }
 0x51e   : > { %4037 = vst [vmem:[#allocation1 + $0x7] ss:$9 sm:$0xff] %v3768_v58  ;;  %v3791_v58 = vperm.slane %v3614_v34, 6  ;;  %v3444_v56 = vmul.f32 %v7296_v40, %v3410_v49 }
 0x520   : > { %v3478_v2 = vadd.f32 %v7302_v55, %v3444_v56 }
 0x525   : > { %v7285_v44 = vld [vmem:[#allocation1] sm:$0xff] }
 0x526   : > { %4039 = vst [vmem:[#allocation1] ss:$9 sm:$0xff] %v3769_v46  ;;  %v3276_v46 = vpop.f32.mrf.mxu0 }
 0x527   : > { %4040 = vst [vmem:[#allocation1 + $0x1] ss:$9 sm:$0xff] %v3770_v8  ;;  %v7311_v8 = vld [vmem:[%s7122_s15 + $0x58] sm:$0xff]  }
 0x528   : > { %4041 = vst [vmem:[#allocation1 + $0x2] ss:$9 sm:$0xff] %v3771_v57  ;;  %v3617_v57 = vpop.xlane.xlu1 %3616 }
 0x529   : > { %4042 = vst [vmem:[#allocation1 + $0x3] ss:$9 sm:$0xff] %v3772_v7  ;;  %v3102_v7 = vadd.f32 %v3101_v5, %v7081_v37  ;;  %v3794_v25 = vperm.slane %v3617_v57, 1  ;;  %v3795_v22 = vperm.slane %v3617_v57, 2  ;;  %v3797_v47 = vperm.slane %v3617_v57, 4 }
 0x52a   : > { %4043 = vst [vmem:[#allocation1 + $0x4] ss:$9 sm:$0xff] %v3773_v10  ;;  %v3365_v10 = vpop.f32.mrf.mxu1  ;;  %v3800_v54 = vperm.slane %v3617_v57, 7 }
 0x52b   : > { %4044 = vst [vmem:[#allocation1 + $0x5] ss:$9 sm:$0xff] %v3774_v63  ;;  %v5417_v63 = vunpack.c.l.bf16 %v7311_v8 }
 0x52c   : > { %4045 = vst [vmem:[#allocation1 + $0x6] ss:$9 sm:$0xff] %v3775_v50  ;;  %v3793_v50 = vperm.slane %v3617_v57, 0 }
 0x52d   : > { %4046 = vst [vmem:[#allocation1 + $0x7] ss:$9 sm:$0xff] %v3776_v31  ;;  %4280 = vperm.xlu1 %5504, %v4029_v41   ;;  %v3190_v31 = vpop.f32.mrf.mxu3  ;;  %v3574_v1 = vmul.f32 %v5417_v63, %v3478_v2  ;;  %v3103_v2 = vpop.f32.mrf.mxu2 }
 0x52e   : > { %v3191_v6 = vadd.f32 %v3190_v31, %v3102_v7 }
 0x530   : > { %v3626_v31 = vpop.xlane.xlu1 %3625 }
 0x534   : > { %v7290_v62 = vld [vmem:[#allocation1] sm:$0xff] }
 0x535   : > { %4048 = vst [vmem:[#allocation1] ss:$9 sm:$0xff] %v3777_v33 }
 0x536   : > { %4049 = vst [vmem:[#allocation1 + $0x1] ss:$9 sm:$0xff] %v3778_v35  ;;  %v3796_v35 = vperm.slane %v3617_v57, 3 }
 0x537   : > { %4050 = vst [vmem:[#allocation1 + $0x2] ss:$9 sm:$0xff] %v3779_v38  ;;  %v3279_v38 = vpop.f32.mrf.mxu0 }
 0x538   : > { %4051 = vst [vmem:[#allocation1 + $0x3] ss:$9 sm:$0xff] %v3780_v15  ;;  %v3798_v15 = vperm.slane %v3617_v57, 5  ;;  %v3280_v37 = vadd.f32 %v3279_v38, %v3191_v6  ;;  %v3192_v6 = vpop.f32.mrf.mxu3 }
 0x539   : > { %4052 = vst [vmem:[#allocation1 + $0x4] ss:$9 sm:$0xff] %v3781_v9  ;;  %v3799_v9 = vperm.slane %v3617_v57, 6 }
 0x53a   : > { %4053 = vst [vmem:[#allocation1 + $0x5] ss:$9 sm:$0xff] %v3782_v23  ;;  %v3651_v23 = vsel %vm3584_vm2, %v3574_v1, 0.0 }
 0x53b   : > { %4054 = vst [vmem:[#allocation1 + $0x6] ss:$9 sm:$0xff] %v3783_v45  ;;  %v3368_v45 = vpop.f32.mrf.mxu1 }
 0x53c   : > { %4055 = vst [vmem:[#allocation1 + $0x7] ss:$9 sm:$0xff] %v3784_v12  ;;  %v3369_v19 = vadd.f32 %v3368_v45, %v3280_v37  ;;  %v3620_v12 = vpop.xlane.xlu2 %3619  ;;  %v3819_v37 = vperm.slane %v3626_v31, 2  ;;  %v3822_v45 = vperm.slane %v3626_v31, 5 }
 0x53d   : > { %v3801_v17 = vperm.slane %v3620_v12, 0  ;;  %v3802_v20 = vperm.slane %v3620_v12, 1  ;;  %v3803_v16 = vperm.slane %v3620_v12, 2  ;;  %v3804_v34 = vperm.slane %v3620_v12, 3 }
 0x53e   : > { %v3412_v51 = vmax.f32 %v3369_v19, 0.0  ;;  %v3806_v11 = vperm.slane %v3620_v12, 5  ;;  %v3808_v0 = vperm.slane %v3620_v12, 7 }
 0x540   : > { %v3446_v27 = vmul.f32 %v7296_v40, %v3412_v51  ;;  %v3824_v51 = vperm.slane %v3626_v31, 7 }
 0x541   : > { %3646 = vadd.xlane.f32.xlu2 %v3645_v32  ;;  %v7326_v32 = vld [vmem:[%s7122_s15 + $0x60] sm:$0xff]  }
 0x542   : > { %v5421_v13 = vunpack.c.l.bf16 %v7326_v32 }
 0x543   : > { %v4056_v41 = vld [vmem:[#allocation1] sm:$0xff] }
 0x544   : > { %4057 = vst [vmem:[#allocation1] ss:$9 sm:$0xff] %v3785_v43  ;;  %4289 = vperm.xlu0 %5503, %v4056_v41   ;;  %v3805_v43 = vperm.slane %v3620_v12, 4 }
 0x545   : > { %4058 = vst [vmem:[#allocation1 + $0x1] ss:$9 sm:$0xff] %v3786_v18  ;;  %v3188_v18 = vadd.f32 %v3187_v42, %v3099_v21 }
 0x546   : > { %4059 = vst [vmem:[#allocation1 + $0x2] ss:$9 sm:$0xff] %v3787_v39  ;;  %v3480_v39 = vadd.f32 %v7302_v55, %v3446_v27 }
 0x547   : > { %4060 = vst [vmem:[#allocation1 + $0x3] ss:$9 sm:$0xff] %v3788_v29  ;;  %v3277_v26 = vadd.f32 %v3276_v46, %v3188_v18  ;;  %v3623_v29 = vpop.xlane.xlu0 %3622 }
 0x548   : > { %4061 = vst [vmem:[#allocation1 + $0x4] ss:$9 sm:$0xff] %v3789_v48  ;;  %v3576_v41 = vmul.f32 %v5421_v13, %v3480_v39  ;;  %v3811_v42 = vperm.slane %v3623_v29, 2  ;;  %v3812_v5 = vperm.slane %v3623_v29, 3  ;;  %v3813_v57 = vperm.slane %v3623_v29, 4 }
 0x549   : > { %4062 = vst [vmem:[#allocation1 + $0x5] ss:$9 sm:$0xff] %v3790_v59  ;;  %v3366_v48 = vadd.f32 %v3365_v10, %v3277_v26  ;;  %v3809_v59 = vperm.slane %v3623_v29, 0  ;;  %v3814_v7 = vperm.slane %v3623_v29, 5  ;;  %v3815_v46 = vperm.slane %v3623_v29, 6 }
 0x54a   : > { %4063 = vst [vmem:[#allocation1 + $0x6] ss:$9 sm:$0xff] %v3791_v58  ;;  %v3657_v49 = vsel %vm3584_vm2, %v3576_v41, 0.0  ;;  %v3810_v58 = vperm.slane %v3623_v29, 1  ;;  %v3816_v63 = vperm.slane %v3623_v29, 7 }
 0x54b   : > { %4064 = vst [vmem:[#allocation1 + $0x7] ss:$9 sm:$0xff] %v3792_v30  ;;  %v3411_v56 = vmax.f32 %v3366_v48, 0.0 }
 0x54d   : > { %v3445_v10 = vmul.f32 %v7296_v40, %v3411_v56 }
 0x54f   : > { %v3632_v56 = vpop.xlane.xlu0 %3631 }
 0x552   : > { %v7316_v33 = vld [vmem:[#allocation1] sm:$0xff] }
 0x553   : > { %4066 = vst [vmem:[#allocation1] ss:$9 sm:$0xff] %v3793_v50  ;;  %v3104_v50 = vadd.f32 %v3103_v2, %v7097_v36 }
 0x554   : > { %4067 = vst [vmem:[#allocation1 + $0x1] ss:$9 sm:$0xff] %v3794_v25  ;;  %v5418_v25 = vunpack.c.h.bf16 %v7311_v8  ;;  %v3370_v8 = vpop.f32.mrf.mxu1 }
 0x555   : > { %4068 = vst [vmem:[#allocation1 + $0x2] ss:$9 sm:$0xff] %v3795_v22  ;;  %v3817_v22 = vperm.slane %v3626_v31, 0  ;;  %v3193_v1 = vadd.f32 %v3192_v6, %v3104_v50 }
 0x556   : > { %4069 = vst [vmem:[#allocation1 + $0x3] ss:$9 sm:$0xff] %v3796_v35  ;;  %v3281_v35 = vpop.f32.mrf.mxu0 }
 0x557   : > { %4070 = vst [vmem:[#allocation1 + $0x4] ss:$9 sm:$0xff] %v3797_v47  ;;  %3652 = vadd.xlane.f32.xlu1 %v3651_v23  ;;  %v3818_v47 = vperm.slane %v3626_v31, 1  ;;  %v3821_v23 = vperm.slane %v3626_v31, 4  ;;  %v3282_v36 = vadd.f32 %v3281_v35, %v3193_v1 }
 0x558   : > { %4071 = vst [vmem:[#allocation1 + $0x5] ss:$9 sm:$0xff] %v3798_v15  ;;  %v7336_v15 = vpop.f32.mrf.mxu2 }
 0x559   : > { %4072 = vst [vmem:[#allocation1 + $0x6] ss:$9 sm:$0xff] %v3799_v9  ;;  %4283 = vperm.xlu2 %5502, %v7285_v44   ;;  %v3807_v44 = vperm.slane %v3620_v12, 6  ;;  %v3823_v12 = vperm.slane %v3626_v31, 6 }
 0x55a   : > { %4073 = vst [vmem:[#allocation1 + $0x7] ss:$9 sm:$0xff] %v3800_v54  ;;  %v3820_v54 = vperm.slane %v3626_v31, 3  ;;  %v3833_v31 = vperm.slane %v3632_v56, 0 }
 0x560   : > { %v3108_v21 = vpop.f32.mrf.mxu2 }
 0x561   : > { %v7322_v52 = vld [vmem:[#allocation1] sm:$0xff] }
 0x562   : > { %4075 = vst [vmem:[#allocation1] ss:$9 sm:$0xff] %v3801_v17  ;;  %v7341_v17 = vpop.f32.mrf.mxu3 }
 0x563   : > { %4076 = vst [vmem:[#allocation1 + $0x1] ss:$9 sm:$0xff] %v3802_v20  ;;  %v3371_v20 = vadd.f32 %v3370_v8, %v3282_v36  ;;  %v3837_v36 = vperm.slane %v3632_v56, 4 }
 0x564   : > { %4077 = vst [vmem:[#allocation1 + $0x2] ss:$9 sm:$0xff] %v3803_v16  ;;  %v7343_v16 = vpop.f32.mrf.mxu0 }
 0x565   : > { %4078 = vst [vmem:[#allocation1 + $0x3] ss:$9 sm:$0xff] %v3804_v34  ;;  %v3629_v34 = vpop.xlane.xlu2 %3628  ;;  %v3413_v27 = vmax.f32 %v3371_v20, 0.0  ;;  %v3840_v20 = vperm.slane %v3632_v56, 7 }
 0x566   : > { %4079 = vst [vmem:[#allocation1 + $0x4] ss:$9 sm:$0xff] %v3805_v43  ;;  %v3109_v43 = vadd.f32 %v3108_v21, %v7139_v61  ;;  %v3826_v18 = vperm.slane %v3629_v34, 1  ;;  %v3828_v41 = vperm.slane %v3629_v34, 3  ;;  %v3829_v48 = vperm.slane %v3629_v34, 4 }
 0x567   : > { %4080 = vst [vmem:[#allocation1 + $0x5] ss:$9 sm:$0xff] %v3806_v11  ;;  %v3825_v11 = vperm.slane %v3629_v34, 0  ;;  %v3447_v39 = vmul.f32 %v7296_v40, %v3413_v27  ;;  %v3107_v21 = vadd.f32 %v7336_v15, %v7112_v53 }
 0x568   : > { %4081 = vst [vmem:[#allocation1 + $0x6] ss:$9 sm:$0xff] %v3807_v44  ;;  %v7346_v44 = vpop.f32.mrf.mxu1 }
 0x569   : > { %4082 = vst [vmem:[#allocation1 + $0x7] ss:$9 sm:$0xff] %v3808_v0  ;;  %v3827_v0 = vperm.slane %v3629_v34, 2  ;;  %v3481_v61 = vadd.f32 %v7302_v55, %v3447_v39 }
 0x56a   : > { %v3197_v13 = vpop.f32.mrf.mxu3 }
 0x56b   : > { %v3198_v29 = vadd.f32 %v3197_v13, %v3109_v43 }
 0x56d   : > { %v4266_v50 = vpop.permute.xlu2 %4265 }
 0x56e   : > { %3658 = vadd.xlane.f32.xlu0 %v3657_v49  ;;  %v3831_v49 = vperm.slane %v3629_v34, 6 }
 0x570   : > { %v4083_v30 = vld [vmem:[#allocation1] sm:$0xff]  ;;  %4286 = vperm.xlu1 %5504, %v7290_v62   ;;  %v3479_v62 = vadd.f32 %v7302_v55, %v3445_v10  ;;  %v3375_v2 = vpop.f32.mrf.mxu1 }
 0x571   : > { %4084 = vst [vmem:[#allocation1] ss:$9 sm:$0xff] %v3809_v59  ;;  %v3830_v59 = vperm.slane %v3629_v34, 5 }
 0x572   : > { %4085 = vst [vmem:[#allocation1 + $0x1] ss:$9 sm:$0xff] %v3810_v58  ;;  %v3575_v38 = vmul.f32 %v5418_v25, %v3479_v62  ;;  %v5422_v58 = vunpack.c.h.bf16 %v7326_v32  ;;  %v3834_v25 = vperm.slane %v3632_v56, 1 }
 0x573   : > { %4086 = vst [vmem:[#allocation1 + $0x2] ss:$9 sm:$0xff] %v3811_v42  ;;  %v3286_v42 = vpop.f32.mrf.mxu0 }
 0x574   : > { %4087 = vst [vmem:[#allocation1 + $0x3] ss:$9 sm:$0xff] %v3812_v5  ;;  %v3654_v19 = vsel %vm3584_vm2, %v3575_v38, 0.0  ;;  %v3287_v5 = vadd.f32 %v3286_v42, %v3198_v29  ;;  %v3835_v38 = vperm.slane %v3632_v56, 2  ;;  %v3111_v42 = vpop.f32.mrf.mxu2 }
 0x575   : > { %4088 = vst [vmem:[#allocation1 + $0x4] ss:$9 sm:$0xff] %v3813_v57  ;;  %v7353_v57 = vpop.xlane.xlu1 %3634 }
 0x576   : > { %4089 = vst [vmem:[#allocation1 + $0x5] ss:$9 sm:$0xff] %v3814_v7  ;;  %v4360_v7 = vlaneseq  ;;  %v3842_v13 = vperm.slane %v7353_v57, 1  ;;  %v3844_v29 = vperm.slane %v7353_v57, 3 }
 0x577   : > { %4090 = vst [vmem:[#allocation1 + $0x6] ss:$9 sm:$0xff] %v3815_v46  ;;  %v3577_v46 = vmul.f32 %v5422_v58, %v3481_v61  ;;  %v3848_v61 = vperm.slane %v7353_v57, 7 }
 0x578   : > { %4091 = vst [vmem:[#allocation1 + $0x7] ss:$9 sm:$0xff] %v3816_v63  ;;  %v3376_v63 = vadd.f32 %v3375_v2, %v3287_v5  ;;  %v7356_v10 = vand.u32 127, %v4360_v7 }
 0x579   : > { %v3660_v32 = vsel %vm3584_vm2, %v3577_v46, 0.0 }
 0x57a   : > { %v3415_v62 = vmax.f32 %v3376_v63, 0.0  ;;  %v7361_v6 = vadd.s32 4294967288, %v7356_v10  ;;  %v7364_v35 = vadd.s32 4294967280, %v7356_v10  ;;  %v7395_v46 = vadd.s32 4294967272, %v7356_v10 }
 0x57c   : > { %v3449_v8 = vmul.f32 %v7296_v40, %v3415_v62 }
 0x57d   : > { %v4272_v1 = vpop.permute.xlu1 %4271 }
 0x57e   : > { %v3483_v27 = vadd.f32 %v7302_v55, %v3449_v8 }
 0x57f   : > { %v7338_v9 = vld [vmem:[#allocation1] sm:$0xff] }
 0x580   : > { %4093 = vst [vmem:[#allocation1] ss:$9 sm:$0xff] %v3817_v22  ;;  %v4269_v22 = vpop.permute.xlu0 %4268 }
 0x581   : > { %4094 = vst [vmem:[#allocation1 + $0x1] ss:$9 sm:$0xff] %v3818_v47  ;;  %v4362_v47 = vperm.slane %v4266_v50, %v7356_v10 }
 0x582   : > { %4095 = vst [vmem:[#allocation1 + $0x2] ss:$9 sm:$0xff] %v3819_v37  ;;  %4298 = vperm.xlu0 %5503, %v4083_v30   ;;  %3655 = vadd.xlane.f32.xlu2 %v3654_v19  ;;  %v3832_v30 = vperm.slane %v3629_v34, 7  ;;  %v5447_v34 = vld [vmem:[%s7122_s15 + $0x68] sm:$0xff]  }
 0x583   : > { %4096 = vst [vmem:[#allocation1 + $0x3] ss:$9 sm:$0xff] %v3820_v54  ;;  %v3836_v54 = vperm.slane %v3632_v56, 3  ;;  %v5426_v43 = vunpack.c.h.bf16 %v5447_v34  ;;  %v5425_v50 = vunpack.c.l.bf16 %v5447_v34 }
 0x584   : > { %4097 = vst [vmem:[#allocation1 + $0x4] ss:$9 sm:$0xff] %v3821_v23  ;;  %v4364_v23 = vperm.slane %v4269_v22, %v7361_v6  ;;  %v7402_v22 = vpop.f32.mrf.mxu2 }
 0x585   : > { %4098 = vst [vmem:[#allocation1 + $0x5] ss:$9 sm:$0xff] %v3822_v45  ;;  %v3838_v45 = vperm.slane %v3632_v56, 5 }
 0x586   : > { %4099 = vst [vmem:[#allocation1 + $0x6] ss:$9 sm:$0xff] %v3823_v12  ;;  %v4366_v19 = vsel %vm4365_vm3, %v4364_v23, %v4362_v47  ;;  %v3839_v12 = vperm.slane %v3632_v56, 6  ;;  %v7406_v23 = vadd.s32 4294967264, %v7356_v10 }
 0x587   : > { %4100 = vst [vmem:[#allocation1 + $0x7] ss:$9 sm:$0xff] %v3824_v51 }
 0x58e   : > { %v7349_v26 = vld [vmem:[#allocation1] sm:$0xff] }
 0x58f   : > { %4102 = vst [vmem:[#allocation1] ss:$9 sm:$0xff] %v3825_v11  ;;  %v3196_v11 = vadd.f32 %v7341_v17, %v3107_v21 }
 0x590   : > { %4103 = vst [vmem:[#allocation1 + $0x1] ss:$9 sm:$0xff] %v3826_v18  ;;  %v3579_v18 = vmul.f32 %v5426_v43, %v3483_v27  ;;  %v3116_v43 = vpop.f32.mrf.mxu2 }
 0x591   : > { %4104 = vst [vmem:[#allocation1 + $0x2] ss:$9 sm:$0xff] %v3827_v0  ;;  %v3841_v0 = vperm.slane %v7353_v57, 0  ;;  %v3285_v39 = vadd.f32 %v7343_v16, %v3196_v11  ;;  %v3847_v16 = vperm.slane %v7353_v57, 6  ;;  %v3641_v11 = vpop.xlane.xlu0 %3640 }
 0x592   : > { %4105 = vst [vmem:[#allocation1 + $0x3] ss:$9 sm:$0xff] %v3828_v41  ;;  %v3843_v41 = vperm.slane %v7353_v57, 2  ;;  %v3666_v53 = vsel %vm3584_vm2, %v3579_v18, 0.0 }
 0x593   : > { %4106 = vst [vmem:[#allocation1 + $0x4] ss:$9 sm:$0xff] %v3829_v48  ;;  %v3845_v48 = vperm.slane %v7353_v57, 4  ;;  %v3374_v17 = vadd.f32 %v7346_v44, %v3285_v39 }
 0x594   : > { %4107 = vst [vmem:[#allocation1 + $0x5] ss:$9 sm:$0xff] %v3830_v59  ;;  %v3846_v59 = vperm.slane %v7353_v57, 5 }
 0x595   : > { %4108 = vst [vmem:[#allocation1 + $0x6] ss:$9 sm:$0xff] %v3831_v49  ;;  %v3638_v49 = vpop.xlane.xlu2 %3637  ;;  %v3414_v58 = vmax.f32 %v3374_v17, 0.0 }
 0x596   : > { %4109 = vst [vmem:[#allocation1 + $0x7] ss:$9 sm:$0xff] %v3832_v30  ;;  %v3200_v30 = vpop.f32.mrf.mxu3  ;;  %v3849_v5 = vperm.slane %v3638_v49, 0  ;;  %v3850_v56 = vperm.slane %v3638_v49, 1  ;;  %v3851_v63 = vperm.slane %v3638_v49, 2  ;;  %v3852_v62 = vperm.slane %v3638_v49, 3 }
 0x597   : > { %v3448_v44 = vmul.f32 %v7296_v40, %v3414_v58  ;;  %v3854_v47 = vperm.slane %v3638_v49, 5  ;;  %v3861_v58 = vperm.slane %v3641_v11, 4 }
 0x599   : > { %v3482_v57 = vadd.f32 %v7302_v55, %v3448_v44  ;;  %v3863_v44 = vperm.slane %v3641_v11, 6 }
 0x59a   : > { %3661 = vadd.xlane.f32.xlu1 %v3660_v32  ;;  %4292 = vperm.xlu2 %5502, %v7316_v33   ;;  %v4368_v33 = vperm.slane %v4272_v1, %v7364_v35  ;;  %v3289_v32 = vpop.f32.mrf.mxu0  ;;  %v3853_v1 = vperm.slane %v3638_v49, 4 }
 0x59c   : > { %v4370_v51 = vsel %vm4369_vm4, %v4368_v33, %v4366_v19  ;;  %v3578_v33 = vmul.f32 %v5425_v50, %v3482_v57 }
 0x59d   : > { %v7367_v37 = vld [vmem:[#allocation1] sm:$0xff]  ;;  %v4275_v2 = vpop.permute.xlu2 %4274 }
 0x59e   : > { %4111 = vst [vmem:[#allocation1] ss:$9 sm:$0xff] %v3833_v31 }
 0x59f   : > { %4112 = vst [vmem:[#allocation1 + $0x1] ss:$9 sm:$0xff] %v3834_v25  ;;  %v3112_v25 = vadd.f32 %v3111_v42, %v7156_v4  ;;  %v7408_v4 = vpop.xlane.xlu1 %3643  ;;  %v3862_v42 = vperm.slane %v3641_v11, 5 }
 0x5a0   : > { %4113 = vst [vmem:[#allocation1 + $0x2] ss:$9 sm:$0xff] %v3835_v38 }
 0x5a1   : > { %4114 = vst [vmem:[#allocation1 + $0x3] ss:$9 sm:$0xff] %v3836_v54  ;;  %v3855_v54 = vperm.slane %v3638_v49, 6  ;;  %v3201_v19 = vadd.f32 %v3200_v30, %v3112_v25  ;;  %v3866_v25 = vperm.slane %v7408_v4, 1 }
 0x5a2   : > { %4115 = vst [vmem:[#allocation1 + $0x4] ss:$9 sm:$0xff] %v3837_v36  ;;  %v3856_v36 = vperm.slane %v3638_v49, 7  ;;  %v7416_v27 = vpop.f32.mrf.mxu0 }
 0x5a3   : > { %4116 = vst [vmem:[#allocation1 + $0x5] ss:$9 sm:$0xff] %v3838_v45  ;;  %v3378_v45 = vpop.f32.mrf.mxu1  ;;  %v3290_v21 = vadd.f32 %v3289_v32, %v3201_v19  ;;  %v3871_v19 = vperm.slane %v7408_v4, 6 }
 0x5a4   : > { %4117 = vst [vmem:[#allocation1 + $0x6] ss:$9 sm:$0xff] %v3839_v12  ;;  %v7411_v12 = vpop.f32.mrf.mxu3 }
 0x5a5   : > { %4118 = vst [vmem:[#allocation1 + $0x7] ss:$9 sm:$0xff] %v3840_v20  ;;  %v4278_v8 = vpop.permute.xlu2 %4277  ;;  %v3663_v20 = vsel %vm3584_vm2, %v3578_v33, 0.0  ;;  %v3379_v18 = vadd.f32 %v3378_v45, %v3290_v21  ;;  %v3868_v33 = vperm.slane %v7408_v4, 3  ;;  %v3870_v45 = vperm.slane %v7408_v4, 5 }
 0x5a7   : > { %v4281_v39 = vpop.permute.xlu1 %4280 }
 0x5aa   : > { %v3294_v30 = vpop.f32.mrf.mxu0 }
 0x5ac   : > { %v7384_v15 = vld [vmem:[#allocation1] sm:$0xff]  ;;  %3667 = vadd.xlane.f32.xlu0 %v3666_v53  ;;  %v7423_v53 = vpop.f32.mrf.mxu1  ;;  %v3205_v49 = vpop.f32.mrf.mxu3 }
 0x5ad   : > { %4120 = vst [vmem:[#allocation1] ss:$9 sm:$0xff] %v3841_v0  ;;  %v7421_v0 = vadd.s32 4294967256, %v7356_v10 }
 0x5ae   : > { %4121 = vst [vmem:[#allocation1 + $0x1] ss:$9 sm:$0xff] %v3842_v13 }
 0x5af   : > { %4122 = vst [vmem:[#allocation1 + $0x2] ss:$9 sm:$0xff] %v3843_v41  ;;  %v3857_v41 = vperm.slane %v3641_v11, 0  ;;  %v4380_v17 = vperm.slane %v4281_v39, %v7421_v0  ;;  %v7458_v39 = vadd.s32 4294967248, %v7356_v10 }
 0x5b0   : > { %4123 = vst [vmem:[#allocation1 + $0x3] ss:$9 sm:$0xff] %v3844_v29 }
 0x5b1   : > { %4124 = vst [vmem:[#allocation1 + $0x4] ss:$9 sm:$0xff] %v3845_v48  ;;  %v3858_v48 = vperm.slane %v3641_v11, 1 }
 0x5b2   : > { %4125 = vst [vmem:[#allocation1 + $0x5] ss:$9 sm:$0xff] %v3846_v59  ;;  %v3859_v59 = vperm.slane %v3641_v11, 2 }
 0x5b3   : > { %4126 = vst [vmem:[#allocation1 + $0x6] ss:$9 sm:$0xff] %v3847_v16  ;;  %4295 = vperm.xlu1 %5504, %v7322_v52   ;;  %v4372_v52 = vperm.slane %v4275_v2, %v7395_v46  ;;  %v3416_v16 = vmax.f32 %v3379_v18, 0.0 }
 0x5b4   : > { %4127 = vst [vmem:[#allocation1 + $0x7] ss:$9 sm:$0xff] %v3848_v61  ;;  %v3383_v57 = vpop.f32.mrf.mxu1 }
 0x5b5   : > { %v4374_v38 = vsel %vm4373_vm5, %v4372_v52, %v4370_v51  ;;  %v4376_v51 = vperm.slane %v4278_v8, %v7406_v23  ;;  %v3865_v52 = vperm.slane %v7408_v4, 0  ;;  %v3647_v8 = vpop.xlane.xlu2 %3646 }
 0x5b7   : > { %v4378_v34 = vsel %vm4377_vm6, %v4376_v51, %v4374_v38 }
 0x5bb   : > { %v7398_v31 = vld [vmem:[#allocation1] sm:$0xff] }
 0x5bc   : > { %4129 = vst [vmem:[#allocation1] ss:$9 sm:$0xff] %v3849_v5  ;;  %v3864_v5 = vperm.slane %v3641_v11, 7 }
 0x5bd   : > { %4130 = vst [vmem:[#allocation1 + $0x1] ss:$9 sm:$0xff] %v3850_v56  ;;  %v3450_v56 = vmul.f32 %v7296_v40, %v3416_v16  ;;  %v3877_v16 = vperm.slane %v3647_v8, 4 }
 0x5be   : > { %4131 = vst [vmem:[#allocation1 + $0x2] ss:$9 sm:$0xff] %v3851_v63  ;;  %v7433_v63 = vld [vmem:[%s7122_s15 + $0x70] sm:$0xff]  }
 0x5bf   : > { %4132 = vst [vmem:[#allocation1 + $0x3] ss:$9 sm:$0xff] %v3852_v62  ;;  %v3484_v50 = vadd.f32 %v7302_v55, %v3450_v56  ;;  %v5429_v32 = vunpack.c.l.bf16 %v7433_v63  ;;  %v7472_v56 = vadd.s32 4294967240, %v7356_v10 }
 0x5c0   : > { %4133 = vst [vmem:[#allocation1 + $0x4] ss:$9 sm:$0xff] %v3853_v1  ;;  %4307 = vperm.xlu0 %5503, %v7367_v37   ;;  %v3028_v37 = vadd.f32 %v7089_v14, %v7103_v28  ;;  %v3860_v14 = vperm.slane %v3641_v11, 3  ;;  %v7429_v28 = vsel %vm4381_vm7, %v4380_v17, %v4378_v34  ;;  %v3867_v1 = vperm.slane %v7408_v4, 2  ;;  %v7451_v34 = vld [vmem:[%s7122_s15 + $0x78] sm:$0xff]   ;;  %s4475_s15 = sshll.u32 %s261_s25, 4  ;;  %s4476_s15 = int_to_ptr.vmem [resolvable:$true] %s4475_s15 }
 0x5c1   : > { %4134 = vst [vmem:[#allocation1 + $0x5] ss:$9 sm:$0xff] %v3854_v47  ;;  %v3580_v47 = vmul.f32 %v5429_v32, %v3484_v50  ;;  %v3114_v11 = vadd.f32 %v7402_v22, %v7172_v60  ;;  %v3878_v22 = vperm.slane %v3647_v8, 5 }
 0x5c2   : > { %4135 = vst [vmem:[#allocation1 + $0x6] ss:$9 sm:$0xff] %v3855_v54  ;;  %v3117_v13 = vadd.f32 %v3116_v43, %v3028_v37  ;;  %v5433_v43 = vunpack.c.l.bf16 %v7451_v34  ;;  %v3873_v37 = vperm.slane %v3647_v8, 0 }
 0x5c3   : > { %4136 = vst [vmem:[#allocation1 + $0x7] ss:$9 sm:$0xff] %v3856_v36  ;;  %3664 = vadd.xlane.f32.xlu2 %v3663_v20  ;;  %v3869_v36 = vperm.slane %v7408_v4, 4  ;;  %v3669_v51 = vsel %vm3584_vm2, %v3580_v47, 0.0  ;;  %v3872_v20 = vperm.slane %v7408_v4, 7  ;;  %v3874_v4 = vperm.slane %v3647_v8, 1 }
 0x5c4   : > { %v3206_v61 = vadd.f32 %v3205_v49, %v3117_v13  ;;  %v4284_v13 = vpop.permute.xlu2 %4283 }
 0x5c5   : > { %v4384_v49 = vperm.slane %v4284_v13, %v7458_v39 }
 0x5c6   : > { %v3295_v2 = vadd.f32 %v3294_v30, %v3206_v61  ;;  %v3879_v61 = vperm.slane %v3647_v8, 6 }
 0x5c8   : > { %v3384_v62 = vadd.f32 %v3383_v57, %v3295_v2 }
 0x5ca   : > { %v7425_v29 = vld [vmem:[#allocation1] sm:$0xff]  ;;  %v3418_v38 = vmax.f32 %v3384_v62, 0.0 }
 0x5cb   : > { %4138 = vst [vmem:[#allocation1] ss:$9 sm:$0xff] %v3857_v41  ;;  %v3203_v41 = vadd.f32 %v7411_v12, %v3114_v11  ;;  %v4386_v12 = vsel %vm4385_vm8, %v4384_v49, %v7429_v28 }
 0x5cc   : > { %4139 = vst [vmem:[#allocation1 + $0x1] ss:$9 sm:$0xff] %v3858_v48  ;;  %v3452_v21 = vmul.f32 %v7296_v40, %v3418_v38  ;;  %v3875_v48 = vperm.slane %v3647_v8, 2  ;;  %v3118_v38 = vpop.f32.mrf.mxu2 }
 0x5cd   : > { %4140 = vst [vmem:[#allocation1 + $0x2] ss:$9 sm:$0xff] %v3859_v59  ;;  %v3876_v59 = vperm.slane %v3647_v8, 3 }
 0x5ce   : > { %4141 = vst [vmem:[#allocation1 + $0x3] ss:$9 sm:$0xff] %v3860_v14  ;;  %v3292_v14 = vadd.f32 %v7416_v27, %v3203_v41 }
 0x5cf   : > { %4142 = vst [vmem:[#allocation1 + $0x4] ss:$9 sm:$0xff] %v3861_v58  ;;  %v3880_v58 = vperm.slane %v3647_v8, 7 }
 0x5d0   : > { %4143 = vst [vmem:[#allocation1 + $0x5] ss:$9 sm:$0xff] %v3862_v42  ;;  %v7468_v42 = vpop.xlane.xlu1 %3652 }
 0x5d1   : > { %4144 = vst [vmem:[#allocation1 + $0x6] ss:$9 sm:$0xff] %v3863_v44  ;;  %v3381_v44 = vadd.f32 %v7423_v53, %v3292_v14  ;;  %v3891_v11 = vperm.slane %v7468_v42, 2  ;;  %v3894_v13 = vperm.slane %v7468_v42, 5 }
 0x5d2   : > { %4145 = vst [vmem:[#allocation1 + $0x7] ss:$9 sm:$0xff] %v3864_v5  ;;  %v3650_v5 = vpop.xlane.xlu0 %3649 }
 0x5d3   : > { %v3417_v30 = vmax.f32 %v3381_v44, 0.0  ;;  %v3881_v2 = vperm.slane %v3650_v5, 0  ;;  %v3882_v28 = vperm.slane %v3650_v5, 1  ;;  %v3883_v62 = vperm.slane %v3650_v5, 2 }
 0x5d4   : > { %v3884_v53 = vperm.slane %v3650_v5, 3 }
 0x5d5   : > { %v3451_v32 = vmul.f32 %v7296_v40, %v3417_v30 }
 0x5d7   : > { %v3485_v47 = vadd.f32 %v7302_v55, %v3451_v32 }
 0x5d9   : > { %v7440_v54 = vld [vmem:[#allocation1] sm:$0xff] }
 0x5da   : > { %4147 = vst [vmem:[#allocation1] ss:$9 sm:$0xff] %v3865_v52 }
 0x5db   : > { %4148 = vst [vmem:[#allocation1 + $0x1] ss:$9 sm:$0xff] %v3866_v25  ;;  %4301 = vperm.xlu2 %5502, %v7338_v9   ;;  %v3486_v9 = vadd.f32 %v7302_v55, %v3452_v21  ;;  %v3885_v25 = vperm.slane %v3650_v5, 4 }
 0x5dc   : > { %4149 = vst [vmem:[#allocation1 + $0x2] ss:$9 sm:$0xff] %v3867_v1  ;;  %v3886_v1 = vperm.slane %v3650_v5, 5 }
 0x5dd   : > { %4150 = vst [vmem:[#allocation1 + $0x3] ss:$9 sm:$0xff] %v3868_v33  ;;  %3670 = vadd.xlane.f32.xlu1 %v3669_v51  ;;  %v3582_v18 = vmul.f32 %v5433_v43, %v3486_v9  ;;  %v3887_v33 = vperm.slane %v3650_v5, 6  ;;  %v3207_v51 = vpop.f32.mrf.mxu3  ;;  %v3296_v9 = vpop.f32.mrf.mxu0 }
 0x5de   : > { %4151 = vst [vmem:[#allocation1 + $0x4] ss:$9 sm:$0xff] %v3869_v36  ;;  %v3030_v36 = vadd.f32 %v7101_v24, %v7107_v3  ;;  %v3890_v24 = vperm.slane %v7468_v42, 1 }
 0x5df   : > { %4152 = vst [vmem:[#allocation1 + $0x5] ss:$9 sm:$0xff] %v3870_v45  ;;  %v3675_v60 = vsel %vm3584_vm2, %v3582_v18, 0.0  ;;  %v3888_v45 = vperm.slane %v3650_v5, 7 }
 0x5e0   : > { %4153 = vst [vmem:[#allocation1 + $0x6] ss:$9 sm:$0xff] %v3871_v19  ;;  %v3119_v19 = vadd.f32 %v3118_v38, %v3030_v36 }
 0x5e1   : > { %4154 = vst [vmem:[#allocation1 + $0x7] ss:$9 sm:$0xff] %v3872_v20 }
 0x5e2   : > { %v4287_v27 = vpop.permute.xlu1 %4286  ;;  %v3208_v20 = vadd.f32 %v3207_v51, %v3119_v19 }
 0x5e3   : > { %v4388_v50 = vperm.slane %v4287_v27, %v7472_v56 }
 0x5e4   : > { %v3297_v3 = vadd.f32 %v3296_v9, %v3208_v20 }
 0x5e5   : > { %v4390_v52 = vsel %vm4389_vm9, %v4388_v50, %v4386_v12  ;;  %v7499_v12 = vadd.s32 4294967224, %v7356_v10 }
 0x5e8   : > { %v7461_v17 = vld [vmem:[#allocation1] sm:$0xff] }
 0x5e9   : > { %4156 = vst [vmem:[#allocation1] ss:$9 sm:$0xff] %v3873_v37  ;;  %v3893_v37 = vperm.slane %v7468_v42, 4 }
 0x5ea   : > { %4157 = vst [vmem:[#allocation1 + $0x1] ss:$9 sm:$0xff] %v3874_v4  ;;  %3676 = vadd.xlane.f32.xlu0 %v3675_v60  ;;  %v3385_v4 = vpop.f32.mrf.mxu1  ;;  %v4290_v60 = vpop.permute.xlu0 %4289 }
 0x5eb   : > { %4158 = vst [vmem:[#allocation1 + $0x2] ss:$9 sm:$0xff] %v3875_v48  ;;  %v3386_v41 = vadd.f32 %v3385_v4, %v3297_v3  ;;  %v3895_v48 = vperm.slane %v7468_v42, 6 }
 0x5ec   : > { %4159 = vst [vmem:[#allocation1 + $0x3] ss:$9 sm:$0xff] %v3876_v59  ;;  %v3896_v59 = vperm.slane %v7468_v42, 7 }
 0x5ed   : > { %4160 = vst [vmem:[#allocation1 + $0x4] ss:$9 sm:$0xff] %v3877_v16  ;;  %v7495_v16 = vadd.s32 4294967232, %v7356_v10  ;;  %v3419_v49 = vmax.f32 %v3386_v41, 0.0 }
 0x5ee   : > { %4161 = vst [vmem:[#allocation1 + $0x5] ss:$9 sm:$0xff] %v3878_v22 }
 0x5ef   : > { %4162 = vst [vmem:[#allocation1 + $0x6] ss:$9 sm:$0xff] %v3879_v61  ;;  %v4392_v22 = vperm.slane %v4290_v60, %v7495_v16  ;;  %v3453_v44 = vmul.f32 %v7296_v40, %v3419_v49 }
 0x5f0   : > { %4163 = vst [vmem:[#allocation1 + $0x7] ss:$9 sm:$0xff] %v3880_v58 }
 0x5f1   : > { %v4394_v30 = vsel %vm4393_vm10, %v4392_v22, %v4390_v52  ;;  %v3487_v32 = vadd.f32 %v7302_v55, %v3453_v44  ;;  %v7512_v55 = vadd.s32 4294967216, %v7356_v10 }
 0x5f5   : > { %v3656_v18 = vpop.xlane.xlu2 %3655 }
 0x5f6   : > { %4304 = vperm.xlu1 %5504, %v7349_v26   ;;  %v5430_v26 = vunpack.c.h.bf16 %v7433_v63  ;;  %v3889_v63 = vperm.slane %v7468_v42, 0  ;;  %v3897_v14 = vperm.slane %v3656_v18, 0  ;;  %v3898_v61 = vperm.slane %v3656_v18, 1 }
 0x5f7   : > { %v4164_v57 = vld [vmem:[#allocation1] sm:$0xff]  ;;  %v3900_v27 = vperm.slane %v3656_v18, 3  ;;  %v3903_v40 = vperm.slane %v3656_v18, 6 }
 0x5f8   : > { %4165 = vst [vmem:[#allocation1] ss:$9 sm:$0xff] %v3881_v2  ;;  %v3581_v8 = vmul.f32 %v5430_v26, %v3485_v47  ;;  %v3659_v47 = vpop.xlane.xlu0 %3658 }
 0x5f9   : > { %4166 = vst [vmem:[#allocation1 + $0x1] ss:$9 sm:$0xff] %v3882_v28  ;;  %v3901_v28 = vperm.slane %v3656_v18, 4  ;;  %v3906_v26 = vperm.slane %v3659_v47, 1  ;;  %v3909_v19 = vperm.slane %v3659_v47, 4  ;;  %v3911_v20 = vperm.slane %v3659_v47, 6 }
 0x5fa   : > { %4167 = vst [vmem:[#allocation1 + $0x2] ss:$9 sm:$0xff] %v3883_v62  ;;  %v3672_v21 = vsel %vm3584_vm2, %v3581_v8, 0.0  ;;  %v5434_v62 = vunpack.c.h.bf16 %v7451_v34  ;;  %v3905_v34 = vperm.slane %v3659_v47, 0  ;;  %v3910_v8 = vperm.slane %v3659_v47, 5 }
 0x5fb   : > { %4168 = vst [vmem:[#allocation1 + $0x3] ss:$9 sm:$0xff] %v3884_v53  ;;  %v3904_v53 = vperm.slane %v3656_v18, 7 }
 0x5fc   : > { %4169 = vst [vmem:[#allocation1 + $0x4] ss:$9 sm:$0xff] %v3885_v25  ;;  %v3583_v52 = vmul.f32 %v5434_v62, %v3487_v32 }
 0x5fd   : > { %4170 = vst [vmem:[#allocation1 + $0x5] ss:$9 sm:$0xff] %v3886_v1  ;;  %v4293_v58 = vpop.permute.xlu2 %4292 }
 0x5fe   : > { %4171 = vst [vmem:[#allocation1 + $0x6] ss:$9 sm:$0xff] %v3887_v33  ;;  %4316 = vperm.xlu0 %5503, %v7425_v29   ;;  %v3892_v29 = vperm.slane %v7468_v42, 3  ;;  %v3899_v42 = vperm.slane %v3656_v18, 2  ;;  %v4396_v2 = vperm.slane %v4293_v58, %v7499_v12  ;;  %v3678_v1 = vsel %vm3584_vm2, %v3583_v52, 0.0 }
 0x5ff   : > { %4172 = vst [vmem:[#allocation1 + $0x7] ss:$9 sm:$0xff] %v3888_v45  ;;  %v3907_v33 = vperm.slane %v3659_v47, 2  ;;  %v7526_v58 = vadd.s32 4294967200, %v7356_v10  ;;  %vm4421_vm2 = vcmask 1048512  }
 0x600   : > { %v4398_v50 = vsel %vm4397_vm11, %v4396_v2, %v4394_v30  ;;  %v4299_v4 = vpop.permute.xlu0 %4298 }
 0x604   : > { %3673 = vadd.xlane.f32.xlu2 %v3672_v21  ;;  %v3912_v21 = vperm.slane %v3659_v47, 7 }
 0x606   : > { %v7485_v43 = vld [vmem:[#allocation1] sm:$0xff]  ;;  %4325 = vperm.xlu0 %5503, %v4164_v57   ;;  %v3902_v57 = vperm.slane %v3656_v18, 5 }
 0x607   : > { %4174 = vst [vmem:[#allocation1] ss:$9 sm:$0xff] %v3889_v63 }
 0x608   : > { %4175 = vst [vmem:[#allocation1 + $0x1] ss:$9 sm:$0xff] %v3890_v24 }
 0x609   : > { %4176 = vst [vmem:[#allocation1 + $0x2] ss:$9 sm:$0xff] %v3891_v11 }
 0x60a   : > { %4177 = vst [vmem:[#allocation1 + $0x3] ss:$9 sm:$0xff] %v3892_v29 }
 0x60b   : > { %4178 = vst [vmem:[#allocation1 + $0x4] ss:$9 sm:$0xff] %v3893_v37 }
 0x60c   : > { %4179 = vst [vmem:[#allocation1 + $0x5] ss:$9 sm:$0xff] %v3894_v13 }
 0x60d   : > { %4180 = vst [vmem:[#allocation1 + $0x6] ss:$9 sm:$0xff] %v3895_v48  ;;  %v3662_v25 = vpop.xlane.xlu1 %3661 }
 0x60e   : > { %4181 = vst [vmem:[#allocation1 + $0x7] ss:$9 sm:$0xff] %v3896_v59  ;;  %v3914_v9 = vperm.slane %v3662_v25, 1  ;;  %v3915_v24 = vperm.slane %v3662_v25, 2  ;;  %v3916_v3 = vperm.slane %v3662_v25, 3  ;;  %v3917_v11 = vperm.slane %v3662_v25, 4 }
 0x60f   : > { %v3918_v29 = vperm.slane %v3662_v25, 5  ;;  %v3919_v37 = vperm.slane %v3662_v25, 6  ;;  %v3920_v18 = vperm.slane %v3662_v25, 7 }
 0x615   : > { %v7503_v5 = vld [vmem:[#allocation1] sm:$0xff] }
 0x616   : > { %4183 = vst [vmem:[#allocation1] ss:$9 sm:$0xff] %v3897_v14 }
 0x617   : > { %4184 = vst [vmem:[#allocation1 + $0x1] ss:$9 sm:$0xff] %v3898_v61 }
 0x618   : > { %4185 = vst [vmem:[#allocation1 + $0x2] ss:$9 sm:$0xff] %v3899_v42 }
 0x619   : > { %4186 = vst [vmem:[#allocation1 + $0x3] ss:$9 sm:$0xff] %v3900_v27 }
 0x61a   : > { %4187 = vst [vmem:[#allocation1 + $0x4] ss:$9 sm:$0xff] %v3901_v28 }
 0x61b   : > { %4188 = vst [vmem:[#allocation1 + $0x5] ss:$9 sm:$0xff] %v3902_v57 }
 0x61c   : > { %4189 = vst [vmem:[#allocation1 + $0x6] ss:$9 sm:$0xff] %v3903_v40  ;;  %4310 = vperm.xlu2 %5502, %v7384_v15   ;;  %v3908_v15 = vperm.slane %v3659_v47, 3 }
 0x61d   : > { %4190 = vst [vmem:[#allocation1 + $0x7] ss:$9 sm:$0xff] %v3904_v53 }
 0x61f   : > { %v3668_v2 = vpop.xlane.xlu0 %3667 }
 0x620   : > { %3679 = vadd.xlane.f32.xlu1 %v3678_v1  ;;  %v3929_v28 = vperm.slane %v3668_v2, 0  ;;  %v3930_v57 = vperm.slane %v3668_v2, 1  ;;  %v3931_v32 = vperm.slane %v3668_v2, 2  ;;  %v3932_v62 = vperm.slane %v3668_v2, 3 }
 0x621   : > { %v3933_v40 = vperm.slane %v3668_v2, 4  ;;  %v3934_v53 = vperm.slane %v3668_v2, 5  ;;  %v3935_v52 = vperm.slane %v3668_v2, 6 }
 0x624   : > { %v4191_v38 = vld [vmem:[#allocation1] sm:$0xff]  ;;  %4319 = vperm.xlu2 %5502, %v7440_v54   ;;  %v3913_v54 = vperm.slane %v3662_v25, 0 }
 0x625   : > { %4192 = vst [vmem:[#allocation1] ss:$9 sm:$0xff] %v3905_v34  ;;  %4334 = vperm.xlu0 %5503, %v4191_v38   ;;  %v4296_v36 = vpop.permute.xlu1 %4295 }
 0x626   : > { %4193 = vst [vmem:[#allocation1 + $0x1] ss:$9 sm:$0xff] %v3906_v26  ;;  %v4400_v45 = vperm.slane %v4296_v36, %v7512_v55 }
 0x627   : > { %4194 = vst [vmem:[#allocation1 + $0x2] ss:$9 sm:$0xff] %v3907_v33 }
 0x628   : > { %4195 = vst [vmem:[#allocation1 + $0x3] ss:$9 sm:$0xff] %v3908_v15  ;;  %v4402_v51 = vsel %vm4401_vm12, %v4400_v45, %v4398_v50 }
 0x629   : > { %4196 = vst [vmem:[#allocation1 + $0x4] ss:$9 sm:$0xff] %v3909_v19  ;;  %v7532_v19 = vadd.s32 4294967192, %v7356_v10 }
 0x62a   : > { %4197 = vst [vmem:[#allocation1 + $0x5] ss:$9 sm:$0xff] %v3910_v8 }
 0x62b   : > { %4198 = vst [vmem:[#allocation1 + $0x6] ss:$9 sm:$0xff] %v3911_v20 }
 0x62c   : > { %4199 = vst [vmem:[#allocation1 + $0x7] ss:$9 sm:$0xff] %v3912_v21  ;;  %4328 = vperm.xlu2 %5502, %v7485_v43   ;;  %v7520_v43 = vadd.s32 4294967208, %v7356_v10 }
 0x62e   : > { %v4404_v41 = vperm.slane %v4299_v4, %v7520_v43 }
 0x630   : > { %v4406_v14 = vsel %vm4405_vm13, %v4404_v41, %v4402_v51 }
 0x633   : > { %v4200_v63 = vld [vmem:[#allocation1] sm:$0xff] }
 0x634   : > { %4201 = vst [vmem:[#allocation1] ss:$9 sm:$0xff] %v3913_v54  ;;  %4337 = vperm.xlu2 %5502, %v4200_v63   ;;  %v7537_v54 = vadd.s32 4294967184, %v7356_v10  ;;  %v4308_v63 = vpop.permute.xlu0 %4307 }
 0x635   : > { %4202 = vst [vmem:[#allocation1 + $0x1] ss:$9 sm:$0xff] %v3914_v9 }
 0x636   : > { %4203 = vst [vmem:[#allocation1 + $0x2] ss:$9 sm:$0xff] %v3915_v24  ;;  %v3665_v13 = vpop.xlane.xlu2 %3664  ;;  %v4416_v24 = vperm.slane %v4308_v63, %v7537_v54 }
 0x637   : > { %4204 = vst [vmem:[#allocation1 + $0x3] ss:$9 sm:$0xff] %v3916_v3  ;;  %v3921_v48 = vperm.slane %v3665_v13, 0  ;;  %v3922_v59 = vperm.slane %v3665_v13, 1  ;;  %v3923_v49 = vperm.slane %v3665_v13, 2  ;;  %v3924_v22 = vperm.slane %v3665_v13, 3 }
 0x638   : > { %4205 = vst [vmem:[#allocation1 + $0x4] ss:$9 sm:$0xff] %v3917_v11  ;;  %v3926_v61 = vperm.slane %v3665_v13, 5  ;;  %v3927_v44 = vperm.slane %v3665_v13, 6  ;;  %v3928_v42 = vperm.slane %v3665_v13, 7 }
 0x639   : > { %4206 = vst [vmem:[#allocation1 + $0x5] ss:$9 sm:$0xff] %v3918_v29  ;;  %4313 = vperm.xlu1 %5504, %v7398_v31   ;;  %v3925_v31 = vperm.slane %v3665_v13, 4 }
 0x63a   : > { %4207 = vst [vmem:[#allocation1 + $0x6] ss:$9 sm:$0xff] %v3919_v37 }
 0x63b   : > { %4208 = vst [vmem:[#allocation1 + $0x7] ss:$9 sm:$0xff] %v3920_v18 }
 0x63e   : > { %v4302_v30 = vpop.permute.xlu2 %4301 }
 0x641   : > { %4322 = vperm.xlu1 %5504, %v7461_v17   ;;  %v4408_v17 = vperm.slane %v4302_v30, %v7526_v58 }
 0x642   : > { %v4209_v60 = vld [vmem:[#allocation1] sm:$0xff] }
 0x643   : > { %4210 = vst [vmem:[#allocation1] ss:$9 sm:$0xff] %v3921_v48  ;;  %v4410_v27 = vsel %vm4409_vm14, %v4408_v17, %v4406_v14 }
 0x644   : > { %4211 = vst [vmem:[#allocation1 + $0x1] ss:$9 sm:$0xff] %v3922_v59 }
 0x645   : > { %4212 = vst [vmem:[#allocation1 + $0x2] ss:$9 sm:$0xff] %v3923_v49 }
 0x646   : > { %4213 = vst [vmem:[#allocation1 + $0x3] ss:$9 sm:$0xff] %v3924_v22 }
 0x647   : > { %4214 = vst [vmem:[#allocation1 + $0x4] ss:$9 sm:$0xff] %v3925_v31 }
 0x648   : > { %4215 = vst [vmem:[#allocation1 + $0x5] ss:$9 sm:$0xff] %v3926_v61 }
 0x649   : > { %4216 = vst [vmem:[#allocation1 + $0x6] ss:$9 sm:$0xff] %v3927_v44  ;;  %4331 = vperm.xlu1 %5504, %v7503_v5   ;;  %v3936_v5 = vperm.slane %v3668_v2, 7 }
 0x64a   : > { %4217 = vst [vmem:[#allocation1 + $0x7] ss:$9 sm:$0xff] %v3928_v42 }
 0x650   : > { %v3671_v25 = vpop.xlane.xlu1 %3670 }
 0x651   : > { %v4218_v50 = vld [vmem:[#allocation1] sm:$0xff]  ;;  %4340 = vperm.xlu1 %5504, %v4209_v60   ;;  %v3937_v1 = vperm.slane %v3671_v25, 0  ;;  %v3938_v47 = vperm.slane %v3671_v25, 1  ;;  %v3939_v34 = vperm.slane %v3671_v25, 2  ;;  %v3940_v26 = vperm.slane %v3671_v25, 3 }
 0x652   : > { %4343 = vperm.xlu0 %5503, %v4218_v50   ;;  %4219 = vst [vmem:[#allocation1] ss:$9 sm:$0xff] %v3929_v28  ;;  %v3941_v33 = vperm.slane %v3671_v25, 4  ;;  %v3942_v36 = vperm.slane %v3671_v25, 5  ;;  %v3943_v15 = vperm.slane %v3671_v25, 6  ;;  %v3944_v45 = vperm.slane %v3671_v25, 7 }
 0x653   : > { %4220 = vst [vmem:[#allocation1 + $0x1] ss:$9 sm:$0xff] %v3930_v57 }
 0x654   : > { %4221 = vst [vmem:[#allocation1 + $0x2] ss:$9 sm:$0xff] %v3931_v32 }
 0x655   : > { %4222 = vst [vmem:[#allocation1 + $0x3] ss:$9 sm:$0xff] %v3932_v62 }
 0x656   : > { %4223 = vst [vmem:[#allocation1 + $0x4] ss:$9 sm:$0xff] %v3933_v40 }
 0x657   : > { %4224 = vst [vmem:[#allocation1 + $0x5] ss:$9 sm:$0xff] %v3934_v53 }
 0x658   : > { %4225 = vst [vmem:[#allocation1 + $0x6] ss:$9 sm:$0xff] %v3935_v52 }
 0x659   : > { %4226 = vst [vmem:[#allocation1 + $0x7] ss:$9 sm:$0xff] %v3936_v5 }
 0x65d   : > { %v3677_v59 = vpop.xlane.xlu0 %3676 }
 0x65e   : > { %v3953_v49 = vperm.slane %v3677_v59, 0  ;;  %v3954_v60 = vperm.slane %v3677_v59, 1  ;;  %v3955_v14 = vperm.slane %v3677_v59, 2  ;;  %v3956_v31 = vperm.slane %v3677_v59, 3 }
 0x65f   : > { %v3957_v61 = vperm.slane %v3677_v59, 4  ;;  %v3958_v44 = vperm.slane %v3677_v59, 5  ;;  %v3959_v42 = vperm.slane %v3677_v59, 6  ;;  %v3960_v30 = vperm.slane %v3677_v59, 7 }
 0x660   : > { %v4227_v38 = vld [vmem:[#allocation1] sm:$0xff] }
 0x661   : > { %4346 = vperm.xlu2 %5502, %v4227_v38   ;;  %4228 = vst [vmem:[#allocation1] ss:$9 sm:$0xff] %v3937_v1 }
 0x662   : > { %4229 = vst [vmem:[#allocation1 + $0x1] ss:$9 sm:$0xff] %v3938_v47 }
 0x663   : > { %4230 = vst [vmem:[#allocation1 + $0x2] ss:$9 sm:$0xff] %v3939_v34 }
 0x664   : > { %4231 = vst [vmem:[#allocation1 + $0x3] ss:$9 sm:$0xff] %v3940_v26 }
 0x665   : > { %4232 = vst [vmem:[#allocation1 + $0x4] ss:$9 sm:$0xff] %v3941_v33 }
 0x666   : > { %4233 = vst [vmem:[#allocation1 + $0x5] ss:$9 sm:$0xff] %v3942_v36 }
 0x667   : > { %4234 = vst [vmem:[#allocation1 + $0x6] ss:$9 sm:$0xff] %v3943_v15 }
 0x668   : > { %4235 = vst [vmem:[#allocation1 + $0x7] ss:$9 sm:$0xff] %v3944_v45  ;;  %v4305_v8 = vpop.permute.xlu1 %4304 }
 0x669   : > { %v4412_v51 = vperm.slane %v4305_v8, %v7532_v19 }
 0x66b   : > { %v4414_v20 = vsel %vm4413_vm15, %v4412_v51, %v4410_v27 }
 0x66c   : > { %v7541_v4 = vsel %vm4417_vm1, %v4416_v24, %v4414_v20 }
 0x66f   : > { %v4236_v21 = vld [vmem:[#allocation1] sm:$0xff] }
 0x670   : > { %4349 = vperm.xlu1 %5504, %v4236_v21   ;;  %v4317_v1 = vpop.permute.xlu0 %4316 }
 0x671   : > { %v4424_v33 = vperm.slane %v4317_v1, %v7361_v6 }
 0x677   : > { %v3674_v9 = vpop.xlane.xlu2 %3673 }
 0x678   : > { %v3945_v3 = vperm.slane %v3674_v9, 0  ;;  %v3946_v11 = vperm.slane %v3674_v9, 1  ;;  %v3947_v29 = vperm.slane %v3674_v9, 2  ;;  %v3948_v37 = vperm.slane %v3674_v9, 3  ;;  %v4326_v26 = vpop.permute.xlu0 %4325 }
 0x679   : > { %v3949_v18 = vperm.slane %v3674_v9, 4  ;;  %v3950_v13 = vperm.slane %v3674_v9, 5  ;;  %v3951_v41 = vperm.slane %v3674_v9, 6  ;;  %v3952_v48 = vperm.slane %v3674_v9, 7 }
 0x67a   : > { %4237 = vst [vmem:[#allocation1] ss:$9 sm:$0xff] %v3945_v3  ;;  %v4430_v9 = vperm.slane %v4326_v26, %v7406_v23 }
 0x67b   : > { %4238 = vst [vmem:[#allocation1 + $0x1] ss:$9 sm:$0xff] %v3946_v11 }
 0x67c   : > { %4239 = vst [vmem:[#allocation1 + $0x2] ss:$9 sm:$0xff] %v3947_v29 }
 0x67d   : > { %4240 = vst [vmem:[#allocation1 + $0x3] ss:$9 sm:$0xff] %v3948_v37 }
 0x67e   : > { %4241 = vst [vmem:[#allocation1 + $0x4] ss:$9 sm:$0xff] %v3949_v18 }
 0x67f   : > { %4242 = vst [vmem:[#allocation1 + $0x5] ss:$9 sm:$0xff] %v3950_v13  ;;  %v4311_v5 = vpop.permute.xlu2 %4310 }
 0x680   : > { %4243 = vst [vmem:[#allocation1 + $0x6] ss:$9 sm:$0xff] %v3951_v41 }
 0x681   : > { %4244 = vst [vmem:[#allocation1 + $0x7] ss:$9 sm:$0xff] %v3952_v48 }
 0x687   : > { %v4320_v47 = vpop.permute.xlu2 %4319 }
 0x688   : > { %v4245_v22 = vld [vmem:[#allocation1] sm:$0xff]  ;;  %v4426_v51 = vperm.slane %v4320_v47, %v7364_v35 }
 0x689   : > { %4352 = vperm.xlu0 %5503, %v4245_v22   ;;  %4246 = vst [vmem:[#allocation1] ss:$9 sm:$0xff] %v3953_v49 }
 0x68a   : > { %4247 = vst [vmem:[#allocation1 + $0x1] ss:$9 sm:$0xff] %v3954_v60 }
 0x68b   : > { %4248 = vst [vmem:[#allocation1 + $0x2] ss:$9 sm:$0xff] %v3955_v14 }
 0x68c   : > { %4249 = vst [vmem:[#allocation1 + $0x3] ss:$9 sm:$0xff] %v3956_v31 }
 0x68d   : > { %4250 = vst [vmem:[#allocation1 + $0x4] ss:$9 sm:$0xff] %v3957_v61 }
 0x68e   : > { %4251 = vst [vmem:[#allocation1 + $0x5] ss:$9 sm:$0xff] %v3958_v44 }
 0x68f   : > { %4252 = vst [vmem:[#allocation1 + $0x6] ss:$9 sm:$0xff] %v3959_v42  ;;  %v4329_v36 = vpop.permute.xlu2 %4328 }
 0x690   : > { %4253 = vst [vmem:[#allocation1 + $0x7] ss:$9 sm:$0xff] %v3960_v30  ;;  %v4432_v6 = vperm.slane %v4329_v36, %v7421_v0 }
 0x693   : > { %v3680_v17 = vpop.xlane.xlu1 %3679 }
 0x694   : > { %v3961_v27 = vperm.slane %v3680_v17, 0  ;;  %v3962_v2 = vperm.slane %v3680_v17, 1  ;;  %v3963_v28 = vperm.slane %v3680_v17, 2  ;;  %v3964_v57 = vperm.slane %v3680_v17, 3 }
 0x695   : > { %v3965_v32 = vperm.slane %v3680_v17, 4  ;;  %v3966_v62 = vperm.slane %v3680_v17, 5  ;;  %v3967_v40 = vperm.slane %v3680_v17, 6  ;;  %v3968_v53 = vperm.slane %v3680_v17, 7 }
 0x697   : > { %v4254_v50 = vld [vmem:[#allocation1] sm:$0xff]  ;;  %v4335_v20 = vpop.permute.xlu0 %4334  ;;  %v4338_v11 = vpop.permute.xlu2 %4337 }
 0x698   : > { %4355 = vperm.xlu2 %5502, %v4254_v50   ;;  %4255 = vst [vmem:[#allocation1] ss:$9 sm:$0xff] %v3961_v27  ;;  %v4436_v18 = vperm.slane %v4335_v20, %v7472_v56 }
 0x699   : > { %4256 = vst [vmem:[#allocation1 + $0x1] ss:$9 sm:$0xff] %v3962_v2 }
 0x69a   : > { %4257 = vst [vmem:[#allocation1 + $0x2] ss:$9 sm:$0xff] %v3963_v28 }
 0x69b   : > { %4258 = vst [vmem:[#allocation1 + $0x3] ss:$9 sm:$0xff] %v3964_v57 }
 0x69c   : > { %4259 = vst [vmem:[#allocation1 + $0x4] ss:$9 sm:$0xff] %v3965_v32 }
 0x69d   : > { %4260 = vst [vmem:[#allocation1 + $0x5] ss:$9 sm:$0xff] %v3966_v62 }
 0x69e   : > { %4261 = vst [vmem:[#allocation1 + $0x6] ss:$9 sm:$0xff] %v3967_v40 }
 0x69f   : > { %4262 = vst [vmem:[#allocation1 + $0x7] ss:$9 sm:$0xff] %v3968_v53 }
 0x6a6   : > { %v4263_v52 = vld [vmem:[#allocation1] sm:$0xff] }
 0x6a7   : > { %4358 = vperm.xlu1 %5504, %v4263_v52  }
 0x6ab   : > { %v4314_v25 = vpop.permute.xlu1 %4313 }
 0x6ac   : > { %v4423_v38 = vperm.slane %v4314_v25, %v7356_v10 }
 0x6ae   : > { %v4425_v15 = vsel %vm4365_vm3, %v4424_v33, %v4423_v38  ;;  %vm4459_vm3 = vcmp.lt.s32.totalorder %v4360_v7, 256 }
 0x6af   : > { %v4427_v21 = vsel %vm4369_vm4, %v4426_v51, %v4425_v15 }
 0x6b3   : > { %v4323_v34 = vpop.permute.xlu1 %4322 }
 0x6b4   : > { %v4428_v45 = vperm.slane %v4323_v34, %v7395_v46 }
 0x6b6   : > { %v4429_v63 = vsel %vm4373_vm5, %v4428_v45, %v4427_v21 }
 0x6b7   : > { %v4431_v24 = vsel %vm4377_vm6, %v4430_v9, %v4429_v63 }
 0x6b8   : > { %v4433_v46 = vsel %vm4381_vm7, %v4432_v6, %v4431_v24 }
 0x6bb   : > { %v4332_v8 = vpop.permute.xlu1 %4331  ;;  %v4347_v41 = vpop.permute.xlu2 %4346 }
 0x6bc   : > { %v4434_v3 = vperm.slane %v4332_v8, %v7458_v39  ;;  %v4438_v39 = vperm.slane %v4338_v11, %v7495_v16  ;;  %v4444_v14 = vperm.slane %v4347_v41, %v7520_v43  ;;  %v4419_v16 = vadd.s32 4294967176, %v7356_v10 }
 0x6be   : > { %v4435_v35 = vsel %vm4385_vm8, %v4434_v3, %v4433_v46 }
 0x6bf   : > { %v4437_v23 = vsel %vm4389_vm9, %v4436_v18, %v4435_v35 }
 0x6c0   : > { %v4439_v0 = vsel %vm4393_vm10, %v4438_v39, %v4437_v23 }
 0x6c3   : > { %v4341_v29 = vpop.permute.xlu1 %4340 }
 0x6c4   : > { %v4344_v37 = vpop.permute.xlu0 %4343  ;;  %v4440_v13 = vperm.slane %v4341_v29, %v7499_v12 }
 0x6c5   : > { %v4442_v49 = vperm.slane %v4344_v37, %v7512_v55 }
 0x6c6   : > { %v4441_v48 = vsel %vm4397_vm11, %v4440_v13, %v4439_v0 }
 0x6c7   : > { %v4443_v22 = vsel %vm4401_vm12, %v4442_v49, %v4441_v48 }
 0x6c8   : > { %v4445_v31 = vsel %vm4405_vm13, %v4444_v14, %v4443_v22 }
 0x6e2   : > { %v4350_v59 = vpop.permute.xlu1 %4349 }
 0x6e3   : > { %v4446_v56 = vperm.slane %v4350_v59, %v7526_v58 }
 0x6e5   : > { %v4447_v55 = vsel %vm4409_vm14, %v4446_v56, %v4445_v31 }
 0x6f2   : > { %v4356_v61 = vpop.permute.xlu2 %4355 }
 0x6f3   : > { %v4450_v43 = vperm.slane %v4356_v61, %v7537_v54 }
 0x6fb   : > { %v4353_v60 = vpop.permute.xlu0 %4352 }
 0x6fc   : > { %v4448_v12 = vperm.slane %v4353_v60, %v7532_v19  ;;  %v4420_v19 = vperm.slane %v4311_v5, %v4419_v16 }
 0x6fe   : > { %v4449_v44 = vsel %vm4413_vm15, %v4448_v12, %v4447_v55  ;;  %v4422_v27 = vsel %vm4421_vm2, %v4420_v19, %v7541_v4 }
 0x6ff   : > { %v4451_v10 = vsel %vm4417_vm1, %v4450_v43, %v4449_v44 }
 0x719   : > { %v4359_v58 = vpop.permute.xlu1 %4358 }
 0x71a   : > { %v4452_v42 = vperm.slane %v4359_v58, %v4419_v16 }
 0x71c   : > { %v4453_v30 = vsel %vm4421_vm2, %v4452_v42, %v4451_v10 }
 0x71d   : > { %v4454_v17 = vrot.slane %v4453_v30, 7 }
 0x71f   : > { %v4455_v54 = vsel %vm744_vm0, %v4422_v27, %v4454_v17 }
 0x720   : > { %4461 = vst.msk [vmem:[%s261_s25] sm:$0x3] %vm4459_vm3, %v4455_v54 }
 0x721   : > { %5553 = shalt.err (!%p5550_p3)
}
 0x722   : > { %5462 = dma.vmem_to_hbm [thread:$0]  (%p5664_p5), %s4476_s15, 32, %s4478_s17, %s4463_s18  }
 0x723 PF: > { %p5468_p4 = scmp.ge.s32.totalorder %s5588_s24, 2  ;;  %s4489_s9 = sand.u32 1, %s5576_s21  }
 0x724   : > { %s4490_s11 = scalar_lea.sflag [#allocation3], %s4489_s9 }
 0x725   : > { %p5465_p7 = pnand %p5468_p4, %p5668_p6 }
 0x727   : > { %p5466_p8 = pneg %p5465_p7 }
 0x729   : > { %5571 = dma.done.wait (%p5466_p8), %s4490_s11, 32  }
 0x72a   : > { %5573 = vsyncadd (%p5466_p8), %s4490_s11, 4294967264  ;;  %p16_p9 = scmp.ge.s32.totalorder %s5651_s27, 4   ;;  %s7795_s21 = smov %s5580_s22 }
 0x72b   : > { %s7796_s22 = smov %s5584_s23  ;;  %s7797_s23 = smov %s5662_s30 }
 0x72c   : > { %s7798_s24 = smov %s5651_s27  ;;  %18 = sbr.rel (!%p16_p9) target bundleno = 3 (0x3), region = 89 }
 0x731   :  { %4496 = vsyncpa [#allocation3], 1 }
 0x732   :  { %4498 = vsyncpa [#allocation3 + $0x1], 1 }

// kernel: tpu_custom_call.1
= control target key start
LH: loop header
LB: loop body
LE: loop exit
PB: predicated region body
PF: predicated region fallthrough
CT: control target
= control target key end

     0   :  { %11 = vsyncpa [#allocation3], 0  ;;  %s7612_s0 = inlined_call_operand.vmem [shape: bf16[512,81], index: 0, kind: input, shape index: {}]   ;;  %s7613_s1 = inlined_call_operand.vmem [shape: bf16[512,40], index: 1, kind: input, shape index: {}]   ;;  %s7614_s2 = inlined_call_operand.vmem [shape: bf16[81,1152], index: 2, kind: input, shape index: {}]   ;;  %s7615_s3 = inlined_call_operand.vmem [shape: bf16[1152,40], index: 3, kind: input, shape index: {}]   ;;  %s7616_s4 = inlined_call_operand.vmem [shape: f32[1,40], index: 4, kind: input, shape index: {}]   ;;  %s7617_s5 = inlined_call_operand.vmem [shape: f32[2,40], index: 5, kind: input, shape index: {}]   ;;  %s7618_s6 = inlined_call_operand.hbm [shape: f32[2,1,256], index: 6, kind: output, shape index: {}]  }
   0x1   :  { %13 = vsyncpa [#allocation3 + $0x1], 0  ;;  %s5626_s21 = smov 0   ;;  %s5628_s22 = smov 0  }
   0x2   :  { %s5630_s23 = smov 0   ;;  %s5632_s24 = smov 0  }
   0x3 LB: > { %s5647_s25 = sadd.s32 4294967295, %s5588_s24   ;;  %s4549_s26 = sadd.s32 4294967294, %s5588_s24   ;;  %s5588_s24 = sphi %s5632_s24, %s7798_s24   ;;  %s5584_s23 = sphi %s5630_s23, %s7797_s23   ;;  %s5580_s22 = sphi %s5628_s22, %s7796_s22   ;;  %s5576_s21 = sphi %s5626_s21, %s7795_s21  }
   0x4   : > { %s5651_s27 = sadd.s32 1, %s5588_s24   ;;  %s162_s28 = sadd.s32 1, %s5584_s23 }
   0x5   : > { %s159_s29 = ssub.s32 %s5588_s24, %s5651_s27  ;;  %p172_p0 = scmp.ne.s32.totalorder %s5584_s23, %s5580_s22 }
   0x6   : > { %p160_p1 = scmp.eq.s32.totalorder %s159_s29, 0  ;;  %p173_p2 = scmp.eq.s32.totalorder %s5647_s25, 1 }
   0x7   : > { %p178_p3 = scmp.ne.s32.totalorder %s5580_s22, %s5576_s21  ;;  %p179_p4 = scmp.eq.s32.totalorder %s4549_s26, 1 }
   0x8   : > { %s5662_s30 = scalar_select %p160_p1, %s5584_s23, %s162_s28  }
   0x9   : > { %p5664_p5 = por %p173_p2, %p172_p0  ;;  %p5668_p6 = por %p179_p4, %p178_p3 }
   0xa   : > { %p4552_p7 = scmp.ge.s32.totalorder %s5588_s24, 1  ;;  %p227_p8 = scmp.lt.s32.totalorder %s5588_s24, 3 }
   0xc   : > { %p228_p9 = pnand %p4552_p7, %p227_p8 }
   0xe   : > { %231 = sbr.rel (%p228_p9) target bundleno = 1827 (0x723), region = 44 }
  0x13   : > { %v357_v0 = vld [vmem:[%s7614_s2 + $0x168] sm:$0x11]  ;;  %vm744_vm0 = vcmask 1040384   ;;  %v5590_v3 = vmov 0   ;;  %v4768_v7 = vld [vmem:[%s7614_s2 + $0x120] sm:$0xf] }
  0x14   : > { %v587_v1 = vunpack.c.l.b16 %v357_v0  ;;  %v588_v2 = vunpack.c.h.b16 %v357_v0  ;;  %5502 = vset.pattern.permute.xlu2 %v5590_v3  ;;  %5503 = vset.pattern.permute.xlu0 %v5590_v3  ;;  %v5678_v4 = vsel %vm744_vm0, 65535, %v5590_v3  ;;  %v5294_v8 = vld [vmem:[%s7614_s2 + $0x140] sm:$0xf0]  ;;  %v4770_v12 = vld [vmem:[%s7614_s2 + $0x144] sm:$0xf0]  ;;  %s4554_s26 = sshll.u32 %s5647_s25, 5 }
  0x15   : > { %5504 = vset.pattern.permute.xlu1 %v5590_v3  ;;  %v5290_v11 = vld [vmem:[%s7614_s2 + $0x124] sm:$0xf]  ;;  %v4769_v13 = vor.u32 %v5294_v8, %v4768_v7  ;;  %v4732_v14 = vld [vmem:[%s7614_s2 + $0xd8] sm:$0xf]  ;;  %v5285_v16 = vld [vmem:[%s7614_s2 + $0xf8] sm:$0xf0] }
  0x16   : > { %v641_v5 = vpack.c.b16 %v587_v1, %v587_v1  ;;  %v642_v6 = vpack.c.b16 %v588_v2, %v588_v2  ;;  %v4773_v15 = vor.u32 %v5290_v11, %v4770_v12  ;;  %v5281_v17 = vld [vmem:[%s7614_s2 + $0xdc] sm:$0xf]  ;;  %v4734_v18 = vld [vmem:[%s7614_s2 + $0xfc] sm:$0xf0]  ;;  %v4733_v19 = vor.u32 %v5285_v16, %v4732_v14  ;;  %p263_p10 = scmp.lt.s32.totalorder %s4554_s26, 63  ;;  %s259_s9 = sand.u32 1, %s5580_s22  }
  0x17   : > { %v4737_v20 = vor.u32 %v5281_v17, %v4734_v18  ;;  %v4696_v21 = vld [vmem:[%s7614_s2 + $0x90] sm:$0xf]  ;;  %v5276_v22 = vld [vmem:[%s7614_s2 + $0xb0] sm:$0xf0]  ;;  %v4698_v24 = vld [vmem:[%s7614_s2 + $0xb4] sm:$0xf0] }
  0x18   : > { %v748_v9 = vand.u32 %v5678_v4, %v641_v5  ;;  %v751_v10 = vand.u32 %v5678_v4, %v642_v6  ;;  %v5272_v23 = vld [vmem:[%s7614_s2 + $0x94] sm:$0xf]  ;;  %v4697_v26 = vor.u32 %v5276_v22, %v4696_v21  ;;  %s7800_s26 = smov (!%p263_p10, %s4554_s26), 63  ;;  %v4660_v28 = vld [vmem:[%s7614_s2 + $0x48] sm:$0xf]  ;;  %vm695_vm1 = vcmask 662528  }
  0x19   : > { %v358_v25 = vld [vmem:[%s7614_s2 + $0x170] sm:$0x11]  ;;  %v4701_v27 = vor.u32 %v5272_v23, %v4698_v24  ;;  %v5267_v29 = vld [vmem:[%s7614_s2 + $0x68] sm:$0xf0]  ;;  %v359_v34 = vld [vmem:[%s7614_s2 + $0x178] sm:$0x11] }
  0x1a   : > { %776 = vmatpush.bf16.msra.mxu0 %v748_v9  ;;  %5450 = vmatpush.bf16.msra.mxu2 %v748_v9  ;;  %v5263_v30 = vld [vmem:[%s7614_s2 + $0x4c] sm:$0xf]  ;;  %v4662_v31 = vld [vmem:[%s7614_s2 + $0x6c] sm:$0xf0]  ;;  %v589_v32 = vunpack.c.l.b16 %v358_v25  ;;  %v590_v33 = vunpack.c.h.b16 %v358_v25  ;;  %v4661_v35 = vor.u32 %v5267_v29, %v4660_v28  ;;  %s4555_s19 = sshll.u32 %s7800_s26, 2  ;;  %v591_v39 = vunpack.c.l.b16 %v359_v34  ;;  %s4553_s10 = sshll.u32 %s259_s9, 1 }
  0x1b   : > { %865 = vmatpush.bf16.msra.mxu1 %v751_v10  ;;  %5456 = vmatpush.bf16.msra.mxu3 %v751_v10  ;;  %v4665_v36 = vor.u32 %v5263_v30, %v4662_v31  ;;  %v4624_v37 = vld [vmem:[%s7614_s2] sm:$0xf]  ;;  %v5258_v38 = vld [vmem:[%s7614_s2 + $0x20] sm:$0xf0]  ;;  %v592_v40 = vunpack.c.h.b16 %v359_v34  ;;  %v4626_v42 = vld [vmem:[%s7614_s2 + $0x24] sm:$0xf0]  ;;  %s5757_s16 = scalar_lea.vmem %s7612_s0, %s4555_s19  ;;  %s7122_s15 = scalar_lea.vmem %s7613_s1, %s4555_s19 }
  0x1c   : > { %v5254_v41 = vld [vmem:[%s7614_s2 + $0x4] sm:$0xf]  ;;  %v643_v43 = vpack.c.b16 %v589_v32, %v589_v32  ;;  %v644_v44 = vpack.c.b16 %v590_v33, %v590_v33  ;;  %v4625_v45 = vor.u32 %v5258_v38, %v4624_v37  ;;  %v645_v47 = vpack.c.b16 %v591_v39, %v591_v39  ;;  %v4776_v53 = vld [vmem:[%s7614_s2 + $0x128] sm:$0xf]  ;;  %v5295_v54 = vld [vmem:[%s7614_s2 + $0x148] sm:$0xf0] }
  0x1d   : > { %v4629_v46 = vor.u32 %v5254_v41, %v4626_v42  ;;  %v646_v48 = vpack.c.b16 %v592_v40, %v592_v40  ;;  %v5760_v49 = vld [vmem:[%s5757_s16] sm:$0xff]  ;;  %v5291_v55 = vld [vmem:[%s7614_s2 + $0x12c] sm:$0xf]  ;;  %v4778_v56 = vld [vmem:[%s7614_s2 + $0x14c] sm:$0xf0]  ;;  %v4777_v59 = vor.u32 %v5295_v54, %v4776_v53  ;;  %vm3584_vm2 = vcmask 326656  }
  0x1e   : > { %777 = vmatpush.bf16.msra.mxu0 %v4769_v13  ;;  %5451 = vmatpush.bf16.msra.mxu2 %v4769_v13  ;;  %v5763_v50 = vld [vmem:[%s5757_s16 + $0x40] sm:$0xff]  ;;  %v754_v51 = vand.u32 %v5678_v4, %v643_v43  ;;  %v757_v52 = vand.u32 %v5678_v4, %v644_v44  ;;  %v760_v57 = vand.u32 %v5678_v4, %v645_v47  ;;  %v4784_v61 = vld [vmem:[%s7614_s2 + $0x130] sm:$0xf]  ;;  %v5296_v62 = vld [vmem:[%s7614_s2 + $0x150] sm:$0xf0]  ;;  %vm4365_vm3 = vcmask 130112  }
  0x1f   : > { %866 = vmatpush.bf16.msra.mxu1 %v4773_v15  ;;  %5457 = vmatpush.bf16.msra.mxu3 %v4773_v15  ;;  %v763_v58 = vand.u32 %v5678_v4, %v646_v48  ;;  %v4781_v60 = vor.u32 %v5291_v55, %v4778_v56  ;;  %v5292_v63 = vld [vmem:[%s7614_s2 + $0x134] sm:$0xf]  ;;  %v4785_v0 = vor.u32 %v5296_v62, %v4784_v61  ;;  %v4786_v1 = vld [vmem:[%s7614_s2 + $0x154] sm:$0xf0]  ;;  %v4740_v2 = vld [vmem:[%s7614_s2 + $0xe0] sm:$0xf] }
  0x20   : > { %v5286_v3 = vld [vmem:[%s7614_s2 + $0x100] sm:$0xf0]  ;;  %v4789_v5 = vor.u32 %v5292_v63, %v4786_v1  ;;  %v4742_v8 = vld [vmem:[%s7614_s2 + $0x104] sm:$0xf0]  ;;  %v5287_v13 = vld [vmem:[%s7614_s2 + $0x108] sm:$0xf0] }
  0x21   : > { %v4741_v6 = vor.u32 %v5286_v3, %v4740_v2  ;;  %v5282_v7 = vld [vmem:[%s7614_s2 + $0xe4] sm:$0xf]  ;;  %v5814_v10 = vld [vmem:[%s5757_s16 + $0x8] sm:$0xff]  ;;  %v4750_v16 = vld [vmem:[%s7614_s2 + $0x10c] sm:$0xf0]  ;;  %vm4369_vm4 = vcmask 195712  }
  0x22   : > { %778 = vmatpush.bf16.msra.mxu0 %v4733_v19  ;;  %5452 = vmatpush.bf16.msra.mxu2 %v4733_v19  ;;  %v4745_v9 = vor.u32 %v5282_v7, %v4742_v8  ;;  %v5817_v11 = vld [vmem:[%s5757_s16 + $0x48] sm:$0xff]  ;;  %v5840_v18 = vld [vmem:[%s5757_s16 + $0x10] sm:$0xff]  ;;  %v5277_v21 = vld [vmem:[%s7614_s2 + $0xb8] sm:$0xf0]  ;;  %vm4373_vm5 = vcmask 261312   ;;  %vm4377_vm6 = vcmask 326912  }
  0x23   : > { %867 = vmatpush.bf16.msra.mxu1 %v4737_v20  ;;  %5458 = vmatpush.bf16.msra.mxu3 %v4737_v20  ;;  %v4748_v12 = vld [vmem:[%s7614_s2 + $0xe8] sm:$0xf]  ;;  %v5283_v14 = vld [vmem:[%s7614_s2 + $0xec] sm:$0xf]  ;;  %v5843_v19 = vld [vmem:[%s5757_s16 + $0x50] sm:$0xff]  ;;  %vm4381_vm7 = vcmask 392512  }
  0x24   : > { %v4749_v15 = vor.u32 %v5287_v13, %v4748_v12  ;;  %v4753_v17 = vor.u32 %v5283_v14, %v4750_v16  ;;  %v4704_v20 = vld [vmem:[%s7614_s2 + $0x98] sm:$0xf]  ;;  %v5273_v22 = vld [vmem:[%s7614_s2 + $0x9c] sm:$0xf]  ;;  %v4706_v24 = vld [vmem:[%s7614_s2 + $0xbc] sm:$0xf0] }
  0x25   : > { %v4705_v23 = vor.u32 %v5277_v21, %v4704_v20  ;;  %v4712_v25 = vld [vmem:[%s7614_s2 + $0xa0] sm:$0xf]  ;;  %v5274_v29 = vld [vmem:[%s7614_s2 + $0xa4] sm:$0xf]  ;;  %v4714_v30 = vld [vmem:[%s7614_s2 + $0xc4] sm:$0xf0] }
  0x26   : > { %779 = vmatpush.bf16.msra.mxu0 %v4697_v26  ;;  %5453 = vmatpush.bf16.msra.mxu2 %v4697_v26  ;;  %v5278_v26 = vld [vmem:[%s7614_s2 + $0xc0] sm:$0xf0]  ;;  %v4717_v31 = vor.u32 %v5274_v29, %v4714_v30  ;;  %v5878_v32 = vld [vmem:[%s5757_s16 + $0x18] sm:$0xff]  ;;  %v4668_v34 = vld [vmem:[%s7614_s2 + $0x50] sm:$0xf]  ;;  %vm4385_vm8 = vcmask 458112  }
  0x27   : > { %868 = vmatpush.bf16.msra.mxu1 %v4701_v27  ;;  %5459 = vmatpush.bf16.msra.mxu3 %v4701_v27  ;;  %v4709_v27 = vor.u32 %v5273_v22, %v4706_v24  ;;  %v4713_v28 = vor.u32 %v5278_v26, %v4712_v25  ;;  %v5881_v33 = vld [vmem:[%s5757_s16 + $0x58] sm:$0xff]  ;;  %v5904_v40 = vld [vmem:[%s5757_s16 + $0x20] sm:$0xff]  ;;  %v4632_v47 = vld [vmem:[%s7614_s2 + $0x8] sm:$0xf]  ;;  %vm4389_vm9 = vcmask 523712   ;;  %vm4393_vm10 = vcmask 589312  }
  0x28   : > { %v4670_v38 = vld [vmem:[%s7614_s2 + $0x74] sm:$0xf0]  ;;  %v5907_v41 = vld [vmem:[%s5757_s16 + $0x60] sm:$0xff]  ;;  %v5269_v43 = vld [vmem:[%s7614_s2 + $0x78] sm:$0xf0]  ;;  %vm4397_vm11 = vcmask 654912  }
  0x29   : > { %v4676_v42 = vld [vmem:[%s7614_s2 + $0x58] sm:$0xf]  ;;  %v5265_v44 = vld [vmem:[%s7614_s2 + $0x5c] sm:$0xf]  ;;  %v5259_v48 = vld [vmem:[%s7614_s2 + $0x28] sm:$0xf0] }
  0x2a   : > { %780 = vmatpush.bf16.msra.mxu0 %v4661_v35  ;;  %5454 = vmatpush.bf16.msra.mxu2 %v4661_v35  ;;  %v5268_v35 = vld [vmem:[%s7614_s2 + $0x70] sm:$0xf0]  ;;  %v5255_v53 = vld [vmem:[%s7614_s2 + $0xc] sm:$0xf]  ;;  %v4634_v54 = vld [vmem:[%s7614_s2 + $0x2c] sm:$0xf0] }
  0x2b   : > { %869 = vmatpush.bf16.msra.mxu1 %v4665_v36  ;;  %5460 = vmatpush.bf16.msra.mxu3 %v4665_v36  ;;  %v5264_v36 = vld [vmem:[%s7614_s2 + $0x54] sm:$0xf]  ;;  %v4669_v37 = vor.u32 %v5268_v35, %v4668_v34  ;;  %v4637_v55 = vor.u32 %v5255_v53, %v4634_v54  ;;  %v5942_v56 = vld [vmem:[%s5757_s16 + $0x28] sm:$0xff]  ;;  %v4642_v62 = vld [vmem:[%s7614_s2 + $0x34] sm:$0xf0]  ;;  %vm4401_vm12 = vcmask 720512  }
  0x2c   : > { %v4673_v39 = vor.u32 %v5264_v36, %v4670_v38  ;;  %v5971_v1 = vld [vmem:[%s5757_s16 + $0x70] sm:$0xff]  ;;  %v360_v2 = vld [vmem:[%s7614_s2 + $0x180] sm:$0x11]  ;;  %v361_v12 = vld [vmem:[%s7614_s2 + $0x188] sm:$0x1]  ;;  %vm4405_vm13 = vcmask 786112  }
  0x2d   : > { %v593_v3 = vunpack.c.l.b16 %v360_v2  ;;  %v595_v13 = vunpack.c.l.b16 %v361_v12  ;;  %v5990_v14 = vld [vmem:[%s5757_s16 + $0x38] sm:$0xff]  ;;  %vm4409_vm14 = vcmask 851712   ;;  %vm4413_vm15 = vcmask 917312   ;;  %s5235_s11 = sshll.u32 %s5647_s25, 1  ;;  %s261_s25 = scalar_lea.vmem [#allocation2], %s4553_s10 }
  0x2e   : > { %781 = vmatpush.bf16.msra.mxu0 %v4625_v45  ;;  %5455 = vmatpush.bf16.msra.mxu2 %v4625_v45  ;;  %v4677_v45 = vor.u32 %v5269_v43, %v4676_v42  ;;  %v5306_v20 = vld [vmem:[%s7615_s3 + $0x38] sm:$0xff]  ;;  %s4473_s14 = scalar_lea.hbm %s7618_s6, %s5235_s11  ;;  %s4463_s18 = scalar_lea.sflag [#allocation3], %s259_s9 }
  0x2f   : > { %870 = vmatpush.bf16.msra.mxu1 %v4629_v46  ;;  %5461 = vmatpush.bf16.msra.mxu3 %v4629_v46  ;;  %v4678_v46 = vld [vmem:[%s7614_s2 + $0x7c] sm:$0xf0]  ;;  %v649_v16 = vpack.c.b16 %v595_v13, %v595_v13  ;;  %s4477_s17 = sshll.u32 %s4473_s14, 4  ;;  %s4478_s17 = int_to_ptr.hbm [resolvable:$true] %s4477_s17 }
  0x30   : > { %s5540_s20 = sshra.s32 %s4478_s17, 4  ;;  %s5541_s20 = int_to_ptr.hbm [resolvable:$true] %s5540_s20 }
  0x31   : > { %4802 = vmatmul.msk.bf16.vlgmr.msra.gmra.mxu0 %vm695_vm1, %v5760_v49  ;;  %4810 = vmatmul.msk.bf16.vlgmr.msra.gmra.mxu2 %vm695_vm1, %v5763_v50  ;;  %s5542_s26 = scalar_lea.hbm %s5541_s20, 2  ;;  %p5547_p0 = scmp.lt.s32.totalorder %s5541_s20, %s7618_s6 }
  0x32   : > { %954 = vmatpush.bf16.msrb.mxu2 %v754_v51  ;;  %4818 = vmatmul.msk.bf16.vlgmr.msra.gmra.mxu1 %vm695_vm1, %v5760_v49  ;;  %v4681_v51 = vor.u32 %v5265_v44, %v4678_v46  ;;  %v5297_v46 = vld [vmem:[%s7614_s2 + $0x158] sm:$0xf0]  ;;  %p5543_p11 = scmp.ne.s32.totalorder %s5541_s20, %s5542_s26 }
  0x33   : > { %1043 = vmatpush.bf16.msrb.mxu3 %v757_v52  ;;  %1132 = vmatpush.bf16.msrb.mxu0 %v760_v57  ;;  %v4633_v52 = vor.u32 %v5259_v48, %v4632_v47  ;;  %v5945_v57 = vld [vmem:[%s5757_s16 + $0x68] sm:$0xff]  ;;  %v5305_v47 = vld [vmem:[%s7615_s3 + $0x30] sm:$0xff] }
  0x34   : > { %4826 = vmatmul.msk.bf16.vlgmr.msra.gmra.mxu3 %vm695_vm1, %v5763_v50  ;;  %1221 = vmatpush.bf16.msrb.mxu1 %v763_v58  ;;  %v4640_v58 = vld [vmem:[%s7614_s2 + $0x10] sm:$0xf]  ;;  %p5544_p12 = pnand %p5543_p11, %p5664_p5 }
  0x36   : > { %955 = vmatpush.bf16.msrb.mxu2 %v4777_v59  ;;  %v5260_v59 = vld [vmem:[%s7614_s2 + $0x30] sm:$0xf0]  ;;  %p5545_p13 = pneg %p5544_p12 }
  0x37   : > { %1044 = vmatpush.bf16.msrb.mxu3 %v4781_v60  ;;  %1133 = vmatpush.bf16.msrb.mxu0 %v4785_v0  ;;  %v5256_v60 = vld [vmem:[%s7614_s2 + $0x14] sm:$0xf]  ;;  %v4641_v61 = vor.u32 %v5260_v59, %v4640_v58 }
  0x38   : > { %1222 = vmatpush.bf16.msrb.mxu1 %v4789_v5  ;;  %v4645_v63 = vor.u32 %v5256_v60, %v4642_v62  ;;  %v5968_v0 = vld [vmem:[%s5757_s16 + $0x30] sm:$0xff]  ;;  %v594_v5 = vunpack.c.h.b16 %v360_v2 }
  0x3a   : > { %956 = vmatpush.bf16.msrb.mxu2 %v4741_v6  ;;  %v647_v6 = vpack.c.b16 %v593_v3, %v593_v3  ;;  %v648_v7 = vpack.c.b16 %v594_v5, %v594_v5  ;;  %v5298_v5 = vld [vmem:[%s7614_s2 + $0x160] sm:$0xf0] }
  0x3b   : > { %1045 = vmatpush.bf16.msrb.mxu3 %v4745_v9  ;;  %1134 = vmatpush.bf16.msrb.mxu0 %v4749_v15  ;;  %v5993_v15 = vld [vmem:[%s5757_s16 + $0x78] sm:$0xff] }
  0x3c   : > { %1223 = vmatpush.bf16.msrb.mxu1 %v4753_v17  ;;  %v766_v8 = vand.u32 %v5678_v4, %v647_v6  ;;  %v769_v9 = vand.u32 %v5678_v4, %v648_v7  ;;  %v772_v17 = vand.u32 %v5678_v4, %v649_v16 }
  0x3e   : > { %957 = vmatpush.bf16.msrb.mxu2 %v4705_v23 }
  0x3f   : > { %1046 = vmatpush.bf16.msrb.mxu3 %v4709_v27  ;;  %1135 = vmatpush.bf16.msrb.mxu0 %v4713_v28 }
  0x40   : > { %1224 = vmatpush.bf16.msrb.mxu1 %v4717_v31 }
  0x41   : > { %4803 = vmatmul.msk.bf16.gmra.mxu0 %vm695_vm1, %v5814_v10  ;;  %4811 = vmatmul.msk.bf16.gmra.mxu2 %vm695_vm1, %v5817_v11 }
  0x42   : > { %4819 = vmatmul.msk.bf16.gmra.mxu1 %vm695_vm1, %v5814_v10  ;;  %958 = vmatpush.bf16.msrb.mxu2 %v4669_v37 }
  0x43   : > { %1047 = vmatpush.bf16.msrb.mxu3 %v4673_v39  ;;  %1136 = vmatpush.bf16.msrb.mxu0 %v4677_v45  ;;  %v4792_v45 = vld [vmem:[%s7614_s2 + $0x138] sm:$0xf] }
  0x44   : > { %4827 = vmatmul.msk.bf16.gmra.mxu3 %vm695_vm1, %v5817_v11  ;;  %1225 = vmatpush.bf16.msrb.mxu1 %v4681_v51  ;;  %v4793_v48 = vor.u32 %v5297_v46, %v4792_v45  ;;  %v5293_v51 = vld [vmem:[%s7614_s2 + $0x13c] sm:$0xf] }
  0x46   : > { %959 = vmatpush.bf16.msrb.mxu2 %v4633_v52  ;;  %v4794_v52 = vld [vmem:[%s7614_s2 + $0x15c] sm:$0xf0] }
  0x47   : > { %1048 = vmatpush.bf16.msrb.mxu3 %v4637_v55  ;;  %1137 = vmatpush.bf16.msrb.mxu0 %v4641_v61  ;;  %v4797_v53 = vor.u32 %v5293_v51, %v4794_v52 }
  0x48   : > { %1226 = vmatpush.bf16.msrb.mxu1 %v4645_v63 }
  0x4a   : > { %1310 = vmatpush.bf16.msra.mxu2 %v766_v8 }
  0x4b   : > { %1399 = vmatpush.bf16.msra.mxu3 %v769_v9  ;;  %1488 = vmatpush.bf16.msra.mxu0 %v772_v17 }
  0x4c   : > { %2587 = vmatpush.bf16.msra.mxu1 %v5306_v20 }
  0x4e   : > { %1311 = vmatpush.bf16.msra.mxu2 %v4793_v48  ;;  %v5304_v48 = vld [vmem:[%s7615_s3 + $0x28] sm:$0xff] }
  0x4f   : > { %1400 = vmatpush.bf16.msra.mxu3 %v4797_v53 }
  0x50   : > { %2588 = vmatpush.bf16.msra.mxu1 %v5305_v47 }
  0x51   : > { %4804 = vmatmul.msk.bf16.gmra.mxu0 %vm695_vm1, %v5840_v18  ;;  %4812 = vmatmul.msk.bf16.gmra.mxu2 %vm695_vm1, %v5843_v19 }
  0x52   : > { %4820 = vmatmul.msk.bf16.gmra.mxu1 %vm695_vm1, %v5840_v18 }
  0x54   : > { %4828 = vmatmul.msk.bf16.gmra.mxu3 %vm695_vm1, %v5843_v19  ;;  %2589 = vmatpush.bf16.msra.mxu1 %v5304_v48 }
  0x61   : > { %4805 = vmatmul.msk.bf16.gmra.mxu0 %vm695_vm1, %v5878_v32  ;;  %4813 = vmatmul.msk.bf16.gmra.mxu2 %vm695_vm1, %v5881_v33 }
  0x62   : > { %4821 = vmatmul.msk.bf16.gmra.mxu1 %vm695_vm1, %v5878_v32 }
  0x64   : > { %4829 = vmatmul.msk.bf16.gmra.mxu3 %vm695_vm1, %v5881_v33 }
  0x71   : > { %4806 = vmatmul.msk.bf16.gmra.mxu0 %vm695_vm1, %v5904_v40  ;;  %4814 = vmatmul.msk.bf16.gmra.mxu2 %vm695_vm1, %v5907_v41 }
  0x72   : > { %4822 = vmatmul.msk.bf16.gmra.mxu1 %vm695_vm1, %v5904_v40 }
  0x74   : > { %4830 = vmatmul.msk.bf16.gmra.mxu3 %vm695_vm1, %v5907_v41 }
  0x81   : > { %4807 = vmatmul.msk.bf16.gmra.mxu0 %vm695_vm1, %v5942_v56  ;;  %4815 = vmatmul.msk.bf16.gmra.mxu2 %vm695_vm1, %v5945_v57 }
  0x82   : > { %4823 = vmatmul.msk.bf16.gmra.mxu1 %vm695_vm1, %v5942_v56 }
  0x84   : > { %4831 = vmatmul.msk.bf16.gmra.mxu3 %vm695_vm1, %v5945_v57 }
  0x91   : > { %4808 = vmatmul.msk.bf16.gmra.mxu0 %vm695_vm1, %v5968_v0  ;;  %4816 = vmatmul.msk.bf16.gmra.mxu2 %vm695_vm1, %v5971_v1 }
  0x92   : > { %4824 = vmatmul.msk.bf16.gmra.mxu1 %vm695_vm1, %v5968_v0 }
  0x94   : > { %4832 = vmatmul.msk.bf16.gmra.mxu3 %vm695_vm1, %v5971_v1 }
  0xa1   : > { %4809 = vmatmul.msk.bf16.gmra.mxu0 %vm695_vm1, %v5990_v14  ;;  %4817 = vmatmul.msk.bf16.gmra.mxu2 %vm695_vm1, %v5993_v15 }
  0xa2   : > { %4825 = vmatmul.msk.bf16.gmra.mxu1 %vm695_vm1, %v5990_v14 }
  0xa4   : > { %4833 = vmatmul.msk.bf16.gmra.mxu3 %vm695_vm1, %v5993_v15 }
  0xae   : > { %v783_v21 = vpop.f32.mrf.mxu0 }
  0xaf   : > { %v872_v4 = vpop.f32.mrf.mxu1  ;;  %v1575_v23 = vmax.f32 %v783_v21, 0.0 }
  0xb0   : > { %v1576_v25 = vmax.f32 %v872_v4, 0.0 }
  0xb1   : > { %4834 = vmatmul.msk.bf16.vlgmr.msrb.gmra.mxu2 %vm695_vm1, %v5760_v49  ;;  %4866 = vmatmul.msk.bf16.vlgmr.msrb.gmra.mxu0 %vm695_vm1, %v5760_v49 }
  0xb2   : > { %4882 = vmatmul.msk.bf16.vlgmr.msrb.gmra.mxu1 %vm695_vm1, %v5760_v49 }
  0xb4   : > { %4850 = vmatmul.msk.bf16.vlgmr.msrb.gmra.mxu3 %vm695_vm1, %v5760_v49  ;;  %v823_v22 = vpop.f32.mrf.mxu2 }
  0xb5   : > { %v1719_v35 = vmax.f32 %v823_v22, 0.0 }
  0xb6   : > { %v785_v26 = vpop.f32.mrf.mxu0 }
  0xb7   : > { %v912_v24 = vpop.f32.mrf.mxu3  ;;  %v1584_v27 = vmax.f32 %v785_v26, 0.0  ;;  %v874_v28 = vpop.f32.mrf.mxu1 }
  0xb8   : > { %v1585_v29 = vmax.f32 %v874_v28, 0.0  ;;  %v1720_v38 = vmax.f32 %v912_v24, 0.0 }
  0xb9   : > { %v6015_v30 = vpack.c.bf16 %v1584_v27, %v1575_v23 }
  0xba   : > { %v6017_v31 = vpack.c.bf16 %v1585_v29, %v1576_v25 }
  0xbc   : > { %v825_v34 = vpop.f32.mrf.mxu2 }
  0xbd   : > { %v1728_v36 = vmax.f32 %v825_v34, 0.0 }
  0xbe   : > { %v788_v42 = vpop.f32.mrf.mxu0 }
  0xbf   : > { %v914_v37 = vpop.f32.mrf.mxu3  ;;  %v6019_v49 = vpack.c.bf16 %v1728_v36, %v1719_v35  ;;  %v877_v43 = vpop.f32.mrf.mxu1  ;;  %v1593_v55 = vmax.f32 %v788_v42, 0.0 }
  0xc0   : > { %v1729_v39 = vmax.f32 %v914_v37, 0.0  ;;  %v1594_v59 = vmax.f32 %v877_v43, 0.0 }
  0xc1   : > { %4835 = vmatmul.msk.bf16.gmra.mxu2 %vm695_vm1, %v5814_v10  ;;  %4867 = vmatmul.msk.bf16.gmra.mxu0 %vm695_vm1, %v5814_v10 }
  0xc2   : > { %v6021_v44 = vpack.c.bf16 %v1729_v39, %v1720_v38  ;;  %4883 = vmatmul.msk.bf16.gmra.mxu1 %vm695_vm1, %v5814_v10 }
  0xc4   : > { %7621 = vst [vmem:[#allocation5_spill] sm:$0xff] %v6021_v44  ;;  %4851 = vmatmul.msk.bf16.gmra.mxu3 %vm695_vm1, %v5814_v10  ;;  %v828_v54 = vpop.f32.mrf.mxu2  ;;  %v4800_v10 = vld [vmem:[%s7614_s2 + $0x140] sm:$0xf] }
  0xc5   : > { %v4801_v6 = vor.u32 %v5298_v5, %v4800_v10  ;;  %v1737_v8 = vmax.f32 %v828_v54, 0.0  ;;  %v5284_v10 = vld [vmem:[%s7614_s2 + $0xf4] sm:$0xf] }
  0xc6   : > { %v790_v60 = vpop.f32.mrf.mxu0 }
  0xc7   : > { %v917_v58 = vpop.f32.mrf.mxu3  ;;  %v1602_v61 = vmax.f32 %v790_v60, 0.0  ;;  %v879_v62 = vpop.f32.mrf.mxu1  ;;  %1489 = vmatpush.bf16.msra.mxu0 %v4801_v6  ;;  %v4758_v6 = vld [vmem:[%s7614_s2 + $0x114] sm:$0xf0] }
  0xc8   : > { %v1603_v63 = vmax.f32 %v879_v62, 0.0  ;;  %v1738_v13 = vmax.f32 %v917_v58, 0.0 }
  0xc9   : > { %v6046_v2 = vpack.c.bf16 %v1602_v61, %v1593_v55 }
  0xca   : > { %v6048_v3 = vpack.c.bf16 %v1603_v63, %v1594_v59  ;;  %v4756_v63 = vld [vmem:[%s7614_s2 + $0xf0] sm:$0xf] }
  0xcc   : > { %v830_v7 = vpop.f32.mrf.mxu2 }
  0xcd   : > { %v1746_v9 = vmax.f32 %v830_v7, 0.0 }
  0xce   : > { %v793_v17 = vpop.f32.mrf.mxu0 }
  0xcf   : > { %v919_v12 = vpop.f32.mrf.mxu3  ;;  %v6056_v20 = vpack.c.bf16 %v1746_v9, %v1737_v8  ;;  %v882_v21 = vpop.f32.mrf.mxu1  ;;  %v1611_v23 = vmax.f32 %v793_v17, 0.0  ;;  %v4761_v8 = vor.u32 %v5284_v10, %v4758_v6 }
  0xd0   : > { %v1747_v16 = vmax.f32 %v919_v12, 0.0  ;;  %v1612_v25 = vmax.f32 %v882_v21, 0.0 }
  0xd1   : > { %4836 = vmatmul.msk.bf16.gmra.mxu2 %vm695_vm1, %v5840_v18  ;;  %4868 = vmatmul.msk.bf16.gmra.mxu0 %vm695_vm1, %v5840_v18 }
  0xd2   : > { %v6058_v4 = vpack.c.bf16 %v1747_v16, %v1738_v13  ;;  %4884 = vmatmul.msk.bf16.gmra.mxu1 %vm695_vm1, %v5840_v18  ;;  %1401 = vmatpush.bf16.msra.mxu3 %v4761_v8 }
  0xd4   : > { %7622 = vst [vmem:[#allocation6_spill] sm:$0xff] %v6058_v4  ;;  %4852 = vmatmul.msk.bf16.gmra.mxu3 %vm695_vm1, %v5840_v18  ;;  %v833_v22 = vpop.f32.mrf.mxu2 }
  0xd5   : > { %v1755_v37 = vmax.f32 %v833_v22, 0.0 }
  0xd6   : > { %v795_v26 = vpop.f32.mrf.mxu0 }
  0xd7   : > { %v922_v24 = vpop.f32.mrf.mxu3  ;;  %v1620_v27 = vmax.f32 %v795_v26, 0.0  ;;  %v884_v28 = vpop.f32.mrf.mxu1  ;;  %v5289_v26 = vld [vmem:[%s7614_s2 + $0x118] sm:$0xf0] }
  0xd8   : > { %v1621_v29 = vmax.f32 %v884_v28, 0.0  ;;  %v1756_v42 = vmax.f32 %v922_v24, 0.0 }
  0xd9   : > { %v6068_v34 = vpack.c.bf16 %v1620_v27, %v1611_v23 }
  0xda   : > { %v6070_v35 = vpack.c.bf16 %v1621_v29, %v1612_v25  ;;  %v4764_v25 = vld [vmem:[%s7614_s2 + $0xf8] sm:$0xf] }
  0xdb   : > { %v4765_v27 = vor.u32 %v5289_v26, %v4764_v25 }
  0xdc   : > { %v835_v36 = vpop.f32.mrf.mxu2 }
  0xdd   : > { %v1764_v38 = vmax.f32 %v835_v36, 0.0  ;;  %1490 = vmatpush.bf16.msra.mxu0 %v4765_v27 }
  0xde   : > { %v798_v45 = vpop.f32.mrf.mxu0 }
  0xdf   : > { %v924_v39 = vpop.f32.mrf.mxu3  ;;  %v6072_v18 = vpack.c.bf16 %v1764_v38, %v1755_v37  ;;  %v887_v46 = vpop.f32.mrf.mxu1  ;;  %v1629_v52 = vmax.f32 %v798_v45, 0.0 }
  0xe0   : > { %v1765_v43 = vmax.f32 %v924_v39, 0.0  ;;  %v1630_v54 = vmax.f32 %v887_v46, 0.0 }
  0xe1   : > { %4837 = vmatmul.msk.bf16.gmra.mxu2 %vm695_vm1, %v5878_v32  ;;  %4869 = vmatmul.msk.bf16.gmra.mxu0 %vm695_vm1, %v5878_v32 }
  0xe2   : > { %v6074_v47 = vpack.c.bf16 %v1765_v43, %v1756_v42  ;;  %4885 = vmatmul.msk.bf16.gmra.mxu1 %vm695_vm1, %v5878_v32 }
  0xe4   : > { %7623 = vst [vmem:[#allocation7_spill] sm:$0xff] %v6074_v47  ;;  %4853 = vmatmul.msk.bf16.gmra.mxu3 %vm695_vm1, %v5878_v32  ;;  %v838_v51 = vpop.f32.mrf.mxu2  ;;  %v5288_v32 = vld [vmem:[%s7614_s2 + $0x110] sm:$0xf0] }
  0xe5   : > { %v4757_v5 = vor.u32 %v5288_v32, %v4756_v63  ;;  %v1773_v9 = vmax.f32 %v838_v51, 0.0  ;;  %v5303_v63 = vld [vmem:[%s7615_s3 + $0x20] sm:$0xff] }
  0xe6   : > { %v800_v55 = vpop.f32.mrf.mxu0  ;;  %2590 = vmatpush.bf16.msra.mxu1 %v5303_v63 }
  0xe7   : > { %v927_v53 = vpop.f32.mrf.mxu3  ;;  %v1638_v58 = vmax.f32 %v800_v55, 0.0  ;;  %v889_v59 = vpop.f32.mrf.mxu1  ;;  %1312 = vmatpush.bf16.msra.mxu2 %v4757_v5 }
  0xe8   : > { %v1639_v60 = vmax.f32 %v889_v59, 0.0  ;;  %v1774_v16 = vmax.f32 %v927_v53, 0.0 }
  0xe9   : > { %v6087_v61 = vpack.c.bf16 %v1638_v58, %v1629_v52 }
  0xea   : > { %v6089_v62 = vpack.c.bf16 %v1639_v60, %v1630_v54 }
  0xec   : > { %v840_v7 = vpop.f32.mrf.mxu2 }
  0xed   : > { %v1782_v12 = vmax.f32 %v840_v7, 0.0 }
  0xee   : > { %v803_v21 = vpop.f32.mrf.mxu0 }
  0xef   : > { %v929_v13 = vpop.f32.mrf.mxu3  ;;  %v6103_v22 = vpack.c.bf16 %v1782_v12, %v1773_v9  ;;  %v892_v23 = vpop.f32.mrf.mxu1  ;;  %v1647_v29 = vmax.f32 %v803_v21, 0.0 }
  0xf0   : > { %v1783_v17 = vmax.f32 %v929_v13, 0.0  ;;  %v1648_v37 = vmax.f32 %v892_v23, 0.0 }
  0xf1   : > { %4838 = vmatmul.msk.bf16.gmra.mxu2 %vm695_vm1, %v5904_v40  ;;  %4870 = vmatmul.msk.bf16.gmra.mxu0 %vm695_vm1, %v5904_v40 }
  0xf2   : > { %v6105_v24 = vpack.c.bf16 %v1783_v17, %v1774_v16  ;;  %4886 = vmatmul.msk.bf16.gmra.mxu1 %vm695_vm1, %v5904_v40 }
  0xf4   : > { %7624 = vst [vmem:[#allocation8_spill] sm:$0xff] %v6105_v24  ;;  %4854 = vmatmul.msk.bf16.gmra.mxu3 %vm695_vm1, %v5904_v40  ;;  %v843_v28 = vpop.f32.mrf.mxu2 }
  0xf5   : > { %v1791_v48 = vmax.f32 %v843_v28, 0.0 }
  0xf6   : > { %v805_v38 = vpop.f32.mrf.mxu0 }
  0xf7   : > { %v932_v36 = vpop.f32.mrf.mxu3  ;;  %v1656_v39 = vmax.f32 %v805_v38, 0.0  ;;  %v894_v42 = vpop.f32.mrf.mxu1  ;;  %v5279_v38 = vld [vmem:[%s7614_s2 + $0xc8] sm:$0xf0] }
  0xf8   : > { %v1657_v43 = vmax.f32 %v894_v42, 0.0  ;;  %v1792_v53 = vmax.f32 %v932_v36, 0.0 }
  0xf9   : > { %v6121_v45 = vpack.c.bf16 %v1656_v39, %v1647_v29  ;;  %v5275_v39 = vld [vmem:[%s7614_s2 + $0xac] sm:$0xf] }
  0xfa   : > { %v6123_v40 = vpack.c.bf16 %v1657_v43, %v1648_v37  ;;  %v4720_v37 = vld [vmem:[%s7614_s2 + $0xa8] sm:$0xf]  ;;  %v4722_v43 = vld [vmem:[%s7614_s2 + $0xcc] sm:$0xf0] }
  0xfb   : > { %v4721_v42 = vor.u32 %v5279_v38, %v4720_v37 }
  0xfc   : > { %v845_v46 = vpop.f32.mrf.mxu2 }
  0xfd   : > { %v1800_v51 = vmax.f32 %v845_v46, 0.0  ;;  %1313 = vmatpush.bf16.msra.mxu2 %v4721_v42 }
  0xfe   : > { %v808_v55 = vpop.f32.mrf.mxu0 }
  0xff   : > { %v934_v52 = vpop.f32.mrf.mxu3  ;;  %v6125_v58 = vpack.c.bf16 %v1800_v51, %v1791_v48  ;;  %v897_v59 = vpop.f32.mrf.mxu1  ;;  %v1665_v10 = vmax.f32 %v808_v55, 0.0  ;;  %v4725_v48 = vor.u32 %v5275_v39, %v4722_v43 }
 0x100   : > { %v1801_v54 = vmax.f32 %v934_v52, 0.0  ;;  %v1666_v6 = vmax.f32 %v897_v59, 0.0 }
 0x101   : > { %4839 = vmatmul.msk.bf16.gmra.mxu2 %vm695_vm1, %v5942_v56  ;;  %4871 = vmatmul.msk.bf16.gmra.mxu0 %vm695_vm1, %v5942_v56 }
 0x102   : > { %v6127_v60 = vpack.c.bf16 %v1801_v54, %v1792_v53  ;;  %4887 = vmatmul.msk.bf16.gmra.mxu1 %vm695_vm1, %v5942_v56  ;;  %1402 = vmatpush.bf16.msra.mxu3 %v4725_v48 }
 0x104   : > { %7625 = vst [vmem:[#allocation9_spill] sm:$0xff] %v6127_v60  ;;  %4855 = vmatmul.msk.bf16.gmra.mxu3 %vm695_vm1, %v5942_v56  ;;  %v848_v32 = vpop.f32.mrf.mxu2 }
 0x105   : > { %v1809_v21 = vmax.f32 %v848_v32, 0.0 }
 0x106   : > { %v810_v7 = vpop.f32.mrf.mxu0 }
 0x107   : > { %v937_v5 = vpop.f32.mrf.mxu3  ;;  %v1674_v8 = vmax.f32 %v810_v7, 0.0  ;;  %v899_v9 = vpop.f32.mrf.mxu1 }
 0x108   : > { %v1675_v12 = vmax.f32 %v899_v9, 0.0  ;;  %v1810_v26 = vmax.f32 %v937_v5, 0.0  ;;  %v5280_v5 = vld [vmem:[%s7614_s2 + $0xd0] sm:$0xf0] }
 0x109   : > { %v6140_v13 = vpack.c.bf16 %v1674_v8, %v1665_v10  ;;  %v4728_v10 = vld [vmem:[%s7614_s2 + $0xb0] sm:$0xf] }
 0x10a   : > { %v6142_v16 = vpack.c.bf16 %v1675_v12, %v1666_v6  ;;  %v4729_v6 = vor.u32 %v5280_v5, %v4728_v10 }
 0x10c   : > { %v850_v17 = vpop.f32.mrf.mxu2  ;;  %1491 = vmatpush.bf16.msra.mxu0 %v4729_v6 }
 0x10d   : > { %v1818_v23 = vmax.f32 %v850_v17, 0.0 }
 0x10e   : > { %v813_v56 = vpop.f32.mrf.mxu0 }
 0x10f   : > { %v939_v25 = vpop.f32.mrf.mxu3  ;;  %v6144_v28 = vpack.c.bf16 %v1818_v23, %v1809_v21  ;;  %v902_v29 = vpop.f32.mrf.mxu1 }
 0x110   : > { %v1819_v27 = vmax.f32 %v939_v25, 0.0  ;;  %v1684_v52 = vmax.f32 %v902_v29, 0.0 }
 0x111   : > { %4840 = vmatmul.msk.bf16.gmra.mxu2 %vm695_vm1, %v5968_v0  ;;  %4872 = vmatmul.msk.bf16.gmra.mxu0 %vm695_vm1, %v5968_v0 }
 0x112   : > { %v6146_v36 = vpack.c.bf16 %v1819_v27, %v1810_v26  ;;  %4888 = vmatmul.msk.bf16.gmra.mxu1 %vm695_vm1, %v5968_v0 }
 0x114   : > { %7626 = vst [vmem:[#allocation10_spill] sm:$0xff] %v6146_v36  ;;  %4856 = vmatmul.msk.bf16.gmra.mxu3 %vm695_vm1, %v5968_v0  ;;  %v853_v46 = vpop.f32.mrf.mxu2  ;;  %v1683_v0 = vmax.f32 %v813_v56, 0.0  ;;  %v5302_v56 = vld [vmem:[%s7615_s3 + $0x18] sm:$0xff] }
 0x115   : > { %v1827_v8 = vmax.f32 %v853_v46, 0.0  ;;  %2591 = vmatpush.bf16.msra.mxu1 %v5302_v56 }
 0x116   : > { %v815_v53 = vpop.f32.mrf.mxu0 }
 0x117   : > { %v942_v51 = vpop.f32.mrf.mxu3  ;;  %v1692_v54 = vmax.f32 %v815_v53, 0.0  ;;  %v904_v55 = vpop.f32.mrf.mxu1 }
 0x118   : > { %v1693_v59 = vmax.f32 %v904_v55, 0.0  ;;  %v1828_v17 = vmax.f32 %v942_v51, 0.0 }
 0x119   : > { %v6168_v63 = vpack.c.bf16 %v1692_v54, %v1683_v0 }
 0x11a   : > { %v6170_v32 = vpack.c.bf16 %v1693_v59, %v1684_v52 }
 0x11c   : > { %v855_v7 = vpop.f32.mrf.mxu2 }
 0x11d   : > { %v1836_v9 = vmax.f32 %v855_v7, 0.0 }
 0x11e   : > { %v818_v23 = vpop.f32.mrf.mxu0 }
 0x11f   : > { %v944_v12 = vpop.f32.mrf.mxu3  ;;  %v6178_v25 = vpack.c.bf16 %v1836_v9, %v1827_v8  ;;  %v907_v26 = vpop.f32.mrf.mxu1  ;;  %v1701_v37 = vmax.f32 %v818_v23, 0.0 }
 0x120   : > { %v1837_v21 = vmax.f32 %v944_v12, 0.0  ;;  %v1702_v39 = vmax.f32 %v907_v26, 0.0 }
 0x121   : > { %4841 = vmatmul.msk.bf16.gmra.mxu2 %vm695_vm1, %v5990_v14  ;;  %4873 = vmatmul.msk.bf16.gmra.mxu0 %vm695_vm1, %v5990_v14 }
 0x122   : > { %v6180_v27 = vpack.c.bf16 %v1837_v21, %v1828_v17  ;;  %4889 = vmatmul.msk.bf16.gmra.mxu1 %vm695_vm1, %v5990_v14 }
 0x124   : > { %7627 = vst [vmem:[#allocation11_spill] sm:$0xff] %v6180_v27  ;;  %4857 = vmatmul.msk.bf16.gmra.mxu3 %vm695_vm1, %v5990_v14  ;;  %v858_v29 = vpop.f32.mrf.mxu2 }
 0x125   : > { %v1845_v53 = vmax.f32 %v858_v29, 0.0 }
 0x126   : > { %v820_v42 = vpop.f32.mrf.mxu0 }
 0x127   : > { %v947_v38 = vpop.f32.mrf.mxu3  ;;  %v1710_v43 = vmax.f32 %v820_v42, 0.0  ;;  %v909_v46 = vpop.f32.mrf.mxu1 }
 0x128   : > { %v1711_v48 = vmax.f32 %v909_v46, 0.0  ;;  %v1846_v59 = vmax.f32 %v947_v38, 0.0 }
 0x129   : > { %v6193_v0 = vpack.c.bf16 %v1710_v43, %v1701_v37 }
 0x12a   : > { %v6195_v51 = vpack.c.bf16 %v1711_v48, %v1702_v39 }
 0x12c   : > { %7628 = vst [vmem:[#allocation12_spill] sm:$0xff] %v6195_v51  ;;  %v860_v52 = vpop.f32.mrf.mxu2 }
 0x12d   : > { %v1854_v54 = vmax.f32 %v860_v52, 0.0 }
 0x12e   : > { %v1139_v14 = vpop.f32.mrf.mxu0 }
 0x12f   : > { %v949_v55 = vpop.f32.mrf.mxu3  ;;  %v6197_v5 = vpack.c.bf16 %v1854_v54, %v1845_v53  ;;  %v1228_v6 = vpop.f32.mrf.mxu1  ;;  %v1579_v9 = vmax.f32 %v1139_v14, 0.0 }
 0x130   : > { %v1855_v10 = vmax.f32 %v949_v55, 0.0  ;;  %v1580_v17 = vmax.f32 %v1228_v6, 0.0  ;;  %v4684_v55 = vld [vmem:[%s7614_s2 + $0x60] sm:$0xf]  ;;  %v5266_v6 = vld [vmem:[%s7614_s2 + $0x64] sm:$0xf] }
 0x131   : > { %4842 = vmatmul.msk.bf16.gmra.mxu2 %vm695_vm1, %v5763_v50  ;;  %4874 = vmatmul.msk.bf16.gmra.mxu0 %vm695_vm1, %v5763_v50 }
 0x132   : > { %v6199_v7 = vpack.c.bf16 %v1855_v10, %v1846_v59  ;;  %4890 = vmatmul.msk.bf16.gmra.mxu1 %vm695_vm1, %v5763_v50  ;;  %v5270_v59 = vld [vmem:[%s7614_s2 + $0x80] sm:$0xf0]  ;;  %v5301_v10 = vld [vmem:[%s7615_s3 + $0x10] sm:$0xff] }
 0x133   : > { %v4685_v14 = vor.u32 %v5270_v59, %v4684_v55  ;;  %2592 = vmatpush.bf16.msra.mxu1 %v5301_v10 }
 0x134   : > { %7629 = vst [vmem:[#allocation13_spill] sm:$0xff] %v6199_v7  ;;  %4858 = vmatmul.msk.bf16.gmra.mxu3 %vm695_vm1, %v5763_v50  ;;  %v961_v8 = vpop.f32.mrf.mxu2 }
 0x135   : > { %v1577_v39 = vmax.f32 %v961_v8, 0.0  ;;  %v4686_v8 = vld [vmem:[%s7614_s2 + $0x84] sm:$0xf0]  ;;  %1314 = vmatpush.bf16.msra.mxu2 %v4685_v14 }
 0x136   : > { %v1141_v21 = vpop.f32.mrf.mxu0 }
 0x137   : > { %v1050_v12 = vpop.f32.mrf.mxu3  ;;  %v1588_v23 = vmax.f32 %v1141_v21, 0.0  ;;  %v1230_v26 = vpop.f32.mrf.mxu1 }
 0x138   : > { %v1589_v56 = vmax.f32 %v1230_v26, 0.0  ;;  %v1578_v46 = vmax.f32 %v1050_v12, 0.0 }
 0x139   : > { %v6209_v29 = vpack.c.bf16 %v1588_v23, %v1579_v9  ;;  %v4689_v9 = vor.u32 %v5266_v6, %v4686_v8 }
 0x13a   : > { %v6211_v37 = vpack.c.bf16 %v1589_v56, %v1580_v17 }
 0x13b   : > { %1403 = vmatpush.bf16.msra.mxu3 %v4689_v9 }
 0x13c   : > { %7630 = vst [vmem:[#allocation14_spill] sm:$0xff] %v6211_v37  ;;  %v963_v38 = vpop.f32.mrf.mxu2 }
 0x13d   : > { %v1586_v42 = vmax.f32 %v963_v38, 0.0 }
 0x13e   : > { %v1144_v52 = vpop.f32.mrf.mxu0 }
 0x13f   : > { %v1052_v43 = vpop.f32.mrf.mxu3  ;;  %v6213_v50 = vpack.c.bf16 %v1586_v42, %v1577_v39  ;;  %v1233_v53 = vpop.f32.mrf.mxu1  ;;  %v1597_v17 = vmax.f32 %v1144_v52, 0.0 }
 0x140   : > { %v1587_v48 = vmax.f32 %v1052_v43, 0.0  ;;  %v1598_v23 = vmax.f32 %v1233_v53, 0.0 }
 0x141   : > { %4843 = vmatmul.msk.bf16.gmra.mxu2 %vm695_vm1, %v5817_v11  ;;  %4875 = vmatmul.msk.bf16.gmra.mxu0 %vm695_vm1, %v5817_v11 }
 0x142   : > { %v6215_v54 = vpack.c.bf16 %v1587_v48, %v1578_v46  ;;  %4891 = vmatmul.msk.bf16.gmra.mxu1 %vm695_vm1, %v5817_v11  ;;  %v5271_v46 = vld [vmem:[%s7614_s2 + $0x88] sm:$0xf0] }
 0x144   : > { %4859 = vmatmul.msk.bf16.gmra.mxu3 %vm695_vm1, %v5817_v11  ;;  %v966_v12 = vpop.f32.mrf.mxu2  ;;  %v4692_v11 = vld [vmem:[%s7614_s2 + $0x68] sm:$0xf] }
 0x145   : > { %v4693_v48 = vor.u32 %v5271_v46, %v4692_v11  ;;  %v1595_v55 = vmax.f32 %v966_v12, 0.0 }
 0x146   : > { %v1146_v26 = vpop.f32.mrf.mxu0 }
 0x147   : > { %v1055_v21 = vpop.f32.mrf.mxu3  ;;  %v1606_v56 = vmax.f32 %v1146_v26, 0.0  ;;  %v1235_v38 = vpop.f32.mrf.mxu1  ;;  %1492 = vmatpush.bf16.msra.mxu0 %v4693_v48 }
 0x148   : > { %v1607_v39 = vmax.f32 %v1235_v38, 0.0  ;;  %v1596_v10 = vmax.f32 %v1055_v21, 0.0 }
 0x149   : > { %v6240_v42 = vpack.c.bf16 %v1606_v56, %v1597_v17 }
 0x14a   : > { %v6242_v43 = vpack.c.bf16 %v1607_v39, %v1598_v23 }
 0x14c   : > { %7631 = vst [vmem:[#allocation15_spill] sm:$0xff] %v6242_v43  ;;  %v968_v52 = vpop.f32.mrf.mxu2 }
 0x14d   : > { %v1604_v53 = vmax.f32 %v968_v52, 0.0 }
 0x14e   : > { %v1149_v6 = vpop.f32.mrf.mxu0 }
 0x14f   : > { %v1057_v59 = vpop.f32.mrf.mxu3  ;;  %v6250_v8 = vpack.c.bf16 %v1604_v53, %v1595_v55  ;;  %v1238_v9 = vpop.f32.mrf.mxu1  ;;  %v1615_v21 = vmax.f32 %v1149_v6, 0.0 }
 0x150   : > { %v1605_v14 = vmax.f32 %v1057_v59, 0.0  ;;  %v1616_v26 = vmax.f32 %v1238_v9, 0.0  ;;  %v5300_v9 = vld [vmem:[%s7615_s3 + $0x8] sm:$0xff] }
 0x151   : > { %4844 = vmatmul.msk.bf16.gmra.mxu2 %vm695_vm1, %v5843_v19  ;;  %4876 = vmatmul.msk.bf16.gmra.mxu0 %vm695_vm1, %v5843_v19 }
 0x152   : > { %v6252_v17 = vpack.c.bf16 %v1605_v14, %v1596_v10  ;;  %4892 = vmatmul.msk.bf16.gmra.mxu1 %vm695_vm1, %v5843_v19 }
 0x153   : > { %2593 = vmatpush.bf16.msra.mxu1 %v5300_v9 }
 0x154   : > { %4860 = vmatmul.msk.bf16.gmra.mxu3 %vm695_vm1, %v5843_v19  ;;  %v971_v12 = vpop.f32.mrf.mxu2 }
 0x155   : > { %v1613_v55 = vmax.f32 %v971_v12, 0.0 }
 0x156   : > { %v1151_v56 = vpop.f32.mrf.mxu0 }
 0x157   : > { %v1060_v23 = vpop.f32.mrf.mxu3  ;;  %v1624_v38 = vmax.f32 %v1151_v56, 0.0  ;;  %v1240_v39 = vpop.f32.mrf.mxu1 }
 0x158   : > { %v1625_v11 = vmax.f32 %v1240_v39, 0.0  ;;  %v1614_v10 = vmax.f32 %v1060_v23, 0.0 }
 0x159   : > { %v6262_v46 = vpack.c.bf16 %v1624_v38, %v1615_v21 }
 0x15a   : > { %v6264_v48 = vpack.c.bf16 %v1625_v11, %v1616_v26 }
 0x15c   : > { %7632 = vst [vmem:[#allocation16_spill] sm:$0xff] %v6264_v48  ;;  %v973_v52 = vpop.f32.mrf.mxu2 }
 0x15d   : > { %v1622_v53 = vmax.f32 %v973_v52, 0.0 }
 0x15e   : > { %v1154_v43 = vpop.f32.mrf.mxu0 }
 0x15f   : > { %v1062_v59 = vpop.f32.mrf.mxu3  ;;  %v6266_v19 = vpack.c.bf16 %v1622_v53, %v1613_v55  ;;  %v1243_v6 = vpop.f32.mrf.mxu1  ;;  %v1633_v21 = vmax.f32 %v1154_v43, 0.0  ;;  %v4648_v53 = vld [vmem:[%s7614_s2 + $0x18] sm:$0xf]  ;;  %v5257_v43 = vld [vmem:[%s7614_s2 + $0x1c] sm:$0xf] }
 0x160   : > { %v1623_v14 = vmax.f32 %v1062_v59, 0.0  ;;  %v1634_v26 = vmax.f32 %v1243_v6, 0.0 }
 0x161   : > { %4845 = vmatmul.msk.bf16.gmra.mxu2 %vm695_vm1, %v5881_v33  ;;  %4877 = vmatmul.msk.bf16.gmra.mxu0 %vm695_vm1, %v5881_v33 }
 0x162   : > { %v6268_v37 = vpack.c.bf16 %v1623_v14, %v1614_v10  ;;  %4893 = vmatmul.msk.bf16.gmra.mxu1 %vm695_vm1, %v5881_v33  ;;  %v4650_v10 = vld [vmem:[%s7614_s2 + $0x3c] sm:$0xf0] }
 0x163   : > { %v4653_v6 = vor.u32 %v5257_v43, %v4650_v10 }
 0x164   : > { %4861 = vmatmul.msk.bf16.gmra.mxu3 %vm695_vm1, %v5881_v33  ;;  %v976_v12 = vpop.f32.mrf.mxu2  ;;  %v5261_v33 = vld [vmem:[%s7614_s2 + $0x38] sm:$0xf0] }
 0x165   : > { %v4649_v59 = vor.u32 %v5261_v33, %v4648_v53  ;;  %v1631_v9 = vmax.f32 %v976_v12, 0.0  ;;  %1404 = vmatpush.bf16.msra.mxu3 %v4653_v6  ;;  %v4656_v12 = vld [vmem:[%s7614_s2 + $0x20] sm:$0xf] }
 0x166   : > { %v1156_v56 = vpop.f32.mrf.mxu0 }
 0x167   : > { %v1065_v23 = vpop.f32.mrf.mxu3  ;;  %v1642_v38 = vmax.f32 %v1156_v56, 0.0  ;;  %v1245_v39 = vpop.f32.mrf.mxu1  ;;  %1315 = vmatpush.bf16.msra.mxu2 %v4649_v59 }
 0x168   : > { %v1643_v11 = vmax.f32 %v1245_v39, 0.0  ;;  %v1632_v56 = vmax.f32 %v1065_v23, 0.0  ;;  %v5262_v23 = vld [vmem:[%s7614_s2 + $0x40] sm:$0xf0] }
 0x169   : > { %v6281_v52 = vpack.c.bf16 %v1642_v38, %v1633_v21  ;;  %v4657_v53 = vor.u32 %v5262_v23, %v4656_v12 }
 0x16a   : > { %v6283_v55 = vpack.c.bf16 %v1643_v11, %v1634_v26 }
 0x16b   : > { %1493 = vmatpush.bf16.msra.mxu0 %v4657_v53 }
 0x16c   : > { %7633 = vst [vmem:[#allocation17_spill] sm:$0xff] %v6283_v55  ;;  %v978_v14 = vpop.f32.mrf.mxu2 }
 0x16d   : > { %v1640_v21 = vmax.f32 %v978_v14, 0.0 }
 0x16e   : > { %v1159_v39 = vpop.f32.mrf.mxu0 }
 0x16f   : > { %v1067_v26 = vpop.f32.mrf.mxu3  ;;  %v6297_v11 = vpack.c.bf16 %v1640_v21, %v1631_v9  ;;  %v1248_v55 = vpop.f32.mrf.mxu1  ;;  %v1651_v43 = vmax.f32 %v1159_v39, 0.0 }
 0x170   : > { %v1641_v38 = vmax.f32 %v1067_v26, 0.0  ;;  %v1652_v10 = vmax.f32 %v1248_v55, 0.0  ;;  %v5299_v55 = vld [vmem:[%s7615_s3] sm:$0xff] }
 0x171   : > { %4846 = vmatmul.msk.bf16.gmra.mxu2 %vm695_vm1, %v5907_v41  ;;  %4878 = vmatmul.msk.bf16.gmra.mxu0 %vm695_vm1, %v5907_v41 }
 0x172   : > { %v6299_v48 = vpack.c.bf16 %v1641_v38, %v1632_v56  ;;  %4894 = vmatmul.msk.bf16.gmra.mxu1 %vm695_vm1, %v5907_v41 }
 0x173   : > { %2594 = vmatpush.bf16.msra.mxu1 %v5299_v55 }
 0x174   : > { %4862 = vmatmul.msk.bf16.gmra.mxu3 %vm695_vm1, %v5907_v41  ;;  %v981_v33 = vpop.f32.mrf.mxu2 }
 0x175   : > { %v1649_v38 = vmax.f32 %v981_v33, 0.0 }
 0x176   : > { %v1161_v14 = vpop.f32.mrf.mxu0 }
 0x177   : > { %v1070_v59 = vpop.f32.mrf.mxu3  ;;  %v1660_v6 = vmax.f32 %v1161_v14, 0.0  ;;  %v1250_v9 = vpop.f32.mrf.mxu1 }
 0x178   : > { %v1661_v21 = vmax.f32 %v1250_v9, 0.0  ;;  %v1650_v36 = vmax.f32 %v1070_v59, 0.0 }
 0x179   : > { %v6315_v26 = vpack.c.bf16 %v1660_v6, %v1651_v43 }
 0x17a   : > { %v6317_v41 = vpack.c.bf16 %v1661_v21, %v1652_v10 }
 0x17c   : > { %7634 = vst [vmem:[#allocation18_spill] sm:$0xff] %v6317_v41  ;;  %v983_v56 = vpop.f32.mrf.mxu2 }
 0x17d   : > { %v1658_v7 = vmax.f32 %v983_v56, 0.0 }
 0x17e   : > { %v1164_v12 = vpop.f32.mrf.mxu0 }
 0x17f   : > { %v1072_v27 = vpop.f32.mrf.mxu3  ;;  %v6319_v23 = vpack.c.bf16 %v1658_v7, %v1649_v38  ;;  %v1253_v39 = vpop.f32.mrf.mxu1 }
 0x180   : > { %v1659_v60 = vmax.f32 %v1072_v27, 0.0  ;;  %v1670_v7 = vmax.f32 %v1253_v39, 0.0  ;;  %v5314_v39 = vld [vmem:[%s7615_s3 + $0x78] sm:$0xff] }
 0x181   : > { %4847 = vmatmul.msk.bf16.gmra.mxu2 %vm695_vm1, %v5945_v57  ;;  %4879 = vmatmul.msk.bf16.gmra.mxu0 %vm695_vm1, %v5945_v57 }
 0x182   : > { %v6321_v53 = vpack.c.bf16 %v1659_v60, %v1650_v36  ;;  %4895 = vmatmul.msk.bf16.gmra.mxu1 %vm695_vm1, %v5945_v57  ;;  %v1669_v60 = vmax.f32 %v1164_v12, 0.0  ;;  %2676 = vmatpush.bf16.msrb.mxu2 %v5314_v39 }
 0x184   : > { %4863 = vmatmul.msk.bf16.gmra.mxu3 %vm695_vm1, %v5945_v57  ;;  %v986_v27 = vpop.f32.mrf.mxu2 }
 0x185   : > { %v1667_v21 = vmax.f32 %v986_v27, 0.0 }
 0x186   : > { %v1166_v33 = vpop.f32.mrf.mxu0 }
 0x187   : > { %v1075_v36 = vpop.f32.mrf.mxu3  ;;  %v1678_v43 = vmax.f32 %v1166_v33, 0.0  ;;  %v1255_v59 = vpop.f32.mrf.mxu1 }
 0x188   : > { %v1679_v10 = vmax.f32 %v1255_v59, 0.0  ;;  %v1668_v41 = vmax.f32 %v1075_v36, 0.0 }
 0x189   : > { %v6334_v14 = vpack.c.bf16 %v1678_v43, %v1669_v60 }
 0x18a   : > { %v6336_v6 = vpack.c.bf16 %v1679_v10, %v1670_v7 }
 0x18c   : > { %7635 = vst [vmem:[#allocation19_spill] sm:$0xff] %v6336_v6  ;;  %v988_v9 = vpop.f32.mrf.mxu2 }
 0x18d   : > { %v1676_v56 = vmax.f32 %v988_v9, 0.0  ;;  %v5330_v9 = vld [vmem:[%s7615_s3 + $0xf8] sm:$0xff] }
 0x18e   : > { %v1169_v57 = vpop.f32.mrf.mxu0  ;;  %2854 = vmatpush.bf16.msrb.mxu0 %v5330_v9 }
 0x18f   : > { %v1077_v38 = vpop.f32.mrf.mxu3  ;;  %v6338_v55 = vpack.c.bf16 %v1676_v56, %v1667_v21  ;;  %v1258_v12 = vpop.f32.mrf.mxu1  ;;  %v1687_v27 = vmax.f32 %v1169_v57, 0.0 }
 0x190   : > { %v1677_v24 = vmax.f32 %v1077_v38, 0.0  ;;  %v1688_v36 = vmax.f32 %v1258_v12, 0.0 }
 0x191   : > { %4848 = vmatmul.msk.bf16.gmra.mxu2 %vm695_vm1, %v5971_v1  ;;  %4880 = vmatmul.msk.bf16.gmra.mxu0 %vm695_vm1, %v5971_v1 }
 0x192   : > { %v6340_v47 = vpack.c.bf16 %v1677_v24, %v1668_v41  ;;  %4896 = vmatmul.msk.bf16.gmra.mxu1 %vm695_vm1, %v5971_v1  ;;  %v5322_v24 = vld [vmem:[%s7615_s3 + $0xb8] sm:$0xff] }
 0x193   : > { %2765 = vmatpush.bf16.msrb.mxu3 %v5322_v24 }
 0x194   : > { %4864 = vmatmul.msk.bf16.gmra.mxu3 %vm695_vm1, %v5971_v1  ;;  %v991_v41 = vpop.f32.mrf.mxu2 }
 0x195   : > { %v1685_v56 = vmax.f32 %v991_v41, 0.0 }
 0x196   : > { %v1171_v7 = vpop.f32.mrf.mxu0 }
 0x197   : > { %v1080_v60 = vpop.f32.mrf.mxu3  ;;  %v1696_v33 = vmax.f32 %v1171_v7, 0.0  ;;  %v1260_v43 = vpop.f32.mrf.mxu1 }
 0x198   : > { %v1697_v59 = vmax.f32 %v1260_v43, 0.0  ;;  %v1686_v57 = vmax.f32 %v1080_v60, 0.0 }
 0x199   : > { %v6356_v10 = vpack.c.bf16 %v1696_v33, %v1687_v27  ;;  %v5338_v27 = vld [vmem:[%s7615_s3 + $0x138] sm:$0xff] }
 0x19a   : > { %v6358_v1 = vpack.c.bf16 %v1697_v59, %v1688_v36  ;;  %2943 = vmatpush.bf16.msrb.mxu1 %v5338_v27 }
 0x19b   : > { %7636 = vst [vmem:[#allocation20_spill] sm:$0xff] %v6356_v10  ;;  %v5508_v10 = vld [vmem:[%s5757_s16] sm:$0xff] }
 0x19c   : > { %7637 = vst [vmem:[#allocation21_spill] sm:$0xff] %v6358_v1  ;;  %v993_v21 = vpop.f32.mrf.mxu2 }
 0x19d   : > { %v1694_v38 = vmax.f32 %v993_v21, 0.0 }
 0x19e   : > { %v1174_v12 = vpop.f32.mrf.mxu0 }
 0x19f   : > { %v1082_v39 = vpop.f32.mrf.mxu3  ;;  %v6363_v6 = vpack.c.bf16 %v1694_v38, %v1685_v56  ;;  %v1263_v7 = vpop.f32.mrf.mxu1  ;;  %v1705_v60 = vmax.f32 %v1174_v12, 0.0 }
 0x1a0   : > { %v1695_v24 = vmax.f32 %v1082_v39, 0.0  ;;  %v1706_v33 = vmax.f32 %v1263_v7, 0.0 }
 0x1a1   : > { %4849 = vmatmul.msk.bf16.gmra.mxu2 %vm695_vm1, %v5993_v15  ;;  %4881 = vmatmul.msk.bf16.gmra.mxu0 %vm695_vm1, %v5993_v15 }
 0x1a2   : > { %v6365_v43 = vpack.c.bf16 %v1695_v24, %v1686_v57  ;;  %4897 = vmatmul.msk.bf16.gmra.mxu1 %vm695_vm1, %v5993_v15 }
 0x1a4   : > { %4865 = vmatmul.msk.bf16.gmra.mxu3 %vm695_vm1, %v5993_v15  ;;  %v996_v41 = vpop.f32.mrf.mxu2 }
 0x1a5   : > { %v1703_v24 = vmax.f32 %v996_v41, 0.0  ;;  %v5313_v41 = vld [vmem:[%s7615_s3 + $0x70] sm:$0xff] }
 0x1a6   : > { %v1176_v59 = vpop.f32.mrf.mxu0  ;;  %2677 = vmatpush.bf16.msrb.mxu2 %v5313_v41 }
 0x1a7   : > { %v1085_v36 = vpop.f32.mrf.mxu3  ;;  %v1714_v9 = vmax.f32 %v1176_v59, 0.0  ;;  %v1265_v21 = vpop.f32.mrf.mxu1 }
 0x1a8   : > { %v1715_v56 = vmax.f32 %v1265_v21, 0.0  ;;  %v1704_v44 = vmax.f32 %v1085_v36, 0.0 }
 0x1a9   : > { %v6378_v38 = vpack.c.bf16 %v1714_v9, %v1705_v60 }
 0x1aa   : > { %v6380_v39 = vpack.c.bf16 %v1715_v56, %v1706_v33  ;;  %v5329_v56 = vld [vmem:[%s7615_s3 + $0xf0] sm:$0xff] }
 0x1ab   : > { %7638 = vst [vmem:[#allocation22_spill] sm:$0xff] %v6378_v38  ;;  %2855 = vmatpush.bf16.msrb.mxu0 %v5329_v56  ;;  %v5510_v38 = vld [vmem:[%s5757_s16 + $0x10] sm:$0xff] }
 0x1ac   : > { %7639 = vst [vmem:[#allocation23_spill] sm:$0xff] %v6380_v39  ;;  %v998_v57 = vpop.f32.mrf.mxu2 }
 0x1ad   : > { %v1712_v1 = vmax.f32 %v998_v57, 0.0 }
 0x1ae   : > { %v1179_v27 = vpop.f32.mrf.mxu0 }
 0x1af   : > { %v1087_v4 = vpop.f32.mrf.mxu3  ;;  %v6382_v51 = vpack.c.bf16 %v1712_v1, %v1703_v24  ;;  %v1268_v12 = vpop.f32.mrf.mxu1 }
 0x1b0   : > { %v1713_v15 = vmax.f32 %v1087_v4, 0.0  ;;  %v5321_v4 = vld [vmem:[%s7615_s3 + $0xb0] sm:$0xff]  ;;  %v1724_v36 = vmax.f32 %v1268_v12, 0.0 }
 0x1b1   : > { %4898 = vmatmul.msk.bf16.vlgmr.msra.gmra.mxu2 %vm695_vm1, %v5508_v10  ;;  %4930 = vmatmul.msk.bf16.vlgmr.msra.gmra.mxu0 %vm695_vm1, %v5508_v10 }
 0x1b2   : > { %v6384_v7 = vpack.c.bf16 %v1713_v15, %v1704_v44  ;;  %2595 = vmatmul.bf16.vlgmr.msra.gmra.mxu1 %v6015_v30  ;;  %2766 = vmatpush.bf16.msrb.mxu3 %v5321_v4  ;;  %v1723_v44 = vmax.f32 %v1179_v27, 0.0 }
 0x1b4   : > { %4914 = vmatmul.msk.bf16.vlgmr.msra.gmra.mxu3 %vm695_vm1, %v5508_v10  ;;  %v1001_v1 = vpop.f32.mrf.mxu2 }
 0x1b5   : > { %v1721_v24 = vmax.f32 %v1001_v1, 0.0 }
 0x1b6   : > { %v1181_v33 = vpop.f32.mrf.mxu0 }
 0x1b7   : > { %v1090_v60 = vpop.f32.mrf.mxu3  ;;  %v1732_v59 = vmax.f32 %v1181_v33, 0.0  ;;  %v1270_v9 = vpop.f32.mrf.mxu1 }
 0x1b8   : > { %v1733_v10 = vmax.f32 %v1270_v9, 0.0  ;;  %v1722_v41 = vmax.f32 %v1090_v60, 0.0 }
 0x1b9   : > { %v6397_v30 = vpack.c.bf16 %v1732_v59, %v1723_v44  ;;  %v5337_v44 = vld [vmem:[%s7615_s3 + $0x130] sm:$0xff] }
 0x1ba   : > { %v6399_v21 = vpack.c.bf16 %v1733_v10, %v1724_v36  ;;  %v5509_v36 = vld [vmem:[%s5757_s16 + $0x8] sm:$0xff]  ;;  %2944 = vmatpush.bf16.msrb.mxu1 %v5337_v44 }
 0x1bb   : > { %7640 = vst [vmem:[#allocation24_spill] sm:$0xff] %v6397_v30 }
 0x1bc   : > { %7641 = vst [vmem:[#allocation25_spill] sm:$0xff] %v6399_v21  ;;  %v1003_v57 = vpop.f32.mrf.mxu2 }
 0x1bd   : > { %v1730_v15 = vmax.f32 %v1003_v57, 0.0 }
 0x1be   : > { %v1184_v4 = vpop.f32.mrf.mxu0 }
 0x1bf   : > { %v1092_v27 = vpop.f32.mrf.mxu3  ;;  %v6404_v33 = vpack.c.bf16 %v1730_v15, %v1721_v24  ;;  %v1273_v9 = vpop.f32.mrf.mxu1  ;;  %v1741_v60 = vmax.f32 %v1184_v4, 0.0 }
 0x1c0   : > { %v1731_v12 = vmax.f32 %v1092_v27, 0.0  ;;  %v1742_v10 = vmax.f32 %v1273_v9, 0.0 }
 0x1c1   : > { %7642 = vst [vmem:[#allocation26_spill] sm:$0xff] %v6404_v33  ;;  %4899 = vmatmul.msk.bf16.gmra.mxu2 %vm695_vm1, %v5509_v36  ;;  %4931 = vmatmul.msk.bf16.gmra.mxu0 %vm695_vm1, %v5509_v36 }
 0x1c2   : > { %v6406_v39 = vpack.c.bf16 %v1731_v12, %v1722_v41  ;;  %2600 = vmatmul.bf16.gmra.mxu1 %v6046_v2 }
 0x1c4   : > { %7643 = vst [vmem:[#allocation27_spill] sm:$0xff] %v6406_v39  ;;  %4915 = vmatmul.msk.bf16.gmra.mxu3 %vm695_vm1, %v5509_v36  ;;  %v1006_v1 = vpop.f32.mrf.mxu2 }
 0x1c5   : > { %v1739_v21 = vmax.f32 %v1006_v1, 0.0  ;;  %v5312_v1 = vld [vmem:[%s7615_s3 + $0x68] sm:$0xff] }
 0x1c6   : > { %v1186_v56 = vpop.f32.mrf.mxu0  ;;  %2678 = vmatpush.bf16.msrb.mxu2 %v5312_v1 }
 0x1c7   : > { %v1095_v59 = vpop.f32.mrf.mxu3  ;;  %v1750_v57 = vmax.f32 %v1186_v56, 0.0  ;;  %v1275_v24 = vpop.f32.mrf.mxu1 }
 0x1c8   : > { %v1751_v15 = vmax.f32 %v1275_v24, 0.0  ;;  %v1740_v33 = vmax.f32 %v1095_v59, 0.0 }
 0x1c9   : > { %v6416_v27 = vpack.c.bf16 %v1750_v57, %v1741_v60 }
 0x1ca   : > { %v6418_v41 = vpack.c.bf16 %v1751_v15, %v1742_v10  ;;  %v5328_v15 = vld [vmem:[%s7615_s3 + $0xe8] sm:$0xff] }
 0x1cb   : > { %7644 = vst [vmem:[#allocation28_spill] sm:$0xff] %v6416_v27  ;;  %2856 = vmatpush.bf16.msrb.mxu0 %v5328_v15  ;;  %v5512_v27 = vld [vmem:[%s5757_s16 + $0x20] sm:$0xff] }
 0x1cc   : > { %7645 = vst [vmem:[#allocation29_spill] sm:$0xff] %v6418_v41  ;;  %v1008_v12 = vpop.f32.mrf.mxu2 }
 0x1cd   : > { %v1748_v30 = vmax.f32 %v1008_v12, 0.0 }
 0x1ce   : > { %v1189_v44 = vpop.f32.mrf.mxu0 }
 0x1cf   : > { %v1097_v36 = vpop.f32.mrf.mxu3  ;;  %v6420_v39 = vpack.c.bf16 %v1748_v30, %v1739_v21  ;;  %v1278_v4 = vpop.f32.mrf.mxu1  ;;  %v5320_v30 = vld [vmem:[%s7615_s3 + $0xa8] sm:$0xff] }
 0x1d0   : > { %v1749_v2 = vmax.f32 %v1097_v36, 0.0  ;;  %2767 = vmatpush.bf16.msrb.mxu3 %v5320_v30  ;;  %v1760_v59 = vmax.f32 %v1278_v4, 0.0 }
 0x1d1   : > { %4900 = vmatmul.msk.bf16.gmra.mxu2 %vm695_vm1, %v5510_v38  ;;  %4932 = vmatmul.msk.bf16.gmra.mxu0 %vm695_vm1, %v5510_v38 }
 0x1d2   : > { %v6422_v9 = vpack.c.bf16 %v1749_v2, %v1740_v33  ;;  %2605 = vmatmul.bf16.gmra.mxu1 %v6068_v34  ;;  %v1759_v33 = vmax.f32 %v1189_v44, 0.0 }
 0x1d4   : > { %4916 = vmatmul.msk.bf16.gmra.mxu3 %vm695_vm1, %v5510_v38  ;;  %v1011_v21 = vpop.f32.mrf.mxu2 }
 0x1d5   : > { %v1757_v36 = vmax.f32 %v1011_v21, 0.0 }
 0x1d6   : > { %v1191_v10 = vpop.f32.mrf.mxu0 }
 0x1d7   : > { %v1100_v60 = vpop.f32.mrf.mxu3  ;;  %v1768_v56 = vmax.f32 %v1191_v10, 0.0  ;;  %v1280_v57 = vpop.f32.mrf.mxu1 }
 0x1d8   : > { %v1769_v38 = vmax.f32 %v1280_v57, 0.0  ;;  %v1758_v1 = vmax.f32 %v1100_v60, 0.0 }
 0x1d9   : > { %v6435_v34 = vpack.c.bf16 %v1768_v56, %v1759_v33  ;;  %v5336_v33 = vld [vmem:[%s7615_s3 + $0x128] sm:$0xff] }
 0x1da   : > { %v6437_v24 = vpack.c.bf16 %v1769_v38, %v1760_v59  ;;  %v5511_v59 = vld [vmem:[%s5757_s16 + $0x18] sm:$0xff]  ;;  %2945 = vmatpush.bf16.msrb.mxu1 %v5336_v33 }
 0x1db   : > { %7646 = vst [vmem:[#allocation30_spill] sm:$0xff] %v6435_v34 }
 0x1dc   : > { %7647 = vst [vmem:[#allocation31_spill] sm:$0xff] %v6437_v24  ;;  %v1013_v12 = vpop.f32.mrf.mxu2 }
 0x1dd   : > { %v1766_v2 = vmax.f32 %v1013_v12, 0.0 }
 0x1de   : > { %v1194_v30 = vpop.f32.mrf.mxu0 }
 0x1df   : > { %v1102_v44 = vpop.f32.mrf.mxu3  ;;  %v6442_v10 = vpack.c.bf16 %v1766_v2, %v1757_v36  ;;  %v1283_v57 = vpop.f32.mrf.mxu1  ;;  %v1777_v60 = vmax.f32 %v1194_v30, 0.0 }
 0x1e0   : > { %v1767_v4 = vmax.f32 %v1102_v44, 0.0  ;;  %v1778_v38 = vmax.f32 %v1283_v57, 0.0 }
 0x1e1   : > { %7648 = vst [vmem:[#allocation32_spill] sm:$0xff] %v6442_v10  ;;  %4901 = vmatmul.msk.bf16.gmra.mxu2 %vm695_vm1, %v5511_v59  ;;  %4933 = vmatmul.msk.bf16.gmra.mxu0 %vm695_vm1, %v5511_v59 }
 0x1e2   : > { %v6444_v41 = vpack.c.bf16 %v1767_v4, %v1758_v1  ;;  %2610 = vmatmul.bf16.gmra.mxu1 %v6087_v61 }
 0x1e4   : > { %7649 = vst [vmem:[#allocation33_spill] sm:$0xff] %v6444_v41  ;;  %4917 = vmatmul.msk.bf16.gmra.mxu3 %vm695_vm1, %v5511_v59  ;;  %v1016_v21 = vpop.f32.mrf.mxu2 }
 0x1e5   : > { %v1775_v24 = vmax.f32 %v1016_v21, 0.0  ;;  %v5311_v21 = vld [vmem:[%s7615_s3 + $0x60] sm:$0xff] }
 0x1e6   : > { %v1196_v15 = vpop.f32.mrf.mxu0  ;;  %2679 = vmatpush.bf16.msrb.mxu2 %v5311_v21 }
 0x1e7   : > { %v1105_v56 = vpop.f32.mrf.mxu3  ;;  %v1786_v12 = vmax.f32 %v1196_v15, 0.0  ;;  %v1285_v36 = vpop.f32.mrf.mxu1 }
 0x1e8   : > { %v1787_v2 = vmax.f32 %v1285_v36, 0.0  ;;  %v1776_v10 = vmax.f32 %v1105_v56, 0.0 }
 0x1e9   : > { %v6454_v44 = vpack.c.bf16 %v1786_v12, %v1777_v60 }
 0x1ea   : > { %v6456_v1 = vpack.c.bf16 %v1787_v2, %v1778_v38  ;;  %v5327_v2 = vld [vmem:[%s7615_s3 + $0xe0] sm:$0xff] }
 0x1eb   : > { %7650 = vst [vmem:[#allocation34_spill] sm:$0xff] %v6454_v44  ;;  %2857 = vmatpush.bf16.msrb.mxu0 %v5327_v2  ;;  %v5514_v44 = vld [vmem:[%s5757_s16 + $0x30] sm:$0xff] }
 0x1ec   : > { %7651 = vst [vmem:[#allocation35_spill] sm:$0xff] %v6456_v1  ;;  %v1018_v4 = vpop.f32.mrf.mxu2 }
 0x1ed   : > { %v1784_v34 = vmax.f32 %v1018_v4, 0.0 }
 0x1ee   : > { %v1199_v33 = vpop.f32.mrf.mxu0 }
 0x1ef   : > { %v1107_v59 = vpop.f32.mrf.mxu3  ;;  %v6458_v41 = vpack.c.bf16 %v1784_v34, %v1775_v24  ;;  %v1288_v30 = vpop.f32.mrf.mxu1  ;;  %v5319_v34 = vld [vmem:[%s7615_s3 + $0xa0] sm:$0xff] }
 0x1f0   : > { %v1785_v61 = vmax.f32 %v1107_v59, 0.0  ;;  %2768 = vmatpush.bf16.msrb.mxu3 %v5319_v34  ;;  %v1796_v56 = vmax.f32 %v1288_v30, 0.0 }
 0x1f1   : > { %4902 = vmatmul.msk.bf16.gmra.mxu2 %vm695_vm1, %v5512_v27  ;;  %4934 = vmatmul.msk.bf16.gmra.mxu0 %vm695_vm1, %v5512_v27 }
 0x1f2   : > { %v6460_v57 = vpack.c.bf16 %v1785_v61, %v1776_v10  ;;  %2615 = vmatmul.bf16.gmra.mxu1 %v6121_v45  ;;  %v1795_v10 = vmax.f32 %v1199_v33, 0.0 }
 0x1f4   : > { %4918 = vmatmul.msk.bf16.gmra.mxu3 %vm695_vm1, %v5512_v27  ;;  %v1021_v24 = vpop.f32.mrf.mxu2 }
 0x1f5   : > { %v1793_v59 = vmax.f32 %v1021_v24, 0.0 }
 0x1f6   : > { %v1201_v38 = vpop.f32.mrf.mxu0 }
 0x1f7   : > { %v1110_v60 = vpop.f32.mrf.mxu3  ;;  %v1804_v15 = vmax.f32 %v1201_v38, 0.0  ;;  %v1290_v12 = vpop.f32.mrf.mxu1 }
 0x1f8   : > { %v1805_v27 = vmax.f32 %v1290_v12, 0.0  ;;  %v1794_v21 = vmax.f32 %v1110_v60, 0.0 }
 0x1f9   : > { %v6473_v45 = vpack.c.bf16 %v1804_v15, %v1795_v10  ;;  %v5335_v10 = vld [vmem:[%s7615_s3 + $0x120] sm:$0xff] }
 0x1fa   : > { %v6475_v36 = vpack.c.bf16 %v1805_v27, %v1796_v56  ;;  %v5513_v56 = vld [vmem:[%s5757_s16 + $0x28] sm:$0xff]  ;;  %2946 = vmatpush.bf16.msrb.mxu1 %v5335_v10 }
 0x1fb   : > { %7652 = vst [vmem:[#allocation36_spill] sm:$0xff] %v6473_v45 }
 0x1fc   : > { %7653 = vst [vmem:[#allocation37_spill] sm:$0xff] %v6475_v36  ;;  %v1023_v4 = vpop.f32.mrf.mxu2 }
 0x1fd   : > { %v1802_v61 = vmax.f32 %v1023_v4, 0.0 }
 0x1fe   : > { %v1204_v34 = vpop.f32.mrf.mxu0 }
 0x1ff   : > { %v1112_v33 = vpop.f32.mrf.mxu3  ;;  %v6480_v38 = vpack.c.bf16 %v1802_v61, %v1793_v59  ;;  %v1293_v12 = vpop.f32.mrf.mxu1  ;;  %v1813_v60 = vmax.f32 %v1204_v34, 0.0 }
 0x200   : > { %v1803_v30 = vmax.f32 %v1112_v33, 0.0  ;;  %v1814_v27 = vmax.f32 %v1293_v12, 0.0 }
 0x201   : > { %7654 = vst [vmem:[#allocation38_spill] sm:$0xff] %v6480_v38  ;;  %4903 = vmatmul.msk.bf16.gmra.mxu2 %vm695_vm1, %v5513_v56  ;;  %4935 = vmatmul.msk.bf16.gmra.mxu0 %vm695_vm1, %v5513_v56 }
 0x202   : > { %v6482_v1 = vpack.c.bf16 %v1803_v30, %v1794_v21  ;;  %2620 = vmatmul.bf16.gmra.mxu1 %v6140_v13 }
 0x204   : > { %7655 = vst [vmem:[#allocation39_spill] sm:$0xff] %v6482_v1  ;;  %4919 = vmatmul.msk.bf16.gmra.mxu3 %vm695_vm1, %v5513_v56  ;;  %v1026_v24 = vpop.f32.mrf.mxu2 }
 0x205   : > { %v1811_v36 = vmax.f32 %v1026_v24, 0.0  ;;  %v5310_v24 = vld [vmem:[%s7615_s3 + $0x58] sm:$0xff] }
 0x206   : > { %v1206_v2 = vpop.f32.mrf.mxu0  ;;  %2680 = vmatpush.bf16.msrb.mxu2 %v5310_v24 }
 0x207   : > { %v1115_v15 = vpop.f32.mrf.mxu3  ;;  %v1822_v4 = vmax.f32 %v1206_v2, 0.0  ;;  %v1295_v59 = vpop.f32.mrf.mxu1 }
 0x208   : > { %v1823_v61 = vmax.f32 %v1295_v59, 0.0  ;;  %v1812_v38 = vmax.f32 %v1115_v15, 0.0  ;;  %v5326_v59 = vld [vmem:[%s7615_s3 + $0xd8] sm:$0xff] }
 0x209   : > { %v6492_v33 = vpack.c.bf16 %v1822_v4, %v1813_v60  ;;  %2858 = vmatpush.bf16.msrb.mxu0 %v5326_v59 }
 0x20a   : > { %v6494_v21 = vpack.c.bf16 %v1823_v61, %v1814_v27 }
 0x20b   : > { %7656 = vst [vmem:[#allocation40_spill] sm:$0xff] %v6492_v33 }
 0x20c   : > { %7657 = vst [vmem:[#allocation41_spill] sm:$0xff] %v6494_v21  ;;  %v1028_v30 = vpop.f32.mrf.mxu2 }
 0x20d   : > { %v1820_v45 = vmax.f32 %v1028_v30, 0.0 }
 0x20e   : > { %v1209_v10 = vpop.f32.mrf.mxu0 }
 0x20f   : > { %v1117_v56 = vpop.f32.mrf.mxu3  ;;  %v6496_v1 = vpack.c.bf16 %v1820_v45, %v1811_v36  ;;  %v1298_v34 = vpop.f32.mrf.mxu1  ;;  %v5318_v45 = vld [vmem:[%s7615_s3 + $0x98] sm:$0xff] }
 0x210   : > { %v1821_v13 = vmax.f32 %v1117_v56, 0.0  ;;  %2769 = vmatpush.bf16.msrb.mxu3 %v5318_v45  ;;  %v1832_v15 = vmax.f32 %v1298_v34, 0.0 }
 0x211   : > { %7658 = vst [vmem:[#allocation42_spill] sm:$0xff] %v6496_v1  ;;  %4904 = vmatmul.msk.bf16.gmra.mxu2 %vm695_vm1, %v5514_v44  ;;  %4936 = vmatmul.msk.bf16.gmra.mxu0 %vm695_vm1, %v5514_v44 }
 0x212   : > { %v6498_v12 = vpack.c.bf16 %v1821_v13, %v1812_v38  ;;  %2625 = vmatmul.bf16.gmra.mxu1 %v6168_v63  ;;  %v1831_v38 = vmax.f32 %v1209_v10, 0.0 }
 0x214   : > { %4920 = vmatmul.msk.bf16.gmra.mxu3 %vm695_vm1, %v5514_v44  ;;  %v1031_v36 = vpop.f32.mrf.mxu2 }
 0x215   : > { %v1829_v56 = vmax.f32 %v1031_v36, 0.0 }
 0x216   : > { %v1211_v27 = vpop.f32.mrf.mxu0 }
 0x217   : > { %v1120_v60 = vpop.f32.mrf.mxu3  ;;  %v1840_v2 = vmax.f32 %v1211_v27, 0.0  ;;  %v1300_v4 = vpop.f32.mrf.mxu1 }
 0x218   : > { %v1841_v44 = vmax.f32 %v1300_v4, 0.0  ;;  %v1830_v24 = vmax.f32 %v1120_v60, 0.0 }
 0x219   : > { %v6511_v63 = vpack.c.bf16 %v1840_v2, %v1831_v38  ;;  %v5334_v38 = vld [vmem:[%s7615_s3 + $0x118] sm:$0xff] }
 0x21a   : > { %v6516_v61 = vpack.c.bf16 %v1841_v44, %v1832_v15  ;;  %v5515_v2 = vld [vmem:[%s5757_s16 + $0x38] sm:$0xff]  ;;  %2947 = vmatpush.bf16.msrb.mxu1 %v5334_v38 }
 0x21b   : > { %7659 = vst [vmem:[#allocation43_spill] sm:$0xff] %v6511_v63 }
 0x21c   : > { %7660 = vst [vmem:[#allocation44_spill] sm:$0xff] %v6516_v61  ;;  %v1033_v30 = vpop.f32.mrf.mxu2 }
 0x21d   : > { %v1838_v13 = vmax.f32 %v1033_v30, 0.0 }
 0x21e   : > { %v1214_v45 = vpop.f32.mrf.mxu0 }
 0x21f   : > { %v1122_v10 = vpop.f32.mrf.mxu3  ;;  %v6518_v27 = vpack.c.bf16 %v1838_v13, %v1829_v56  ;;  %v1303_v4 = vpop.f32.mrf.mxu1  ;;  %v1849_v60 = vmax.f32 %v1214_v45, 0.0 }
 0x220   : > { %v1839_v34 = vmax.f32 %v1122_v10, 0.0  ;;  %v1850_v44 = vmax.f32 %v1303_v4, 0.0 }
 0x221   : > { %7661 = vst [vmem:[#allocation45_spill] sm:$0xff] %v6518_v27  ;;  %4905 = vmatmul.msk.bf16.gmra.mxu2 %vm695_vm1, %v5515_v2  ;;  %4937 = vmatmul.msk.bf16.gmra.mxu0 %vm695_vm1, %v5515_v2 }
 0x222   : > { %v6520_v21 = vpack.c.bf16 %v1839_v34, %v1830_v24  ;;  %2630 = vmatmul.bf16.gmra.mxu1 %v6193_v0 }
 0x224   : > { %7662 = vst [vmem:[#allocation46_spill] sm:$0xff] %v6520_v21  ;;  %4921 = vmatmul.msk.bf16.gmra.mxu3 %vm695_vm1, %v5515_v2  ;;  %v1036_v36 = vpop.f32.mrf.mxu2 }
 0x225   : > { %v1847_v61 = vmax.f32 %v1036_v36, 0.0  ;;  %v5309_v36 = vld [vmem:[%s7615_s3 + $0x50] sm:$0xff] }
 0x226   : > { %v1216_v59 = vpop.f32.mrf.mxu0  ;;  %2681 = vmatpush.bf16.msrb.mxu2 %v5309_v36 }
 0x227   : > { %v1125_v15 = vpop.f32.mrf.mxu3  ;;  %v1858_v30 = vmax.f32 %v1216_v59, 0.0  ;;  %v1305_v56 = vpop.f32.mrf.mxu1  ;;  %v5516_v59 = vld [vmem:[%s5757_s16 + $0x40] sm:$0xff] }
 0x228   : > { %v1859_v13 = vmax.f32 %v1305_v56, 0.0  ;;  %v1848_v27 = vmax.f32 %v1125_v15, 0.0 }
 0x229   : > { %v6530_v10 = vpack.c.bf16 %v1858_v30, %v1849_v60 }
 0x22a   : > { %v6532_v24 = vpack.c.bf16 %v1859_v13, %v1850_v44 }
 0x22b   : > { %7663 = vst [vmem:[#allocation47_spill] sm:$0xff] %v6530_v10 }
 0x22c   : > { %7664 = vst [vmem:[#allocation48_spill] sm:$0xff] %v6532_v24  ;;  %v1038_v34 = vpop.f32.mrf.mxu2 }
 0x22d   : > { %v1856_v63 = vmax.f32 %v1038_v34, 0.0 }
 0x22e   : > { %v1495_v38 = vpop.f32.mrf.mxu0 }
 0x22f   : > { %v1127_v2 = vpop.f32.mrf.mxu3  ;;  %v6534_v21 = vpack.c.bf16 %v1856_v63, %v1847_v61  ;;  %v6536_v45 = vpop.f32.mrf.mxu1  ;;  %v5317_v63 = vld [vmem:[%s7615_s3 + $0x90] sm:$0xff] }
 0x230   : > { %v1857_v0 = vmax.f32 %v1127_v2, 0.0  ;;  %2770 = vmatpush.bf16.msrb.mxu3 %v5317_v63 }
 0x231   : > { %7665 = vst [vmem:[#allocation49_spill] sm:$0xff] %v6534_v21  ;;  %4906 = vmatmul.msk.bf16.gmra.mxu2 %vm695_vm1, %v5516_v59  ;;  %4938 = vmatmul.msk.bf16.gmra.mxu0 %vm695_vm1, %v5516_v59 }
 0x232   : > { %v6538_v4 = vpack.c.bf16 %v1857_v0, %v1848_v27  ;;  %2635 = vmatmul.bf16.gmra.mxu1 %v6019_v49  ;;  %v1583_v27 = vmax.f32 %v1495_v38, 0.0  ;;  %v5325_v49 = vld [vmem:[%s7615_s3 + $0xd0] sm:$0xff] }
 0x233   : > { %2859 = vmatpush.bf16.msrb.mxu0 %v5325_v49 }
 0x234   : > { %7666 = vst [vmem:[#allocation50_spill] sm:$0xff] %v6538_v4  ;;  %4922 = vmatmul.msk.bf16.gmra.mxu3 %vm695_vm1, %v5516_v59  ;;  %v1317_v61 = vpop.f32.mrf.mxu2 }
 0x235   : > { %v1581_v34 = vmax.f32 %v1317_v61, 0.0 }
 0x236   : > { %v1497_v15 = vpop.f32.mrf.mxu0 }
 0x237   : > { %v1406_v60 = vpop.f32.mrf.mxu3  ;;  %v1592_v44 = vmax.f32 %v1497_v15, 0.0  ;;  %v6551_v30 = vpop.f32.mrf.mxu1 }
 0x238   : > { %v1582_v59 = vmax.f32 %v1406_v60, 0.0 }
 0x239   : > { %v6553_v56 = vpack.c.bf16 %v1592_v44, %v1583_v27  ;;  %v5333_v27 = vld [vmem:[%s7615_s3 + $0x110] sm:$0xff]  ;;  %v5517_v44 = vld [vmem:[%s5757_s16 + $0x48] sm:$0xff] }
 0x23a   : > { %2948 = vmatpush.bf16.msrb.mxu1 %v5333_v27  ;;  %v5518_v27 = vld [vmem:[%s5757_s16 + $0x50] sm:$0xff] }
 0x23b   : > { %7667 = vst [vmem:[#allocation51_spill] sm:$0xff] %v6553_v56 }
 0x23c   : > { %v1319_v13 = vpop.f32.mrf.mxu2 }
 0x23d   : > { %v1590_v2 = vmax.f32 %v1319_v13, 0.0 }
 0x23e   : > { %v1500_v38 = vpop.f32.mrf.mxu0 }
 0x23f   : > { %v1408_v0 = vpop.f32.mrf.mxu3  ;;  %v6558_v63 = vpack.c.bf16 %v1590_v2, %v1581_v34  ;;  %v6560_v15 = vpop.f32.mrf.mxu1  ;;  %v1601_v60 = vmax.f32 %v1500_v38, 0.0 }
 0x240   : > { %v1591_v36 = vmax.f32 %v1408_v0, 0.0 }
 0x241   : > { %7668 = vst [vmem:[#allocation52_spill] sm:$0xff] %v6558_v63  ;;  %4907 = vmatmul.msk.bf16.gmra.mxu2 %vm695_vm1, %v5517_v44  ;;  %4939 = vmatmul.msk.bf16.gmra.mxu0 %vm695_vm1, %v5517_v44 }
 0x242   : > { %v6562_v24 = vpack.c.bf16 %v1591_v36, %v1582_v59  ;;  %2640 = vmatmul.bf16.gmra.mxu1 %v6056_v20 }
 0x244   : > { %7669 = vst [vmem:[#allocation53_spill] sm:$0xff] %v6562_v24  ;;  %4923 = vmatmul.msk.bf16.gmra.mxu3 %vm695_vm1, %v5517_v44  ;;  %v1322_v61 = vpop.f32.mrf.mxu2 }
 0x245   : > { %v1599_v36 = vmax.f32 %v1322_v61, 0.0 }
 0x246   : > { %v1502_v13 = vpop.f32.mrf.mxu0 }
 0x247   : > { %v1411_v49 = vpop.f32.mrf.mxu3  ;;  %v1610_v34 = vmax.f32 %v1502_v13, 0.0  ;;  %v6572_v2 = vpop.f32.mrf.mxu1 }
 0x248   : > { %v1600_v24 = vmax.f32 %v1411_v49, 0.0 }
 0x249   : > { %v6574_v0 = vpack.c.bf16 %v1610_v34, %v1601_v60 }
 0x24b   : > { %7670 = vst [vmem:[#allocation54_spill] sm:$0xff] %v6574_v0 }
 0x24c   : > { %v1324_v59 = vpop.f32.mrf.mxu2 }
 0x24d   : > { %v1608_v56 = vmax.f32 %v1324_v59, 0.0 }
 0x24e   : > { %v1505_v44 = vpop.f32.mrf.mxu0 }
 0x24f   : > { %v1413_v63 = vpop.f32.mrf.mxu3  ;;  %v6576_v21 = vpack.c.bf16 %v1608_v56, %v1599_v36  ;;  %v6578_v20 = vpop.f32.mrf.mxu1  ;;  %v5316_v56 = vld [vmem:[%s7615_s3 + $0x88] sm:$0xff] }
 0x250   : > { %v1609_v10 = vmax.f32 %v1413_v63, 0.0  ;;  %v5308_v63 = vld [vmem:[%s7615_s3 + $0x48] sm:$0xff]  ;;  %2771 = vmatpush.bf16.msrb.mxu3 %v5316_v56 }
 0x251   : > { %7671 = vst [vmem:[#allocation55_spill] sm:$0xff] %v6576_v21  ;;  %4908 = vmatmul.msk.bf16.gmra.mxu2 %vm695_vm1, %v5518_v27  ;;  %4940 = vmatmul.msk.bf16.gmra.mxu0 %vm695_vm1, %v5518_v27 }
 0x252   : > { %v6580_v38 = vpack.c.bf16 %v1609_v10, %v1600_v24  ;;  %2645 = vmatmul.bf16.gmra.mxu1 %v6072_v18  ;;  %2682 = vmatpush.bf16.msrb.mxu2 %v5308_v63  ;;  %v1619_v10 = vmax.f32 %v1505_v44, 0.0  ;;  %v5324_v18 = vld [vmem:[%s7615_s3 + $0xc8] sm:$0xff] }
 0x253   : > { %2860 = vmatpush.bf16.msrb.mxu0 %v5324_v18 }
 0x254   : > { %7672 = vst [vmem:[#allocation56_spill] sm:$0xff] %v6580_v38  ;;  %4924 = vmatmul.msk.bf16.gmra.mxu3 %vm695_vm1, %v5518_v27  ;;  %v1327_v61 = vpop.f32.mrf.mxu2 }
 0x255   : > { %v1617_v36 = vmax.f32 %v1327_v61, 0.0 }
 0x256   : > { %v1507_v60 = vpop.f32.mrf.mxu0 }
 0x257   : > { %v1416_v24 = vpop.f32.mrf.mxu3  ;;  %v1628_v49 = vmax.f32 %v1507_v60, 0.0  ;;  %v6593_v13 = vpop.f32.mrf.mxu1 }
 0x258   : > { %v1618_v63 = vmax.f32 %v1416_v24, 0.0 }
 0x259   : > { %v6595_v34 = vpack.c.bf16 %v1628_v49, %v1619_v10  ;;  %v5332_v10 = vld [vmem:[%s7615_s3 + $0x108] sm:$0xff]  ;;  %v5519_v49 = vld [vmem:[%s5757_s16 + $0x58] sm:$0xff] }
 0x25a   : > { %2949 = vmatpush.bf16.msrb.mxu1 %v5332_v10  ;;  %v5520_v10 = vld [vmem:[%s5757_s16 + $0x60] sm:$0xff] }
 0x25b   : > { %7673 = vst [vmem:[#allocation57_spill] sm:$0xff] %v6595_v34 }
 0x25c   : > { %v1329_v59 = vpop.f32.mrf.mxu2 }
 0x25d   : > { %v1626_v27 = vmax.f32 %v1329_v59, 0.0 }
 0x25e   : > { %v1510_v44 = vpop.f32.mrf.mxu0 }
 0x25f   : > { %v1418_v0 = vpop.f32.mrf.mxu3  ;;  %v6600_v21 = vpack.c.bf16 %v1626_v27, %v1617_v36  ;;  %v6602_v60 = vpop.f32.mrf.mxu1  ;;  %v1637_v61 = vmax.f32 %v1510_v44, 0.0 }
 0x260   : > { %v1627_v56 = vmax.f32 %v1418_v0, 0.0 }
 0x261   : > { %7674 = vst [vmem:[#allocation58_spill] sm:$0xff] %v6600_v21  ;;  %4909 = vmatmul.msk.bf16.gmra.mxu2 %vm695_vm1, %v5519_v49  ;;  %4941 = vmatmul.msk.bf16.gmra.mxu0 %vm695_vm1, %v5519_v49 }
 0x262   : > { %v6604_v38 = vpack.c.bf16 %v1627_v56, %v1618_v63  ;;  %2650 = vmatmul.bf16.gmra.mxu1 %v6103_v22 }
 0x264   : > { %7675 = vst [vmem:[#allocation59_spill] sm:$0xff] %v6604_v38  ;;  %4925 = vmatmul.msk.bf16.gmra.mxu3 %vm695_vm1, %v5519_v49  ;;  %v1332_v0 = vpop.f32.mrf.mxu2 }
 0x265   : > { %v1635_v56 = vmax.f32 %v1332_v0, 0.0 }
 0x266   : > { %v1512_v18 = vpop.f32.mrf.mxu0 }
 0x267   : > { %v1421_v24 = vpop.f32.mrf.mxu3  ;;  %v1646_v59 = vmax.f32 %v1512_v18, 0.0  ;;  %v6614_v36 = vpop.f32.mrf.mxu1 }
 0x268   : > { %v1636_v38 = vmax.f32 %v1421_v24, 0.0 }
 0x269   : > { %v6616_v27 = vpack.c.bf16 %v1646_v59, %v1637_v61 }
 0x26b   : > { %7676 = vst [vmem:[#allocation60_spill] sm:$0xff] %v6616_v27 }
 0x26c   : > { %v1334_v63 = vpop.f32.mrf.mxu2 }
 0x26d   : > { %v1644_v34 = vmax.f32 %v1334_v63, 0.0 }
 0x26e   : > { %v1515_v49 = vpop.f32.mrf.mxu0 }
 0x26f   : > { %v1423_v21 = vpop.f32.mrf.mxu3  ;;  %v6618_v33 = vpack.c.bf16 %v1644_v34, %v1635_v56  ;;  %v6620_v22 = vpop.f32.mrf.mxu1  ;;  %v5315_v34 = vld [vmem:[%s7615_s3 + $0x80] sm:$0xff] }
 0x270   : > { %v1645_v4 = vmax.f32 %v1423_v21, 0.0  ;;  %v5307_v21 = vld [vmem:[%s7615_s3 + $0x40] sm:$0xff]  ;;  %2772 = vmatpush.bf16.msrb.mxu3 %v5315_v34 }
 0x271   : > { %7677 = vst [vmem:[#allocation61_spill] sm:$0xff] %v6618_v33  ;;  %4910 = vmatmul.msk.bf16.gmra.mxu2 %vm695_vm1, %v5520_v10  ;;  %4942 = vmatmul.msk.bf16.gmra.mxu0 %vm695_vm1, %v5520_v10 }
 0x272   : > { %v6622_v44 = vpack.c.bf16 %v1645_v4, %v1636_v38  ;;  %2655 = vmatmul.bf16.gmra.mxu1 %v6125_v58  ;;  %2683 = vmatpush.bf16.msrb.mxu2 %v5307_v21  ;;  %v1655_v4 = vmax.f32 %v1515_v49, 0.0  ;;  %v5323_v58 = vld [vmem:[%s7615_s3 + $0xc0] sm:$0xff] }
 0x273   : > { %2861 = vmatpush.bf16.msrb.mxu0 %v5323_v58 }
 0x274   : > { %7678 = vst [vmem:[#allocation62_spill] sm:$0xff] %v6622_v44  ;;  %4926 = vmatmul.msk.bf16.gmra.mxu3 %vm695_vm1, %v5520_v10  ;;  %v1337_v0 = vpop.f32.mrf.mxu2 }
 0x275   : > { %v1653_v56 = vmax.f32 %v1337_v0, 0.0 }
 0x276   : > { %v1517_v61 = vpop.f32.mrf.mxu0 }
 0x277   : > { %v1426_v38 = vpop.f32.mrf.mxu3  ;;  %v1664_v24 = vmax.f32 %v1517_v61, 0.0  ;;  %v6635_v18 = vpop.f32.mrf.mxu1 }
 0x278   : > { %v1654_v21 = vmax.f32 %v1426_v38, 0.0 }
 0x279   : > { %v6637_v59 = vpack.c.bf16 %v1664_v24, %v1655_v4  ;;  %v5331_v4 = vld [vmem:[%s7615_s3 + $0x100] sm:$0xff]  ;;  %v5521_v24 = vld [vmem:[%s5757_s16 + $0x68] sm:$0xff] }
 0x27a   : > { %2950 = vmatpush.bf16.msrb.mxu1 %v5331_v4  ;;  %v5522_v4 = vld [vmem:[%s5757_s16 + $0x70] sm:$0xff] }
 0x27b   : > { %7679 = vst [vmem:[#allocation63_spill] sm:$0xff] %v6637_v59 }
 0x27c   : > { %v1339_v63 = vpop.f32.mrf.mxu2 }
 0x27d   : > { %v1662_v10 = vmax.f32 %v1339_v63, 0.0 }
 0x27e   : > { %v1520_v49 = vpop.f32.mrf.mxu0 }
 0x27f   : > { %v1428_v27 = vpop.f32.mrf.mxu3  ;;  %v6642_v33 = vpack.c.bf16 %v1662_v10, %v1653_v56  ;;  %v6644_v61 = vpop.f32.mrf.mxu1  ;;  %v1673_v0 = vmax.f32 %v1520_v49, 0.0 }
 0x280   : > { %v1663_v34 = vmax.f32 %v1428_v27, 0.0  ;;  %7681 = vst [vmem:[#allocation65_spill] sm:$0xff] %v6644_v61 }
 0x281   : > { %7680 = vst [vmem:[#allocation64_spill] sm:$0xff] %v6642_v33  ;;  %4911 = vmatmul.msk.bf16.gmra.mxu2 %vm695_vm1, %v5521_v24  ;;  %4943 = vmatmul.msk.bf16.gmra.mxu0 %vm695_vm1, %v5521_v24 }
 0x282   : > { %v6646_v44 = vpack.c.bf16 %v1663_v34, %v1654_v21  ;;  %2660 = vmatmul.bf16.gmra.mxu1 %v6144_v28 }
 0x284   : > { %7682 = vst [vmem:[#allocation66_spill] sm:$0xff] %v6646_v44  ;;  %4927 = vmatmul.msk.bf16.gmra.mxu3 %vm695_vm1, %v5521_v24  ;;  %v1342_v27 = vpop.f32.mrf.mxu2 }
 0x285   : > { %v1671_v34 = vmax.f32 %v1342_v27, 0.0 }
 0x286   : > { %v1522_v58 = vpop.f32.mrf.mxu0 }
 0x287   : > { %v1431_v38 = vpop.f32.mrf.mxu3  ;;  %v1682_v63 = vmax.f32 %v1522_v58, 0.0  ;;  %v6656_v56 = vpop.f32.mrf.mxu1 }
 0x288   : > { %v1672_v44 = vmax.f32 %v1431_v38, 0.0 }
 0x289   : > { %v6658_v10 = vpack.c.bf16 %v1682_v63, %v1673_v0 }
 0x28b   : > { %7683 = vst [vmem:[#allocation67_spill] sm:$0xff] %v6658_v10 }
 0x28c   : > { %v1344_v21 = vpop.f32.mrf.mxu2 }
 0x28d   : > { %v1680_v59 = vmax.f32 %v1344_v21, 0.0 }
 0x28e   : > { %v1525_v24 = vpop.f32.mrf.mxu0 }
 0x28f   : > { %v1433_v33 = vpop.f32.mrf.mxu3  ;;  %v6660_v1 = vpack.c.bf16 %v1680_v59, %v1671_v34  ;;  %v6662_v28 = vpop.f32.mrf.mxu1  ;;  %v5354_v59 = vld [vmem:[%s7615_s3 + $0x1b8] sm:$0xff] }
 0x290   : > { %v1681_v61 = vmax.f32 %v1433_v33, 0.0  ;;  %v5346_v33 = vld [vmem:[%s7615_s3 + $0x178] sm:$0xff]  ;;  %3121 = vmatpush.bf16.msra.mxu3 %v5354_v59 }
 0x291   : > { %7684 = vst [vmem:[#allocation68_spill] sm:$0xff] %v6660_v1  ;;  %4912 = vmatmul.msk.bf16.gmra.mxu2 %vm695_vm1, %v5522_v4  ;;  %4944 = vmatmul.msk.bf16.gmra.mxu0 %vm695_vm1, %v5522_v4 }
 0x292   : > { %v6664_v49 = vpack.c.bf16 %v1681_v61, %v1672_v44  ;;  %2665 = vmatmul.bf16.gmra.mxu1 %v6178_v25  ;;  %3032 = vmatpush.bf16.msra.mxu2 %v5346_v33  ;;  %v1691_v44 = vmax.f32 %v1525_v24, 0.0  ;;  %v5362_v25 = vld [vmem:[%s7615_s3 + $0x1f8] sm:$0xff] }
 0x293   : > { %3210 = vmatpush.bf16.msra.mxu0 %v5362_v25 }
 0x294   : > { %7685 = vst [vmem:[#allocation69_spill] sm:$0xff] %v6664_v49  ;;  %4928 = vmatmul.msk.bf16.gmra.mxu3 %vm695_vm1, %v5522_v4  ;;  %v1347_v27 = vpop.f32.mrf.mxu2 }
 0x295   : > { %v1689_v34 = vmax.f32 %v1347_v27, 0.0 }
 0x296   : > { %v1527_v0 = vpop.f32.mrf.mxu0 }
 0x297   : > { %v1436_v61 = vpop.f32.mrf.mxu3  ;;  %v1700_v38 = vmax.f32 %v1527_v0, 0.0  ;;  %v6677_v58 = vpop.f32.mrf.mxu1 }
 0x298   : > { %7686 = vst [vmem:[#allocation70_spill] sm:$0xff] %v6677_v58  ;;  %v1690_v33 = vmax.f32 %v1436_v61, 0.0 }
 0x299   : > { %v6679_v63 = vpack.c.bf16 %v1700_v38, %v1691_v44  ;;  %v5370_v44 = vld [vmem:[%s7615_s3 + $0x238] sm:$0xff] }
 0x29a   : > { %v5523_v38 = vld [vmem:[%s5757_s16 + $0x78] sm:$0xff]  ;;  %3299 = vmatpush.bf16.msra.mxu1 %v5370_v44  ;;  %s5546_s16 = scalar_lea.hbm %s7618_s6, 4 }
 0x29b   : > { %7687 = vst [vmem:[#allocation71_spill] sm:$0xff] %v6679_v63  ;;  %p5548_p1 = scmp.lt.s32.totalorder %s5546_s16, %s5542_s26 }
 0x29c   : > { %v1349_v21 = vpop.f32.mrf.mxu2 }
 0x29d   : > { %v1698_v4 = vmax.f32 %v1349_v21, 0.0  ;;  %p5549_p2 = por %p5548_p1, %p5547_p0 }
 0x29e   : > { %v1530_v24 = vpop.f32.mrf.mxu0 }
 0x29f   : > { %v1438_v10 = vpop.f32.mrf.mxu3  ;;  %v6684_v1 = vpack.c.bf16 %v1698_v4, %v1689_v34  ;;  %v6686_v0 = vpop.f32.mrf.mxu1  ;;  %v1709_v27 = vmax.f32 %v1530_v24, 0.0  ;;  %v5345_v24 = vld [vmem:[%s7615_s3 + $0x170] sm:$0xff]  ;;  %p5550_p3 = pnand %p5549_p2, %p5545_p13 }
 0x2a0   : > { %v1699_v59 = vmax.f32 %v1438_v10, 0.0  ;;  %7689 = vst [vmem:[#allocation73_spill] sm:$0xff] %v6686_v0  ;;  %3033 = vmatpush.bf16.msra.mxu2 %v5345_v24 }
 0x2a1   : > { %7688 = vst [vmem:[#allocation72_spill] sm:$0xff] %v6684_v1  ;;  %4913 = vmatmul.msk.bf16.gmra.mxu2 %vm695_vm1, %v5523_v38  ;;  %4945 = vmatmul.msk.bf16.gmra.mxu0 %vm695_vm1, %v5523_v38 }
 0x2a2   : > { %v6688_v49 = vpack.c.bf16 %v1699_v59, %v1690_v33  ;;  %2670 = vmatmul.bf16.gmra.mxu1 %v6197_v5 }
 0x2a4   : > { %7690 = vst [vmem:[#allocation74_spill] sm:$0xff] %v6688_v49  ;;  %4929 = vmatmul.msk.bf16.gmra.mxu3 %vm695_vm1, %v5523_v38  ;;  %v1352_v10 = vpop.f32.mrf.mxu2  ;;  %vm4417_vm1 = vcmask 982912  }
 0x2a5   : > { %v1707_v59 = vmax.f32 %v1352_v10, 0.0 }
 0x2a6   : > { %v1532_v25 = vpop.f32.mrf.mxu0 }
 0x2a7   : > { %v1441_v61 = vpop.f32.mrf.mxu3  ;;  %v1718_v21 = vmax.f32 %v1532_v25, 0.0  ;;  %v6698_v34 = vpop.f32.mrf.mxu1 }
 0x2a8   : > { %v1708_v49 = vmax.f32 %v1441_v61, 0.0 }
 0x2a9   : > { %v6700_v4 = vpack.c.bf16 %v1718_v21, %v1709_v27 }
 0x2ac   : > { %v1354_v33 = vpop.f32.mrf.mxu2 }
 0x2ad   : > { %v1716_v63 = vmax.f32 %v1354_v33, 0.0 }
 0x2ae   : > { %v1535_v58 = vpop.f32.mrf.mxu0 }
 0x2af   : > { %v1443_v1 = vpop.f32.mrf.mxu3  ;;  %v6702_v38 = vpack.c.bf16 %v1716_v63, %v1707_v59  ;;  %v6704_v5 = vpop.f32.mrf.mxu1 }
 0x2b0   : > { %v1717_v0 = vmax.f32 %v1443_v1, 0.0  ;;  %v5353_v1 = vld [vmem:[%s7615_s3 + $0x1b0] sm:$0xff] }
 0x2b1   : > { %2684 = vmatmul.bf16.vlgmr.msrb.gmra.mxu2 %v6017_v31  ;;  %2862 = vmatmul.bf16.vlgmr.msrb.gmra.mxu0 %v6215_v54 }
 0x2b2   : > { %v6706_v44 = vpack.c.bf16 %v1717_v0, %v1708_v49  ;;  %2951 = vmatmul.bf16.vlgmr.msrb.gmra.mxu1 %v6209_v29  ;;  %3122 = vmatpush.bf16.msra.mxu3 %v5353_v1  ;;  %v1727_v49 = vmax.f32 %v1535_v58, 0.0  ;;  %v5361_v29 = vld [vmem:[%s7615_s3 + $0x1f0] sm:$0xff] }
 0x2b3   : > { %3211 = vmatpush.bf16.msra.mxu0 %v5361_v29 }
 0x2b4   : > { %2773 = vmatmul.bf16.vlgmr.msrb.gmra.mxu3 %v6213_v50  ;;  %v1357_v63 = vpop.f32.mrf.mxu2 }
 0x2b5   : > { %v1725_v61 = vmax.f32 %v1357_v63, 0.0 }
 0x2b6   : > { %v1537_v31 = vpop.f32.mrf.mxu0 }
 0x2b7   : > { %v1446_v0 = vpop.f32.mrf.mxu3  ;;  %v1736_v10 = vmax.f32 %v1537_v31, 0.0  ;;  %v6718_v54 = vpop.f32.mrf.mxu1 }
 0x2b8   : > { %v1726_v33 = vmax.f32 %v1446_v0, 0.0 }
 0x2b9   : > { %v6720_v50 = vpack.c.bf16 %v1736_v10, %v1727_v49  ;;  %v5369_v49 = vld [vmem:[%s7615_s3 + $0x230] sm:$0xff] }
 0x2ba   : > { %3300 = vmatpush.bf16.msra.mxu1 %v5369_v49 }
 0x2bb   : > { %7691 = vst [vmem:[#allocation75_spill] sm:$0xff] %v6720_v50 }
 0x2bc   : > { %v1359_v27 = vpop.f32.mrf.mxu2 }
 0x2bd   : > { %v1734_v25 = vmax.f32 %v1359_v27, 0.0 }
 0x2be   : > { %v1540_v24 = vpop.f32.mrf.mxu0 }
 0x2bf   : > { %v1448_v21 = vpop.f32.mrf.mxu3  ;;  %v6725_v58 = vpack.c.bf16 %v1734_v25, %v1725_v61  ;;  %v6727_v1 = vpop.f32.mrf.mxu1  ;;  %v1745_v0 = vmax.f32 %v1540_v24, 0.0  ;;  %v5344_v24 = vld [vmem:[%s7615_s3 + $0x168] sm:$0xff] }
 0x2c0   : > { %v1735_v59 = vmax.f32 %v1448_v21, 0.0  ;;  %3034 = vmatpush.bf16.msra.mxu2 %v5344_v24 }
 0x2c1   : > { %7692 = vst [vmem:[#allocation76_spill] sm:$0xff] %v6725_v58  ;;  %2689 = vmatmul.bf16.gmra.mxu2 %v6048_v3  ;;  %2867 = vmatmul.bf16.gmra.mxu0 %v6252_v17 }
 0x2c2   : > { %v6729_v31 = vpack.c.bf16 %v1735_v59, %v1726_v33  ;;  %2956 = vmatmul.bf16.gmra.mxu1 %v6240_v42 }
 0x2c4   : > { %2778 = vmatmul.bf16.gmra.mxu3 %v6250_v8  ;;  %v1362_v63 = vpop.f32.mrf.mxu2 }
 0x2c5   : > { %v1743_v33 = vmax.f32 %v1362_v63, 0.0  ;;  %v5352_v63 = vld [vmem:[%s7615_s3 + $0x1a8] sm:$0xff] }
 0x2c6   : > { %v1542_v29 = vpop.f32.mrf.mxu0  ;;  %3123 = vmatpush.bf16.msra.mxu3 %v5352_v63 }
 0x2c7   : > { %v1451_v10 = vpop.f32.mrf.mxu3  ;;  %v1754_v27 = vmax.f32 %v1542_v29, 0.0  ;;  %v6738_v61 = vpop.f32.mrf.mxu1 }
 0x2c8   : > { %v1744_v50 = vmax.f32 %v1451_v10, 0.0 }
 0x2c9   : > { %v6740_v25 = vpack.c.bf16 %v1754_v27, %v1745_v0 }
 0x2cc   : > { %v1364_v21 = vpop.f32.mrf.mxu2 }
 0x2cd   : > { %v1752_v59 = vmax.f32 %v1364_v21, 0.0 }
 0x2ce   : > { %v1545_v58 = vpop.f32.mrf.mxu0 }
 0x2cf   : > { %v1453_v3 = vpop.f32.mrf.mxu3  ;;  %v6742_v8 = vpack.c.bf16 %v1752_v59, %v1743_v33  ;;  %v6744_v42 = vpop.f32.mrf.mxu1 }
 0x2d0   : > { %v1753_v17 = vmax.f32 %v1453_v3, 0.0 }
 0x2d1   : > { %2694 = vmatmul.bf16.gmra.mxu2 %v6070_v35  ;;  %2872 = vmatmul.bf16.gmra.mxu0 %v6268_v37 }
 0x2d2   : > { %v6746_v49 = vpack.c.bf16 %v1753_v17, %v1744_v50  ;;  %2961 = vmatmul.bf16.gmra.mxu1 %v6262_v46  ;;  %v1763_v50 = vmax.f32 %v1545_v58, 0.0  ;;  %v5360_v46 = vld [vmem:[%s7615_s3 + $0x1e8] sm:$0xff] }
 0x2d3   : > { %3212 = vmatpush.bf16.msra.mxu0 %v5360_v46 }
 0x2d4   : > { %2783 = vmatmul.bf16.gmra.mxu3 %v6266_v19  ;;  %v1367_v0 = vpop.f32.mrf.mxu2 }
 0x2d5   : > { %v1761_v21 = vmax.f32 %v1367_v0, 0.0 }
 0x2d6   : > { %v1547_v35 = vpop.f32.mrf.mxu0 }
 0x2d7   : > { %v1456_v10 = vpop.f32.mrf.mxu3  ;;  %v1772_v29 = vmax.f32 %v1547_v35, 0.0  ;;  %v6758_v37 = vpop.f32.mrf.mxu1 }
 0x2d8   : > { %v1762_v3 = vmax.f32 %v1456_v10, 0.0 }
 0x2d9   : > { %v6760_v19 = vpack.c.bf16 %v1772_v29, %v1763_v50  ;;  %v5368_v50 = vld [vmem:[%s7615_s3 + $0x228] sm:$0xff] }
 0x2da   : > { %3301 = vmatpush.bf16.msra.mxu1 %v5368_v50 }
 0x2db   : > { %7693 = vst [vmem:[#allocation77_spill] sm:$0xff] %v6760_v19 }
 0x2dc   : > { %v1369_v27 = vpop.f32.mrf.mxu2 }
 0x2dd   : > { %v1770_v33 = vmax.f32 %v1369_v27, 0.0 }
 0x2de   : > { %v1550_v24 = vpop.f32.mrf.mxu0 }
 0x2df   : > { %v1458_v59 = vpop.f32.mrf.mxu3  ;;  %v6765_v58 = vpack.c.bf16 %v1770_v33, %v1761_v21  ;;  %v6767_v63 = vpop.f32.mrf.mxu1  ;;  %v1781_v10 = vmax.f32 %v1550_v24, 0.0  ;;  %v5343_v24 = vld [vmem:[%s7615_s3 + $0x160] sm:$0xff] }
 0x2e0   : > { %v1771_v17 = vmax.f32 %v1458_v59, 0.0  ;;  %3035 = vmatpush.bf16.msra.mxu2 %v5343_v24 }
 0x2e1   : > { %7694 = vst [vmem:[#allocation78_spill] sm:$0xff] %v6765_v58  ;;  %2699 = vmatmul.bf16.gmra.mxu2 %v6089_v62  ;;  %2877 = vmatmul.bf16.gmra.mxu0 %v6299_v48 }
 0x2e2   : > { %v6769_v35 = vpack.c.bf16 %v1771_v17, %v1762_v3  ;;  %2966 = vmatmul.bf16.gmra.mxu1 %v6281_v52 }
 0x2e4   : > { %2788 = vmatmul.bf16.gmra.mxu3 %v6297_v11  ;;  %v1372_v0 = vpop.f32.mrf.mxu2 }
 0x2e5   : > { %v1779_v3 = vmax.f32 %v1372_v0, 0.0  ;;  %v5351_v0 = vld [vmem:[%s7615_s3 + $0x1a0] sm:$0xff] }
 0x2e6   : > { %v1552_v46 = vpop.f32.mrf.mxu0  ;;  %3124 = vmatpush.bf16.msra.mxu3 %v5351_v0 }
 0x2e7   : > { %v1461_v29 = vpop.f32.mrf.mxu3  ;;  %v1790_v27 = vmax.f32 %v1552_v46, 0.0  ;;  %v6778_v21 = vpop.f32.mrf.mxu1 }
 0x2e8   : > { %v1780_v19 = vmax.f32 %v1461_v29, 0.0 }
 0x2e9   : > { %v6780_v33 = vpack.c.bf16 %v1790_v27, %v1781_v10 }
 0x2ec   : > { %v1374_v59 = vpop.f32.mrf.mxu2 }
 0x2ed   : > { %v1788_v17 = vmax.f32 %v1374_v59, 0.0 }
 0x2ee   : > { %v1555_v58 = vpop.f32.mrf.mxu0 }
 0x2ef   : > { %v1463_v62 = vpop.f32.mrf.mxu3  ;;  %v6782_v11 = vpack.c.bf16 %v1788_v17, %v1779_v3  ;;  %v6784_v52 = vpop.f32.mrf.mxu1 }
 0x2f0   : > { %v1789_v48 = vmax.f32 %v1463_v62, 0.0 }
 0x2f1   : > { %2704 = vmatmul.bf16.gmra.mxu2 %v6123_v40  ;;  %2882 = vmatmul.bf16.gmra.mxu0 %v6321_v53 }
 0x2f2   : > { %v6786_v50 = vpack.c.bf16 %v1789_v48, %v1780_v19  ;;  %2971 = vmatmul.bf16.gmra.mxu1 %v6315_v26  ;;  %v1799_v19 = vmax.f32 %v1555_v58, 0.0  ;;  %v5359_v26 = vld [vmem:[%s7615_s3 + $0x1e0] sm:$0xff] }
 0x2f3   : > { %3213 = vmatpush.bf16.msra.mxu0 %v5359_v26 }
 0x2f4   : > { %2793 = vmatmul.bf16.gmra.mxu3 %v6319_v23  ;;  %v1377_v10 = vpop.f32.mrf.mxu2 }
 0x2f5   : > { %v1797_v59 = vmax.f32 %v1377_v10, 0.0 }
 0x2f6   : > { %v1557_v40 = vpop.f32.mrf.mxu0 }
 0x2f7   : > { %v1466_v29 = vpop.f32.mrf.mxu3  ;;  %v1808_v46 = vmax.f32 %v1557_v40, 0.0  ;;  %v6798_v53 = vpop.f32.mrf.mxu1 }
 0x2f8   : > { %v1798_v62 = vmax.f32 %v1466_v29, 0.0 }
 0x2f9   : > { %v6800_v23 = vpack.c.bf16 %v1808_v46, %v1799_v19  ;;  %v5367_v19 = vld [vmem:[%s7615_s3 + $0x220] sm:$0xff] }
 0x2fa   : > { %3302 = vmatpush.bf16.msra.mxu1 %v5367_v19 }
 0x2fb   : > { %7695 = vst [vmem:[#allocation79_spill] sm:$0xff] %v6800_v23 }
 0x2fc   : > { %v1379_v27 = vpop.f32.mrf.mxu2 }
 0x2fd   : > { %v1806_v3 = vmax.f32 %v1379_v27, 0.0 }
 0x2fe   : > { %v1560_v24 = vpop.f32.mrf.mxu0 }
 0x2ff   : > { %v1468_v17 = vpop.f32.mrf.mxu3  ;;  %v6805_v58 = vpack.c.bf16 %v1806_v3, %v1797_v59  ;;  %v6807_v0 = vpop.f32.mrf.mxu1  ;;  %v1817_v29 = vmax.f32 %v1560_v24, 0.0  ;;  %v7700_v24 = vld [vmem:[#allocation20_spill] sm:$0xff] }
 0x300   : > { %v1807_v48 = vmax.f32 %v1468_v17, 0.0 }
 0x301   : > { %7696 = vst [vmem:[#allocation80_spill] sm:$0xff] %v6805_v58  ;;  %2709 = vmatmul.bf16.gmra.mxu2 %v6142_v16  ;;  %2887 = vmatmul.bf16.gmra.mxu0 %v6340_v47 }
 0x302   : > { %v6809_v40 = vpack.c.bf16 %v1807_v48, %v1798_v62  ;;  %2976 = vmatmul.bf16.gmra.mxu1 %v6334_v14 }
 0x304   : > { %2798 = vmatmul.bf16.gmra.mxu3 %v6338_v55  ;;  %v1382_v10 = vpop.f32.mrf.mxu2 }
 0x305   : > { %v1815_v62 = vmax.f32 %v1382_v10, 0.0  ;;  %v5342_v10 = vld [vmem:[%s7615_s3 + $0x158] sm:$0xff] }
 0x306   : > { %v1562_v26 = vpop.f32.mrf.mxu0  ;;  %3036 = vmatpush.bf16.msra.mxu2 %v5342_v10 }
 0x307   : > { %v1471_v46 = vpop.f32.mrf.mxu3  ;;  %v1826_v27 = vmax.f32 %v1562_v26, 0.0  ;;  %v6818_v59 = vpop.f32.mrf.mxu1 }
 0x308   : > { %v1816_v23 = vmax.f32 %v1471_v46, 0.0 }
 0x309   : > { %v6820_v3 = vpack.c.bf16 %v1826_v27, %v1817_v29  ;;  %v5350_v29 = vld [vmem:[%s7615_s3 + $0x198] sm:$0xff] }
 0x30a   : > { %3125 = vmatpush.bf16.msra.mxu3 %v5350_v29 }
 0x30b   : > { %7697 = vst [vmem:[#allocation81_spill] sm:$0xff] %v6820_v3 }
 0x30c   : > { %v1384_v17 = vpop.f32.mrf.mxu2 }
 0x30d   : > { %v1824_v48 = vmax.f32 %v1384_v17, 0.0  ;;  %v5358_v17 = vld [vmem:[%s7615_s3 + $0x1d8] sm:$0xff] }
 0x30e   : > { %v1565_v58 = vpop.f32.mrf.mxu0  ;;  %3214 = vmatpush.bf16.msra.mxu0 %v5358_v17 }
 0x30f   : > { %v1473_v16 = vpop.f32.mrf.mxu3  ;;  %v6822_v55 = vpack.c.bf16 %v1824_v48, %v1815_v62  ;;  %v6824_v14 = vpop.f32.mrf.mxu1 }
 0x310   : > { %v1825_v47 = vmax.f32 %v1473_v16, 0.0 }
 0x311   : > { %7698 = vst [vmem:[#allocation82_spill] sm:$0xff] %v6822_v55  ;;  %2714 = vmatmul.bf16.gmra.mxu2 %v6170_v32  ;;  %2892 = vmatmul.bf16.gmra.mxu0 %v6365_v43 }
 0x312   : > { %v6826_v19 = vpack.c.bf16 %v1825_v47, %v1816_v23  ;;  %2981 = vmatmul.bf16.gmra.mxu1 %v7700_v24  ;;  %v1835_v23 = vmax.f32 %v1565_v58, 0.0 }
 0x314   : > { %7699 = vst [vmem:[#allocation83_spill] sm:$0xff] %v6826_v19  ;;  %2803 = vmatmul.bf16.gmra.mxu3 %v6363_v6  ;;  %v1387_v46 = vpop.f32.mrf.mxu2 }
 0x315   : > { %v1833_v48 = vmax.f32 %v1387_v46, 0.0  ;;  %v7705_v46 = vld [vmem:[#allocation22_spill] sm:$0xff] }
 0x316   : > { %v1567_v32 = vpop.f32.mrf.mxu0 }
 0x317   : > { %v1476_v26 = vpop.f32.mrf.mxu3  ;;  %v1844_v27 = vmax.f32 %v1567_v32, 0.0  ;;  %v6838_v43 = vpop.f32.mrf.mxu1 }
 0x318   : > { %v1834_v24 = vmax.f32 %v1476_v26, 0.0 }
 0x319   : > { %v6840_v6 = vpack.c.bf16 %v1844_v27, %v1835_v23  ;;  %v7704_v23 = vld [vmem:[#allocation12_spill] sm:$0xff]  ;;  %v5366_v27 = vld [vmem:[%s7615_s3 + $0x218] sm:$0xff] }
 0x31a   : > { %3303 = vmatpush.bf16.msra.mxu1 %v5366_v27 }
 0x31b   : > { %7701 = vst [vmem:[#allocation20_spill] sm:$0xff] %v6840_v6 }
 0x31c   : > { %v1389_v62 = vpop.f32.mrf.mxu2 }
 0x31d   : > { %v1842_v16 = vmax.f32 %v1389_v62, 0.0 }
 0x31e   : > { %v1570_v29 = vpop.f32.mrf.mxu0 }
 0x31f   : > { %v1478_v47 = vpop.f32.mrf.mxu3  ;;  %v6845_v58 = vpack.c.bf16 %v1842_v16, %v1833_v48  ;;  %v6847_v3 = vpop.f32.mrf.mxu1  ;;  %v1853_v17 = vmax.f32 %v1570_v29, 0.0 }
 0x320   : > { %v1843_v10 = vmax.f32 %v1478_v47, 0.0 }
 0x321   : > { %7702 = vst [vmem:[#allocation84_spill] sm:$0xff] %v6845_v58  ;;  %2719 = vmatmul.bf16.gmra.mxu2 %v7704_v23  ;;  %2897 = vmatmul.bf16.gmra.mxu0 %v6384_v7 }
 0x322   : > { %v6849_v32 = vpack.c.bf16 %v1843_v10, %v1834_v24  ;;  %2986 = vmatmul.bf16.gmra.mxu1 %v7705_v46 }
 0x324   : > { %7703 = vst [vmem:[#allocation85_spill] sm:$0xff] %v6849_v32  ;;  %2808 = vmatmul.bf16.gmra.mxu3 %v6382_v51  ;;  %v1392_v26 = vpop.f32.mrf.mxu2  ;;  %v6865_v51 = vld [vmem:[%s7616_s4] ss:$0 sm:$0xff] }
 0x325   : > { %v1851_v7 = vmax.f32 %v1392_v26, 0.0  ;;  %v7711_v26 = vld [vmem:[#allocation26_spill] sm:$0xff] }
 0x326   : > { %v1572_v48 = vpop.f32.mrf.mxu0 }
 0x327   : > { %v1481_v62 = vpop.f32.mrf.mxu3  ;;  %v1862_v16 = vmax.f32 %v1572_v48, 0.0  ;;  %v6858_v47 = vpop.f32.mrf.mxu1  ;;  %v7709_v48 = vld [vmem:[#allocation5_spill] sm:$0xff] }
 0x328   : > { %v1852_v58 = vmax.f32 %v1481_v62, 0.0  ;;  %v5349_v62 = vld [vmem:[%s7615_s3 + $0x190] sm:$0xff] }
 0x329   : > { %v6860_v24 = vpack.c.bf16 %v1862_v16, %v1853_v17  ;;  %v7710_v17 = vld [vmem:[#allocation27_spill] sm:$0xff]  ;;  %v7712_v16 = vld [vmem:[#allocation24_spill] sm:$0xff]  ;;  %3126 = vmatpush.bf16.msra.mxu3 %v5349_v62 }
 0x32b   : > { %7706 = vst [vmem:[#allocation12_spill] sm:$0xff] %v6860_v24  ;;  %v2599_v24 = vadd.f32 %v6865_v51, %v6551_v30  ;;  %v7714_v30 = vld [vmem:[#allocation28_spill] sm:$0xff] }
 0x32c   : > { %v1394_v10 = vpop.f32.mrf.mxu2 }
 0x32d   : > { %v1860_v23 = vmax.f32 %v1394_v10, 0.0 }
 0x32e   : > { %v2863_v55 = vpop.f32.mrf.mxu0 }
 0x32f   : > { %v1483_v6 = vpop.f32.mrf.mxu3  ;;  %v6867_v29 = vpack.c.bf16 %v1860_v23, %v1851_v7  ;;  %v2952_v27 = vpop.f32.mrf.mxu1 }
 0x330   : > { %v1861_v32 = vmax.f32 %v1483_v6, 0.0  ;;  %v5341_v6 = vld [vmem:[%s7615_s3 + $0x150] sm:$0xff] }
 0x331   : > { %7707 = vst [vmem:[#allocation22_spill] sm:$0xff] %v6867_v29  ;;  %2724 = vmatmul.bf16.gmra.mxu2 %v7709_v48  ;;  %2902 = vmatmul.bf16.gmra.mxu0 %v7710_v17 }
 0x332   : > { %v6869_v46 = vpack.c.bf16 %v1861_v32, %v1852_v58  ;;  %2991 = vmatmul.bf16.gmra.mxu1 %v7712_v16  ;;  %v2597_v58 = vadd.f32 %v6865_v51, %v6536_v45  ;;  %3037 = vmatpush.bf16.msra.mxu2 %v5341_v6  ;;  %v5357_v16 = vld [vmem:[%s7615_s3 + $0x1d0] sm:$0xff] }
 0x333   : > { %3215 = vmatpush.bf16.msra.mxu0 %v5357_v16 }
 0x334   : > { %7708 = vst [vmem:[#allocation86_spill] sm:$0xff] %v6869_v46  ;;  %2813 = vmatmul.bf16.gmra.mxu3 %v7711_v26  ;;  %v2685_v32 = vpop.f32.mrf.mxu2 }
 0x335   : > { %v2686_v10 = vadd.f32 %v2685_v32, %v2597_v58 }
 0x336   : > { %v2865_v23 = vpop.f32.mrf.mxu0 }
 0x337   : > { %v2774_v7 = vpop.f32.mrf.mxu3  ;;  %v2954_v17 = vpop.f32.mrf.mxu1 }
 0x338   : > { %v2775_v48 = vadd.f32 %v2774_v7, %v2686_v10  ;;  %v7713_v10 = vld [vmem:[#allocation6_spill] sm:$0xff] }
 0x33a   : > { %v2864_v26 = vadd.f32 %v2863_v55, %v2775_v48  ;;  %v5365_v55 = vld [vmem:[%s7615_s3 + $0x210] sm:$0xff] }
 0x33b   : > { %3304 = vmatpush.bf16.msra.mxu1 %v5365_v55 }
 0x33c   : > { %v6888_v29 = vadd.f32 %v2952_v27, %v2864_v26  ;;  %v2687_v45 = vpop.f32.mrf.mxu2 }
 0x33d   : > { %v2688_v46 = vadd.f32 %v2687_v45, %v2599_v24  ;;  %v2602_v24 = vadd.f32 %v6865_v51, %v6560_v15  ;;  %v2604_v45 = vadd.f32 %v6865_v51, %v6572_v2  ;;  %v5340_v2 = vld [vmem:[%s7615_s3 + $0x148] sm:$0xff] }
 0x33e   : > { %v2868_v62 = vpop.f32.mrf.mxu0  ;;  %3038 = vmatpush.bf16.msra.mxu2 %v5340_v2 }
 0x33f   : > { %v2776_v6 = vpop.f32.mrf.mxu3  ;;  %v2957_v32 = vpop.f32.mrf.mxu1 }
 0x340   : > { %v2777_v58 = vadd.f32 %v2776_v6, %v2688_v46 }
 0x341   : > { %2729 = vmatmul.bf16.gmra.mxu2 %v7713_v10  ;;  %2907 = vmatmul.bf16.gmra.mxu0 %v6422_v9 }
 0x342   : > { %v2866_v19 = vadd.f32 %v2865_v23, %v2777_v58  ;;  %2996 = vmatmul.bf16.gmra.mxu1 %v7714_v30 }
 0x344   : > { %2818 = vmatmul.bf16.gmra.mxu3 %v6420_v39  ;;  %v6899_v27 = vadd.f32 %v2954_v17, %v2866_v19  ;;  %v2690_v46 = vpop.f32.mrf.mxu2  ;;  %v7715_v17 = vld [vmem:[#allocation7_spill] sm:$0xff] }
 0x345   : > { %v2691_v7 = vadd.f32 %v2690_v46, %v2602_v24  ;;  %v7716_v24 = vld [vmem:[#allocation33_spill] sm:$0xff]  ;;  %v7717_v46 = vld [vmem:[#allocation32_spill] sm:$0xff] }
 0x346   : > { %v2870_v48 = vpop.f32.mrf.mxu0 }
 0x347   : > { %v2779_v23 = vpop.f32.mrf.mxu3  ;;  %v2959_v9 = vpop.f32.mrf.mxu1 }
 0x348   : > { %v2780_v26 = vadd.f32 %v2779_v23, %v2691_v7  ;;  %v7718_v7 = vld [vmem:[#allocation30_spill] sm:$0xff] }
 0x34a   : > { %v2869_v16 = vadd.f32 %v2868_v62, %v2780_v26  ;;  %v5348_v62 = vld [vmem:[%s7615_s3 + $0x188] sm:$0xff] }
 0x34b   : > { %3127 = vmatpush.bf16.msra.mxu3 %v5348_v62 }
 0x34c   : > { %v6903_v6 = vadd.f32 %v2957_v32, %v2869_v16  ;;  %v2692_v39 = vpop.f32.mrf.mxu2  ;;  %v2607_v32 = vadd.f32 %v6865_v51, %v6578_v20 }
 0x34d   : > { %v2693_v58 = vadd.f32 %v2692_v39, %v2604_v45 }
 0x34e   : > { %v2873_v30 = vpop.f32.mrf.mxu0 }
 0x34f   : > { %v2781_v10 = vpop.f32.mrf.mxu3  ;;  %v2962_v55 = vpop.f32.mrf.mxu1 }
 0x350   : > { %v2782_v15 = vadd.f32 %v2781_v10, %v2693_v58 }
 0x351   : > { %2734 = vmatmul.bf16.gmra.mxu2 %v7715_v17  ;;  %2912 = vmatmul.bf16.gmra.mxu0 %v7716_v24  ;;  %v2609_v17 = vadd.f32 %v6865_v51, %v6593_v13  ;;  %v7720_v13 = vld [vmem:[#allocation34_spill] sm:$0xff] }
 0x352   : > { %v2871_v19 = vadd.f32 %v2870_v48, %v2782_v15  ;;  %3001 = vmatmul.bf16.gmra.mxu1 %v7718_v7  ;;  %v5356_v15 = vld [vmem:[%s7615_s3 + $0x1c8] sm:$0xff] }
 0x353   : > { %3216 = vmatpush.bf16.msra.mxu0 %v5356_v15 }
 0x354   : > { %2823 = vmatmul.bf16.gmra.mxu3 %v7717_v46  ;;  %v6917_v23 = vadd.f32 %v2959_v9, %v2871_v19  ;;  %v2695_v48 = vpop.f32.mrf.mxu2 }
 0x355   : > { %v2696_v26 = vadd.f32 %v2695_v48, %v2607_v32  ;;  %v7719_v32 = vld [vmem:[#allocation8_spill] sm:$0xff] }
 0x356   : > { %v2875_v45 = vpop.f32.mrf.mxu0 }
 0x357   : > { %v2784_v16 = vpop.f32.mrf.mxu3  ;;  %v2964_v58 = vpop.f32.mrf.mxu1 }
 0x358   : > { %v2785_v39 = vadd.f32 %v2784_v16, %v2696_v26 }
 0x35a   : > { %v2874_v10 = vadd.f32 %v2873_v30, %v2785_v39  ;;  %v5364_v30 = vld [vmem:[%s7615_s3 + $0x208] sm:$0xff] }
 0x35b   : > { %3305 = vmatpush.bf16.msra.mxu1 %v5364_v30  ;;  %v7722_v30 = vld [vmem:[#allocation39_spill] sm:$0xff] }
 0x35c   : > { %v6924_v20 = vadd.f32 %v2962_v55, %v2874_v10  ;;  %v2697_v9 = vpop.f32.mrf.mxu2  ;;  %v2612_v55 = vadd.f32 %v6865_v51, %v6602_v60 }
 0x35d   : > { %v2698_v19 = vadd.f32 %v2697_v9, %v2609_v17  ;;  %v2614_v17 = vadd.f32 %v6865_v51, %v6614_v36  ;;  %v5339_v36 = vld [vmem:[%s7615_s3 + $0x140] sm:$0xff] }
 0x35e   : > { %v2878_v46 = vpop.f32.mrf.mxu0  ;;  %3039 = vmatpush.bf16.msra.mxu2 %v5339_v36  ;;  %v7725_v36 = vld [vmem:[#allocation10_spill] sm:$0xff] }
 0x35f   : > { %v2786_v24 = vpop.f32.mrf.mxu3  ;;  %v2967_v2 = vpop.f32.mrf.mxu1 }
 0x360   : > { %v2787_v7 = vadd.f32 %v2786_v24, %v2698_v19 }
 0x361   : > { %2739 = vmatmul.bf16.gmra.mxu2 %v7719_v32  ;;  %2917 = vmatmul.bf16.gmra.mxu0 %v6460_v57 }
 0x362   : > { %v2876_v62 = vadd.f32 %v2875_v45, %v2787_v7  ;;  %3006 = vmatmul.bf16.gmra.mxu1 %v7720_v13  ;;  %v7723_v13 = vld [vmem:[#allocation38_spill] sm:$0xff] }
 0x364   : > { %2828 = vmatmul.bf16.gmra.mxu3 %v6458_v41  ;;  %v6935_v48 = vadd.f32 %v2964_v58, %v2876_v62  ;;  %v2700_v26 = vpop.f32.mrf.mxu2  ;;  %v7721_v62 = vld [vmem:[#allocation9_spill] sm:$0xff] }
 0x365   : > { %v2701_v16 = vadd.f32 %v2700_v26, %v2612_v55  ;;  %v7724_v55 = vld [vmem:[#allocation36_spill] sm:$0xff] }
 0x366   : > { %v2880_v39 = vpop.f32.mrf.mxu0 }
 0x367   : > { %v2789_v45 = vpop.f32.mrf.mxu3  ;;  %v2969_v57 = vpop.f32.mrf.mxu1 }
 0x368   : > { %v2790_v10 = vadd.f32 %v2789_v45, %v2701_v16 }
 0x36a   : > { %v2879_v15 = vadd.f32 %v2878_v46, %v2790_v10  ;;  %v5347_v46 = vld [vmem:[%s7615_s3 + $0x180] sm:$0xff] }
 0x36b   : > { %3128 = vmatpush.bf16.msra.mxu3 %v5347_v46  ;;  %v7726_v46 = vld [vmem:[#allocation42_spill] sm:$0xff] }
 0x36c   : > { %v6939_v9 = vadd.f32 %v2967_v2, %v2879_v15  ;;  %v2702_v41 = vpop.f32.mrf.mxu2  ;;  %v2617_v2 = vadd.f32 %v6865_v51, %v6620_v22 }
 0x36d   : > { %v2703_v19 = vadd.f32 %v2702_v41, %v2614_v17 }
 0x36e   : > { %v2883_v7 = vpop.f32.mrf.mxu0 }
 0x36f   : > { %v2791_v24 = vpop.f32.mrf.mxu3  ;;  %v2972_v32 = vpop.f32.mrf.mxu1 }
 0x370   : > { %v2792_v60 = vadd.f32 %v2791_v24, %v2703_v19  ;;  %v5355_v19 = vld [vmem:[%s7615_s3 + $0x1c0] sm:$0xff]  ;;  %v2619_v24 = vadd.f32 %v6865_v51, %v6635_v18 }
 0x371   : > { %2744 = vmatmul.bf16.gmra.mxu2 %v7721_v62  ;;  %2922 = vmatmul.bf16.gmra.mxu0 %v7722_v30  ;;  %v7727_v18 = vld [vmem:[#allocation40_spill] sm:$0xff] }
 0x372   : > { %v2881_v58 = vadd.f32 %v2880_v39, %v2792_v60  ;;  %3011 = vmatmul.bf16.gmra.mxu1 %v7724_v55  ;;  %3217 = vmatpush.bf16.msra.mxu0 %v5355_v19 }
 0x374   : > { %2833 = vmatmul.bf16.gmra.mxu3 %v7723_v13  ;;  %v6953_v26 = vadd.f32 %v2969_v57, %v2881_v58  ;;  %v2705_v16 = vpop.f32.mrf.mxu2 }
 0x375   : > { %v2706_v45 = vadd.f32 %v2705_v16, %v2617_v2 }
 0x376   : > { %v2885_v10 = vpop.f32.mrf.mxu0 }
 0x377   : > { %v2794_v39 = vpop.f32.mrf.mxu3  ;;  %v2974_v17 = vpop.f32.mrf.mxu1 }
 0x378   : > { %v2795_v15 = vadd.f32 %v2794_v39, %v2706_v45 }
 0x37a   : > { %v2884_v41 = vadd.f32 %v2883_v7, %v2795_v15  ;;  %v5363_v7 = vld [vmem:[%s7615_s3 + $0x200] sm:$0xff] }
 0x37b   : > { %3306 = vmatpush.bf16.msra.mxu1 %v5363_v7 }
 0x37c   : > { %v6960_v22 = vadd.f32 %v2972_v32, %v2884_v41  ;;  %v2707_v57 = vpop.f32.mrf.mxu2  ;;  %v7728_v32 = vld [vmem:[#allocation65_spill] sm:$0xff] }
 0x37d   : > { %v2708_v60 = vadd.f32 %v2707_v57, %v2619_v24  ;;  %v2622_v2 = vadd.f32 %v6865_v51, %v7728_v32  ;;  %v2624_v24 = vadd.f32 %v6865_v51, %v6656_v56  ;;  %v7731_v32 = vld [vmem:[#allocation45_spill] sm:$0xff]  ;;  %v2627_v56 = vadd.f32 %v6865_v51, %v6662_v28 }
 0x37e   : > { %v2888_v62 = vpop.f32.mrf.mxu0 }
 0x37f   : > { %v2796_v58 = vpop.f32.mrf.mxu3  ;;  %v2977_v13 = vpop.f32.mrf.mxu1 }
 0x380   : > { %v2797_v30 = vadd.f32 %v2796_v58, %v2708_v60 }
 0x381   : > { %2749 = vmatmul.bf16.gmra.mxu2 %v7725_v36  ;;  %2927 = vmatmul.bf16.gmra.mxu0 %v6498_v12 }
 0x382   : > { %v2886_v55 = vadd.f32 %v2885_v10, %v2797_v30  ;;  %3016 = vmatmul.bf16.gmra.mxu1 %v7727_v18  ;;  %v7730_v18 = vld [vmem:[#allocation46_spill] sm:$0xff] }
 0x384   : > { %2838 = vmatmul.bf16.gmra.mxu3 %v7726_v46  ;;  %v6971_v16 = vadd.f32 %v2974_v17, %v2886_v55  ;;  %v2710_v45 = vpop.f32.mrf.mxu2  ;;  %v7729_v55 = vld [vmem:[#allocation11_spill] sm:$0xff] }
 0x385   : > { %v2711_v39 = vadd.f32 %v2710_v45, %v2622_v2  ;;  %v7732_v2 = vld [vmem:[#allocation43_spill] sm:$0xff] }
 0x386   : > { %v2890_v15 = vpop.f32.mrf.mxu0 }
 0x387   : > { %v2799_v10 = vpop.f32.mrf.mxu3  ;;  %v2979_v12 = vpop.f32.mrf.mxu1 }
 0x388   : > { %v2800_v41 = vadd.f32 %v2799_v10, %v2711_v39 }
 0x38a   : > { %v2889_v19 = vadd.f32 %v2888_v62, %v2800_v41 }
 0x38c   : > { %v6975_v57 = vadd.f32 %v2977_v13, %v2889_v19  ;;  %v2712_v60 = vpop.f32.mrf.mxu2 }
 0x38d   : > { %v2713_v58 = vadd.f32 %v2712_v60, %v2624_v24  ;;  %v7733_v24 = vld [vmem:[#allocation70_spill] sm:$0xff] }
 0x38e   : > { %v2893_v36 = vpop.f32.mrf.mxu0  ;;  %v2629_v60 = vadd.f32 %v6865_v51, %v7733_v24 }
 0x38f   : > { %v2801_v30 = vpop.f32.mrf.mxu3  ;;  %v2982_v7 = vpop.f32.mrf.mxu1 }
 0x390   : > { %v2802_v46 = vadd.f32 %v2801_v30, %v2713_v58 }
 0x391   : > { %2754 = vmatmul.bf16.gmra.mxu2 %v7729_v55  ;;  %2932 = vmatmul.bf16.gmra.mxu0 %v7730_v18 }
 0x392   : > { %v2891_v17 = vadd.f32 %v2890_v15, %v2802_v46  ;;  %3021 = vmatmul.bf16.gmra.mxu1 %v7732_v2  ;;  %v7735_v2 = vld [vmem:[#allocation50_spill] sm:$0xff] }
 0x394   : > { %2843 = vmatmul.bf16.gmra.mxu3 %v7731_v32  ;;  %v6983_v62 = vadd.f32 %v2979_v12, %v2891_v17  ;;  %v2715_v13 = vpop.f32.mrf.mxu2  ;;  %v7734_v17 = vld [vmem:[#allocation13_spill] sm:$0xff] }
 0x395   : > { %v2716_v45 = vadd.f32 %v2715_v13, %v2627_v56  ;;  %v7736_v56 = vld [vmem:[#allocation49_spill] sm:$0xff]  ;;  %v7737_v13 = vld [vmem:[#allocation47_spill] sm:$0xff] }
 0x396   : > { %v2895_v10 = vpop.f32.mrf.mxu0 }
 0x397   : > { %v2804_v39 = vpop.f32.mrf.mxu3  ;;  %v2984_v19 = vpop.f32.mrf.mxu1 }
 0x398   : > { %v2805_v41 = vadd.f32 %v2804_v39, %v2716_v45 }
 0x39a   : > { %v2894_v15 = vadd.f32 %v2893_v36, %v2805_v41  ;;  %v7738_v36 = vld [vmem:[#allocation73_spill] sm:$0xff] }
 0x39b   : > { %v2632_v45 = vadd.f32 %v6865_v51, %v7738_v36 }
 0x39c   : > { %v6987_v58 = vadd.f32 %v2982_v7, %v2894_v15  ;;  %v2717_v30 = vpop.f32.mrf.mxu2 }
 0x39d   : > { %v2718_v46 = vadd.f32 %v2717_v30, %v2629_v60 }
 0x39e   : > { %v2898_v18 = vpop.f32.mrf.mxu0 }
 0x39f   : > { %v2806_v55 = vpop.f32.mrf.mxu3  ;;  %v2987_v28 = vpop.f32.mrf.mxu1 }
 0x3a0   : > { %v2807_v32 = vadd.f32 %v2806_v55, %v2718_v46  ;;  %v2634_v46 = vadd.f32 %v6865_v51, %v6698_v34  ;;  %v2637_v34 = vadd.f32 %v6865_v51, %v6704_v5 }
 0x3a1   : > { %2759 = vmatmul.bf16.gmra.mxu2 %v7734_v17  ;;  %2937 = vmatmul.bf16.gmra.mxu0 %v7735_v2 }
 0x3a2   : > { %v2896_v12 = vadd.f32 %v2895_v10, %v2807_v32  ;;  %3026 = vmatmul.bf16.gmra.mxu1 %v7737_v13 }
 0x3a4   : > { %2848 = vmatmul.bf16.gmra.mxu3 %v7736_v56  ;;  %v6995_v7 = vadd.f32 %v2984_v19, %v2896_v12  ;;  %v2720_v39 = vpop.f32.mrf.mxu2  ;;  %v7739_v12 = vld [vmem:[#allocation14_spill] sm:$0xff] }
 0x3a5   : > { %v2721_v41 = vadd.f32 %v2720_v39, %v2632_v45  ;;  %v7740_v45 = vld [vmem:[#allocation53_spill] sm:$0xff]  ;;  %v7741_v39 = vld [vmem:[#allocation52_spill] sm:$0xff] }
 0x3a6   : > { %v2900_v24 = vpop.f32.mrf.mxu0 }
 0x3a7   : > { %v2809_v15 = vpop.f32.mrf.mxu3  ;;  %v2989_v30 = vpop.f32.mrf.mxu1 }
 0x3a8   : > { %v2810_v60 = vadd.f32 %v2809_v15, %v2721_v41  ;;  %v7742_v41 = vld [vmem:[#allocation51_spill] sm:$0xff] }
 0x3aa   : > { %v2899_v10 = vadd.f32 %v2898_v18, %v2810_v60 }
 0x3ac   : > { %v6999_v55 = vadd.f32 %v2987_v28, %v2899_v10  ;;  %v2722_v32 = vpop.f32.mrf.mxu2 }
 0x3ad   : > { %v2723_v17 = vadd.f32 %v2722_v32, %v2634_v46 }
 0x3ae   : > { %v2903_v56 = vpop.f32.mrf.mxu0 }
 0x3af   : > { %v2811_v2 = vpop.f32.mrf.mxu3  ;;  %v2992_v36 = vpop.f32.mrf.mxu1 }
 0x3b0   : > { %v2812_v13 = vadd.f32 %v2811_v2, %v2723_v17  ;;  %v2639_v17 = vadd.f32 %v6865_v51, %v6718_v54  ;;  %v2642_v54 = vadd.f32 %v6865_v51, %v6727_v1 }
 0x3b1   : > { %3040 = vmatmul.bf16.vlgmr.msra.gmra.mxu2 %v7739_v12  ;;  %3218 = vmatmul.bf16.vlgmr.msra.gmra.mxu0 %v7740_v45 }
 0x3b2   : > { %v2901_v19 = vadd.f32 %v2900_v24, %v2812_v13  ;;  %3307 = vmatmul.bf16.vlgmr.msra.gmra.mxu1 %v7742_v41 }
 0x3b4   : > { %3129 = vmatmul.bf16.vlgmr.msra.gmra.mxu3 %v7741_v39  ;;  %v7007_v18 = vadd.f32 %v2989_v30, %v2901_v19  ;;  %v2725_v28 = vpop.f32.mrf.mxu2  ;;  %v7743_v19 = vld [vmem:[#allocation15_spill] sm:$0xff] }
 0x3b5   : > { %v2726_v15 = vadd.f32 %v2725_v28, %v2637_v34  ;;  %v7744_v34 = vld [vmem:[#allocation56_spill] sm:$0xff]  ;;  %v7745_v28 = vld [vmem:[#allocation55_spill] sm:$0xff] }
 0x3b6   : > { %v2905_v10 = vpop.f32.mrf.mxu0 }
 0x3b7   : > { %v2814_v60 = vpop.f32.mrf.mxu3  ;;  %v2994_v32 = vpop.f32.mrf.mxu1 }
 0x3b8   : > { %v2815_v46 = vadd.f32 %v2814_v60, %v2726_v15  ;;  %v7746_v15 = vld [vmem:[#allocation54_spill] sm:$0xff] }
 0x3ba   : > { %v2904_v24 = vadd.f32 %v2903_v56, %v2815_v46 }
 0x3bc   : > { %v7011_v2 = vadd.f32 %v2992_v36, %v2904_v24  ;;  %v2727_v13 = vpop.f32.mrf.mxu2 }
 0x3bd   : > { %v2728_v12 = vadd.f32 %v2727_v13, %v2639_v17 }
 0x3be   : > { %v2908_v39 = vpop.f32.mrf.mxu0 }
 0x3bf   : > { %v2816_v45 = vpop.f32.mrf.mxu3  ;;  %v2997_v5 = vpop.f32.mrf.mxu1 }
 0x3c0   : > { %v2817_v41 = vadd.f32 %v2816_v45, %v2728_v12  ;;  %v2644_v12 = vadd.f32 %v6865_v51, %v6738_v61  ;;  %v2647_v61 = vadd.f32 %v6865_v51, %v6744_v42 }
 0x3c1   : > { %3045 = vmatmul.bf16.gmra.mxu2 %v7743_v19  ;;  %3223 = vmatmul.bf16.gmra.mxu0 %v7744_v34 }
 0x3c2   : > { %v2906_v30 = vadd.f32 %v2905_v10, %v2817_v41  ;;  %3312 = vmatmul.bf16.gmra.mxu1 %v7746_v15 }
 0x3c4   : > { %3134 = vmatmul.bf16.gmra.mxu3 %v7745_v28  ;;  %v7019_v56 = vadd.f32 %v2994_v32, %v2906_v30  ;;  %v2730_v36 = vpop.f32.mrf.mxu2  ;;  %v7747_v30 = vld [vmem:[#allocation16_spill] sm:$0xff] }
 0x3c5   : > { %v2731_v60 = vadd.f32 %v2730_v36, %v2642_v54  ;;  %v7748_v54 = vld [vmem:[#allocation59_spill] sm:$0xff]  ;;  %v7749_v36 = vld [vmem:[#allocation58_spill] sm:$0xff] }
 0x3c6   : > { %v2910_v24 = vpop.f32.mrf.mxu0 }
 0x3c7   : > { %v2819_v46 = vpop.f32.mrf.mxu3  ;;  %v2999_v13 = vpop.f32.mrf.mxu1 }
 0x3c8   : > { %v2820_v17 = vadd.f32 %v2819_v46, %v2731_v60  ;;  %v7750_v60 = vld [vmem:[#allocation57_spill] sm:$0xff] }
 0x3ca   : > { %v2909_v10 = vadd.f32 %v2908_v39, %v2820_v17 }
 0x3cc   : > { %v7023_v45 = vadd.f32 %v2997_v5, %v2909_v10  ;;  %v2732_v41 = vpop.f32.mrf.mxu2 }
 0x3cd   : > { %v2733_v19 = vadd.f32 %v2732_v41, %v2644_v12 }
 0x3ce   : > { %v2913_v28 = vpop.f32.mrf.mxu0 }
 0x3cf   : > { %v2821_v34 = vpop.f32.mrf.mxu3  ;;  %v3002_v1 = vpop.f32.mrf.mxu1 }
 0x3d0   : > { %v2822_v15 = vadd.f32 %v2821_v34, %v2733_v19  ;;  %v2649_v19 = vadd.f32 %v6865_v51, %v6758_v37  ;;  %v2652_v37 = vadd.f32 %v6865_v51, %v6767_v63  ;;  %v7757_v63 = vld [vmem:[#allocation18_spill] sm:$0xff] }
 0x3d1   : > { %3050 = vmatmul.bf16.gmra.mxu2 %v7747_v30  ;;  %3228 = vmatmul.bf16.gmra.mxu0 %v7748_v54 }
 0x3d2   : > { %v2911_v32 = vadd.f32 %v2910_v24, %v2822_v15  ;;  %3317 = vmatmul.bf16.gmra.mxu1 %v7750_v60 }
 0x3d4   : > { %3139 = vmatmul.bf16.gmra.mxu3 %v7749_v36  ;;  %v7031_v39 = vadd.f32 %v2999_v13, %v2911_v32  ;;  %v2735_v5 = vpop.f32.mrf.mxu2  ;;  %v7752_v32 = vld [vmem:[#allocation17_spill] sm:$0xff] }
 0x3d5   : > { %v2736_v46 = vadd.f32 %v2735_v5, %v2647_v61  ;;  %v7753_v61 = vld [vmem:[#allocation62_spill] sm:$0xff]  ;;  %v7754_v5 = vld [vmem:[#allocation61_spill] sm:$0xff] }
 0x3d6   : > { %v2915_v10 = vpop.f32.mrf.mxu0 }
 0x3d7   : > { %v2824_v17 = vpop.f32.mrf.mxu3  ;;  %v3004_v41 = vpop.f32.mrf.mxu1 }
 0x3d8   : > { %v2825_v12 = vadd.f32 %v2824_v17, %v2736_v46  ;;  %v7755_v46 = vld [vmem:[#allocation60_spill] sm:$0xff] }
 0x3da   : > { %v2914_v24 = vadd.f32 %v2913_v28, %v2825_v12 }
 0x3dc   : > { %v7035_v34 = vadd.f32 %v3002_v1, %v2914_v24  ;;  %v2737_v15 = vpop.f32.mrf.mxu2 }
 0x3dd   : > { %v2738_v30 = vadd.f32 %v2737_v15, %v2649_v19 }
 0x3de   : > { %7751 = vst [vmem:[#allocation5_spill] sm:$0xff] %v7035_v34  ;;  %v2918_v36 = vpop.f32.mrf.mxu0 }
 0x3df   : > { %v2826_v54 = vpop.f32.mrf.mxu3  ;;  %v3007_v42 = vpop.f32.mrf.mxu1 }
 0x3e0   : > { %v2827_v60 = vadd.f32 %v2826_v54, %v2738_v30  ;;  %v2654_v30 = vadd.f32 %v6865_v51, %v6778_v21 }
 0x3e1   : > { %3055 = vmatmul.bf16.gmra.mxu2 %v7752_v32  ;;  %3233 = vmatmul.bf16.gmra.mxu0 %v7753_v61 }
 0x3e2   : > { %v2916_v13 = vadd.f32 %v2915_v10, %v2827_v60  ;;  %3322 = vmatmul.bf16.gmra.mxu1 %v7755_v46 }
 0x3e4   : > { %3144 = vmatmul.bf16.gmra.mxu3 %v7754_v5  ;;  %v2740_v28 = vpop.f32.mrf.mxu2  ;;  %v7043_v24 = vadd.f32 %v3004_v41, %v2916_v13  ;;  %v7760_v41 = vld [vmem:[#allocation63_spill] sm:$0xff] }
 0x3e5   : > { %v2741_v1 = vadd.f32 %v2740_v28, %v2652_v37  ;;  %v7758_v37 = vld [vmem:[#allocation66_spill] sm:$0xff]  ;;  %v7759_v28 = vld [vmem:[#allocation64_spill] sm:$0xff] }
 0x3e6   : > { %v2920_v12 = vpop.f32.mrf.mxu0  ;;  %7756 = vst [vmem:[#allocation27_spill] sm:$0xff] %v7043_v24  ;;  %v7761_v24 = vld [vmem:[#allocation19_spill] sm:$0xff] }
 0x3e7   : > { %v2829_v17 = vpop.f32.mrf.mxu3  ;;  %v3009_v15 = vpop.f32.mrf.mxu1 }
 0x3e8   : > { %v2830_v19 = vadd.f32 %v2829_v17, %v2741_v1 }
 0x3ea   : > { %v2919_v10 = vadd.f32 %v2918_v36, %v2830_v19  ;;  %v2657_v36 = vadd.f32 %v6865_v51, %v6784_v52 }
 0x3ec   : > { %v2742_v54 = vpop.f32.mrf.mxu2  ;;  %v7053_v17 = vadd.f32 %v3007_v42, %v2919_v10  ;;  %v7763_v42 = vld [vmem:[#allocation68_spill] sm:$0xff]  ;;  %v7764_v10 = vld [vmem:[#allocation67_spill] sm:$0xff] }
 0x3ed   : > { %v2743_v60 = vadd.f32 %v2742_v54, %v2654_v30 }
 0x3ee   : > { %v2923_v61 = vpop.f32.mrf.mxu0 }
 0x3ef   : > { %v2831_v32 = vpop.f32.mrf.mxu3  ;;  %v3012_v46 = vpop.f32.mrf.mxu1 }
 0x3f0   : > { %v2832_v5 = vadd.f32 %v2831_v32, %v2743_v60  ;;  %v2659_v60 = vadd.f32 %v6865_v51, %v6798_v53 }
 0x3f1   : > { %3060 = vmatmul.bf16.gmra.mxu2 %v7757_v63  ;;  %3238 = vmatmul.bf16.gmra.mxu0 %v7758_v37 }
 0x3f2   : > { %v2921_v34 = vadd.f32 %v2920_v12, %v2832_v5  ;;  %3327 = vmatmul.bf16.gmra.mxu1 %v7760_v41 }
 0x3f4   : > { %3149 = vmatmul.bf16.gmra.mxu3 %v7759_v28  ;;  %v2745_v13 = vpop.f32.mrf.mxu2 }
 0x3f5   : > { %v2746_v21 = vadd.f32 %v2745_v13, %v2657_v36  ;;  %v7762_v36 = vld [vmem:[#allocation69_spill] sm:$0xff]  ;;  %v7065_v13 = vadd.f32 %v3009_v15, %v2921_v34  ;;  %v7766_v15 = vld [vmem:[#allocation74_spill] sm:$0xff] }
 0x3f6   : > { %v2925_v19 = vpop.f32.mrf.mxu0  ;;  %v7765_v34 = vld [vmem:[#allocation21_spill] sm:$0xff] }
 0x3f7   : > { %v2834_v1 = vpop.f32.mrf.mxu3  ;;  %v3014_v54 = vpop.f32.mrf.mxu1 }
 0x3f8   : > { %v2835_v30 = vadd.f32 %v2834_v1, %v2746_v21 }
 0x3fa   : > { %v2924_v12 = vadd.f32 %v2923_v61, %v2835_v30  ;;  %v2662_v61 = vadd.f32 %v6865_v51, %v6807_v0 }
 0x3fc   : > { %v2747_v32 = vpop.f32.mrf.mxu2 }
 0x3fd   : > { %v2748_v5 = vadd.f32 %v2747_v32, %v2659_v60 }
 0x3fe   : > { %v2928_v37 = vpop.f32.mrf.mxu0 }
 0x3ff   : > { %v2836_v63 = vpop.f32.mrf.mxu3  ;;  %v7057_v41 = vpop.f32.mrf.mxu1 }
 0x400   : > { %v2837_v28 = vadd.f32 %v2836_v63, %v2748_v5 }
 0x401   : > { %3065 = vmatmul.bf16.gmra.mxu2 %v7761_v24  ;;  %3243 = vmatmul.bf16.gmra.mxu0 %v7762_v36  ;;  %v2664_v24 = vadd.f32 %v6865_v51, %v6818_v59  ;;  %v2667_v59 = vadd.f32 %v6865_v51, %v6824_v14 }
 0x402   : > { %v2926_v52 = vadd.f32 %v2925_v19, %v2837_v28  ;;  %3332 = vmatmul.bf16.gmra.mxu1 %v7764_v10 }
 0x404   : > { %3154 = vmatmul.bf16.gmra.mxu3 %v7763_v42  ;;  %v2750_v53 = vpop.f32.mrf.mxu2 }
 0x405   : > { %v2751_v21 = vadd.f32 %v2750_v53, %v2662_v61  ;;  %v7767_v61 = vld [vmem:[#allocation72_spill] sm:$0xff]  ;;  %v7768_v53 = vld [vmem:[#allocation71_spill] sm:$0xff] }
 0x406   : > { %v2930_v30 = vpop.f32.mrf.mxu0 }
 0x407   : > { %v2839_v1 = vpop.f32.mrf.mxu3  ;;  %v7067_v32 = vpop.f32.mrf.mxu1 }
 0x408   : > { %v2840_v60 = vadd.f32 %v2839_v1, %v2751_v21 }
 0x40a   : > { %v2929_v19 = vadd.f32 %v2928_v37, %v2840_v60  ;;  %v7081_v37 = vadd.f32 %v3012_v46, %v2924_v12  ;;  %v7769_v12 = vld [vmem:[#allocation23_spill] sm:$0xff] }
 0x40c   : > { %v2752_v5 = vpop.f32.mrf.mxu2 }
 0x40d   : > { %v2753_v63 = vadd.f32 %v2752_v5, %v2664_v24 }
 0x40e   : > { %v2933_v36 = vpop.f32.mrf.mxu0 }
 0x40f   : > { %v2841_v28 = vpop.f32.mrf.mxu3  ;;  %v7071_v10 = vpop.f32.mrf.mxu1 }
 0x410   : > { %v2842_v42 = vadd.f32 %v2841_v28, %v2753_v63  ;;  %v2669_v28 = vadd.f32 %v6865_v51, %v6838_v43  ;;  %v2672_v43 = vadd.f32 %v6865_v51, %v6847_v3 }
 0x411   : > { %3070 = vmatmul.bf16.gmra.mxu2 %v7765_v34  ;;  %3248 = vmatmul.bf16.gmra.mxu0 %v7766_v15 }
 0x412   : > { %v7073_v0 = vadd.f32 %v2930_v30, %v2842_v42  ;;  %3337 = vmatmul.bf16.gmra.mxu1 %v7768_v53 }
 0x414   : > { %3159 = vmatmul.bf16.gmra.mxu3 %v7767_v61  ;;  %v2755_v21 = vpop.f32.mrf.mxu2 }
 0x415   : > { %v2756_v1 = vadd.f32 %v2755_v21, %v2667_v59 }
 0x416   : > { %v2935_v24 = vpop.f32.mrf.mxu0 }
 0x417   : > { %v2844_v60 = vpop.f32.mrf.mxu3  ;;  %v7083_v30 = vpop.f32.mrf.mxu1 }
 0x418   : > { %v2845_v5 = vadd.f32 %v2844_v60, %v2756_v1 }
 0x41a   : > { %v7085_v63 = vadd.f32 %v2933_v36, %v2845_v5  ;;  %v7097_v36 = vadd.f32 %v3014_v54, %v2926_v52 }
 0x41c   : > { %v2757_v42 = vpop.f32.mrf.mxu2 }
 0x41d   : > { %v2758_v34 = vadd.f32 %v2757_v42, %v2669_v28 }
 0x41e   : > { %v2938_v61 = vpop.f32.mrf.mxu0 }
 0x41f   : > { %v2846_v15 = vpop.f32.mrf.mxu3  ;;  %v7089_v14 = vpop.f32.mrf.mxu1 }
 0x420   : > { %v2847_v53 = vadd.f32 %v2846_v15, %v2758_v34  ;;  %v7770_v15 = vld [vmem:[#allocation25_spill] sm:$0xff] }
 0x421   : > { %3075 = vmatmul.bf16.gmra.mxu2 %v7769_v12  ;;  %3253 = vmatmul.bf16.gmra.mxu0 %v6706_v44  ;;  %v2674_v44 = vadd.f32 %v6865_v51, %v6858_v47  ;;  %v7772_v12 = vld [vmem:[#allocation75_spill] sm:$0xff] }
 0x422   : > { %v7091_v46 = vadd.f32 %v2935_v24, %v2847_v53  ;;  %3342 = vmatmul.bf16.gmra.mxu1 %v6700_v4  ;;  %v7112_v53 = vadd.f32 %v7057_v41, %v2929_v19  ;;  %v7127_v41 = vld [vmem:[%s7617_s5] ss:$0 sm:$0xff] }
 0x424   : > { %3164 = vmatmul.bf16.gmra.mxu3 %v6702_v38  ;;  %v2760_v59 = vpop.f32.mrf.mxu2 }
 0x425   : > { %v2761_v21 = vadd.f32 %v2760_v59, %v2672_v43 }
 0x426   : > { %v2940_v60 = vpop.f32.mrf.mxu0 }
 0x427   : > { %v2849_v1 = vpop.f32.mrf.mxu3  ;;  %v7101_v24 = vpop.f32.mrf.mxu1 }
 0x428   : > { %v2850_v5 = vadd.f32 %v2849_v1, %v2761_v21 }
 0x42a   : > { %v7103_v28 = vadd.f32 %v2938_v61, %v2850_v5  ;;  %v7771_v61 = vld [vmem:[#allocation76_spill] sm:$0xff] }
 0x42c   : > { %v2762_v38 = vpop.f32.mrf.mxu2 }
 0x42d   : > { %v2763_v42 = vadd.f32 %v2762_v38, %v2674_v44 }
 0x42e   : > { %v3219_v54 = vpop.f32.mrf.mxu0 }
 0x42f   : > { %v2851_v4 = vpop.f32.mrf.mxu3  ;;  %v3308_v34 = vpop.f32.mrf.mxu1 }
 0x430   : > { %v2852_v52 = vadd.f32 %v2851_v4, %v2763_v42  ;;  %v7134_v42 = vld [vmem:[%s7617_s5 + $0x1] ss:$0 sm:$0xff] }
 0x431   : > { %3080 = vmatmul.bf16.gmra.mxu2 %v7770_v15  ;;  %3258 = vmatmul.bf16.gmra.mxu0 %v6729_v31 }
 0x432   : > { %v7107_v3 = vadd.f32 %v2940_v60, %v2852_v52  ;;  %3347 = vmatmul.bf16.gmra.mxu1 %v7772_v12 }
 0x434   : > { %3169 = vmatmul.bf16.gmra.mxu3 %v7771_v61  ;;  %v3041_v47 = vpop.f32.mrf.mxu2  ;;  %v7139_v61 = vadd.f32 %v7067_v32, %v7073_v0 }
 0x435   : > { %v3042_v51 = vadd.f32 %v3041_v47, %v6888_v29  ;;  %v5372_v29 = vld [vmem:[%s7122_s15] sm:$0xff]   ;;  %v7773_v47 = vld [vmem:[#allocation29_spill] sm:$0xff] }
 0x436   : > { %v3221_v59 = vpop.f32.mrf.mxu0  ;;  %v5373_v15 = vunpack.c.l.bf16 %v5372_v29 }
 0x437   : > { %v3130_v43 = vpop.f32.mrf.mxu3  ;;  %v3310_v1 = vpop.f32.mrf.mxu1 }
 0x438   : > { %v3131_v21 = vadd.f32 %v3130_v43, %v3042_v51 }
 0x43a   : > { %v3220_v60 = vadd.f32 %v3219_v54, %v3131_v21 }
 0x43c   : > { %v3309_v31 = vadd.f32 %v3308_v34, %v3220_v60  ;;  %v3043_v19 = vpop.f32.mrf.mxu2 }
 0x43d   : > { %v3044_v44 = vadd.f32 %v3043_v19, %v6899_v27 }
 0x43e   : > { %v3388_v5 = vmax.f32 %v3309_v31, 0.0  ;;  %v3224_v4 = vpop.f32.mrf.mxu0 }
 0x43f   : > { %v3132_v38 = vpop.f32.mrf.mxu3  ;;  %v3313_v52 = vpop.f32.mrf.mxu1 }
 0x440   : > { %v3133_v54 = vadd.f32 %v3132_v38, %v3044_v44  ;;  %v3422_v34 = vmul.f32 %v7127_v41, %v3388_v5 }
 0x441   : > { %3085 = vmatmul.bf16.gmra.mxu2 %v7773_v47  ;;  %3263 = vmatmul.bf16.gmra.mxu0 %v6746_v49 }
 0x442   : > { %v3222_v12 = vadd.f32 %v3221_v59, %v3133_v54  ;;  %v3456_v27 = vadd.f32 %v7134_v42, %v3422_v34  ;;  %3352 = vmatmul.bf16.gmra.mxu1 %v6740_v25  ;;  %v5435_v34 = vld [vmem:[%s7122_s15 + $0x8] sm:$0xff]  }
 0x444   : > { %3174 = vmatmul.bf16.gmra.mxu3 %v6742_v8  ;;  %v3311_v51 = vadd.f32 %v3310_v1, %v3222_v12  ;;  %v3552_v43 = vmul.f32 %v5373_v15, %v3456_v27  ;;  %v3046_v21 = vpop.f32.mrf.mxu2  ;;  %v5374_v8 = vunpack.c.h.bf16 %v5372_v29  ;;  %v5377_v29 = vunpack.c.l.bf16 %v5435_v34 }
 0x445   : > { %v3047_v32 = vadd.f32 %v3046_v21, %v6903_v6 }
 0x446   : > { %v3389_v60 = vmax.f32 %v3311_v51, 0.0  ;;  %v3585_v59 = vsel %vm3584_vm2, %v3552_v43, 0.0  ;;  %v3226_v31 = vpop.f32.mrf.mxu0 }
 0x447   : > { %v3135_v0 = vpop.f32.mrf.mxu3  ;;  %3586 = vadd.xlane.f32.xlu0 %v3585_v59  ;;  %v3315_v19 = vpop.f32.mrf.mxu1 }
 0x448   : > { %v3136_v49 = vadd.f32 %v3135_v0, %v3047_v32  ;;  %v3423_v5 = vmul.f32 %v7127_v41, %v3389_v60  ;;  %v7774_v60 = vld [vmem:[#allocation31_spill] sm:$0xff]  ;;  %v7775_v32 = vld [vmem:[#allocation78_spill] sm:$0xff]  ;;  %v7776_v0 = vld [vmem:[#allocation77_spill] sm:$0xff] }
 0x44a   : > { %v3225_v44 = vadd.f32 %v3224_v4, %v3136_v49  ;;  %v3457_v25 = vadd.f32 %v7134_v42, %v3423_v5  ;;  %v7156_v4 = vadd.f32 %v7071_v10, %v7085_v63 }
 0x44c   : > { %v3314_v1 = vadd.f32 %v3313_v52, %v3225_v44  ;;  %v3553_v38 = vmul.f32 %v5374_v8, %v3457_v25  ;;  %v3048_v54 = vpop.f32.mrf.mxu2 }
 0x44d   : > { %v3049_v6 = vadd.f32 %v3048_v54, %v6917_v23 }
 0x44e   : > { %v3390_v15 = vmax.f32 %v3314_v1, 0.0  ;;  %v3588_v47 = vsel %vm3584_vm2, %v3553_v38, 0.0  ;;  %v3229_v27 = vpop.f32.mrf.mxu0  ;;  %v5378_v38 = vunpack.c.h.bf16 %v5435_v34 }
 0x44f   : > { %v3137_v12 = vpop.f32.mrf.mxu3  ;;  %3589 = vadd.xlane.f32.xlu0 %v3588_v47  ;;  %v3318_v43 = vpop.f32.mrf.mxu1  ;;  %v5436_v47 = vld [vmem:[%s7122_s15 + $0x10] sm:$0xff]  }
 0x450   : > { %v3138_v51 = vadd.f32 %v3137_v12, %v3049_v6  ;;  %v3424_v21 = vmul.f32 %v7127_v41, %v3390_v15 }
 0x451   : > { %3090 = vmatmul.bf16.gmra.mxu2 %v7774_v60  ;;  %3268 = vmatmul.bf16.gmra.mxu0 %v6769_v35  ;;  %v7172_v60 = vadd.f32 %v7083_v30, %v7091_v46 }
 0x452   : > { %v3227_v52 = vadd.f32 %v3226_v31, %v3138_v51  ;;  %v3458_v23 = vadd.f32 %v7134_v42, %v3424_v21  ;;  %3357 = vmatmul.bf16.gmra.mxu1 %v7776_v0  ;;  %v7777_v0 = vld [vmem:[#allocation35_spill] sm:$0xff] }
 0x454   : > { %3179 = vmatmul.bf16.gmra.mxu3 %v7775_v32  ;;  %v3316_v59 = vadd.f32 %v3315_v19, %v3227_v52  ;;  %v3554_v49 = vmul.f32 %v5377_v29, %v3458_v23  ;;  %v3051_v5 = vpop.f32.mrf.mxu2 }
 0x455   : > { %v3052_v44 = vadd.f32 %v3051_v5, %v6924_v20 }
 0x456   : > { %v3391_v8 = vmax.f32 %v3316_v59, 0.0  ;;  %v3591_v63 = vsel %vm3584_vm2, %v3554_v49, 0.0  ;;  %v3231_v31 = vpop.f32.mrf.mxu0 }
 0x457   : > { %v3140_v10 = vpop.f32.mrf.mxu3  ;;  %3592 = vadd.xlane.f32.xlu1 %v3591_v63  ;;  %v3320_v35 = vpop.f32.mrf.mxu1 }
 0x458   : > { %v3141_v25 = vadd.f32 %v3140_v10, %v3052_v44  ;;  %v3425_v1 = vmul.f32 %v7127_v41, %v3391_v8 }
 0x45a   : > { %v3230_v54 = vadd.f32 %v3229_v27, %v3141_v25  ;;  %v3459_v15 = vadd.f32 %v7134_v42, %v3425_v1  ;;  %v5382_v25 = vunpack.c.h.bf16 %v5436_v47 }
 0x45c   : > { %v3319_v19 = vadd.f32 %v3318_v43, %v3230_v54  ;;  %v3555_v6 = vmul.f32 %v5378_v38, %v3459_v15  ;;  %v3053_v12 = vpop.f32.mrf.mxu2  ;;  %v5381_v43 = vunpack.c.l.bf16 %v5436_v47  ;;  %v5437_v54 = vld [vmem:[%s7122_s15 + $0x18] sm:$0xff]  }
 0x45d   : > { %v3054_v20 = vadd.f32 %v3053_v12, %v6935_v48  ;;  %v5385_v47 = vunpack.c.l.bf16 %v5437_v54 }
 0x45e   : > { %v3392_v51 = vmax.f32 %v3319_v19, 0.0  ;;  %v3594_v29 = vsel %vm3584_vm2, %v3555_v6, 0.0  ;;  %v3234_v52 = vpop.f32.mrf.mxu0 }
 0x45f   : > { %v3142_v21 = vpop.f32.mrf.mxu3  ;;  %3595 = vadd.xlane.f32.xlu1 %v3594_v29  ;;  %v3323_v27 = vpop.f32.mrf.mxu1 }
 0x460   : > { %v3143_v34 = vadd.f32 %v3142_v21, %v3054_v20  ;;  %v3426_v23 = vmul.f32 %v7127_v41, %v3392_v51 }
 0x461   : > { %3095 = vmatmul.bf16.gmra.mxu2 %v7777_v0  ;;  %3273 = vmatmul.bf16.gmra.mxu0 %v6786_v50 }
 0x462   : > { %v3232_v32 = vadd.f32 %v3231_v31, %v3143_v34  ;;  %v3460_v48 = vadd.f32 %v7134_v42, %v3426_v23  ;;  %3362 = vmatmul.bf16.gmra.mxu1 %v6780_v33 }
 0x464   : > { %3184 = vmatmul.bf16.gmra.mxu3 %v6782_v11  ;;  %v3321_v59 = vadd.f32 %v3320_v35, %v3232_v32  ;;  %v3556_v49 = vmul.f32 %v5381_v43, %v3460_v48  ;;  %v3056_v30 = vpop.f32.mrf.mxu2 }
 0x465   : > { %v3057_v5 = vadd.f32 %v3056_v30, %v6939_v9 }
 0x466   : > { %v3393_v46 = vmax.f32 %v3321_v59, 0.0  ;;  %v3597_v44 = vsel %vm3584_vm2, %v3556_v49, 0.0  ;;  %v3236_v10 = vpop.f32.mrf.mxu0 }
 0x467   : > { %v3145_v8 = vpop.f32.mrf.mxu3  ;;  %3598 = vadd.xlane.f32.xlu2 %v3597_v44  ;;  %v3325_v50 = vpop.f32.mrf.mxu1 }
 0x468   : > { %v3146_v63 = vadd.f32 %v3145_v8, %v3057_v5  ;;  %v3427_v31 = vmul.f32 %v7127_v41, %v3393_v46  ;;  %v5386_v8 = vunpack.c.h.bf16 %v5437_v54 }
 0x46a   : > { %v3235_v11 = vadd.f32 %v3234_v52, %v3146_v63  ;;  %v3461_v33 = vadd.f32 %v7134_v42, %v3427_v31  ;;  %v7778_v52 = vld [vmem:[#allocation37_spill] sm:$0xff] }
 0x46c   : > { %v3324_v35 = vadd.f32 %v3323_v27, %v3235_v11  ;;  %v3557_v1 = vmul.f32 %v5382_v25, %v3461_v33  ;;  %v3058_v38 = vpop.f32.mrf.mxu2  ;;  %v7779_v27 = vld [vmem:[#allocation80_spill] sm:$0xff] }
 0x46d   : > { %v3059_v9 = vadd.f32 %v3058_v38, %v6953_v26  ;;  %v7780_v26 = vld [vmem:[#allocation79_spill] sm:$0xff] }
 0x46e   : > { %v3394_v15 = vmax.f32 %v3324_v35, 0.0  ;;  %v3600_v6 = vsel %vm3584_vm2, %v3557_v1, 0.0  ;;  %v3239_v12 = vpop.f32.mrf.mxu0  ;;  %v5438_v25 = vld [vmem:[%s7122_s15 + $0x20] sm:$0xff]  }
 0x46f   : > { %v3147_v19 = vpop.f32.mrf.mxu3  ;;  %3601 = vadd.xlane.f32.xlu2 %v3600_v6  ;;  %v3328_v20 = vpop.f32.mrf.mxu1  ;;  %v5389_v54 = vunpack.c.l.bf16 %v5438_v25  ;;  %v7781_v6 = vld [vmem:[#allocation41_spill] sm:$0xff] }
 0x470   : > { %v3148_v51 = vadd.f32 %v3147_v19, %v3059_v9  ;;  %v3428_v21 = vmul.f32 %v7127_v41, %v3394_v15 }
 0x471   : > { %3100 = vmatmul.bf16.gmra.mxu2 %v7778_v52  ;;  %3278 = vmatmul.bf16.gmra.mxu0 %v6809_v40 }
 0x472   : > { %v3237_v29 = vadd.f32 %v3236_v10, %v3148_v51  ;;  %v3462_v34 = vadd.f32 %v7134_v42, %v3428_v21  ;;  %3367 = vmatmul.bf16.gmra.mxu1 %v7780_v26 }
 0x474   : > { %3189 = vmatmul.bf16.gmra.mxu3 %v7779_v27  ;;  %v3326_v23 = vadd.f32 %v3325_v50, %v3237_v29  ;;  %v3558_v43 = vmul.f32 %v5385_v47, %v3462_v34  ;;  %v3061_v32 = vpop.f32.mrf.mxu2 }
 0x475   : > { %v3062_v48 = vadd.f32 %v3061_v32, %v6960_v22 }
 0x476   : > { %v3395_v0 = vmax.f32 %v3326_v23, 0.0  ;;  %v3603_v49 = vsel %vm3584_vm2, %v3558_v43, 0.0  ;;  %v3241_v30 = vpop.f32.mrf.mxu0 }
 0x477   : > { %v3150_v59 = vpop.f32.mrf.mxu3  ;;  %3604 = vadd.xlane.f32.xlu0 %v3603_v49  ;;  %v3330_v40 = vpop.f32.mrf.mxu1 }
 0x478   : > { %v3151_v46 = vadd.f32 %v3150_v59, %v3062_v48  ;;  %v3429_v5 = vmul.f32 %v7127_v41, %v3395_v0  ;;  %v5390_v0 = vunpack.c.h.bf16 %v5438_v25 }
 0x47a   : > { %v3240_v44 = vadd.f32 %v3239_v12, %v3151_v46  ;;  %v3463_v10 = vadd.f32 %v7134_v42, %v3429_v5  ;;  %v7782_v12 = vld [vmem:[#allocation83_spill] sm:$0xff]  ;;  %v5439_v5 = vld [vmem:[%s7122_s15 + $0x28] sm:$0xff]  }
 0x47c   : > { %v3329_v63 = vadd.f32 %v3328_v20, %v3240_v44  ;;  %v3559_v50 = vmul.f32 %v5386_v8, %v3463_v10  ;;  %v3063_v31 = vpop.f32.mrf.mxu2  ;;  %v7783_v20 = vld [vmem:[#allocation82_spill] sm:$0xff] }
 0x47d   : > { %v3064_v22 = vadd.f32 %v3063_v31, %v6971_v16  ;;  %v7784_v16 = vld [vmem:[#allocation81_spill] sm:$0xff]  ;;  %v5393_v31 = vunpack.c.l.bf16 %v5439_v5 }
 0x47e   : > { %v3396_v11 = vmax.f32 %v3329_v63, 0.0  ;;  %v3606_v35 = vsel %vm3584_vm2, %v3559_v50, 0.0  ;;  %v3244_v1 = vpop.f32.mrf.mxu0 }
 0x47f   : > { %v3152_v33 = vpop.f32.mrf.mxu3  ;;  %3607 = vadd.xlane.f32.xlu1 %v3606_v35  ;;  %v3333_v15 = vpop.f32.mrf.mxu1 }
 0x480   : > { %v3153_v38 = vadd.f32 %v3152_v33, %v3064_v22  ;;  %v3430_v9 = vmul.f32 %v7127_v41, %v3396_v11  ;;  %v7785_v22 = vld [vmem:[#allocation44_spill] sm:$0xff]  ;;  %v7786_v33 = vld [vmem:[#allocation85_spill] sm:$0xff] }
 0x481   : > { %3105 = vmatmul.bf16.gmra.mxu2 %v7781_v6  ;;  %3283 = vmatmul.bf16.gmra.mxu0 %v7782_v12 }
 0x482   : > { %v3242_v19 = vadd.f32 %v3241_v30, %v3153_v38  ;;  %v3464_v51 = vadd.f32 %v7134_v42, %v3430_v9  ;;  %3372 = vmatmul.bf16.gmra.mxu1 %v7784_v16  ;;  %v7787_v38 = vld [vmem:[#allocation84_spill] sm:$0xff] }
 0x484   : > { %3194 = vmatmul.bf16.gmra.mxu3 %v7783_v20  ;;  %v3331_v21 = vadd.f32 %v3330_v40, %v3242_v19  ;;  %v3560_v47 = vmul.f32 %v5389_v54, %v3464_v51  ;;  %v3066_v29 = vpop.f32.mrf.mxu2 }
 0x485   : > { %v3067_v34 = vadd.f32 %v3066_v29, %v6975_v57 }
 0x486   : > { %v3397_v52 = vmax.f32 %v3331_v21, 0.0  ;;  %v3609_v26 = vsel %vm3584_vm2, %v3560_v47, 0.0  ;;  %v3246_v23 = vpop.f32.mrf.mxu0  ;;  %v5394_v21 = vunpack.c.h.bf16 %v5439_v5  ;;  %v7790_v5 = vld [vmem:[#allocation86_spill] sm:$0xff] }
 0x487   : > { %v3155_v27 = vpop.f32.mrf.mxu3  ;;  %3610 = vadd.xlane.f32.xlu2 %v3609_v26  ;;  %v3335_v48 = vpop.f32.mrf.mxu1 }
 0x488   : > { %v3156_v43 = vadd.f32 %v3155_v27, %v3067_v34  ;;  %v3431_v32 = vmul.f32 %v7127_v41, %v3397_v52 }
 0x48a   : > { %v3245_v59 = vadd.f32 %v3244_v1, %v3156_v43  ;;  %v3465_v49 = vadd.f32 %v7134_v42, %v3431_v32  ;;  %v5440_v43 = vld [vmem:[%s7122_s15 + $0x30] sm:$0xff]  }
 0x48c   : > { %v3334_v30 = vadd.f32 %v3333_v15, %v3245_v59  ;;  %v3561_v46 = vmul.f32 %v5390_v0, %v3465_v49  ;;  %v3068_v40 = vpop.f32.mrf.mxu2 }
 0x48d   : > { %v3069_v57 = vadd.f32 %v3068_v40, %v6983_v62  ;;  %v7788_v62 = vld [vmem:[#allocation20_spill] sm:$0xff] }
 0x48e   : > { %v3398_v8 = vmax.f32 %v3334_v30, 0.0  ;;  %v3612_v10 = vsel %vm3584_vm2, %v3561_v46, 0.0  ;;  %v3249_v25 = vpop.f32.mrf.mxu0  ;;  %v5397_v30 = vunpack.c.l.bf16 %v5440_v43  ;;  %v7789_v40 = vld [vmem:[#allocation48_spill] sm:$0xff] }
 0x48f   : > { %v3157_v44 = vpop.f32.mrf.mxu3  ;;  %3613 = vadd.xlane.f32.xlu0 %v3612_v10  ;;  %v3338_v1 = vpop.f32.mrf.mxu1 }
 0x490   : > { %v3158_v63 = vadd.f32 %v3157_v44, %v3069_v57  ;;  %v3432_v50 = vmul.f32 %v7127_v41, %v3398_v8  ;;  %v7791_v57 = vld [vmem:[#allocation22_spill] sm:$0xff]  ;;  %v7792_v44 = vld [vmem:[#allocation12_spill] sm:$0xff] }
 0x491   : > { %3110 = vmatmul.bf16.gmra.mxu2 %v7785_v22  ;;  %3288 = vmatmul.bf16.gmra.mxu0 %v7786_v33 }
 0x492   : > { %v3247_v11 = vadd.f32 %v3246_v23, %v3158_v63  ;;  %v3466_v35 = vadd.f32 %v7134_v42, %v3432_v50  ;;  %3377 = vmatmul.bf16.gmra.mxu1 %v7788_v62 }
 0x494   : > { %3199 = vmatmul.bf16.gmra.mxu3 %v7787_v38  ;;  %v3336_v15 = vadd.f32 %v3335_v48, %v3247_v11  ;;  %v3562_v9 = vmul.f32 %v5393_v31, %v3466_v35  ;;  %v3071_v54 = vpop.f32.mrf.mxu2  ;;  %v5398_v38 = vunpack.c.h.bf16 %v5440_v43 }
 0x495   : > { %v3072_v6 = vadd.f32 %v3071_v54, %v6987_v58 }
 0x496   : > { %v3399_v19 = vmax.f32 %v3336_v15, 0.0  ;;  %v3615_v51 = vsel %vm3584_vm2, %v3562_v9, 0.0  ;;  %v3251_v52 = vpop.f32.mrf.mxu0 }
 0x497   : > { %v3160_v12 = vpop.f32.mrf.mxu3  ;;  %3616 = vadd.xlane.f32.xlu1 %v3615_v51  ;;  %v3340_v26 = vpop.f32.mrf.mxu1 }
 0x498   : > { %v3161_v20 = vadd.f32 %v3160_v12, %v3072_v6  ;;  %v3433_v16 = vmul.f32 %v7127_v41, %v3399_v19  ;;  %v5441_v6 = vld [vmem:[%s7122_s15 + $0x38] sm:$0xff]  }
 0x49a   : > { %v3250_v47 = vadd.f32 %v3249_v25, %v3161_v20  ;;  %v3467_v29 = vadd.f32 %v7134_v42, %v3433_v16 }
 0x49c   : > { %v3339_v34 = vadd.f32 %v3338_v1, %v3250_v47  ;;  %v3563_v27 = vmul.f32 %v5394_v21, %v3467_v29  ;;  %v3073_v23 = vpop.f32.mrf.mxu2  ;;  %v5401_v29 = vunpack.c.l.bf16 %v5441_v6 }
 0x49d   : > { %v3074_v58 = vadd.f32 %v3073_v23, %v6995_v7 }
 0x49e   : > { %v3400_v32 = vmax.f32 %v3339_v34, 0.0  ;;  %v3618_v48 = vsel %vm3584_vm2, %v3563_v27, 0.0  ;;  %v3254_v63 = vpop.f32.mrf.mxu0 }
 0x49f   : > { %v3162_v0 = vpop.f32.mrf.mxu3  ;;  %3619 = vadd.xlane.f32.xlu2 %v3618_v48  ;;  %v3343_v33 = vpop.f32.mrf.mxu1 }
 0x4a0   : > { %v3163_v59 = vadd.f32 %v3162_v0, %v3074_v58  ;;  %v3434_v49 = vmul.f32 %v7127_v41, %v3400_v32 }
 0x4a1   : > { %3115 = vmatmul.bf16.gmra.mxu2 %v7789_v40  ;;  %3293 = vmatmul.bf16.gmra.mxu0 %v7790_v5 }
 0x4a2   : > { %v3252_v46 = vadd.f32 %v3251_v52, %v3163_v59  ;;  %v3468_v8 = vadd.f32 %v7134_v42, %v3434_v49  ;;  %3382 = vmatmul.bf16.gmra.mxu1 %v7792_v44 }
 0x4a4   : > { %3204 = vmatmul.bf16.gmra.mxu3 %v7791_v57  ;;  %v3341_v7 = vadd.f32 %v3340_v26, %v3252_v46  ;;  %v3564_v10 = vmul.f32 %v5397_v30, %v3468_v8  ;;  %v3076_v50 = vpop.f32.mrf.mxu2  ;;  %v5402_v30 = vunpack.c.h.bf16 %v5441_v6 }
 0x4a5   : > { %v3077_v25 = vadd.f32 %v3076_v50, %v6999_v55 }
 0x4a6   : > { %v3401_v31 = vmax.f32 %v3341_v7, 0.0  ;;  %v3621_v22 = vsel %vm3584_vm2, %v3564_v10, 0.0  ;;  %v3256_v16 = vpop.f32.mrf.mxu0 }
 0x4a7   : > { %v3165_v11 = vpop.f32.mrf.mxu3  ;;  %3622 = vadd.xlane.f32.xlu0 %v3621_v22  ;;  %v3345_v52 = vpop.f32.mrf.mxu1 }
 0x4a8   : > { %v3166_v35 = vadd.f32 %v3165_v11, %v3077_v25  ;;  %v3435_v1 = vmul.f32 %v7127_v41, %v3401_v31  ;;  %v7246_v11 = vld [vmem:[%s7122_s15 + $0x40] sm:$0xff]  }
 0x4aa   : > { %v3255_v62 = vadd.f32 %v3254_v63, %v3166_v35  ;;  %v3469_v15 = vadd.f32 %v7134_v42, %v3435_v1 }
 0x4ac   : > { %v3344_v9 = vadd.f32 %v3343_v33, %v3255_v62  ;;  %v3565_v54 = vmul.f32 %v5398_v38, %v3469_v15  ;;  %v3078_v19 = vpop.f32.mrf.mxu2  ;;  %v5405_v38 = vunpack.c.l.bf16 %v7246_v11 }
 0x4ad   : > { %v3079_v51 = vadd.f32 %v3078_v19, %v7007_v18 }
 0x4ae   : > { %v3402_v12 = vmax.f32 %v3344_v9, 0.0  ;;  %v3624_v20 = vsel %vm3584_vm2, %v3565_v54, 0.0  ;;  %v3259_v49 = vpop.f32.mrf.mxu0 }
 0x4af   : > { %v3167_v55 = vpop.f32.mrf.mxu3  ;;  %3625 = vadd.xlane.f32.xlu1 %v3624_v20  ;;  %v3348_v8 = vpop.f32.mrf.mxu1 }
 0x4b0   : > { %v3168_v21 = vadd.f32 %v3167_v55, %v3079_v51  ;;  %v3436_v47 = vmul.f32 %v7127_v41, %v3402_v12 }
 0x4b2   : > { %v3257_v34 = vadd.f32 %v3256_v16, %v3168_v21  ;;  %v3470_v27 = vadd.f32 %v7134_v42, %v3436_v47 }
 0x4b4   : > { %v3346_v26 = vadd.f32 %v3345_v52, %v3257_v34  ;;  %v3566_v23 = vmul.f32 %v5401_v29, %v3470_v27  ;;  %v3081_v43 = vpop.f32.mrf.mxu2 }
 0x4b5   : > { %v3082_v58 = vadd.f32 %v3081_v43, %v7011_v2 }
 0x4b6   : > { %v3403_v32 = vmax.f32 %v3346_v26, 0.0  ;;  %v3627_v18 = vsel %vm3584_vm2, %v3566_v23, 0.0  ;;  %v3261_v23 = vpop.f32.mrf.mxu0 }
 0x4b7   : > { %v3170_v0 = vpop.f32.mrf.mxu3  ;;  %3628 = vadd.xlane.f32.xlu2 %v3627_v18 }
 0x4b8   : > { %v3171_v48 = vadd.f32 %v3170_v0, %v3082_v58  ;;  %v3437_v59 = vmul.f32 %v7127_v41, %v3403_v32 }
 0x4ba   : > { %v3260_v46 = vadd.f32 %v3259_v49, %v3171_v48  ;;  %v3587_v40 = vpop.xlane.xlu0 %3586  ;;  %v3471_v5 = vadd.f32 %v7134_v42, %v3437_v59 }
 0x4bb   : > { %v3713_v57 = vperm.slane %v3587_v40, 0  ;;  %v3714_v44 = vperm.slane %v3587_v40, 1  ;;  %v3715_v7 = vperm.slane %v3587_v40, 2  ;;  %v3716_v2 = vperm.slane %v3587_v40, 3 }
 0x4bc   : > { %v3349_v10 = vadd.f32 %v3348_v8, %v3260_v46  ;;  %v3717_v63 = vperm.slane %v3587_v40, 4  ;;  %v3567_v50 = vmul.f32 %v5402_v30, %v3471_v5  ;;  %v3718_v25 = vperm.slane %v3587_v40, 5  ;;  %v3083_v47 = vpop.f32.mrf.mxu2  ;;  %v3350_v30 = vpop.f32.mrf.mxu1 }
 0x4bd   : > { %3969 = vst [vmem:[#allocation1] ss:$9 sm:$0xff] %v3713_v57  ;;  %v3719_v22 = vperm.slane %v3587_v40, 6  ;;  %v3720_v35 = vperm.slane %v3587_v40, 7  ;;  %v3084_v27 = vadd.f32 %v3083_v47, %v7019_v56 }
 0x4be   : > { %v3404_v31 = vmax.f32 %v3349_v10, 0.0  ;;  %3971 = vst [vmem:[#allocation1 + $0x1] ss:$9 sm:$0xff] %v3714_v44  ;;  %v3630_v33 = vsel %vm3584_vm2, %v3567_v50, 0.0  ;;  %v3264_v8 = vpop.f32.mrf.mxu0 }
 0x4bf   : > { %3973 = vst [vmem:[#allocation1 + $0x2] ss:$9 sm:$0xff] %v3715_v7  ;;  %3631 = vadd.xlane.f32.xlu0 %v3630_v33  ;;  %v3172_v34 = vpop.f32.mrf.mxu3 }
 0x4c0   : > { %3975 = vst [vmem:[#allocation1 + $0x3] ss:$9 sm:$0xff] %v3716_v2  ;;  %v3438_v1 = vmul.f32 %v7127_v41, %v3404_v31  ;;  %v3173_v48 = vadd.f32 %v3172_v34, %v3084_v27 }
 0x4c1   : > { %3977 = vst [vmem:[#allocation1 + $0x4] ss:$9 sm:$0xff] %v3717_v63 }
 0x4c2   : > { %3979 = vst [vmem:[#allocation1 + $0x5] ss:$9 sm:$0xff] %v3718_v25  ;;  %v3472_v62 = vadd.f32 %v7134_v42, %v3438_v1  ;;  %v3590_v15 = vpop.xlane.xlu0 %3589  ;;  %v3262_v5 = vadd.f32 %v3261_v23, %v3173_v48  ;;  %v5443_v48 = vld [vmem:[%s7122_s15 + $0x48] sm:$0xff]  }
 0x4c3   : > { %3981 = vst [vmem:[#allocation1 + $0x6] ss:$9 sm:$0xff] %v3719_v22  ;;  %v3721_v19 = vperm.slane %v3590_v15, 0  ;;  %v3722_v6 = vperm.slane %v3590_v15, 1  ;;  %v3723_v12 = vperm.slane %v3590_v15, 2  ;;  %v3724_v55 = vperm.slane %v3590_v15, 3 }
 0x4c4   : > { %3983 = vst [vmem:[#allocation1 + $0x7] ss:$9 sm:$0xff] %v3720_v35  ;;  %v3568_v9 = vmul.f32 %v5405_v38, %v3472_v62  ;;  %v3725_v20 = vperm.slane %v3590_v15, 4  ;;  %v3726_v16 = vperm.slane %v3590_v15, 5  ;;  %v3727_v21 = vperm.slane %v3590_v15, 6  ;;  %v3086_v32 = vpop.f32.mrf.mxu2  ;;  %v3353_v50 = vpop.f32.mrf.mxu1 }
 0x4c5   : > { %v3728_v29 = vperm.slane %v3590_v15, 7  ;;  %v3351_v57 = vadd.f32 %v3350_v30, %v3262_v5  ;;  %v3087_v10 = vadd.f32 %v3086_v32, %v7023_v45 }
 0x4c6   : > { %v3633_v54 = vsel %vm3584_vm2, %v3568_v9, 0.0  ;;  %v3266_v45 = vpop.f32.mrf.mxu0 }
 0x4c7   : > { %3634 = vadd.xlane.f32.xlu1 %v3633_v54  ;;  %v3175_v56 = vpop.f32.mrf.mxu3  ;;  %v3405_v63 = vmax.f32 %v3351_v57, 0.0  ;;  %v5409_v57 = vunpack.c.l.bf16 %v5443_v48 }
 0x4c8   : > { %v3176_v25 = vadd.f32 %v3175_v56, %v3087_v10 }
 0x4c9   : > { %v3439_v15 = vmul.f32 %v7127_v41, %v3405_v63 }
 0x4ca   : > { %v3593_v52 = vpop.xlane.xlu1 %3592  ;;  %v3265_v9 = vadd.f32 %v3264_v8, %v3176_v25 }
 0x4cb   : > { %v3984_v51 = vld [vmem:[#allocation1] sm:$0xff]  ;;  %v3729_v26 = vperm.slane %v3593_v52, 0  ;;  %v3730_v43 = vperm.slane %v3593_v52, 1  ;;  %v3731_v58 = vperm.slane %v3593_v52, 2  ;;  %v3732_v0 = vperm.slane %v3593_v52, 3 }
 0x4cc   : > { %3985 = vst [vmem:[#allocation1] ss:$9 sm:$0xff] %v3721_v19  ;;  %v3733_v59 = vperm.slane %v3593_v52, 4  ;;  %v3734_v49 = vperm.slane %v3593_v52, 5  ;;  %v3735_v46 = vperm.slane %v3593_v52, 6  ;;  %v3736_v40 = vperm.slane %v3593_v52, 7  ;;  %v3088_v44 = vpop.f32.mrf.mxu2 }
 0x4cd   : > { %3986 = vst [vmem:[#allocation1 + $0x1] ss:$9 sm:$0xff] %v3722_v6 }
 0x4ce   : > { %3987 = vst [vmem:[#allocation1 + $0x2] ss:$9 sm:$0xff] %v3723_v12  ;;  %v3473_v12 = vadd.f32 %v7134_v42, %v3439_v15  ;;  %v7263_v23 = vpop.f32.mrf.mxu0 }
 0x4cf   : > { %3988 = vst [vmem:[#allocation1 + $0x3] ss:$9 sm:$0xff] %v3724_v55  ;;  %4265 = vperm.xlu2 %5502, %v3984_v51   ;;  %v3177_v35 = vpop.f32.mrf.mxu3  ;;  %v5406_v51 = vunpack.c.h.bf16 %v7246_v11  ;;  %v3354_v55 = vadd.f32 %v3353_v50, %v3265_v9 }
 0x4d0   : > { %3989 = vst [vmem:[#allocation1 + $0x4] ss:$9 sm:$0xff] %v3725_v20  ;;  %v3355_v20 = vpop.f32.mrf.mxu1 }
 0x4d1   : > { %3990 = vst [vmem:[#allocation1 + $0x5] ss:$9 sm:$0xff] %v3726_v16  ;;  %v3406_v52 = vmax.f32 %v3354_v55, 0.0 }
 0x4d2   : > { %3991 = vst [vmem:[#allocation1 + $0x6] ss:$9 sm:$0xff] %v3727_v21  ;;  %v3596_v7 = vpop.xlane.xlu1 %3595  ;;  %v3089_v21 = vadd.f32 %v3088_v44, %v7031_v39 }
 0x4d3   : > { %3992 = vst [vmem:[#allocation1 + $0x7] ss:$9 sm:$0xff] %v3728_v29  ;;  %v3737_v2 = vperm.slane %v3596_v7, 0  ;;  %v3738_v31 = vperm.slane %v3596_v7, 1  ;;  %v3739_v22 = vperm.slane %v3596_v7, 2  ;;  %v3740_v1 = vperm.slane %v3596_v7, 3 }
 0x4d4   : > { %v3741_v38 = vperm.slane %v3596_v7, 4  ;;  %v3742_v62 = vperm.slane %v3596_v7, 5  ;;  %v3743_v54 = vperm.slane %v3596_v7, 6  ;;  %v3744_v19 = vperm.slane %v3596_v7, 7  ;;  %v7256_v6 = vpop.f32.mrf.mxu2 }
 0x4d5   : > { %v3569_v29 = vmul.f32 %v5406_v51, %v3473_v12 }
 0x4d6   : > { %v3271_v63 = vpop.f32.mrf.mxu0 }
 0x4d7   : > { %v7261_v47 = vpop.f32.mrf.mxu3  ;;  %v3636_v11 = vsel %vm3584_vm2, %v3569_v29, 0.0  ;;  %v7277_v29 = vld [vmem:[%s7122_s15 + $0x50] sm:$0xff]  }
 0x4da   : > { %v3993_v18 = vld [vmem:[#allocation1] sm:$0xff]  ;;  %v3599_v16 = vpop.xlane.xlu2 %3598 }
 0x4db   : > { %3994 = vst [vmem:[#allocation1] ss:$9 sm:$0xff] %v3729_v26  ;;  %4268 = vperm.xlu0 %5503, %v3993_v18   ;;  %v3745_v34 = vperm.slane %v3599_v16, 0  ;;  %v3746_v27 = vperm.slane %v3599_v16, 1  ;;  %v3178_v26 = vadd.f32 %v3177_v35, %v3089_v21  ;;  %v3748_v18 = vperm.slane %v3599_v16, 3 }
 0x4dc   : > { %3995 = vst [vmem:[#allocation1 + $0x1] ss:$9 sm:$0xff] %v3730_v43  ;;  %v3747_v43 = vperm.slane %v3599_v16, 2  ;;  %v3093_v32 = vpop.f32.mrf.mxu2  ;;  %v3749_v39 = vperm.slane %v3599_v16, 4  ;;  %v3751_v5 = vperm.slane %v3599_v16, 6  ;;  %v3752_v56 = vperm.slane %v3599_v16, 7 }
 0x4dd   : > { %3996 = vst [vmem:[#allocation1 + $0x2] ss:$9 sm:$0xff] %v3731_v58 }
 0x4de   : > { %3997 = vst [vmem:[#allocation1 + $0x3] ss:$9 sm:$0xff] %v3732_v0  ;;  %v3440_v0 = vmul.f32 %v7127_v41, %v3406_v52 }
 0x4df   : > { %3998 = vst [vmem:[#allocation1 + $0x4] ss:$9 sm:$0xff] %v3733_v59  ;;  %v3750_v59 = vperm.slane %v3599_v16, 5  ;;  %v3182_v44 = vpop.f32.mrf.mxu3  ;;  %v5410_v16 = vunpack.c.h.bf16 %v5443_v48 }
 0x4e0   : > { %3999 = vst [vmem:[#allocation1 + $0x5] ss:$9 sm:$0xff] %v3734_v49  ;;  %v7793_v49 = vld [vmem:[#allocation27_spill] sm:$0xff]  ;;  %v3474_v8 = vadd.f32 %v7134_v42, %v3440_v0 }
 0x4e1   : > { %4000 = vst [vmem:[#allocation1 + $0x6] ss:$9 sm:$0xff] %v3735_v46  ;;  %v3094_v30 = vadd.f32 %v3093_v32, %v7793_v49  ;;  %v3267_v46 = vadd.f32 %v3266_v45, %v3178_v26  ;;  %v5414_v26 = vunpack.c.h.bf16 %v7277_v29 }
 0x4e2   : > { %4001 = vst [vmem:[#allocation1 + $0x7] ss:$9 sm:$0xff] %v3736_v40  ;;  %v7269_v40 = vpop.f32.mrf.mxu1  ;;  %v3602_v50 = vpop.xlane.xlu2 %3601 }
 0x4e3   : > { %v3183_v7 = vadd.f32 %v3182_v44, %v3094_v30  ;;  %v3356_v10 = vadd.f32 %v3355_v20, %v3267_v46  ;;  %v3756_v9 = vperm.slane %v3602_v50, 3  ;;  %v3757_v45 = vperm.slane %v3602_v50, 4 }
 0x4e4   : > { %v3759_v51 = vperm.slane %v3602_v50, 6  ;;  %v3760_v55 = vperm.slane %v3602_v50, 7 }
 0x4e5   : > { %v3407_v25 = vmax.f32 %v3356_v10, 0.0 }
 0x4e9   : > { %v4002_v33 = vld [vmem:[#allocation1] sm:$0xff] }
 0x4ea   : > { %4003 = vst [vmem:[#allocation1] ss:$9 sm:$0xff] %v3737_v2  ;;  %4271 = vperm.xlu1 %5504, %v4002_v33   ;;  %v3570_v2 = vmul.f32 %v5409_v57, %v3474_v8  ;;  %v3360_v35 = vpop.f32.mrf.mxu1 }
 0x4eb   : > { %4004 = vst [vmem:[#allocation1 + $0x1] ss:$9 sm:$0xff] %v3738_v31  ;;  %v3272_v31 = vadd.f32 %v3271_v63, %v3183_v7 }
 0x4ec   : > { %4005 = vst [vmem:[#allocation1 + $0x2] ss:$9 sm:$0xff] %v3739_v22  ;;  %v3753_v22 = vperm.slane %v3602_v50, 0  ;;  %v3639_v33 = vsel %vm3584_vm2, %v3570_v2, 0.0 }
 0x4ed   : > { %4006 = vst [vmem:[#allocation1 + $0x3] ss:$9 sm:$0xff] %v3740_v1  ;;  %v3754_v1 = vperm.slane %v3602_v50, 1 }
 0x4ee   : > { %4007 = vst [vmem:[#allocation1 + $0x4] ss:$9 sm:$0xff] %v3741_v38  ;;  %v3361_v38 = vadd.f32 %v3360_v35, %v3272_v31 }
 0x4ef   : > { %4008 = vst [vmem:[#allocation1 + $0x5] ss:$9 sm:$0xff] %v3742_v62  ;;  %v3755_v62 = vperm.slane %v3602_v50, 2 }
 0x4f0   : > { %4009 = vst [vmem:[#allocation1 + $0x6] ss:$9 sm:$0xff] %v3743_v54  ;;  %v3441_v54 = vmul.f32 %v7127_v41, %v3407_v25  ;;  %v3409_v12 = vmax.f32 %v3361_v38, 0.0 }
 0x4f1   : > { %4010 = vst [vmem:[#allocation1 + $0x7] ss:$9 sm:$0xff] %v3744_v19  ;;  %v3758_v19 = vperm.slane %v3602_v50, 5 }
 0x4f2   : > { %v3475_v20 = vadd.f32 %v7134_v42, %v3441_v54  ;;  %v3443_v21 = vmul.f32 %v7127_v41, %v3409_v12  ;;  %v3608_v30 = vpop.xlane.xlu1 %3607 }
 0x4f3   : > { %v3769_v46 = vperm.slane %v3608_v30, 0  ;;  %v3770_v8 = vperm.slane %v3608_v30, 1  ;;  %v3771_v57 = vperm.slane %v3608_v30, 2  ;;  %v3772_v7 = vperm.slane %v3608_v30, 3 }
 0x4f4   : > { %v3571_v52 = vmul.f32 %v5410_v16, %v3475_v20  ;;  %v3773_v10 = vperm.slane %v3608_v30, 4  ;;  %v3774_v63 = vperm.slane %v3608_v30, 5  ;;  %v3775_v50 = vperm.slane %v3608_v30, 6 }
 0x4f5   : > { %v3776_v31 = vperm.slane %v3608_v30, 7  ;;  %v5413_v20 = vunpack.c.l.bf16 %v7277_v29 }
 0x4f8   : > { %v4011_v58 = vld [vmem:[#allocation1] sm:$0xff]  ;;  %3637 = vadd.xlane.f32.xlu2 %v3636_v11  ;;  %v3642_v11 = vsel %vm3584_vm2, %v3571_v52, 0.0  ;;  %v3274_v52 = vpop.f32.mrf.mxu0 }
 0x4f9   : > { %4012 = vst [vmem:[#allocation1] ss:$9 sm:$0xff] %v3745_v34  ;;  %v3605_v34 = vpop.xlane.xlu0 %3604 }
 0x4fa   : > { %4013 = vst [vmem:[#allocation1 + $0x1] ss:$9 sm:$0xff] %v3746_v27  ;;  %v3477_v27 = vadd.f32 %v7134_v42, %v3443_v21  ;;  %v3761_v32 = vperm.slane %v3605_v34, 0  ;;  %v3763_v0 = vperm.slane %v3605_v34, 2  ;;  %v3764_v48 = vperm.slane %v3605_v34, 3 }
 0x4fb   : > { %4014 = vst [vmem:[#allocation1 + $0x2] ss:$9 sm:$0xff] %v3747_v43  ;;  %v3766_v49 = vperm.slane %v3605_v34, 5  ;;  %v3767_v42 = vperm.slane %v3605_v34, 6 }
 0x4fc   : > { %4015 = vst [vmem:[#allocation1 + $0x3] ss:$9 sm:$0xff] %v3748_v18  ;;  %v3573_v43 = vmul.f32 %v5414_v26, %v3477_v27  ;;  %v3762_v18 = vperm.slane %v3605_v34, 1 }
 0x4fd   : > { %4016 = vst [vmem:[#allocation1 + $0x4] ss:$9 sm:$0xff] %v3749_v39 }
 0x4fe   : > { %4017 = vst [vmem:[#allocation1 + $0x5] ss:$9 sm:$0xff] %v3750_v59  ;;  %v3648_v39 = vsel %vm3584_vm2, %v3573_v43, 0.0  ;;  %v3765_v59 = vperm.slane %v3605_v34, 4 }
 0x4ff   : > { %4018 = vst [vmem:[#allocation1 + $0x6] ss:$9 sm:$0xff] %v3751_v5  ;;  %v7794_v5 = vld [vmem:[#allocation5_spill] sm:$0xff] }
 0x500   : > { %4019 = vst [vmem:[#allocation1 + $0x7] ss:$9 sm:$0xff] %v3752_v56  ;;  %v3092_v56 = vadd.f32 %v7256_v6, %v7794_v5  ;;  %v3611_v6 = vpop.xlane.xlu2 %3610 }
 0x501   : > { %v3778_v35 = vperm.slane %v3611_v6, 1  ;;  %v3779_v38 = vperm.slane %v3611_v6, 2  ;;  %v3784_v12 = vperm.slane %v3611_v6, 7 }
 0x502   : > { %v3181_v2 = vadd.f32 %v7261_v47, %v3092_v56  ;;  %v3096_v47 = vpop.f32.mrf.mxu2 }
 0x503   : > { %v3097_v54 = vadd.f32 %v3096_v47, %v7053_v17 }
 0x504   : > { %v3270_v25 = vadd.f32 %v7263_v23, %v3181_v2  ;;  %v3782_v23 = vperm.slane %v3611_v6, 5 }
 0x505   : > { %3640 = vadd.xlane.f32.xlu0 %v3639_v33  ;;  %v3777_v33 = vperm.slane %v3611_v6, 0 }
 0x507   : > { %v4020_v15 = vld [vmem:[#allocation1] sm:$0xff] }
 0x508   : > { %4021 = vst [vmem:[#allocation1] ss:$9 sm:$0xff] %v3753_v22  ;;  %v3359_v22 = vadd.f32 %v7269_v40, %v3270_v25  ;;  %v7296_v40 = vld [vmem:[%s7617_s5] ss:$0 sm:$0xff] }
 0x509   : > { %4022 = vst [vmem:[#allocation1 + $0x1] ss:$9 sm:$0xff] %v3754_v1 }
 0x50a   : > { %4023 = vst [vmem:[#allocation1 + $0x2] ss:$9 sm:$0xff] %v3755_v62  ;;  %v3408_v1 = vmax.f32 %v3359_v22, 0.0  ;;  %v7306_v26 = vpop.f32.mrf.mxu2 }
 0x50b   : > { %4024 = vst [vmem:[#allocation1 + $0x3] ss:$9 sm:$0xff] %v3756_v9  ;;  %v3781_v9 = vperm.slane %v3611_v6, 4 }
 0x50c   : > { %4025 = vst [vmem:[#allocation1 + $0x4] ss:$9 sm:$0xff] %v3757_v45  ;;  %v3783_v45 = vperm.slane %v3611_v6, 6 }
 0x50d   : > { %4026 = vst [vmem:[#allocation1 + $0x5] ss:$9 sm:$0xff] %v3758_v19  ;;  %3649 = vadd.xlane.f32.xlu0 %v3648_v39  ;;  %v3442_v19 = vmul.f32 %v7296_v40, %v3408_v1 }
 0x50e   : > { %4027 = vst [vmem:[#allocation1 + $0x6] ss:$9 sm:$0xff] %v3759_v51  ;;  %v3185_v51 = vpop.f32.mrf.mxu3 }
 0x50f   : > { %4028 = vst [vmem:[#allocation1 + $0x7] ss:$9 sm:$0xff] %v3760_v55  ;;  %v7302_v55 = vld [vmem:[%s7617_s5 + $0x1] ss:$0 sm:$0xff]  ;;  %v3186_v16 = vadd.f32 %v3185_v51, %v3097_v54 }
 0x510   : > { %4274 = vperm.xlu2 %5502, %v4011_v58   ;;  %v3768_v58 = vperm.slane %v3605_v34, 7  ;;  %v3476_v17 = vadd.f32 %v7302_v55, %v3442_v19  ;;  %v3614_v34 = vpop.xlane.xlu0 %3613 }
 0x511   : > { %v3275_v27 = vadd.f32 %v3274_v52, %v3186_v16  ;;  %v3785_v43 = vperm.slane %v3614_v34, 0  ;;  %v3787_v39 = vperm.slane %v3614_v34, 2  ;;  %v3788_v29 = vperm.slane %v3614_v34, 3 }
 0x512   : > { %v3572_v21 = vmul.f32 %v5413_v20, %v3476_v17  ;;  %v3792_v30 = vperm.slane %v3614_v34, 7  ;;  %v3101_v5 = vpop.f32.mrf.mxu2 }
 0x514   : > { %3643 = vadd.xlane.f32.xlu1 %v3642_v11  ;;  %v3363_v11 = vpop.f32.mrf.mxu1 }
 0x516   : > { %v4029_v41 = vld [vmem:[#allocation1] sm:$0xff] }
 0x517   : > { %4030 = vst [vmem:[#allocation1] ss:$9 sm:$0xff] %v3761_v32  ;;  %v3645_v32 = vsel %vm3584_vm2, %v3572_v21, 0.0  ;;  %v3099_v21 = vadd.f32 %v7306_v26, %v7065_v13 }
 0x518   : > { %4031 = vst [vmem:[#allocation1 + $0x1] ss:$9 sm:$0xff] %v3762_v18  ;;  %4277 = vperm.xlu2 %5502, %v4020_v15   ;;  %v3780_v15 = vperm.slane %v3611_v6, 3  ;;  %v3786_v18 = vperm.slane %v3614_v34, 1 }
 0x519   : > { %4032 = vst [vmem:[#allocation1 + $0x2] ss:$9 sm:$0xff] %v3763_v0  ;;  %v3364_v0 = vadd.f32 %v3363_v11, %v3275_v27 }
 0x51a   : > { %4033 = vst [vmem:[#allocation1 + $0x3] ss:$9 sm:$0xff] %v3764_v48  ;;  %v3789_v48 = vperm.slane %v3614_v34, 4 }
 0x51b   : > { %4034 = vst [vmem:[#allocation1 + $0x4] ss:$9 sm:$0xff] %v3765_v59  ;;  %v3790_v59 = vperm.slane %v3614_v34, 5 }
 0x51c   : > { %4035 = vst [vmem:[#allocation1 + $0x5] ss:$9 sm:$0xff] %v3766_v49  ;;  %v3410_v49 = vmax.f32 %v3364_v0, 0.0 }
 0x51d   : > { %4036 = vst [vmem:[#allocation1 + $0x6] ss:$9 sm:$0xff] %v3767_v42  ;;  %v3187_v42 = vpop.f32.mrf.mxu3 }
 0x51e   : > { %4037 = vst [vmem:[#allocation1 + $0x7] ss:$9 sm:$0xff] %v3768_v58  ;;  %v3791_v58 = vperm.slane %v3614_v34, 6  ;;  %v3444_v56 = vmul.f32 %v7296_v40, %v3410_v49 }
 0x520   : > { %v3478_v2 = vadd.f32 %v7302_v55, %v3444_v56 }
 0x525   : > { %v7285_v44 = vld [vmem:[#allocation1] sm:$0xff] }
 0x526   : > { %4039 = vst [vmem:[#allocation1] ss:$9 sm:$0xff] %v3769_v46  ;;  %v3276_v46 = vpop.f32.mrf.mxu0 }
 0x527   : > { %4040 = vst [vmem:[#allocation1 + $0x1] ss:$9 sm:$0xff] %v3770_v8  ;;  %v7311_v8 = vld [vmem:[%s7122_s15 + $0x58] sm:$0xff]  }
 0x528   : > { %4041 = vst [vmem:[#allocation1 + $0x2] ss:$9 sm:$0xff] %v3771_v57  ;;  %v3617_v57 = vpop.xlane.xlu1 %3616 }
 0x529   : > { %4042 = vst [vmem:[#allocation1 + $0x3] ss:$9 sm:$0xff] %v3772_v7  ;;  %v3102_v7 = vadd.f32 %v3101_v5, %v7081_v37  ;;  %v3794_v25 = vperm.slane %v3617_v57, 1  ;;  %v3795_v22 = vperm.slane %v3617_v57, 2  ;;  %v3797_v47 = vperm.slane %v3617_v57, 4 }
 0x52a   : > { %4043 = vst [vmem:[#allocation1 + $0x4] ss:$9 sm:$0xff] %v3773_v10  ;;  %v3365_v10 = vpop.f32.mrf.mxu1  ;;  %v3800_v54 = vperm.slane %v3617_v57, 7 }
 0x52b   : > { %4044 = vst [vmem:[#allocation1 + $0x5] ss:$9 sm:$0xff] %v3774_v63  ;;  %v5417_v63 = vunpack.c.l.bf16 %v7311_v8 }
 0x52c   : > { %4045 = vst [vmem:[#allocation1 + $0x6] ss:$9 sm:$0xff] %v3775_v50  ;;  %v3793_v50 = vperm.slane %v3617_v57, 0 }
 0x52d   : > { %4046 = vst [vmem:[#allocation1 + $0x7] ss:$9 sm:$0xff] %v3776_v31  ;;  %4280 = vperm.xlu1 %5504, %v4029_v41   ;;  %v3190_v31 = vpop.f32.mrf.mxu3  ;;  %v3574_v1 = vmul.f32 %v5417_v63, %v3478_v2  ;;  %v3103_v2 = vpop.f32.mrf.mxu2 }
 0x52e   : > { %v3191_v6 = vadd.f32 %v3190_v31, %v3102_v7 }
 0x530   : > { %v3626_v31 = vpop.xlane.xlu1 %3625 }
 0x534   : > { %v7290_v62 = vld [vmem:[#allocation1] sm:$0xff] }
 0x535   : > { %4048 = vst [vmem:[#allocation1] ss:$9 sm:$0xff] %v3777_v33 }
 0x536   : > { %4049 = vst [vmem:[#allocation1 + $0x1] ss:$9 sm:$0xff] %v3778_v35  ;;  %v3796_v35 = vperm.slane %v3617_v57, 3 }
 0x537   : > { %4050 = vst [vmem:[#allocation1 + $0x2] ss:$9 sm:$0xff] %v3779_v38  ;;  %v3279_v38 = vpop.f32.mrf.mxu0 }
 0x538   : > { %4051 = vst [vmem:[#allocation1 + $0x3] ss:$9 sm:$0xff] %v3780_v15  ;;  %v3798_v15 = vperm.slane %v3617_v57, 5  ;;  %v3280_v37 = vadd.f32 %v3279_v38, %v3191_v6  ;;  %v3192_v6 = vpop.f32.mrf.mxu3 }
 0x539   : > { %4052 = vst [vmem:[#allocation1 + $0x4] ss:$9 sm:$0xff] %v3781_v9  ;;  %v3799_v9 = vperm.slane %v3617_v57, 6 }
 0x53a   : > { %4053 = vst [vmem:[#allocation1 + $0x5] ss:$9 sm:$0xff] %v3782_v23  ;;  %v3651_v23 = vsel %vm3584_vm2, %v3574_v1, 0.0 }
 0x53b   : > { %4054 = vst [vmem:[#allocation1 + $0x6] ss:$9 sm:$0xff] %v3783_v45  ;;  %v3368_v45 = vpop.f32.mrf.mxu1 }
 0x53c   : > { %4055 = vst [vmem:[#allocation1 + $0x7] ss:$9 sm:$0xff] %v3784_v12  ;;  %v3369_v19 = vadd.f32 %v3368_v45, %v3280_v37  ;;  %v3620_v12 = vpop.xlane.xlu2 %3619  ;;  %v3819_v37 = vperm.slane %v3626_v31, 2  ;;  %v3822_v45 = vperm.slane %v3626_v31, 5 }
 0x53d   : > { %v3801_v17 = vperm.slane %v3620_v12, 0  ;;  %v3802_v20 = vperm.slane %v3620_v12, 1  ;;  %v3803_v16 = vperm.slane %v3620_v12, 2  ;;  %v3804_v34 = vperm.slane %v3620_v12, 3 }
 0x53e   : > { %v3412_v51 = vmax.f32 %v3369_v19, 0.0  ;;  %v3806_v11 = vperm.slane %v3620_v12, 5  ;;  %v3808_v0 = vperm.slane %v3620_v12, 7 }
 0x540   : > { %v3446_v27 = vmul.f32 %v7296_v40, %v3412_v51  ;;  %v3824_v51 = vperm.slane %v3626_v31, 7 }
 0x541   : > { %3646 = vadd.xlane.f32.xlu2 %v3645_v32  ;;  %v7326_v32 = vld [vmem:[%s7122_s15 + $0x60] sm:$0xff]  }
 0x542   : > { %v5421_v13 = vunpack.c.l.bf16 %v7326_v32 }
 0x543   : > { %v4056_v41 = vld [vmem:[#allocation1] sm:$0xff] }
 0x544   : > { %4057 = vst [vmem:[#allocation1] ss:$9 sm:$0xff] %v3785_v43  ;;  %4289 = vperm.xlu0 %5503, %v4056_v41   ;;  %v3805_v43 = vperm.slane %v3620_v12, 4 }
 0x545   : > { %4058 = vst [vmem:[#allocation1 + $0x1] ss:$9 sm:$0xff] %v3786_v18  ;;  %v3188_v18 = vadd.f32 %v3187_v42, %v3099_v21 }
 0x546   : > { %4059 = vst [vmem:[#allocation1 + $0x2] ss:$9 sm:$0xff] %v3787_v39  ;;  %v3480_v39 = vadd.f32 %v7302_v55, %v3446_v27 }
 0x547   : > { %4060 = vst [vmem:[#allocation1 + $0x3] ss:$9 sm:$0xff] %v3788_v29  ;;  %v3277_v26 = vadd.f32 %v3276_v46, %v3188_v18  ;;  %v3623_v29 = vpop.xlane.xlu0 %3622 }
 0x548   : > { %4061 = vst [vmem:[#allocation1 + $0x4] ss:$9 sm:$0xff] %v3789_v48  ;;  %v3576_v41 = vmul.f32 %v5421_v13, %v3480_v39  ;;  %v3811_v42 = vperm.slane %v3623_v29, 2  ;;  %v3812_v5 = vperm.slane %v3623_v29, 3  ;;  %v3813_v57 = vperm.slane %v3623_v29, 4 }
 0x549   : > { %4062 = vst [vmem:[#allocation1 + $0x5] ss:$9 sm:$0xff] %v3790_v59  ;;  %v3366_v48 = vadd.f32 %v3365_v10, %v3277_v26  ;;  %v3809_v59 = vperm.slane %v3623_v29, 0  ;;  %v3814_v7 = vperm.slane %v3623_v29, 5  ;;  %v3815_v46 = vperm.slane %v3623_v29, 6 }
 0x54a   : > { %4063 = vst [vmem:[#allocation1 + $0x6] ss:$9 sm:$0xff] %v3791_v58  ;;  %v3657_v49 = vsel %vm3584_vm2, %v3576_v41, 0.0  ;;  %v3810_v58 = vperm.slane %v3623_v29, 1  ;;  %v3816_v63 = vperm.slane %v3623_v29, 7 }
 0x54b   : > { %4064 = vst [vmem:[#allocation1 + $0x7] ss:$9 sm:$0xff] %v3792_v30  ;;  %v3411_v56 = vmax.f32 %v3366_v48, 0.0 }
 0x54d   : > { %v3445_v10 = vmul.f32 %v7296_v40, %v3411_v56 }
 0x54f   : > { %v3632_v56 = vpop.xlane.xlu0 %3631 }
 0x552   : > { %v7316_v33 = vld [vmem:[#allocation1] sm:$0xff] }
 0x553   : > { %4066 = vst [vmem:[#allocation1] ss:$9 sm:$0xff] %v3793_v50  ;;  %v3104_v50 = vadd.f32 %v3103_v2, %v7097_v36 }
 0x554   : > { %4067 = vst [vmem:[#allocation1 + $0x1] ss:$9 sm:$0xff] %v3794_v25  ;;  %v5418_v25 = vunpack.c.h.bf16 %v7311_v8  ;;  %v3370_v8 = vpop.f32.mrf.mxu1 }
 0x555   : > { %4068 = vst [vmem:[#allocation1 + $0x2] ss:$9 sm:$0xff] %v3795_v22  ;;  %v3817_v22 = vperm.slane %v3626_v31, 0  ;;  %v3193_v1 = vadd.f32 %v3192_v6, %v3104_v50 }
 0x556   : > { %4069 = vst [vmem:[#allocation1 + $0x3] ss:$9 sm:$0xff] %v3796_v35  ;;  %v3281_v35 = vpop.f32.mrf.mxu0 }
 0x557   : > { %4070 = vst [vmem:[#allocation1 + $0x4] ss:$9 sm:$0xff] %v3797_v47  ;;  %3652 = vadd.xlane.f32.xlu1 %v3651_v23  ;;  %v3818_v47 = vperm.slane %v3626_v31, 1  ;;  %v3821_v23 = vperm.slane %v3626_v31, 4  ;;  %v3282_v36 = vadd.f32 %v3281_v35, %v3193_v1 }
 0x558   : > { %4071 = vst [vmem:[#allocation1 + $0x5] ss:$9 sm:$0xff] %v3798_v15  ;;  %v7336_v15 = vpop.f32.mrf.mxu2 }
 0x559   : > { %4072 = vst [vmem:[#allocation1 + $0x6] ss:$9 sm:$0xff] %v3799_v9  ;;  %4283 = vperm.xlu2 %5502, %v7285_v44   ;;  %v3807_v44 = vperm.slane %v3620_v12, 6  ;;  %v3823_v12 = vperm.slane %v3626_v31, 6 }
 0x55a   : > { %4073 = vst [vmem:[#allocation1 + $0x7] ss:$9 sm:$0xff] %v3800_v54  ;;  %v3820_v54 = vperm.slane %v3626_v31, 3  ;;  %v3833_v31 = vperm.slane %v3632_v56, 0 }
 0x560   : > { %v3108_v21 = vpop.f32.mrf.mxu2 }
 0x561   : > { %v7322_v52 = vld [vmem:[#allocation1] sm:$0xff] }
 0x562   : > { %4075 = vst [vmem:[#allocation1] ss:$9 sm:$0xff] %v3801_v17  ;;  %v7341_v17 = vpop.f32.mrf.mxu3 }
 0x563   : > { %4076 = vst [vmem:[#allocation1 + $0x1] ss:$9 sm:$0xff] %v3802_v20  ;;  %v3371_v20 = vadd.f32 %v3370_v8, %v3282_v36  ;;  %v3837_v36 = vperm.slane %v3632_v56, 4 }
 0x564   : > { %4077 = vst [vmem:[#allocation1 + $0x2] ss:$9 sm:$0xff] %v3803_v16  ;;  %v7343_v16 = vpop.f32.mrf.mxu0 }
 0x565   : > { %4078 = vst [vmem:[#allocation1 + $0x3] ss:$9 sm:$0xff] %v3804_v34  ;;  %v3629_v34 = vpop.xlane.xlu2 %3628  ;;  %v3413_v27 = vmax.f32 %v3371_v20, 0.0  ;;  %v3840_v20 = vperm.slane %v3632_v56, 7 }
 0x566   : > { %4079 = vst [vmem:[#allocation1 + $0x4] ss:$9 sm:$0xff] %v3805_v43  ;;  %v3109_v43 = vadd.f32 %v3108_v21, %v7139_v61  ;;  %v3826_v18 = vperm.slane %v3629_v34, 1  ;;  %v3828_v41 = vperm.slane %v3629_v34, 3  ;;  %v3829_v48 = vperm.slane %v3629_v34, 4 }
 0x567   : > { %4080 = vst [vmem:[#allocation1 + $0x5] ss:$9 sm:$0xff] %v3806_v11  ;;  %v3825_v11 = vperm.slane %v3629_v34, 0  ;;  %v3447_v39 = vmul.f32 %v7296_v40, %v3413_v27  ;;  %v3107_v21 = vadd.f32 %v7336_v15, %v7112_v53 }
 0x568   : > { %4081 = vst [vmem:[#allocation1 + $0x6] ss:$9 sm:$0xff] %v3807_v44  ;;  %v7346_v44 = vpop.f32.mrf.mxu1 }
 0x569   : > { %4082 = vst [vmem:[#allocation1 + $0x7] ss:$9 sm:$0xff] %v3808_v0  ;;  %v3827_v0 = vperm.slane %v3629_v34, 2  ;;  %v3481_v61 = vadd.f32 %v7302_v55, %v3447_v39 }
 0x56a   : > { %v3197_v13 = vpop.f32.mrf.mxu3 }
 0x56b   : > { %v3198_v29 = vadd.f32 %v3197_v13, %v3109_v43 }
 0x56d   : > { %v4266_v50 = vpop.permute.xlu2 %4265 }
 0x56e   : > { %3658 = vadd.xlane.f32.xlu0 %v3657_v49  ;;  %v3831_v49 = vperm.slane %v3629_v34, 6 }
 0x570   : > { %v4083_v30 = vld [vmem:[#allocation1] sm:$0xff]  ;;  %4286 = vperm.xlu1 %5504, %v7290_v62   ;;  %v3479_v62 = vadd.f32 %v7302_v55, %v3445_v10  ;;  %v3375_v2 = vpop.f32.mrf.mxu1 }
 0x571   : > { %4084 = vst [vmem:[#allocation1] ss:$9 sm:$0xff] %v3809_v59  ;;  %v3830_v59 = vperm.slane %v3629_v34, 5 }
 0x572   : > { %4085 = vst [vmem:[#allocation1 + $0x1] ss:$9 sm:$0xff] %v3810_v58  ;;  %v3575_v38 = vmul.f32 %v5418_v25, %v3479_v62  ;;  %v5422_v58 = vunpack.c.h.bf16 %v7326_v32  ;;  %v3834_v25 = vperm.slane %v3632_v56, 1 }
 0x573   : > { %4086 = vst [vmem:[#allocation1 + $0x2] ss:$9 sm:$0xff] %v3811_v42  ;;  %v3286_v42 = vpop.f32.mrf.mxu0 }
 0x574   : > { %4087 = vst [vmem:[#allocation1 + $0x3] ss:$9 sm:$0xff] %v3812_v5  ;;  %v3654_v19 = vsel %vm3584_vm2, %v3575_v38, 0.0  ;;  %v3287_v5 = vadd.f32 %v3286_v42, %v3198_v29  ;;  %v3835_v38 = vperm.slane %v3632_v56, 2  ;;  %v3111_v42 = vpop.f32.mrf.mxu2 }
 0x575   : > { %4088 = vst [vmem:[#allocation1 + $0x4] ss:$9 sm:$0xff] %v3813_v57  ;;  %v7353_v57 = vpop.xlane.xlu1 %3634 }
 0x576   : > { %4089 = vst [vmem:[#allocation1 + $0x5] ss:$9 sm:$0xff] %v3814_v7  ;;  %v4360_v7 = vlaneseq  ;;  %v3842_v13 = vperm.slane %v7353_v57, 1  ;;  %v3844_v29 = vperm.slane %v7353_v57, 3 }
 0x577   : > { %4090 = vst [vmem:[#allocation1 + $0x6] ss:$9 sm:$0xff] %v3815_v46  ;;  %v3577_v46 = vmul.f32 %v5422_v58, %v3481_v61  ;;  %v3848_v61 = vperm.slane %v7353_v57, 7 }
 0x578   : > { %4091 = vst [vmem:[#allocation1 + $0x7] ss:$9 sm:$0xff] %v3816_v63  ;;  %v3376_v63 = vadd.f32 %v3375_v2, %v3287_v5  ;;  %v7356_v10 = vand.u32 127, %v4360_v7 }
 0x579   : > { %v3660_v32 = vsel %vm3584_vm2, %v3577_v46, 0.0 }
 0x57a   : > { %v3415_v62 = vmax.f32 %v3376_v63, 0.0  ;;  %v7361_v6 = vadd.s32 4294967288, %v7356_v10  ;;  %v7364_v35 = vadd.s32 4294967280, %v7356_v10  ;;  %v7395_v46 = vadd.s32 4294967272, %v7356_v10 }
 0x57c   : > { %v3449_v8 = vmul.f32 %v7296_v40, %v3415_v62 }
 0x57d   : > { %v4272_v1 = vpop.permute.xlu1 %4271 }
 0x57e   : > { %v3483_v27 = vadd.f32 %v7302_v55, %v3449_v8 }
 0x57f   : > { %v7338_v9 = vld [vmem:[#allocation1] sm:$0xff] }
 0x580   : > { %4093 = vst [vmem:[#allocation1] ss:$9 sm:$0xff] %v3817_v22  ;;  %v4269_v22 = vpop.permute.xlu0 %4268 }
 0x581   : > { %4094 = vst [vmem:[#allocation1 + $0x1] ss:$9 sm:$0xff] %v3818_v47  ;;  %v4362_v47 = vperm.slane %v4266_v50, %v7356_v10 }
 0x582   : > { %4095 = vst [vmem:[#allocation1 + $0x2] ss:$9 sm:$0xff] %v3819_v37  ;;  %4298 = vperm.xlu0 %5503, %v4083_v30   ;;  %3655 = vadd.xlane.f32.xlu2 %v3654_v19  ;;  %v3832_v30 = vperm.slane %v3629_v34, 7  ;;  %v5447_v34 = vld [vmem:[%s7122_s15 + $0x68] sm:$0xff]  }
 0x583   : > { %4096 = vst [vmem:[#allocation1 + $0x3] ss:$9 sm:$0xff] %v3820_v54  ;;  %v3836_v54 = vperm.slane %v3632_v56, 3  ;;  %v5426_v43 = vunpack.c.h.bf16 %v5447_v34  ;;  %v5425_v50 = vunpack.c.l.bf16 %v5447_v34 }
 0x584   : > { %4097 = vst [vmem:[#allocation1 + $0x4] ss:$9 sm:$0xff] %v3821_v23  ;;  %v4364_v23 = vperm.slane %v4269_v22, %v7361_v6  ;;  %v7402_v22 = vpop.f32.mrf.mxu2 }
 0x585   : > { %4098 = vst [vmem:[#allocation1 + $0x5] ss:$9 sm:$0xff] %v3822_v45  ;;  %v3838_v45 = vperm.slane %v3632_v56, 5 }
 0x586   : > { %4099 = vst [vmem:[#allocation1 + $0x6] ss:$9 sm:$0xff] %v3823_v12  ;;  %v4366_v19 = vsel %vm4365_vm3, %v4364_v23, %v4362_v47  ;;  %v3839_v12 = vperm.slane %v3632_v56, 6  ;;  %v7406_v23 = vadd.s32 4294967264, %v7356_v10 }
 0x587   : > { %4100 = vst [vmem:[#allocation1 + $0x7] ss:$9 sm:$0xff] %v3824_v51 }
 0x58e   : > { %v7349_v26 = vld [vmem:[#allocation1] sm:$0xff] }
 0x58f   : > { %4102 = vst [vmem:[#allocation1] ss:$9 sm:$0xff] %v3825_v11  ;;  %v3196_v11 = vadd.f32 %v7341_v17, %v3107_v21 }
 0x590   : > { %4103 = vst [vmem:[#allocation1 + $0x1] ss:$9 sm:$0xff] %v3826_v18  ;;  %v3579_v18 = vmul.f32 %v5426_v43, %v3483_v27  ;;  %v3116_v43 = vpop.f32.mrf.mxu2 }
 0x591   : > { %4104 = vst [vmem:[#allocation1 + $0x2] ss:$9 sm:$0xff] %v3827_v0  ;;  %v3841_v0 = vperm.slane %v7353_v57, 0  ;;  %v3285_v39 = vadd.f32 %v7343_v16, %v3196_v11  ;;  %v3847_v16 = vperm.slane %v7353_v57, 6  ;;  %v3641_v11 = vpop.xlane.xlu0 %3640 }
 0x592   : > { %4105 = vst [vmem:[#allocation1 + $0x3] ss:$9 sm:$0xff] %v3828_v41  ;;  %v3843_v41 = vperm.slane %v7353_v57, 2  ;;  %v3666_v53 = vsel %vm3584_vm2, %v3579_v18, 0.0 }
 0x593   : > { %4106 = vst [vmem:[#allocation1 + $0x4] ss:$9 sm:$0xff] %v3829_v48  ;;  %v3845_v48 = vperm.slane %v7353_v57, 4  ;;  %v3374_v17 = vadd.f32 %v7346_v44, %v3285_v39 }
 0x594   : > { %4107 = vst [vmem:[#allocation1 + $0x5] ss:$9 sm:$0xff] %v3830_v59  ;;  %v3846_v59 = vperm.slane %v7353_v57, 5 }
 0x595   : > { %4108 = vst [vmem:[#allocation1 + $0x6] ss:$9 sm:$0xff] %v3831_v49  ;;  %v3638_v49 = vpop.xlane.xlu2 %3637  ;;  %v3414_v58 = vmax.f32 %v3374_v17, 0.0 }
 0x596   : > { %4109 = vst [vmem:[#allocation1 + $0x7] ss:$9 sm:$0xff] %v3832_v30  ;;  %v3200_v30 = vpop.f32.mrf.mxu3  ;;  %v3849_v5 = vperm.slane %v3638_v49, 0  ;;  %v3850_v56 = vperm.slane %v3638_v49, 1  ;;  %v3851_v63 = vperm.slane %v3638_v49, 2  ;;  %v3852_v62 = vperm.slane %v3638_v49, 3 }
 0x597   : > { %v3448_v44 = vmul.f32 %v7296_v40, %v3414_v58  ;;  %v3854_v47 = vperm.slane %v3638_v49, 5  ;;  %v3861_v58 = vperm.slane %v3641_v11, 4 }
 0x599   : > { %v3482_v57 = vadd.f32 %v7302_v55, %v3448_v44  ;;  %v3863_v44 = vperm.slane %v3641_v11, 6 }
 0x59a   : > { %3661 = vadd.xlane.f32.xlu1 %v3660_v32  ;;  %4292 = vperm.xlu2 %5502, %v7316_v33   ;;  %v4368_v33 = vperm.slane %v4272_v1, %v7364_v35  ;;  %v3289_v32 = vpop.f32.mrf.mxu0  ;;  %v3853_v1 = vperm.slane %v3638_v49, 4 }
 0x59c   : > { %v4370_v51 = vsel %vm4369_vm4, %v4368_v33, %v4366_v19  ;;  %v3578_v33 = vmul.f32 %v5425_v50, %v3482_v57 }
 0x59d   : > { %v7367_v37 = vld [vmem:[#allocation1] sm:$0xff]  ;;  %v4275_v2 = vpop.permute.xlu2 %4274 }
 0x59e   : > { %4111 = vst [vmem:[#allocation1] ss:$9 sm:$0xff] %v3833_v31 }
 0x59f   : > { %4112 = vst [vmem:[#allocation1 + $0x1] ss:$9 sm:$0xff] %v3834_v25  ;;  %v3112_v25 = vadd.f32 %v3111_v42, %v7156_v4  ;;  %v7408_v4 = vpop.xlane.xlu1 %3643  ;;  %v3862_v42 = vperm.slane %v3641_v11, 5 }
 0x5a0   : > { %4113 = vst [vmem:[#allocation1 + $0x2] ss:$9 sm:$0xff] %v3835_v38 }
 0x5a1   : > { %4114 = vst [vmem:[#allocation1 + $0x3] ss:$9 sm:$0xff] %v3836_v54  ;;  %v3855_v54 = vperm.slane %v3638_v49, 6  ;;  %v3201_v19 = vadd.f32 %v3200_v30, %v3112_v25  ;;  %v3866_v25 = vperm.slane %v7408_v4, 1 }
 0x5a2   : > { %4115 = vst [vmem:[#allocation1 + $0x4] ss:$9 sm:$0xff] %v3837_v36  ;;  %v3856_v36 = vperm.slane %v3638_v49, 7  ;;  %v7416_v27 = vpop.f32.mrf.mxu0 }
 0x5a3   : > { %4116 = vst [vmem:[#allocation1 + $0x5] ss:$9 sm:$0xff] %v3838_v45  ;;  %v3378_v45 = vpop.f32.mrf.mxu1  ;;  %v3290_v21 = vadd.f32 %v3289_v32, %v3201_v19  ;;  %v3871_v19 = vperm.slane %v7408_v4, 6 }
 0x5a4   : > { %4117 = vst [vmem:[#allocation1 + $0x6] ss:$9 sm:$0xff] %v3839_v12  ;;  %v7411_v12 = vpop.f32.mrf.mxu3 }
 0x5a5   : > { %4118 = vst [vmem:[#allocation1 + $0x7] ss:$9 sm:$0xff] %v3840_v20  ;;  %v4278_v8 = vpop.permute.xlu2 %4277  ;;  %v3663_v20 = vsel %vm3584_vm2, %v3578_v33, 0.0  ;;  %v3379_v18 = vadd.f32 %v3378_v45, %v3290_v21  ;;  %v3868_v33 = vperm.slane %v7408_v4, 3  ;;  %v3870_v45 = vperm.slane %v7408_v4, 5 }
 0x5a7   : > { %v4281_v39 = vpop.permute.xlu1 %4280 }
 0x5aa   : > { %v3294_v30 = vpop.f32.mrf.mxu0 }
 0x5ac   : > { %v7384_v15 = vld [vmem:[#allocation1] sm:$0xff]  ;;  %3667 = vadd.xlane.f32.xlu0 %v3666_v53  ;;  %v7423_v53 = vpop.f32.mrf.mxu1  ;;  %v3205_v49 = vpop.f32.mrf.mxu3 }
 0x5ad   : > { %4120 = vst [vmem:[#allocation1] ss:$9 sm:$0xff] %v3841_v0  ;;  %v7421_v0 = vadd.s32 4294967256, %v7356_v10 }
 0x5ae   : > { %4121 = vst [vmem:[#allocation1 + $0x1] ss:$9 sm:$0xff] %v3842_v13 }
 0x5af   : > { %4122 = vst [vmem:[#allocation1 + $0x2] ss:$9 sm:$0xff] %v3843_v41  ;;  %v3857_v41 = vperm.slane %v3641_v11, 0  ;;  %v4380_v17 = vperm.slane %v4281_v39, %v7421_v0  ;;  %v7458_v39 = vadd.s32 4294967248, %v7356_v10 }
 0x5b0   : > { %4123 = vst [vmem:[#allocation1 + $0x3] ss:$9 sm:$0xff] %v3844_v29 }
 0x5b1   : > { %4124 = vst [vmem:[#allocation1 + $0x4] ss:$9 sm:$0xff] %v3845_v48  ;;  %v3858_v48 = vperm.slane %v3641_v11, 1 }
 0x5b2   : > { %4125 = vst [vmem:[#allocation1 + $0x5] ss:$9 sm:$0xff] %v3846_v59  ;;  %v3859_v59 = vperm.slane %v3641_v11, 2 }
 0x5b3   : > { %4126 = vst [vmem:[#allocation1 + $0x6] ss:$9 sm:$0xff] %v3847_v16  ;;  %4295 = vperm.xlu1 %5504, %v7322_v52   ;;  %v4372_v52 = vperm.slane %v4275_v2, %v7395_v46  ;;  %v3416_v16 = vmax.f32 %v3379_v18, 0.0 }
 0x5b4   : > { %4127 = vst [vmem:[#allocation1 + $0x7] ss:$9 sm:$0xff] %v3848_v61  ;;  %v3383_v57 = vpop.f32.mrf.mxu1 }
 0x5b5   : > { %v4374_v38 = vsel %vm4373_vm5, %v4372_v52, %v4370_v51  ;;  %v4376_v51 = vperm.slane %v4278_v8, %v7406_v23  ;;  %v3865_v52 = vperm.slane %v7408_v4, 0  ;;  %v3647_v8 = vpop.xlane.xlu2 %3646 }
 0x5b7   : > { %v4378_v34 = vsel %vm4377_vm6, %v4376_v51, %v4374_v38 }
 0x5bb   : > { %v7398_v31 = vld [vmem:[#allocation1] sm:$0xff] }
 0x5bc   : > { %4129 = vst [vmem:[#allocation1] ss:$9 sm:$0xff] %v3849_v5  ;;  %v3864_v5 = vperm.slane %v3641_v11, 7 }
 0x5bd   : > { %4130 = vst [vmem:[#allocation1 + $0x1] ss:$9 sm:$0xff] %v3850_v56  ;;  %v3450_v56 = vmul.f32 %v7296_v40, %v3416_v16  ;;  %v3877_v16 = vperm.slane %v3647_v8, 4 }
 0x5be   : > { %4131 = vst [vmem:[#allocation1 + $0x2] ss:$9 sm:$0xff] %v3851_v63  ;;  %v7433_v63 = vld [vmem:[%s7122_s15 + $0x70] sm:$0xff]  }
 0x5bf   : > { %4132 = vst [vmem:[#allocation1 + $0x3] ss:$9 sm:$0xff] %v3852_v62  ;;  %v3484_v50 = vadd.f32 %v7302_v55, %v3450_v56  ;;  %v5429_v32 = vunpack.c.l.bf16 %v7433_v63  ;;  %v7472_v56 = vadd.s32 4294967240, %v7356_v10 }
 0x5c0   : > { %4133 = vst [vmem:[#allocation1 + $0x4] ss:$9 sm:$0xff] %v3853_v1  ;;  %4307 = vperm.xlu0 %5503, %v7367_v37   ;;  %v3028_v37 = vadd.f32 %v7089_v14, %v7103_v28  ;;  %v3860_v14 = vperm.slane %v3641_v11, 3  ;;  %v7429_v28 = vsel %vm4381_vm7, %v4380_v17, %v4378_v34  ;;  %v3867_v1 = vperm.slane %v7408_v4, 2  ;;  %v7451_v34 = vld [vmem:[%s7122_s15 + $0x78] sm:$0xff]   ;;  %s4475_s15 = sshll.u32 %s261_s25, 4  ;;  %s4476_s15 = int_to_ptr.vmem [resolvable:$true] %s4475_s15 }
 0x5c1   : > { %4134 = vst [vmem:[#allocation1 + $0x5] ss:$9 sm:$0xff] %v3854_v47  ;;  %v3580_v47 = vmul.f32 %v5429_v32, %v3484_v50  ;;  %v3114_v11 = vadd.f32 %v7402_v22, %v7172_v60  ;;  %v3878_v22 = vperm.slane %v3647_v8, 5 }
 0x5c2   : > { %4135 = vst [vmem:[#allocation1 + $0x6] ss:$9 sm:$0xff] %v3855_v54  ;;  %v3117_v13 = vadd.f32 %v3116_v43, %v3028_v37  ;;  %v5433_v43 = vunpack.c.l.bf16 %v7451_v34  ;;  %v3873_v37 = vperm.slane %v3647_v8, 0 }
 0x5c3   : > { %4136 = vst [vmem:[#allocation1 + $0x7] ss:$9 sm:$0xff] %v3856_v36  ;;  %3664 = vadd.xlane.f32.xlu2 %v3663_v20  ;;  %v3869_v36 = vperm.slane %v7408_v4, 4  ;;  %v3669_v51 = vsel %vm3584_vm2, %v3580_v47, 0.0  ;;  %v3872_v20 = vperm.slane %v7408_v4, 7  ;;  %v3874_v4 = vperm.slane %v3647_v8, 1 }
 0x5c4   : > { %v3206_v61 = vadd.f32 %v3205_v49, %v3117_v13  ;;  %v4284_v13 = vpop.permute.xlu2 %4283 }
 0x5c5   : > { %v4384_v49 = vperm.slane %v4284_v13, %v7458_v39 }
 0x5c6   : > { %v3295_v2 = vadd.f32 %v3294_v30, %v3206_v61  ;;  %v3879_v61 = vperm.slane %v3647_v8, 6 }
 0x5c8   : > { %v3384_v62 = vadd.f32 %v3383_v57, %v3295_v2 }
 0x5ca   : > { %v7425_v29 = vld [vmem:[#allocation1] sm:$0xff]  ;;  %v3418_v38 = vmax.f32 %v3384_v62, 0.0 }
 0x5cb   : > { %4138 = vst [vmem:[#allocation1] ss:$9 sm:$0xff] %v3857_v41  ;;  %v3203_v41 = vadd.f32 %v7411_v12, %v3114_v11  ;;  %v4386_v12 = vsel %vm4385_vm8, %v4384_v49, %v7429_v28 }
 0x5cc   : > { %4139 = vst [vmem:[#allocation1 + $0x1] ss:$9 sm:$0xff] %v3858_v48  ;;  %v3452_v21 = vmul.f32 %v7296_v40, %v3418_v38  ;;  %v3875_v48 = vperm.slane %v3647_v8, 2  ;;  %v3118_v38 = vpop.f32.mrf.mxu2 }
 0x5cd   : > { %4140 = vst [vmem:[#allocation1 + $0x2] ss:$9 sm:$0xff] %v3859_v59  ;;  %v3876_v59 = vperm.slane %v3647_v8, 3 }
 0x5ce   : > { %4141 = vst [vmem:[#allocation1 + $0x3] ss:$9 sm:$0xff] %v3860_v14  ;;  %v3292_v14 = vadd.f32 %v7416_v27, %v3203_v41 }
 0x5cf   : > { %4142 = vst [vmem:[#allocation1 + $0x4] ss:$9 sm:$0xff] %v3861_v58  ;;  %v3880_v58 = vperm.slane %v3647_v8, 7 }
 0x5d0   : > { %4143 = vst [vmem:[#allocation1 + $0x5] ss:$9 sm:$0xff] %v3862_v42  ;;  %v7468_v42 = vpop.xlane.xlu1 %3652 }
 0x5d1   : > { %4144 = vst [vmem:[#allocation1 + $0x6] ss:$9 sm:$0xff] %v3863_v44  ;;  %v3381_v44 = vadd.f32 %v7423_v53, %v3292_v14  ;;  %v3891_v11 = vperm.slane %v7468_v42, 2  ;;  %v3894_v13 = vperm.slane %v7468_v42, 5 }
 0x5d2   : > { %4145 = vst [vmem:[#allocation1 + $0x7] ss:$9 sm:$0xff] %v3864_v5  ;;  %v3650_v5 = vpop.xlane.xlu0 %3649 }
 0x5d3   : > { %v3417_v30 = vmax.f32 %v3381_v44, 0.0  ;;  %v3881_v2 = vperm.slane %v3650_v5, 0  ;;  %v3882_v28 = vperm.slane %v3650_v5, 1  ;;  %v3883_v62 = vperm.slane %v3650_v5, 2 }
 0x5d4   : > { %v3884_v53 = vperm.slane %v3650_v5, 3 }
 0x5d5   : > { %v3451_v32 = vmul.f32 %v7296_v40, %v3417_v30 }
 0x5d7   : > { %v3485_v47 = vadd.f32 %v7302_v55, %v3451_v32 }
 0x5d9   : > { %v7440_v54 = vld [vmem:[#allocation1] sm:$0xff] }
 0x5da   : > { %4147 = vst [vmem:[#allocation1] ss:$9 sm:$0xff] %v3865_v52 }
 0x5db   : > { %4148 = vst [vmem:[#allocation1 + $0x1] ss:$9 sm:$0xff] %v3866_v25  ;;  %4301 = vperm.xlu2 %5502, %v7338_v9   ;;  %v3486_v9 = vadd.f32 %v7302_v55, %v3452_v21  ;;  %v3885_v25 = vperm.slane %v3650_v5, 4 }
 0x5dc   : > { %4149 = vst [vmem:[#allocation1 + $0x2] ss:$9 sm:$0xff] %v3867_v1  ;;  %v3886_v1 = vperm.slane %v3650_v5, 5 }
 0x5dd   : > { %4150 = vst [vmem:[#allocation1 + $0x3] ss:$9 sm:$0xff] %v3868_v33  ;;  %3670 = vadd.xlane.f32.xlu1 %v3669_v51  ;;  %v3582_v18 = vmul.f32 %v5433_v43, %v3486_v9  ;;  %v3887_v33 = vperm.slane %v3650_v5, 6  ;;  %v3207_v51 = vpop.f32.mrf.mxu3  ;;  %v3296_v9 = vpop.f32.mrf.mxu0 }
 0x5de   : > { %4151 = vst [vmem:[#allocation1 + $0x4] ss:$9 sm:$0xff] %v3869_v36  ;;  %v3030_v36 = vadd.f32 %v7101_v24, %v7107_v3  ;;  %v3890_v24 = vperm.slane %v7468_v42, 1 }
 0x5df   : > { %4152 = vst [vmem:[#allocation1 + $0x5] ss:$9 sm:$0xff] %v3870_v45  ;;  %v3675_v60 = vsel %vm3584_vm2, %v3582_v18, 0.0  ;;  %v3888_v45 = vperm.slane %v3650_v5, 7 }
 0x5e0   : > { %4153 = vst [vmem:[#allocation1 + $0x6] ss:$9 sm:$0xff] %v3871_v19  ;;  %v3119_v19 = vadd.f32 %v3118_v38, %v3030_v36 }
 0x5e1   : > { %4154 = vst [vmem:[#allocation1 + $0x7] ss:$9 sm:$0xff] %v3872_v20 }
 0x5e2   : > { %v4287_v27 = vpop.permute.xlu1 %4286  ;;  %v3208_v20 = vadd.f32 %v3207_v51, %v3119_v19 }
 0x5e3   : > { %v4388_v50 = vperm.slane %v4287_v27, %v7472_v56 }
 0x5e4   : > { %v3297_v3 = vadd.f32 %v3296_v9, %v3208_v20 }
 0x5e5   : > { %v4390_v52 = vsel %vm4389_vm9, %v4388_v50, %v4386_v12  ;;  %v7499_v12 = vadd.s32 4294967224, %v7356_v10 }
 0x5e8   : > { %v7461_v17 = vld [vmem:[#allocation1] sm:$0xff] }
 0x5e9   : > { %4156 = vst [vmem:[#allocation1] ss:$9 sm:$0xff] %v3873_v37  ;;  %v3893_v37 = vperm.slane %v7468_v42, 4 }
 0x5ea   : > { %4157 = vst [vmem:[#allocation1 + $0x1] ss:$9 sm:$0xff] %v3874_v4  ;;  %3676 = vadd.xlane.f32.xlu0 %v3675_v60  ;;  %v3385_v4 = vpop.f32.mrf.mxu1  ;;  %v4290_v60 = vpop.permute.xlu0 %4289 }
 0x5eb   : > { %4158 = vst [vmem:[#allocation1 + $0x2] ss:$9 sm:$0xff] %v3875_v48  ;;  %v3386_v41 = vadd.f32 %v3385_v4, %v3297_v3  ;;  %v3895_v48 = vperm.slane %v7468_v42, 6 }
 0x5ec   : > { %4159 = vst [vmem:[#allocation1 + $0x3] ss:$9 sm:$0xff] %v3876_v59  ;;  %v3896_v59 = vperm.slane %v7468_v42, 7 }
 0x5ed   : > { %4160 = vst [vmem:[#allocation1 + $0x4] ss:$9 sm:$0xff] %v3877_v16  ;;  %v7495_v16 = vadd.s32 4294967232, %v7356_v10  ;;  %v3419_v49 = vmax.f32 %v3386_v41, 0.0 }
 0x5ee   : > { %4161 = vst [vmem:[#allocation1 + $0x5] ss:$9 sm:$0xff] %v3878_v22 }
 0x5ef   : > { %4162 = vst [vmem:[#allocation1 + $0x6] ss:$9 sm:$0xff] %v3879_v61  ;;  %v4392_v22 = vperm.slane %v4290_v60, %v7495_v16  ;;  %v3453_v44 = vmul.f32 %v7296_v40, %v3419_v49 }
 0x5f0   : > { %4163 = vst [vmem:[#allocation1 + $0x7] ss:$9 sm:$0xff] %v3880_v58 }
 0x5f1   : > { %v4394_v30 = vsel %vm4393_vm10, %v4392_v22, %v4390_v52  ;;  %v3487_v32 = vadd.f32 %v7302_v55, %v3453_v44  ;;  %v7512_v55 = vadd.s32 4294967216, %v7356_v10 }
 0x5f5   : > { %v3656_v18 = vpop.xlane.xlu2 %3655 }
 0x5f6   : > { %4304 = vperm.xlu1 %5504, %v7349_v26   ;;  %v5430_v26 = vunpack.c.h.bf16 %v7433_v63  ;;  %v3889_v63 = vperm.slane %v7468_v42, 0  ;;  %v3897_v14 = vperm.slane %v3656_v18, 0  ;;  %v3898_v61 = vperm.slane %v3656_v18, 1 }
 0x5f7   : > { %v4164_v57 = vld [vmem:[#allocation1] sm:$0xff]  ;;  %v3900_v27 = vperm.slane %v3656_v18, 3  ;;  %v3903_v40 = vperm.slane %v3656_v18, 6 }
 0x5f8   : > { %4165 = vst [vmem:[#allocation1] ss:$9 sm:$0xff] %v3881_v2  ;;  %v3581_v8 = vmul.f32 %v5430_v26, %v3485_v47  ;;  %v3659_v47 = vpop.xlane.xlu0 %3658 }
 0x5f9   : > { %4166 = vst [vmem:[#allocation1 + $0x1] ss:$9 sm:$0xff] %v3882_v28  ;;  %v3901_v28 = vperm.slane %v3656_v18, 4  ;;  %v3906_v26 = vperm.slane %v3659_v47, 1  ;;  %v3909_v19 = vperm.slane %v3659_v47, 4  ;;  %v3911_v20 = vperm.slane %v3659_v47, 6 }
 0x5fa   : > { %4167 = vst [vmem:[#allocation1 + $0x2] ss:$9 sm:$0xff] %v3883_v62  ;;  %v3672_v21 = vsel %vm3584_vm2, %v3581_v8, 0.0  ;;  %v5434_v62 = vunpack.c.h.bf16 %v7451_v34  ;;  %v3905_v34 = vperm.slane %v3659_v47, 0  ;;  %v3910_v8 = vperm.slane %v3659_v47, 5 }
 0x5fb   : > { %4168 = vst [vmem:[#allocation1 + $0x3] ss:$9 sm:$0xff] %v3884_v53  ;;  %v3904_v53 = vperm.slane %v3656_v18, 7 }
 0x5fc   : > { %4169 = vst [vmem:[#allocation1 + $0x4] ss:$9 sm:$0xff] %v3885_v25  ;;  %v3583_v52 = vmul.f32 %v5434_v62, %v3487_v32 }
 0x5fd   : > { %4170 = vst [vmem:[#allocation1 + $0x5] ss:$9 sm:$0xff] %v3886_v1  ;;  %v4293_v58 = vpop.permute.xlu2 %4292 }
 0x5fe   : > { %4171 = vst [vmem:[#allocation1 + $0x6] ss:$9 sm:$0xff] %v3887_v33  ;;  %4316 = vperm.xlu0 %5503, %v7425_v29   ;;  %v3892_v29 = vperm.slane %v7468_v42, 3  ;;  %v3899_v42 = vperm.slane %v3656_v18, 2  ;;  %v4396_v2 = vperm.slane %v4293_v58, %v7499_v12  ;;  %v3678_v1 = vsel %vm3584_vm2, %v3583_v52, 0.0 }
 0x5ff   : > { %4172 = vst [vmem:[#allocation1 + $0x7] ss:$9 sm:$0xff] %v3888_v45  ;;  %v3907_v33 = vperm.slane %v3659_v47, 2  ;;  %v7526_v58 = vadd.s32 4294967200, %v7356_v10  ;;  %vm4421_vm2 = vcmask 1048512  }
 0x600   : > { %v4398_v50 = vsel %vm4397_vm11, %v4396_v2, %v4394_v30  ;;  %v4299_v4 = vpop.permute.xlu0 %4298 }
 0x604   : > { %3673 = vadd.xlane.f32.xlu2 %v3672_v21  ;;  %v3912_v21 = vperm.slane %v3659_v47, 7 }
 0x606   : > { %v7485_v43 = vld [vmem:[#allocation1] sm:$0xff]  ;;  %4325 = vperm.xlu0 %5503, %v4164_v57   ;;  %v3902_v57 = vperm.slane %v3656_v18, 5 }
 0x607   : > { %4174 = vst [vmem:[#allocation1] ss:$9 sm:$0xff] %v3889_v63 }
 0x608   : > { %4175 = vst [vmem:[#allocation1 + $0x1] ss:$9 sm:$0xff] %v3890_v24 }
 0x609   : > { %4176 = vst [vmem:[#allocation1 + $0x2] ss:$9 sm:$0xff] %v3891_v11 }
 0x60a   : > { %4177 = vst [vmem:[#allocation1 + $0x3] ss:$9 sm:$0xff] %v3892_v29 }
 0x60b   : > { %4178 = vst [vmem:[#allocation1 + $0x4] ss:$9 sm:$0xff] %v3893_v37 }
 0x60c   : > { %4179 = vst [vmem:[#allocation1 + $0x5] ss:$9 sm:$0xff] %v3894_v13 }
 0x60d   : > { %4180 = vst [vmem:[#allocation1 + $0x6] ss:$9 sm:$0xff] %v3895_v48  ;;  %v3662_v25 = vpop.xlane.xlu1 %3661 }
 0x60e   : > { %4181 = vst [vmem:[#allocation1 + $0x7] ss:$9 sm:$0xff] %v3896_v59  ;;  %v3914_v9 = vperm.slane %v3662_v25, 1  ;;  %v3915_v24 = vperm.slane %v3662_v25, 2  ;;  %v3916_v3 = vperm.slane %v3662_v25, 3  ;;  %v3917_v11 = vperm.slane %v3662_v25, 4 }
 0x60f   : > { %v3918_v29 = vperm.slane %v3662_v25, 5  ;;  %v3919_v37 = vperm.slane %v3662_v25, 6  ;;  %v3920_v18 = vperm.slane %v3662_v25, 7 }
 0x615   : > { %v7503_v5 = vld [vmem:[#allocation1] sm:$0xff] }
 0x616   : > { %4183 = vst [vmem:[#allocation1] ss:$9 sm:$0xff] %v3897_v14 }
 0x617   : > { %4184 = vst [vmem:[#allocation1 + $0x1] ss:$9 sm:$0xff] %v3898_v61 }
 0x618   : > { %4185 = vst [vmem:[#allocation1 + $0x2] ss:$9 sm:$0xff] %v3899_v42 }
 0x619   : > { %4186 = vst [vmem:[#allocation1 + $0x3] ss:$9 sm:$0xff] %v3900_v27 }
 0x61a   : > { %4187 = vst [vmem:[#allocation1 + $0x4] ss:$9 sm:$0xff] %v3901_v28 }
 0x61b   : > { %4188 = vst [vmem:[#allocation1 + $0x5] ss:$9 sm:$0xff] %v3902_v57 }
 0x61c   : > { %4189 = vst [vmem:[#allocation1 + $0x6] ss:$9 sm:$0xff] %v3903_v40  ;;  %4310 = vperm.xlu2 %5502, %v7384_v15   ;;  %v3908_v15 = vperm.slane %v3659_v47, 3 }
 0x61d   : > { %4190 = vst [vmem:[#allocation1 + $0x7] ss:$9 sm:$0xff] %v3904_v53 }
 0x61f   : > { %v3668_v2 = vpop.xlane.xlu0 %3667 }
 0x620   : > { %3679 = vadd.xlane.f32.xlu1 %v3678_v1  ;;  %v3929_v28 = vperm.slane %v3668_v2, 0  ;;  %v3930_v57 = vperm.slane %v3668_v2, 1  ;;  %v3931_v32 = vperm.slane %v3668_v2, 2  ;;  %v3932_v62 = vperm.slane %v3668_v2, 3 }
 0x621   : > { %v3933_v40 = vperm.slane %v3668_v2, 4  ;;  %v3934_v53 = vperm.slane %v3668_v2, 5  ;;  %v3935_v52 = vperm.slane %v3668_v2, 6 }
 0x624   : > { %v4191_v38 = vld [vmem:[#allocation1] sm:$0xff]  ;;  %4319 = vperm.xlu2 %5502, %v7440_v54   ;;  %v3913_v54 = vperm.slane %v3662_v25, 0 }
 0x625   : > { %4192 = vst [vmem:[#allocation1] ss:$9 sm:$0xff] %v3905_v34  ;;  %4334 = vperm.xlu0 %5503, %v4191_v38   ;;  %v4296_v36 = vpop.permute.xlu1 %4295 }
 0x626   : > { %4193 = vst [vmem:[#allocation1 + $0x1] ss:$9 sm:$0xff] %v3906_v26  ;;  %v4400_v45 = vperm.slane %v4296_v36, %v7512_v55 }
 0x627   : > { %4194 = vst [vmem:[#allocation1 + $0x2] ss:$9 sm:$0xff] %v3907_v33 }
 0x628   : > { %4195 = vst [vmem:[#allocation1 + $0x3] ss:$9 sm:$0xff] %v3908_v15  ;;  %v4402_v51 = vsel %vm4401_vm12, %v4400_v45, %v4398_v50 }
 0x629   : > { %4196 = vst [vmem:[#allocation1 + $0x4] ss:$9 sm:$0xff] %v3909_v19  ;;  %v7532_v19 = vadd.s32 4294967192, %v7356_v10 }
 0x62a   : > { %4197 = vst [vmem:[#allocation1 + $0x5] ss:$9 sm:$0xff] %v3910_v8 }
 0x62b   : > { %4198 = vst [vmem:[#allocation1 + $0x6] ss:$9 sm:$0xff] %v3911_v20 }
 0x62c   : > { %4199 = vst [vmem:[#allocation1 + $0x7] ss:$9 sm:$0xff] %v3912_v21  ;;  %4328 = vperm.xlu2 %5502, %v7485_v43   ;;  %v7520_v43 = vadd.s32 4294967208, %v7356_v10 }
 0x62e   : > { %v4404_v41 = vperm.slane %v4299_v4, %v7520_v43 }
 0x630   : > { %v4406_v14 = vsel %vm4405_vm13, %v4404_v41, %v4402_v51 }
 0x633   : > { %v4200_v63 = vld [vmem:[#allocation1] sm:$0xff] }
 0x634   : > { %4201 = vst [vmem:[#allocation1] ss:$9 sm:$0xff] %v3913_v54  ;;  %4337 = vperm.xlu2 %5502, %v4200_v63   ;;  %v7537_v54 = vadd.s32 4294967184, %v7356_v10  ;;  %v4308_v63 = vpop.permute.xlu0 %4307 }
 0x635   : > { %4202 = vst [vmem:[#allocation1 + $0x1] ss:$9 sm:$0xff] %v3914_v9 }
 0x636   : > { %4203 = vst [vmem:[#allocation1 + $0x2] ss:$9 sm:$0xff] %v3915_v24  ;;  %v3665_v13 = vpop.xlane.xlu2 %3664  ;;  %v4416_v24 = vperm.slane %v4308_v63, %v7537_v54 }
 0x637   : > { %4204 = vst [vmem:[#allocation1 + $0x3] ss:$9 sm:$0xff] %v3916_v3  ;;  %v3921_v48 = vperm.slane %v3665_v13, 0  ;;  %v3922_v59 = vperm.slane %v3665_v13, 1  ;;  %v3923_v49 = vperm.slane %v3665_v13, 2  ;;  %v3924_v22 = vperm.slane %v3665_v13, 3 }
 0x638   : > { %4205 = vst [vmem:[#allocation1 + $0x4] ss:$9 sm:$0xff] %v3917_v11  ;;  %v3926_v61 = vperm.slane %v3665_v13, 5  ;;  %v3927_v44 = vperm.slane %v3665_v13, 6  ;;  %v3928_v42 = vperm.slane %v3665_v13, 7 }
 0x639   : > { %4206 = vst [vmem:[#allocation1 + $0x5] ss:$9 sm:$0xff] %v3918_v29  ;;  %4313 = vperm.xlu1 %5504, %v7398_v31   ;;  %v3925_v31 = vperm.slane %v3665_v13, 4 }
 0x63a   : > { %4207 = vst [vmem:[#allocation1 + $0x6] ss:$9 sm:$0xff] %v3919_v37 }
 0x63b   : > { %4208 = vst [vmem:[#allocation1 + $0x7] ss:$9 sm:$0xff] %v3920_v18 }
 0x63e   : > { %v4302_v30 = vpop.permute.xlu2 %4301 }
 0x641   : > { %4322 = vperm.xlu1 %5504, %v7461_v17   ;;  %v4408_v17 = vperm.slane %v4302_v30, %v7526_v58 }
 0x642   : > { %v4209_v60 = vld [vmem:[#allocation1] sm:$0xff] }
 0x643   : > { %4210 = vst [vmem:[#allocation1] ss:$9 sm:$0xff] %v3921_v48  ;;  %v4410_v27 = vsel %vm4409_vm14, %v4408_v17, %v4406_v14 }
 0x644   : > { %4211 = vst [vmem:[#allocation1 + $0x1] ss:$9 sm:$0xff] %v3922_v59 }
 0x645   : > { %4212 = vst [vmem:[#allocation1 + $0x2] ss:$9 sm:$0xff] %v3923_v49 }
 0x646   : > { %4213 = vst [vmem:[#allocation1 + $0x3] ss:$9 sm:$0xff] %v3924_v22 }
 0x647   : > { %4214 = vst [vmem:[#allocation1 + $0x4] ss:$9 sm:$0xff] %v3925_v31 }
 0x648   : > { %4215 = vst [vmem:[#allocation1 + $0x5] ss:$9 sm:$0xff] %v3926_v61 }
 0x649   : > { %4216 = vst [vmem:[#allocation1 + $0x6] ss:$9 sm:$0xff] %v3927_v44  ;;  %4331 = vperm.xlu1 %5504, %v7503_v5   ;;  %v3936_v5 = vperm.slane %v3668_v2, 7 }
 0x64a   : > { %4217 = vst [vmem:[#allocation1 + $0x7] ss:$9 sm:$0xff] %v3928_v42 }
 0x650   : > { %v3671_v25 = vpop.xlane.xlu1 %3670 }
 0x651   : > { %v4218_v50 = vld [vmem:[#allocation1] sm:$0xff]  ;;  %4340 = vperm.xlu1 %5504, %v4209_v60   ;;  %v3937_v1 = vperm.slane %v3671_v25, 0  ;;  %v3938_v47 = vperm.slane %v3671_v25, 1  ;;  %v3939_v34 = vperm.slane %v3671_v25, 2  ;;  %v3940_v26 = vperm.slane %v3671_v25, 3 }
 0x652   : > { %4343 = vperm.xlu0 %5503, %v4218_v50   ;;  %4219 = vst [vmem:[#allocation1] ss:$9 sm:$0xff] %v3929_v28  ;;  %v3941_v33 = vperm.slane %v3671_v25, 4  ;;  %v3942_v36 = vperm.slane %v3671_v25, 5  ;;  %v3943_v15 = vperm.slane %v3671_v25, 6  ;;  %v3944_v45 = vperm.slane %v3671_v25, 7 }
 0x653   : > { %4220 = vst [vmem:[#allocation1 + $0x1] ss:$9 sm:$0xff] %v3930_v57 }
 0x654   : > { %4221 = vst [vmem:[#allocation1 + $0x2] ss:$9 sm:$0xff] %v3931_v32 }
 0x655   : > { %4222 = vst [vmem:[#allocation1 + $0x3] ss:$9 sm:$0xff] %v3932_v62 }
 0x656   : > { %4223 = vst [vmem:[#allocation1 + $0x4] ss:$9 sm:$0xff] %v3933_v40 }
 0x657   : > { %4224 = vst [vmem:[#allocation1 + $0x5] ss:$9 sm:$0xff] %v3934_v53 }
 0x658   : > { %4225 = vst [vmem:[#allocation1 + $0x6] ss:$9 sm:$0xff] %v3935_v52 }
 0x659   : > { %4226 = vst [vmem:[#allocation1 + $0x7] ss:$9 sm:$0xff] %v3936_v5 }
 0x65d   : > { %v3677_v59 = vpop.xlane.xlu0 %3676 }
 0x65e   : > { %v3953_v49 = vperm.slane %v3677_v59, 0  ;;  %v3954_v60 = vperm.slane %v3677_v59, 1  ;;  %v3955_v14 = vperm.slane %v3677_v59, 2  ;;  %v3956_v31 = vperm.slane %v3677_v59, 3 }
 0x65f   : > { %v3957_v61 = vperm.slane %v3677_v59, 4  ;;  %v3958_v44 = vperm.slane %v3677_v59, 5  ;;  %v3959_v42 = vperm.slane %v3677_v59, 6  ;;  %v3960_v30 = vperm.slane %v3677_v59, 7 }
 0x660   : > { %v4227_v38 = vld [vmem:[#allocation1] sm:$0xff] }
 0x661   : > { %4346 = vperm.xlu2 %5502, %v4227_v38   ;;  %4228 = vst [vmem:[#allocation1] ss:$9 sm:$0xff] %v3937_v1 }
 0x662   : > { %4229 = vst [vmem:[#allocation1 + $0x1] ss:$9 sm:$0xff] %v3938_v47 }
 0x663   : > { %4230 = vst [vmem:[#allocation1 + $0x2] ss:$9 sm:$0xff] %v3939_v34 }
 0x664   : > { %4231 = vst [vmem:[#allocation1 + $0x3] ss:$9 sm:$0xff] %v3940_v26 }
 0x665   : > { %4232 = vst [vmem:[#allocation1 + $0x4] ss:$9 sm:$0xff] %v3941_v33 }
 0x666   : > { %4233 = vst [vmem:[#allocation1 + $0x5] ss:$9 sm:$0xff] %v3942_v36 }
 0x667   : > { %4234 = vst [vmem:[#allocation1 + $0x6] ss:$9 sm:$0xff] %v3943_v15 }
 0x668   : > { %4235 = vst [vmem:[#allocation1 + $0x7] ss:$9 sm:$0xff] %v3944_v45  ;;  %v4305_v8 = vpop.permute.xlu1 %4304 }
 0x669   : > { %v4412_v51 = vperm.slane %v4305_v8, %v7532_v19 }
 0x66b   : > { %v4414_v20 = vsel %vm4413_vm15, %v4412_v51, %v4410_v27 }
 0x66c   : > { %v7541_v4 = vsel %vm4417_vm1, %v4416_v24, %v4414_v20 }
 0x66f   : > { %v4236_v21 = vld [vmem:[#allocation1] sm:$0xff] }
 0x670   : > { %4349 = vperm.xlu1 %5504, %v4236_v21   ;;  %v4317_v1 = vpop.permute.xlu0 %4316 }
 0x671   : > { %v4424_v33 = vperm.slane %v4317_v1, %v7361_v6 }
 0x677   : > { %v3674_v9 = vpop.xlane.xlu2 %3673 }
 0x678   : > { %v3945_v3 = vperm.slane %v3674_v9, 0  ;;  %v3946_v11 = vperm.slane %v3674_v9, 1  ;;  %v3947_v29 = vperm.slane %v3674_v9, 2  ;;  %v3948_v37 = vperm.slane %v3674_v9, 3  ;;  %v4326_v26 = vpop.permute.xlu0 %4325 }
 0x679   : > { %v3949_v18 = vperm.slane %v3674_v9, 4  ;;  %v3950_v13 = vperm.slane %v3674_v9, 5  ;;  %v3951_v41 = vperm.slane %v3674_v9, 6  ;;  %v3952_v48 = vperm.slane %v3674_v9, 7 }
 0x67a   : > { %4237 = vst [vmem:[#allocation1] ss:$9 sm:$0xff] %v3945_v3  ;;  %v4430_v9 = vperm.slane %v4326_v26, %v7406_v23 }
 0x67b   : > { %4238 = vst [vmem:[#allocation1 + $0x1] ss:$9 sm:$0xff] %v3946_v11 }
 0x67c   : > { %4239 = vst [vmem:[#allocation1 + $0x2] ss:$9 sm:$0xff] %v3947_v29 }
 0x67d   : > { %4240 = vst [vmem:[#allocation1 + $0x3] ss:$9 sm:$0xff] %v3948_v37 }
 0x67e   : > { %4241 = vst [vmem:[#allocation1 + $0x4] ss:$9 sm:$0xff] %v3949_v18 }
 0x67f   : > { %4242 = vst [vmem:[#allocation1 + $0x5] ss:$9 sm:$0xff] %v3950_v13  ;;  %v4311_v5 = vpop.permute.xlu2 %4310 }
 0x680   : > { %4243 = vst [vmem:[#allocation1 + $0x6] ss:$9 sm:$0xff] %v3951_v41 }
 0x681   : > { %4244 = vst [vmem:[#allocation1 + $0x7] ss:$9 sm:$0xff] %v3952_v48 }
 0x687   : > { %v4320_v47 = vpop.permute.xlu2 %4319 }
 0x688   : > { %v4245_v22 = vld [vmem:[#allocation1] sm:$0xff]  ;;  %v4426_v51 = vperm.slane %v4320_v47, %v7364_v35 }
 0x689   : > { %4352 = vperm.xlu0 %5503, %v4245_v22   ;;  %4246 = vst [vmem:[#allocation1] ss:$9 sm:$0xff] %v3953_v49 }
 0x68a   : > { %4247 = vst [vmem:[#allocation1 + $0x1] ss:$9 sm:$0xff] %v3954_v60 }
 0x68b   : > { %4248 = vst [vmem:[#allocation1 + $0x2] ss:$9 sm:$0xff] %v3955_v14 }
 0x68c   : > { %4249 = vst [vmem:[#allocation1 + $0x3] ss:$9 sm:$0xff] %v3956_v31 }
 0x68d   : > { %4250 = vst [vmem:[#allocation1 + $0x4] ss:$9 sm:$0xff] %v3957_v61 }
 0x68e   : > { %4251 = vst [vmem:[#allocation1 + $0x5] ss:$9 sm:$0xff] %v3958_v44 }
 0x68f   : > { %4252 = vst [vmem:[#allocation1 + $0x6] ss:$9 sm:$0xff] %v3959_v42  ;;  %v4329_v36 = vpop.permute.xlu2 %4328 }
 0x690   : > { %4253 = vst [vmem:[#allocation1 + $0x7] ss:$9 sm:$0xff] %v3960_v30  ;;  %v4432_v6 = vperm.slane %v4329_v36, %v7421_v0 }
 0x693   : > { %v3680_v17 = vpop.xlane.xlu1 %3679 }
 0x694   : > { %v3961_v27 = vperm.slane %v3680_v17, 0  ;;  %v3962_v2 = vperm.slane %v3680_v17, 1  ;;  %v3963_v28 = vperm.slane %v3680_v17, 2  ;;  %v3964_v57 = vperm.slane %v3680_v17, 3 }
 0x695   : > { %v3965_v32 = vperm.slane %v3680_v17, 4  ;;  %v3966_v62 = vperm.slane %v3680_v17, 5  ;;  %v3967_v40 = vperm.slane %v3680_v17, 6  ;;  %v3968_v53 = vperm.slane %v3680_v17, 7 }
 0x697   : > { %v4254_v50 = vld [vmem:[#allocation1] sm:$0xff]  ;;  %v4335_v20 = vpop.permute.xlu0 %4334  ;;  %v4338_v11 = vpop.permute.xlu2 %4337 }
 0x698   : > { %4355 = vperm.xlu2 %5502, %v4254_v50   ;;  %4255 = vst [vmem:[#allocation1] ss:$9 sm:$0xff] %v3961_v27  ;;  %v4436_v18 = vperm.slane %v4335_v20, %v7472_v56 }
 0x699   : > { %4256 = vst [vmem:[#allocation1 + $0x1] ss:$9 sm:$0xff] %v3962_v2 }
 0x69a   : > { %4257 = vst [vmem:[#allocation1 + $0x2] ss:$9 sm:$0xff] %v3963_v28 }
 0x69b   : > { %4258 = vst [vmem:[#allocation1 + $0x3] ss:$9 sm:$0xff] %v3964_v57 }
 0x69c   : > { %4259 = vst [vmem:[#allocation1 + $0x4] ss:$9 sm:$0xff] %v3965_v32 }
 0x69d   : > { %4260 = vst [vmem:[#allocation1 + $0x5] ss:$9 sm:$0xff] %v3966_v62 }
 0x69e   : > { %4261 = vst [vmem:[#allocation1 + $0x6] ss:$9 sm:$0xff] %v3967_v40 }
 0x69f   : > { %4262 = vst [vmem:[#allocation1 + $0x7] ss:$9 sm:$0xff] %v3968_v53 }
 0x6a6   : > { %v4263_v52 = vld [vmem:[#allocation1] sm:$0xff] }
 0x6a7   : > { %4358 = vperm.xlu1 %5504, %v4263_v52  }
 0x6ab   : > { %v4314_v25 = vpop.permute.xlu1 %4313 }
 0x6ac   : > { %v4423_v38 = vperm.slane %v4314_v25, %v7356_v10 }
 0x6ae   : > { %v4425_v15 = vsel %vm4365_vm3, %v4424_v33, %v4423_v38  ;;  %vm4459_vm3 = vcmp.lt.s32.totalorder %v4360_v7, 256 }
 0x6af   : > { %v4427_v21 = vsel %vm4369_vm4, %v4426_v51, %v4425_v15 }
 0x6b3   : > { %v4323_v34 = vpop.permute.xlu1 %4322 }
 0x6b4   : > { %v4428_v45 = vperm.slane %v4323_v34, %v7395_v46 }
 0x6b6   : > { %v4429_v63 = vsel %vm4373_vm5, %v4428_v45, %v4427_v21 }
 0x6b7   : > { %v4431_v24 = vsel %vm4377_vm6, %v4430_v9, %v4429_v63 }
 0x6b8   : > { %v4433_v46 = vsel %vm4381_vm7, %v4432_v6, %v4431_v24 }
 0x6bb   : > { %v4332_v8 = vpop.permute.xlu1 %4331  ;;  %v4347_v41 = vpop.permute.xlu2 %4346 }
 0x6bc   : > { %v4434_v3 = vperm.slane %v4332_v8, %v7458_v39  ;;  %v4438_v39 = vperm.slane %v4338_v11, %v7495_v16  ;;  %v4444_v14 = vperm.slane %v4347_v41, %v7520_v43  ;;  %v4419_v16 = vadd.s32 4294967176, %v7356_v10 }
 0x6be   : > { %v4435_v35 = vsel %vm4385_vm8, %v4434_v3, %v4433_v46 }
 0x6bf   : > { %v4437_v23 = vsel %vm4389_vm9, %v4436_v18, %v4435_v35 }
 0x6c0   : > { %v4439_v0 = vsel %vm4393_vm10, %v4438_v39, %v4437_v23 }
 0x6c3   : > { %v4341_v29 = vpop.permute.xlu1 %4340 }
 0x6c4   : > { %v4344_v37 = vpop.permute.xlu0 %4343  ;;  %v4440_v13 = vperm.slane %v4341_v29, %v7499_v12 }
 0x6c5   : > { %v4442_v49 = vperm.slane %v4344_v37, %v7512_v55 }
 0x6c6   : > { %v4441_v48 = vsel %vm4397_vm11, %v4440_v13, %v4439_v0 }
 0x6c7   : > { %v4443_v22 = vsel %vm4401_vm12, %v4442_v49, %v4441_v48 }
 0x6c8   : > { %v4445_v31 = vsel %vm4405_vm13, %v4444_v14, %v4443_v22 }
 0x6e2   : > { %v4350_v59 = vpop.permute.xlu1 %4349 }
 0x6e3   : > { %v4446_v56 = vperm.slane %v4350_v59, %v7526_v58 }
 0x6e5   : > { %v4447_v55 = vsel %vm4409_vm14, %v4446_v56, %v4445_v31 }
 0x6f2   : > { %v4356_v61 = vpop.permute.xlu2 %4355 }
 0x6f3   : > { %v4450_v43 = vperm.slane %v4356_v61, %v7537_v54 }
 0x6fb   : > { %v4353_v60 = vpop.permute.xlu0 %4352 }
 0x6fc   : > { %v4448_v12 = vperm.slane %v4353_v60, %v7532_v19  ;;  %v4420_v19 = vperm.slane %v4311_v5, %v4419_v16 }
 0x6fe   : > { %v4449_v44 = vsel %vm4413_vm15, %v4448_v12, %v4447_v55  ;;  %v4422_v27 = vsel %vm4421_vm2, %v4420_v19, %v7541_v4 }
 0x6ff   : > { %v4451_v10 = vsel %vm4417_vm1, %v4450_v43, %v4449_v44 }
 0x719   : > { %v4359_v58 = vpop.permute.xlu1 %4358 }
 0x71a   : > { %v4452_v42 = vperm.slane %v4359_v58, %v4419_v16 }
 0x71c   : > { %v4453_v30 = vsel %vm4421_vm2, %v4452_v42, %v4451_v10 }
 0x71d   : > { %v4454_v17 = vrot.slane %v4453_v30, 7 }
 0x71f   : > { %v4455_v54 = vsel %vm744_vm0, %v4422_v27, %v4454_v17 }
 0x720   : > { %4461 = vst.msk [vmem:[%s261_s25] sm:$0x3] %vm4459_vm3, %v4455_v54 }
 0x721   : > { %5553 = shalt.err (!%p5550_p3)
}
 0x722   : > { %5462 = dma.vmem_to_hbm [thread:$0]  (%p5664_p5), %s4476_s15, 32, %s4478_s17, %s4463_s18  }
 0x723 PF: > { %p5468_p4 = scmp.ge.s32.totalorder %s5588_s24, 2  ;;  %s4489_s9 = sand.u32 1, %s5576_s21  }
 0x724   : > { %s4490_s11 = scalar_lea.sflag [#allocation3], %s4489_s9 }
 0x725   : > { %p5465_p7 = pnand %p5468_p4, %p5668_p6 }
 0x727   : > { %p5466_p8 = pneg %p5465_p7 }
 0x729   : > { %5571 = dma.done.wait (%p5466_p8), %s4490_s11, 32  }
 0x72a   : > { %5573 = vsyncadd (%p5466_p8), %s4490_s11, 4294967264  ;;  %p16_p9 = scmp.ge.s32.totalorder %s5651_s27, 4   ;;  %s7795_s21 = smov %s5580_s22 }
 0x72b   : > { %s7796_s22 = smov %s5584_s23  ;;  %s7797_s23 = smov %s5662_s30 }
 0x72c   : > { %s7798_s24 = smov %s5651_s27  ;;  %18 = sbr.rel (!%p16_p9) target bundleno = 3 (0x3), region = 89 }
 0x731   :  { %4496 = vsyncpa [#allocation3], 1 }
 0x732   :  { %4498 = vsyncpa [#allocation3 + $0x1], 1 }

</bundles_post_ra>
